<compile_context>
chip_gen: v6e
topology: v6e:2x2x1
jax: 0.10.0
libtpu: 0.0.40
codegen_flags: <defaults>
</compile_context>

<pallas_src>
import jax
import jax.numpy as jnp
from jax.experimental import pallas as pl
from jax.experimental.pallas import tpu as pltpu

BN_EPS = 1e-5
CK_CHUNK = 16          # bf16 sublane-packing aligned chunk for the LC reduce


def net_one_kernel(x_ref, wsign_ref, lcb_ref, gamma_ref, beta_ref,
                   wfc_ref, bfc_ref, wscale_ref, logits_ref, xint_ref):
    n, ckp, p = x_ref.shape          # (N, CK_pad, P) f32 im2col patches
    oc = wsign_ref.shape[0]          # (OC, CK_pad, P) bf16 sign(w) in {-1,0,+1}
    w_scale = wscale_ref[0]          # scalar mean|w| (SMEM, f32)

    # ---- LocallyConnected2d: acc[n,oc,p] = sum_ck x[n,ck,p] * sign(w)[oc,ck,p]
    # VPU fmas; operands read from VMEM refs in packing-aligned chunks so only
    # the (N, OC, P) accumulator stays live across the whole reduction.
    acc = jnp.zeros((n, oc, p), jnp.float32)
    for c0 in range(0, ckp, CK_CHUNK):
        xs = x_ref[:, pl.ds(c0, CK_CHUNK), :]        # (N, 16, P)  f32
        ws = wsign_ref[:, pl.ds(c0, CK_CHUNK), :]    # (OC, 16, P) bf16
        for t in range(CK_CHUNK):
            xt = xs[:, t, :]                         # (N, P)
            wt = ws[:, t, :].astype(jnp.float32)     # (OC, P)
            acc = acc + xt[:, None, :] * wt[None, :, :]

    # binarized weight = sign(w) * mean|w|; apply the scalar once, add LC bias
    out = acc * w_scale + lcb_ref[...][None, :, :]   # (N, OC, P)

    # ---- BatchNorm2d (training batch stats, biased var), two-pass / centered
    inv_np = 1.0 / float(n * p)
    mean = jnp.sum(jnp.sum(out, axis=2, keepdims=True),
                   axis=0, keepdims=True) * inv_np                  # (1, OC, 1)
    cent = out - mean
    var = jnp.sum(jnp.sum(cent * cent, axis=2, keepdims=True),
                  axis=0, keepdims=True) * inv_np
    scale = gamma_ref[...][None, :, :] * jax.lax.rsqrt(var + BN_EPS)
    bn = cent * scale + beta_ref[...][None, :, :]                   # (N, OC, P)

    # ---- relu -> Binarize(det, allow_scale) -> relu
    # r = relu(bn) >= 0 so sign(r/s)*s == (bn > 0) * s, and the outer relu is a
    # no-op. s = mean(|r|) over all elements.
    r = jnp.maximum(bn, 0.0)
    a_scale = jnp.sum(r) * (1.0 / float(n * oc * p))
    x_internal = jnp.where(bn > 0.0, a_scale, 0.0)                  # (N, OC, P)
    xint_ref[...] = x_internal

    # ---- lastfc: single long-K MXU dot (K = OC*P), lane-dense padded logits.
    # Flatten (N, OC, P) -> (N, OC*P) by concatenating per-channel lane slices
    # (128-aligned boundaries; matches torch's (OC, H, W) flatten order).
    xflat = jnp.concatenate([x_internal[:, c, :] for c in range(oc)], axis=1)
    logits = jnp.dot(xflat.astype(jnp.bfloat16), wfc_ref[...],
                     preferred_element_type=jnp.float32)            # (N, CLS_PAD)
    logits_ref[...] = logits + bfc_ref[...]


def net_one_forward(x, lc_weight, lc_bias, bn_gamma, bn_beta, fc_weight, fc_bias,
                    kernel_size=3):
    N, C, H, W = x.shape
    _, OC, _, OH, OW, K2 = lc_weight.shape
    assert (OH, OW) == (H, W) and K2 == kernel_size ** 2
    P = OH * OW
    CK = C * K2
    CK_pad = ((CK + CK_CHUNK - 1) // CK_CHUNK) * CK_CHUNK
    pad = (kernel_size - 1) // 2
    CLS = fc_weight.shape[0]
    CLS_PAD = ((CLS + 127) // 128) * 128             # lane-dense logits slab

    # --- im2col glue (matches torch: F.pad + unfold(2,kh).unfold(3,kw).view) ---
    xpad = jnp.pad(x, ((0, 0), (0, 0), (pad, pad), (pad, pad)))
    pats = jnp.stack([xpad[:, :, a:a + H, b:b + W]
                      for a in range(kernel_size) for b in range(kernel_size)],
                     axis=2)                                    # (N, C, K2, H, W)
    x_r = pats.reshape(N, CK, P).astype(jnp.float32)
    x_r = jnp.pad(x_r, ((0, 0), (0, CK_pad - CK), (0, 0)))      # zero rows: no effect

    # --- weight binarize hoisted out of the kernel (independent of x) ---
    # Binarize: sign(w / mean|w|) * mean|w| == sign(w) * mean|w| (scale > 0).
    # Signs are exact in bf16; the scalar scale goes to SMEM in f32.
    w_r = jnp.transpose(lc_weight[0], (0, 1, 4, 2, 3)).reshape(OC, CK, P).astype(jnp.float32)
    w_scale = jnp.mean(jnp.abs(w_r)).reshape(1)                 # (1,) f32 scalar
    w_sign = jnp.pad(jnp.sign(w_r), ((0, 0), (0, CK_pad - CK), (0, 0))).astype(jnp.bfloat16)

    lcb = lc_bias[0].reshape(OC, P).astype(jnp.float32)
    gamma = bn_gamma.reshape(OC, 1).astype(jnp.float32)
    beta = bn_beta.reshape(OC, 1).astype(jnp.float32)

    # lastfc weight flattened to (OC*P, CLS_PAD): torch in_features order is
    # (OC, H, W) row-major == oc*P + p, identical to the kernel's concat order.
    wfc = jnp.pad(fc_weight.astype(jnp.float32).T, ((0, 0), (0, CLS_PAD - CLS)))
    wfc = wfc.astype(jnp.bfloat16)                              # (OC*P, CLS_PAD)
    bfc = jnp.pad(fc_bias.astype(jnp.float32), (0, CLS_PAD - CLS)).reshape(1, CLS_PAD)

    logits_pad, xint = pl.pallas_call(
        net_one_kernel,
        out_shape=(jax.ShapeDtypeStruct((N, CLS_PAD), jnp.float32),
                   jax.ShapeDtypeStruct((N, OC, P), jnp.float32)),
        in_specs=[
            pl.BlockSpec(memory_space=pltpu.MemorySpace.VMEM),   # x patches (f32)
            pl.BlockSpec(memory_space=pltpu.MemorySpace.VMEM),   # sign(w) (bf16)
            pl.BlockSpec(memory_space=pltpu.MemorySpace.VMEM),   # LC bias
            pl.BlockSpec(memory_space=pltpu.MemorySpace.VMEM),   # gamma
            pl.BlockSpec(memory_space=pltpu.MemorySpace.VMEM),   # beta
            pl.BlockSpec(memory_space=pltpu.MemorySpace.VMEM),   # fc weight (bf16)
            pl.BlockSpec(memory_space=pltpu.MemorySpace.VMEM),   # fc bias
            pl.BlockSpec(memory_space=pltpu.MemorySpace.SMEM),   # w_scale scalar
        ],
        out_specs=(
            pl.BlockSpec(memory_space=pltpu.MemorySpace.VMEM),   # logits (padded)
            pl.BlockSpec(memory_space=pltpu.MemorySpace.VMEM),   # x_internal
        ),
        compiler_params=pltpu.CompilerParams(
            vmem_limit_bytes=32 * 1024 * 1024,
        ),
    )(x_r, w_sign, lcb, gamma, beta, wfc, bfc, w_scale)

    logits = logits_pad[:, :CLS]
    x_internal = xint.reshape(N, OC, OH, OW)
    return logits, x_internal


if __name__ == "__main__":
    # Small shapes consistent with the module: stride=1, pad=(k-1)/2 => output_size == H == W
    N, C, H, W = 2, 4, 16, 16
    OC = 16                 # layer_channels[0]
    K = 3                   # kernel_size
    CLS = 10                # class_num
    F = OC * H * W          # lastfc in_features

    key = jax.random.PRNGKey(0)
    k = jax.random.split(key, 5)
    x = jax.random.normal(k[0], (N, C, H, W), jnp.float32)
    lc_weight = jax.random.normal(k[1], (1, OC, C, H, W, K * K), jnp.float32)  # torch.randn
    lc_bias = jax.random.normal(k[2], (1, OC, H, W), jnp.float32)              # torch.randn
    bn_gamma = jnp.ones((OC,), jnp.float32)    # BatchNorm2d default affine init
    bn_beta = jnp.zeros((OC,), jnp.float32)
    bound = 1.0 / (F ** 0.5)                   # nn.Linear default init range
    fc_weight = jax.random.uniform(k[3], (CLS, F), jnp.float32, -bound, bound)
    fc_bias = jax.random.uniform(k[4], (CLS,), jnp.float32, -bound, bound)

    logits, x_internal = net_one_forward(x, lc_weight, lc_bias, bn_gamma, bn_beta,
                                         fc_weight, fc_bias, kernel_size=K)
    jax.block_until_ready((logits, x_internal))
    assert logits.shape == (N, CLS)
    assert x_internal.shape == (N, OC, H, W)
    assert bool(jnp.all(jnp.isfinite(logits))) and bool(jnp.all(jnp.isfinite(x_internal)))
    print("KERNEL_OK")
</pallas_src>

<mosaic_0001>
module attributes {stable_mosaic.version = 11 : i64} {
  func.func @net_one_kernel(%arg0: memref<2x48x256xf32, #tpu.memory_space<vmem>>, %arg1: memref<16x48x256xbf16, #tpu.memory_space<vmem>>, %arg2: memref<16x256xf32, #tpu.memory_space<vmem>>, %arg3: memref<16x1xf32, #tpu.memory_space<vmem>>, %arg4: memref<16x1xf32, #tpu.memory_space<vmem>>, %arg5: memref<4096x128xbf16, #tpu.memory_space<vmem>>, %arg6: memref<1x128xf32, #tpu.memory_space<vmem>>, %arg7: memref<1xf32, #tpu.memory_space<smem>>, %arg8: memref<2x128xf32, #tpu.memory_space<vmem>>, %arg9: memref<2x16x256xf32, #tpu.memory_space<vmem>>) attributes {dimension_semantics = [], scalar_prefetch = 0 : i64, scratch_operands = 0 : i64, tpu.core_type = #tpu.core_type<tc>} {
    %c0 = arith.constant 0 : index
    %0 = memref.load %arg7[%c0] : memref<1xf32, #tpu.memory_space<smem>>
    %cst = arith.constant 0.000000e+00 : f32
    %1 = vector.broadcast %cst : f32 to vector<2x16x256xf32>
    %c0_0 = arith.constant 0 : index
    %c0_1 = arith.constant 0 : index
    %c0_2 = arith.constant 0 : index
    %2 = vector.load %arg0[%c0_0, %c0_1, %c0_2] : memref<2x48x256xf32, #tpu.memory_space<vmem>>, vector<2x16x256xf32>
    %c0_3 = arith.constant 0 : index
    %c0_4 = arith.constant 0 : index
    %c0_5 = arith.constant 0 : index
    %3 = vector.load %arg1[%c0_3, %c0_4, %c0_5] : memref<16x48x256xbf16, #tpu.memory_space<vmem>>, vector<16x16x256xbf16>
    %4 = vector.extract_strided_slice %2 {offsets = [0, 0, 0], sizes = [2, 1, 256], strides = [1, 1, 1]} : vector<2x16x256xf32> to vector<2x1x256xf32>
    %5 = vector.shape_cast %4 : vector<2x1x256xf32> to vector<2x256xf32>
    %6 = vector.extract_strided_slice %3 {offsets = [0, 0, 0], sizes = [16, 1, 256], strides = [1, 1, 1]} : vector<16x16x256xbf16> to vector<16x1x256xbf16>
    %7 = vector.shape_cast %6 : vector<16x1x256xbf16> to vector<16x256xbf16>
    %8 = arith.extf %7 : vector<16x256xbf16> to vector<16x256xf32>
    %9 = vector.shape_cast %5 : vector<2x256xf32> to vector<2x1x256xf32>
    %10 = vector.shape_cast %8 : vector<16x256xf32> to vector<1x16x256xf32>
    %11 = vector.broadcast %9 : vector<2x1x256xf32> to vector<2x16x256xf32>
    %12 = vector.broadcast %10 : vector<1x16x256xf32> to vector<2x16x256xf32>
    %13 = arith.mulf %11, %12 : vector<2x16x256xf32>
    %14 = arith.addf %1, %13 : vector<2x16x256xf32>
    %15 = vector.extract_strided_slice %2 {offsets = [0, 1, 0], sizes = [2, 1, 256], strides = [1, 1, 1]} : vector<2x16x256xf32> to vector<2x1x256xf32>
    %16 = vector.shape_cast %15 : vector<2x1x256xf32> to vector<2x256xf32>
    %17 = vector.extract_strided_slice %3 {offsets = [0, 1, 0], sizes = [16, 1, 256], strides = [1, 1, 1]} : vector<16x16x256xbf16> to vector<16x1x256xbf16>
    %18 = vector.shape_cast %17 : vector<16x1x256xbf16> to vector<16x256xbf16>
    %19 = arith.extf %18 : vector<16x256xbf16> to vector<16x256xf32>
    %20 = vector.shape_cast %16 : vector<2x256xf32> to vector<2x1x256xf32>
    %21 = vector.shape_cast %19 : vector<16x256xf32> to vector<1x16x256xf32>
    %22 = vector.broadcast %20 : vector<2x1x256xf32> to vector<2x16x256xf32>
    %23 = vector.broadcast %21 : vector<1x16x256xf32> to vector<2x16x256xf32>
    %24 = arith.mulf %22, %23 : vector<2x16x256xf32>
    %25 = arith.addf %14, %24 : vector<2x16x256xf32>
    %26 = vector.extract_strided_slice %2 {offsets = [0, 2, 0], sizes = [2, 1, 256], strides = [1, 1, 1]} : vector<2x16x256xf32> to vector<2x1x256xf32>
    %27 = vector.shape_cast %26 : vector<2x1x256xf32> to vector<2x256xf32>
    %28 = vector.extract_strided_slice %3 {offsets = [0, 2, 0], sizes = [16, 1, 256], strides = [1, 1, 1]} : vector<16x16x256xbf16> to vector<16x1x256xbf16>
    %29 = vector.shape_cast %28 : vector<16x1x256xbf16> to vector<16x256xbf16>
    %30 = arith.extf %29 : vector<16x256xbf16> to vector<16x256xf32>
    %31 = vector.shape_cast %27 : vector<2x256xf32> to vector<2x1x256xf32>
    %32 = vector.shape_cast %30 : vector<16x256xf32> to vector<1x16x256xf32>
    %33 = vector.broadcast %31 : vector<2x1x256xf32> to vector<2x16x256xf32>
    %34 = vector.broadcast %32 : vector<1x16x256xf32> to vector<2x16x256xf32>
    %35 = arith.mulf %33, %34 : vector<2x16x256xf32>
    %36 = arith.addf %25, %35 : vector<2x16x256xf32>
    %37 = vector.extract_strided_slice %2 {offsets = [0, 3, 0], sizes = [2, 1, 256], strides = [1, 1, 1]} : vector<2x16x256xf32> to vector<2x1x256xf32>
    %38 = vector.shape_cast %37 : vector<2x1x256xf32> to vector<2x256xf32>
    %39 = vector.extract_strided_slice %3 {offsets = [0, 3, 0], sizes = [16, 1, 256], strides = [1, 1, 1]} : vector<16x16x256xbf16> to vector<16x1x256xbf16>
    %40 = vector.shape_cast %39 : vector<16x1x256xbf16> to vector<16x256xbf16>
    %41 = arith.extf %40 : vector<16x256xbf16> to vector<16x256xf32>
    %42 = vector.shape_cast %38 : vector<2x256xf32> to vector<2x1x256xf32>
    %43 = vector.shape_cast %41 : vector<16x256xf32> to vector<1x16x256xf32>
    %44 = vector.broadcast %42 : vector<2x1x256xf32> to vector<2x16x256xf32>
    %45 = vector.broadcast %43 : vector<1x16x256xf32> to vector<2x16x256xf32>
    %46 = arith.mulf %44, %45 : vector<2x16x256xf32>
    %47 = arith.addf %36, %46 : vector<2x16x256xf32>
    %48 = vector.extract_strided_slice %2 {offsets = [0, 4, 0], sizes = [2, 1, 256], strides = [1, 1, 1]} : vector<2x16x256xf32> to vector<2x1x256xf32>
    %49 = vector.shape_cast %48 : vector<2x1x256xf32> to vector<2x256xf32>
    %50 = vector.extract_strided_slice %3 {offsets = [0, 4, 0], sizes = [16, 1, 256], strides = [1, 1, 1]} : vector<16x16x256xbf16> to vector<16x1x256xbf16>
    %51 = vector.shape_cast %50 : vector<16x1x256xbf16> to vector<16x256xbf16>
    %52 = arith.extf %51 : vector<16x256xbf16> to vector<16x256xf32>
    %53 = vector.shape_cast %49 : vector<2x256xf32> to vector<2x1x256xf32>
    %54 = vector.shape_cast %52 : vector<16x256xf32> to vector<1x16x256xf32>
    %55 = vector.broadcast %53 : vector<2x1x256xf32> to vector<2x16x256xf32>
    %56 = vector.broadcast %54 : vector<1x16x256xf32> to vector<2x16x256xf32>
    %57 = arith.mulf %55, %56 : vector<2x16x256xf32>
    %58 = arith.addf %47, %57 : vector<2x16x256xf32>
    %59 = vector.extract_strided_slice %2 {offsets = [0, 5, 0], sizes = [2, 1, 256], strides = [1, 1, 1]} : vector<2x16x256xf32> to vector<2x1x256xf32>
    %60 = vector.shape_cast %59 : vector<2x1x256xf32> to vector<2x256xf32>
    %61 = vector.extract_strided_slice %3 {offsets = [0, 5, 0], sizes = [16, 1, 256], strides = [1, 1, 1]} : vector<16x16x256xbf16> to vector<16x1x256xbf16>
    %62 = vector.shape_cast %61 : vector<16x1x256xbf16> to vector<16x256xbf16>
    %63 = arith.extf %62 : vector<16x256xbf16> to vector<16x256xf32>
    %64 = vector.shape_cast %60 : vector<2x256xf32> to vector<2x1x256xf32>
    %65 = vector.shape_cast %63 : vector<16x256xf32> to vector<1x16x256xf32>
    %66 = vector.broadcast %64 : vector<2x1x256xf32> to vector<2x16x256xf32>
    %67 = vector.broadcast %65 : vector<1x16x256xf32> to vector<2x16x256xf32>
    %68 = arith.mulf %66, %67 : vector<2x16x256xf32>
    %69 = arith.addf %58, %68 : vector<2x16x256xf32>
    %70 = vector.extract_strided_slice %2 {offsets = [0, 6, 0], sizes = [2, 1, 256], strides = [1, 1, 1]} : vector<2x16x256xf32> to vector<2x1x256xf32>
    %71 = vector.shape_cast %70 : vector<2x1x256xf32> to vector<2x256xf32>
    %72 = vector.extract_strided_slice %3 {offsets = [0, 6, 0], sizes = [16, 1, 256], strides = [1, 1, 1]} : vector<16x16x256xbf16> to vector<16x1x256xbf16>
    %73 = vector.shape_cast %72 : vector<16x1x256xbf16> to vector<16x256xbf16>
    %74 = arith.extf %73 : vector<16x256xbf16> to vector<16x256xf32>
    %75 = vector.shape_cast %71 : vector<2x256xf32> to vector<2x1x256xf32>
    %76 = vector.shape_cast %74 : vector<16x256xf32> to vector<1x16x256xf32>
    %77 = vector.broadcast %75 : vector<2x1x256xf32> to vector<2x16x256xf32>
    %78 = vector.broadcast %76 : vector<1x16x256xf32> to vector<2x16x256xf32>
    %79 = arith.mulf %77, %78 : vector<2x16x256xf32>
    %80 = arith.addf %69, %79 : vector<2x16x256xf32>
    %81 = vector.extract_strided_slice %2 {offsets = [0, 7, 0], sizes = [2, 1, 256], strides = [1, 1, 1]} : vector<2x16x256xf32> to vector<2x1x256xf32>
    %82 = vector.shape_cast %81 : vector<2x1x256xf32> to vector<2x256xf32>
    %83 = vector.extract_strided_slice %3 {offsets = [0, 7, 0], sizes = [16, 1, 256], strides = [1, 1, 1]} : vector<16x16x256xbf16> to vector<16x1x256xbf16>
    %84 = vector.shape_cast %83 : vector<16x1x256xbf16> to vector<16x256xbf16>
    %85 = arith.extf %84 : vector<16x256xbf16> to vector<16x256xf32>
    %86 = vector.shape_cast %82 : vector<2x256xf32> to vector<2x1x256xf32>
    %87 = vector.shape_cast %85 : vector<16x256xf32> to vector<1x16x256xf32>
    %88 = vector.broadcast %86 : vector<2x1x256xf32> to vector<2x16x256xf32>
    %89 = vector.broadcast %87 : vector<1x16x256xf32> to vector<2x16x256xf32>
    %90 = arith.mulf %88, %89 : vector<2x16x256xf32>
    %91 = arith.addf %80, %90 : vector<2x16x256xf32>
    %92 = vector.extract_strided_slice %2 {offsets = [0, 8, 0], sizes = [2, 1, 256], strides = [1, 1, 1]} : vector<2x16x256xf32> to vector<2x1x256xf32>
    %93 = vector.shape_cast %92 : vector<2x1x256xf32> to vector<2x256xf32>
    %94 = vector.extract_strided_slice %3 {offsets = [0, 8, 0], sizes = [16, 1, 256], strides = [1, 1, 1]} : vector<16x16x256xbf16> to vector<16x1x256xbf16>
    %95 = vector.shape_cast %94 : vector<16x1x256xbf16> to vector<16x256xbf16>
    %96 = arith.extf %95 : vector<16x256xbf16> to vector<16x256xf32>
    %97 = vector.shape_cast %93 : vector<2x256xf32> to vector<2x1x256xf32>
    %98 = vector.shape_cast %96 : vector<16x256xf32> to vector<1x16x256xf32>
    %99 = vector.broadcast %97 : vector<2x1x256xf32> to vector<2x16x256xf32>
    %100 = vector.broadcast %98 : vector<1x16x256xf32> to vector<2x16x256xf32>
    %101 = arith.mulf %99, %100 : vector<2x16x256xf32>
    %102 = arith.addf %91, %101 : vector<2x16x256xf32>
    %103 = vector.extract_strided_slice %2 {offsets = [0, 9, 0], sizes = [2, 1, 256], strides = [1, 1, 1]} : vector<2x16x256xf32> to vector<2x1x256xf32>
    %104 = vector.shape_cast %103 : vector<2x1x256xf32> to vector<2x256xf32>
    %105 = vector.extract_strided_slice %3 {offsets = [0, 9, 0], sizes = [16, 1, 256], strides = [1, 1, 1]} : vector<16x16x256xbf16> to vector<16x1x256xbf16>
    %106 = vector.shape_cast %105 : vector<16x1x256xbf16> to vector<16x256xbf16>
    %107 = arith.extf %106 : vector<16x256xbf16> to vector<16x256xf32>
    %108 = vector.shape_cast %104 : vector<2x256xf32> to vector<2x1x256xf32>
    %109 = vector.shape_cast %107 : vector<16x256xf32> to vector<1x16x256xf32>
    %110 = vector.broadcast %108 : vector<2x1x256xf32> to vector<2x16x256xf32>
    %111 = vector.broadcast %109 : vector<1x16x256xf32> to vector<2x16x256xf32>
    %112 = arith.mulf %110, %111 : vector<2x16x256xf32>
    %113 = arith.addf %102, %112 : vector<2x16x256xf32>
    %114 = vector.extract_strided_slice %2 {offsets = [0, 10, 0], sizes = [2, 1, 256], strides = [1, 1, 1]} : vector<2x16x256xf32> to vector<2x1x256xf32>
    %115 = vector.shape_cast %114 : vector<2x1x256xf32> to vector<2x256xf32>
    %116 = vector.extract_strided_slice %3 {offsets = [0, 10, 0], sizes = [16, 1, 256], strides = [1, 1, 1]} : vector<16x16x256xbf16> to vector<16x1x256xbf16>
    %117 = vector.shape_cast %116 : vector<16x1x256xbf16> to vector<16x256xbf16>
    %118 = arith.extf %117 : vector<16x256xbf16> to vector<16x256xf32>
    %119 = vector.shape_cast %115 : vector<2x256xf32> to vector<2x1x256xf32>
    %120 = vector.shape_cast %118 : vector<16x256xf32> to vector<1x16x256xf32>
    %121 = vector.broadcast %119 : vector<2x1x256xf32> to vector<2x16x256xf32>
    %122 = vector.broadcast %120 : vector<1x16x256xf32> to vector<2x16x256xf32>
    %123 = arith.mulf %121, %122 : vector<2x16x256xf32>
    %124 = arith.addf %113, %123 : vector<2x16x256xf32>
    %125 = vector.extract_strided_slice %2 {offsets = [0, 11, 0], sizes = [2, 1, 256], strides = [1, 1, 1]} : vector<2x16x256xf32> to vector<2x1x256xf32>
    %126 = vector.shape_cast %125 : vector<2x1x256xf32> to vector<2x256xf32>
    %127 = vector.extract_strided_slice %3 {offsets = [0, 11, 0], sizes = [16, 1, 256], strides = [1, 1, 1]} : vector<16x16x256xbf16> to vector<16x1x256xbf16>
    %128 = vector.shape_cast %127 : vector<16x1x256xbf16> to vector<16x256xbf16>
    %129 = arith.extf %128 : vector<16x256xbf16> to vector<16x256xf32>
    %130 = vector.shape_cast %126 : vector<2x256xf32> to vector<2x1x256xf32>
    %131 = vector.shape_cast %129 : vector<16x256xf32> to vector<1x16x256xf32>
    %132 = vector.broadcast %130 : vector<2x1x256xf32> to vector<2x16x256xf32>
    %133 = vector.broadcast %131 : vector<1x16x256xf32> to vector<2x16x256xf32>
    %134 = arith.mulf %132, %133 : vector<2x16x256xf32>
    %135 = arith.addf %124, %134 : vector<2x16x256xf32>
    %136 = vector.extract_strided_slice %2 {offsets = [0, 12, 0], sizes = [2, 1, 256], strides = [1, 1, 1]} : vector<2x16x256xf32> to vector<2x1x256xf32>
    %137 = vector.shape_cast %136 : vector<2x1x256xf32> to vector<2x256xf32>
    %138 = vector.extract_strided_slice %3 {offsets = [0, 12, 0], sizes = [16, 1, 256], strides = [1, 1, 1]} : vector<16x16x256xbf16> to vector<16x1x256xbf16>
    %139 = vector.shape_cast %138 : vector<16x1x256xbf16> to vector<16x256xbf16>
    %140 = arith.extf %139 : vector<16x256xbf16> to vector<16x256xf32>
    %141 = vector.shape_cast %137 : vector<2x256xf32> to vector<2x1x256xf32>
    %142 = vector.shape_cast %140 : vector<16x256xf32> to vector<1x16x256xf32>
    %143 = vector.broadcast %141 : vector<2x1x256xf32> to vector<2x16x256xf32>
    %144 = vector.broadcast %142 : vector<1x16x256xf32> to vector<2x16x256xf32>
    %145 = arith.mulf %143, %144 : vector<2x16x256xf32>
    %146 = arith.addf %135, %145 : vector<2x16x256xf32>
    %147 = vector.extract_strided_slice %2 {offsets = [0, 13, 0], sizes = [2, 1, 256], strides = [1, 1, 1]} : vector<2x16x256xf32> to vector<2x1x256xf32>
    %148 = vector.shape_cast %147 : vector<2x1x256xf32> to vector<2x256xf32>
    %149 = vector.extract_strided_slice %3 {offsets = [0, 13, 0], sizes = [16, 1, 256], strides = [1, 1, 1]} : vector<16x16x256xbf16> to vector<16x1x256xbf16>
    %150 = vector.shape_cast %149 : vector<16x1x256xbf16> to vector<16x256xbf16>
    %151 = arith.extf %150 : vector<16x256xbf16> to vector<16x256xf32>
    %152 = vector.shape_cast %148 : vector<2x256xf32> to vector<2x1x256xf32>
    %153 = vector.shape_cast %151 : vector<16x256xf32> to vector<1x16x256xf32>
    %154 = vector.broadcast %152 : vector<2x1x256xf32> to vector<2x16x256xf32>
    %155 = vector.broadcast %153 : vector<1x16x256xf32> to vector<2x16x256xf32>
    %156 = arith.mulf %154, %155 : vector<2x16x256xf32>
    %157 = arith.addf %146, %156 : vector<2x16x256xf32>
    %158 = vector.extract_strided_slice %2 {offsets = [0, 14, 0], sizes = [2, 1, 256], strides = [1, 1, 1]} : vector<2x16x256xf32> to vector<2x1x256xf32>
    %159 = vector.shape_cast %158 : vector<2x1x256xf32> to vector<2x256xf32>
    %160 = vector.extract_strided_slice %3 {offsets = [0, 14, 0], sizes = [16, 1, 256], strides = [1, 1, 1]} : vector<16x16x256xbf16> to vector<16x1x256xbf16>
    %161 = vector.shape_cast %160 : vector<16x1x256xbf16> to vector<16x256xbf16>
    %162 = arith.extf %161 : vector<16x256xbf16> to vector<16x256xf32>
    %163 = vector.shape_cast %159 : vector<2x256xf32> to vector<2x1x256xf32>
    %164 = vector.shape_cast %162 : vector<16x256xf32> to vector<1x16x256xf32>
    %165 = vector.broadcast %163 : vector<2x1x256xf32> to vector<2x16x256xf32>
    %166 = vector.broadcast %164 : vector<1x16x256xf32> to vector<2x16x256xf32>
    %167 = arith.mulf %165, %166 : vector<2x16x256xf32>
    %168 = arith.addf %157, %167 : vector<2x16x256xf32>
    %169 = vector.extract_strided_slice %2 {offsets = [0, 15, 0], sizes = [2, 1, 256], strides = [1, 1, 1]} : vector<2x16x256xf32> to vector<2x1x256xf32>
    %170 = vector.shape_cast %169 : vector<2x1x256xf32> to vector<2x256xf32>
    %171 = vector.extract_strided_slice %3 {offsets = [0, 15, 0], sizes = [16, 1, 256], strides = [1, 1, 1]} : vector<16x16x256xbf16> to vector<16x1x256xbf16>
    %172 = vector.shape_cast %171 : vector<16x1x256xbf16> to vector<16x256xbf16>
    %173 = arith.extf %172 : vector<16x256xbf16> to vector<16x256xf32>
    %174 = vector.shape_cast %170 : vector<2x256xf32> to vector<2x1x256xf32>
    %175 = vector.shape_cast %173 : vector<16x256xf32> to vector<1x16x256xf32>
    %176 = vector.broadcast %174 : vector<2x1x256xf32> to vector<2x16x256xf32>
    %177 = vector.broadcast %175 : vector<1x16x256xf32> to vector<2x16x256xf32>
    %178 = arith.mulf %176, %177 : vector<2x16x256xf32>
    %179 = arith.addf %168, %178 : vector<2x16x256xf32>
    %c0_6 = arith.constant 0 : index
    %c16 = arith.constant 16 : index
    %c0_7 = arith.constant 0 : index
    %180 = vector.load %arg0[%c0_6, %c16, %c0_7] : memref<2x48x256xf32, #tpu.memory_space<vmem>>, vector<2x16x256xf32>
    %c0_8 = arith.constant 0 : index
    %c16_9 = arith.constant 16 : index
    %c0_10 = arith.constant 0 : index
    %181 = vector.load %arg1[%c0_8, %c16_9, %c0_10] : memref<16x48x256xbf16, #tpu.memory_space<vmem>>, vector<16x16x256xbf16>
    %182 = vector.extract_strided_slice %180 {offsets = [0, 0, 0], sizes = [2, 1, 256], strides = [1, 1, 1]} : vector<2x16x256xf32> to vector<2x1x256xf32>
    %183 = vector.shape_cast %182 : vector<2x1x256xf32> to vector<2x256xf32>
    %184 = vector.extract_strided_slice %181 {offsets = [0, 0, 0], sizes = [16, 1, 256], strides = [1, 1, 1]} : vector<16x16x256xbf16> to vector<16x1x256xbf16>
    %185 = vector.shape_cast %184 : vector<16x1x256xbf16> to vector<16x256xbf16>
    %186 = arith.extf %185 : vector<16x256xbf16> to vector<16x256xf32>
    %187 = vector.shape_cast %183 : vector<2x256xf32> to vector<2x1x256xf32>
    %188 = vector.shape_cast %186 : vector<16x256xf32> to vector<1x16x256xf32>
    %189 = vector.broadcast %187 : vector<2x1x256xf32> to vector<2x16x256xf32>
    %190 = vector.broadcast %188 : vector<1x16x256xf32> to vector<2x16x256xf32>
    %191 = arith.mulf %189, %190 : vector<2x16x256xf32>
    %192 = arith.addf %179, %191 : vector<2x16x256xf32>
    %193 = vector.extract_strided_slice %180 {offsets = [0, 1, 0], sizes = [2, 1, 256], strides = [1, 1, 1]} : vector<2x16x256xf32> to vector<2x1x256xf32>
    %194 = vector.shape_cast %193 : vector<2x1x256xf32> to vector<2x256xf32>
    %195 = vector.extract_strided_slice %181 {offsets = [0, 1, 0], sizes = [16, 1, 256], strides = [1, 1, 1]} : vector<16x16x256xbf16> to vector<16x1x256xbf16>
    %196 = vector.shape_cast %195 : vector<16x1x256xbf16> to vector<16x256xbf16>
    %197 = arith.extf %196 : vector<16x256xbf16> to vector<16x256xf32>
    %198 = vector.shape_cast %194 : vector<2x256xf32> to vector<2x1x256xf32>
    %199 = vector.shape_cast %197 : vector<16x256xf32> to vector<1x16x256xf32>
    %200 = vector.broadcast %198 : vector<2x1x256xf32> to vector<2x16x256xf32>
    %201 = vector.broadcast %199 : vector<1x16x256xf32> to vector<2x16x256xf32>
    %202 = arith.mulf %200, %201 : vector<2x16x256xf32>
    %203 = arith.addf %192, %202 : vector<2x16x256xf32>
    %204 = vector.extract_strided_slice %180 {offsets = [0, 2, 0], sizes = [2, 1, 256], strides = [1, 1, 1]} : vector<2x16x256xf32> to vector<2x1x256xf32>
    %205 = vector.shape_cast %204 : vector<2x1x256xf32> to vector<2x256xf32>
    %206 = vector.extract_strided_slice %181 {offsets = [0, 2, 0], sizes = [16, 1, 256], strides = [1, 1, 1]} : vector<16x16x256xbf16> to vector<16x1x256xbf16>
    %207 = vector.shape_cast %206 : vector<16x1x256xbf16> to vector<16x256xbf16>
    %208 = arith.extf %207 : vector<16x256xbf16> to vector<16x256xf32>
    %209 = vector.shape_cast %205 : vector<2x256xf32> to vector<2x1x256xf32>
    %210 = vector.shape_cast %208 : vector<16x256xf32> to vector<1x16x256xf32>
    %211 = vector.broadcast %209 : vector<2x1x256xf32> to vector<2x16x256xf32>
    %212 = vector.broadcast %210 : vector<1x16x256xf32> to vector<2x16x256xf32>
    %213 = arith.mulf %211, %212 : vector<2x16x256xf32>
    %214 = arith.addf %203, %213 : vector<2x16x256xf32>
    %215 = vector.extract_strided_slice %180 {offsets = [0, 3, 0], sizes = [2, 1, 256], strides = [1, 1, 1]} : vector<2x16x256xf32> to vector<2x1x256xf32>
    %216 = vector.shape_cast %215 : vector<2x1x256xf32> to vector<2x256xf32>
    %217 = vector.extract_strided_slice %181 {offsets = [0, 3, 0], sizes = [16, 1, 256], strides = [1, 1, 1]} : vector<16x16x256xbf16> to vector<16x1x256xbf16>
    %218 = vector.shape_cast %217 : vector<16x1x256xbf16> to vector<16x256xbf16>
    %219 = arith.extf %218 : vector<16x256xbf16> to vector<16x256xf32>
    %220 = vector.shape_cast %216 : vector<2x256xf32> to vector<2x1x256xf32>
    %221 = vector.shape_cast %219 : vector<16x256xf32> to vector<1x16x256xf32>
    %222 = vector.broadcast %220 : vector<2x1x256xf32> to vector<2x16x256xf32>
    %223 = vector.broadcast %221 : vector<1x16x256xf32> to vector<2x16x256xf32>
    %224 = arith.mulf %222, %223 : vector<2x16x256xf32>
    %225 = arith.addf %214, %224 : vector<2x16x256xf32>
    %226 = vector.extract_strided_slice %180 {offsets = [0, 4, 0], sizes = [2, 1, 256], strides = [1, 1, 1]} : vector<2x16x256xf32> to vector<2x1x256xf32>
    %227 = vector.shape_cast %226 : vector<2x1x256xf32> to vector<2x256xf32>
    %228 = vector.extract_strided_slice %181 {offsets = [0, 4, 0], sizes = [16, 1, 256], strides = [1, 1, 1]} : vector<16x16x256xbf16> to vector<16x1x256xbf16>
    %229 = vector.shape_cast %228 : vector<16x1x256xbf16> to vector<16x256xbf16>
    %230 = arith.extf %229 : vector<16x256xbf16> to vector<16x256xf32>
    %231 = vector.shape_cast %227 : vector<2x256xf32> to vector<2x1x256xf32>
    %232 = vector.shape_cast %230 : vector<16x256xf32> to vector<1x16x256xf32>
    %233 = vector.broadcast %231 : vector<2x1x256xf32> to vector<2x16x256xf32>
    %234 = vector.broadcast %232 : vector<1x16x256xf32> to vector<2x16x256xf32>
    %235 = arith.mulf %233, %234 : vector<2x16x256xf32>
    %236 = arith.addf %225, %235 : vector<2x16x256xf32>
    %237 = vector.extract_strided_slice %180 {offsets = [0, 5, 0], sizes = [2, 1, 256], strides = [1, 1, 1]} : vector<2x16x256xf32> to vector<2x1x256xf32>
    %238 = vector.shape_cast %237 : vector<2x1x256xf32> to vector<2x256xf32>
    %239 = vector.extract_strided_slice %181 {offsets = [0, 5, 0], sizes = [16, 1, 256], strides = [1, 1, 1]} : vector<16x16x256xbf16> to vector<16x1x256xbf16>
    %240 = vector.shape_cast %239 : vector<16x1x256xbf16> to vector<16x256xbf16>
    %241 = arith.extf %240 : vector<16x256xbf16> to vector<16x256xf32>
    %242 = vector.shape_cast %238 : vector<2x256xf32> to vector<2x1x256xf32>
    %243 = vector.shape_cast %241 : vector<16x256xf32> to vector<1x16x256xf32>
    %244 = vector.broadcast %242 : vector<2x1x256xf32> to vector<2x16x256xf32>
    %245 = vector.broadcast %243 : vector<1x16x256xf32> to vector<2x16x256xf32>
    %246 = arith.mulf %244, %245 : vector<2x16x256xf32>
    %247 = arith.addf %236, %246 : vector<2x16x256xf32>
    %248 = vector.extract_strided_slice %180 {offsets = [0, 6, 0], sizes = [2, 1, 256], strides = [1, 1, 1]} : vector<2x16x256xf32> to vector<2x1x256xf32>
    %249 = vector.shape_cast %248 : vector<2x1x256xf32> to vector<2x256xf32>
    %250 = vector.extract_strided_slice %181 {offsets = [0, 6, 0], sizes = [16, 1, 256], strides = [1, 1, 1]} : vector<16x16x256xbf16> to vector<16x1x256xbf16>
    %251 = vector.shape_cast %250 : vector<16x1x256xbf16> to vector<16x256xbf16>
    %252 = arith.extf %251 : vector<16x256xbf16> to vector<16x256xf32>
    %253 = vector.shape_cast %249 : vector<2x256xf32> to vector<2x1x256xf32>
    %254 = vector.shape_cast %252 : vector<16x256xf32> to vector<1x16x256xf32>
    %255 = vector.broadcast %253 : vector<2x1x256xf32> to vector<2x16x256xf32>
    %256 = vector.broadcast %254 : vector<1x16x256xf32> to vector<2x16x256xf32>
    %257 = arith.mulf %255, %256 : vector<2x16x256xf32>
    %258 = arith.addf %247, %257 : vector<2x16x256xf32>
    %259 = vector.extract_strided_slice %180 {offsets = [0, 7, 0], sizes = [2, 1, 256], strides = [1, 1, 1]} : vector<2x16x256xf32> to vector<2x1x256xf32>
    %260 = vector.shape_cast %259 : vector<2x1x256xf32> to vector<2x256xf32>
    %261 = vector.extract_strided_slice %181 {offsets = [0, 7, 0], sizes = [16, 1, 256], strides = [1, 1, 1]} : vector<16x16x256xbf16> to vector<16x1x256xbf16>
    %262 = vector.shape_cast %261 : vector<16x1x256xbf16> to vector<16x256xbf16>
    %263 = arith.extf %262 : vector<16x256xbf16> to vector<16x256xf32>
    %264 = vector.shape_cast %260 : vector<2x256xf32> to vector<2x1x256xf32>
    %265 = vector.shape_cast %263 : vector<16x256xf32> to vector<1x16x256xf32>
    %266 = vector.broadcast %264 : vector<2x1x256xf32> to vector<2x16x256xf32>
    %267 = vector.broadcast %265 : vector<1x16x256xf32> to vector<2x16x256xf32>
    %268 = arith.mulf %266, %267 : vector<2x16x256xf32>
    %269 = arith.addf %258, %268 : vector<2x16x256xf32>
    %270 = vector.extract_strided_slice %180 {offsets = [0, 8, 0], sizes = [2, 1, 256], strides = [1, 1, 1]} : vector<2x16x256xf32> to vector<2x1x256xf32>
    %271 = vector.shape_cast %270 : vector<2x1x256xf32> to vector<2x256xf32>
    %272 = vector.extract_strided_slice %181 {offsets = [0, 8, 0], sizes = [16, 1, 256], strides = [1, 1, 1]} : vector<16x16x256xbf16> to vector<16x1x256xbf16>
    %273 = vector.shape_cast %272 : vector<16x1x256xbf16> to vector<16x256xbf16>
    %274 = arith.extf %273 : vector<16x256xbf16> to vector<16x256xf32>
    %275 = vector.shape_cast %271 : vector<2x256xf32> to vector<2x1x256xf32>
    %276 = vector.shape_cast %274 : vector<16x256xf32> to vector<1x16x256xf32>
    %277 = vector.broadcast %275 : vector<2x1x256xf32> to vector<2x16x256xf32>
    %278 = vector.broadcast %276 : vector<1x16x256xf32> to vector<2x16x256xf32>
    %279 = arith.mulf %277, %278 : vector<2x16x256xf32>
    %280 = arith.addf %269, %279 : vector<2x16x256xf32>
    %281 = vector.extract_strided_slice %180 {offsets = [0, 9, 0], sizes = [2, 1, 256], strides = [1, 1, 1]} : vector<2x16x256xf32> to vector<2x1x256xf32>
    %282 = vector.shape_cast %281 : vector<2x1x256xf32> to vector<2x256xf32>
    %283 = vector.extract_strided_slice %181 {offsets = [0, 9, 0], sizes = [16, 1, 256], strides = [1, 1, 1]} : vector<16x16x256xbf16> to vector<16x1x256xbf16>
    %284 = vector.shape_cast %283 : vector<16x1x256xbf16> to vector<16x256xbf16>
    %285 = arith.extf %284 : vector<16x256xbf16> to vector<16x256xf32>
    %286 = vector.shape_cast %282 : vector<2x256xf32> to vector<2x1x256xf32>
    %287 = vector.shape_cast %285 : vector<16x256xf32> to vector<1x16x256xf32>
    %288 = vector.broadcast %286 : vector<2x1x256xf32> to vector<2x16x256xf32>
    %289 = vector.broadcast %287 : vector<1x16x256xf32> to vector<2x16x256xf32>
    %290 = arith.mulf %288, %289 : vector<2x16x256xf32>
    %291 = arith.addf %280, %290 : vector<2x16x256xf32>
    %292 = vector.extract_strided_slice %180 {offsets = [0, 10, 0], sizes = [2, 1, 256], strides = [1, 1, 1]} : vector<2x16x256xf32> to vector<2x1x256xf32>
    %293 = vector.shape_cast %292 : vector<2x1x256xf32> to vector<2x256xf32>
    %294 = vector.extract_strided_slice %181 {offsets = [0, 10, 0], sizes = [16, 1, 256], strides = [1, 1, 1]} : vector<16x16x256xbf16> to vector<16x1x256xbf16>
    %295 = vector.shape_cast %294 : vector<16x1x256xbf16> to vector<16x256xbf16>
    %296 = arith.extf %295 : vector<16x256xbf16> to vector<16x256xf32>
    %297 = vector.shape_cast %293 : vector<2x256xf32> to vector<2x1x256xf32>
    %298 = vector.shape_cast %296 : vector<16x256xf32> to vector<1x16x256xf32>
    %299 = vector.broadcast %297 : vector<2x1x256xf32> to vector<2x16x256xf32>
    %300 = vector.broadcast %298 : vector<1x16x256xf32> to vector<2x16x256xf32>
    %301 = arith.mulf %299, %300 : vector<2x16x256xf32>
    %302 = arith.addf %291, %301 : vector<2x16x256xf32>
    %303 = vector.extract_strided_slice %180 {offsets = [0, 11, 0], sizes = [2, 1, 256], strides = [1, 1, 1]} : vector<2x16x256xf32> to vector<2x1x256xf32>
    %304 = vector.shape_cast %303 : vector<2x1x256xf32> to vector<2x256xf32>
    %305 = vector.extract_strided_slice %181 {offsets = [0, 11, 0], sizes = [16, 1, 256], strides = [1, 1, 1]} : vector<16x16x256xbf16> to vector<16x1x256xbf16>
    %306 = vector.shape_cast %305 : vector<16x1x256xbf16> to vector<16x256xbf16>
    %307 = arith.extf %306 : vector<16x256xbf16> to vector<16x256xf32>
    %308 = vector.shape_cast %304 : vector<2x256xf32> to vector<2x1x256xf32>
    %309 = vector.shape_cast %307 : vector<16x256xf32> to vector<1x16x256xf32>
    %310 = vector.broadcast %308 : vector<2x1x256xf32> to vector<2x16x256xf32>
    %311 = vector.broadcast %309 : vector<1x16x256xf32> to vector<2x16x256xf32>
    %312 = arith.mulf %310, %311 : vector<2x16x256xf32>
    %313 = arith.addf %302, %312 : vector<2x16x256xf32>
    %314 = vector.extract_strided_slice %180 {offsets = [0, 12, 0], sizes = [2, 1, 256], strides = [1, 1, 1]} : vector<2x16x256xf32> to vector<2x1x256xf32>
    %315 = vector.shape_cast %314 : vector<2x1x256xf32> to vector<2x256xf32>
    %316 = vector.extract_strided_slice %181 {offsets = [0, 12, 0], sizes = [16, 1, 256], strides = [1, 1, 1]} : vector<16x16x256xbf16> to vector<16x1x256xbf16>
    %317 = vector.shape_cast %316 : vector<16x1x256xbf16> to vector<16x256xbf16>
    %318 = arith.extf %317 : vector<16x256xbf16> to vector<16x256xf32>
    %319 = vector.shape_cast %315 : vector<2x256xf32> to vector<2x1x256xf32>
    %320 = vector.shape_cast %318 : vector<16x256xf32> to vector<1x16x256xf32>
    %321 = vector.broadcast %319 : vector<2x1x256xf32> to vector<2x16x256xf32>
    %322 = vector.broadcast %320 : vector<1x16x256xf32> to vector<2x16x256xf32>
    %323 = arith.mulf %321, %322 : vector<2x16x256xf32>
    %324 = arith.addf %313, %323 : vector<2x16x256xf32>
    %325 = vector.extract_strided_slice %180 {offsets = [0, 13, 0], sizes = [2, 1, 256], strides = [1, 1, 1]} : vector<2x16x256xf32> to vector<2x1x256xf32>
    %326 = vector.shape_cast %325 : vector<2x1x256xf32> to vector<2x256xf32>
    %327 = vector.extract_strided_slice %181 {offsets = [0, 13, 0], sizes = [16, 1, 256], strides = [1, 1, 1]} : vector<16x16x256xbf16> to vector<16x1x256xbf16>
    %328 = vector.shape_cast %327 : vector<16x1x256xbf16> to vector<16x256xbf16>
    %329 = arith.extf %328 : vector<16x256xbf16> to vector<16x256xf32>
    %330 = vector.shape_cast %326 : vector<2x256xf32> to vector<2x1x256xf32>
    %331 = vector.shape_cast %329 : vector<16x256xf32> to vector<1x16x256xf32>
    %332 = vector.broadcast %330 : vector<2x1x256xf32> to vector<2x16x256xf32>
    %333 = vector.broadcast %331 : vector<1x16x256xf32> to vector<2x16x256xf32>
    %334 = arith.mulf %332, %333 : vector<2x16x256xf32>
    %335 = arith.addf %324, %334 : vector<2x16x256xf32>
    %336 = vector.extract_strided_slice %180 {offsets = [0, 14, 0], sizes = [2, 1, 256], strides = [1, 1, 1]} : vector<2x16x256xf32> to vector<2x1x256xf32>
    %337 = vector.shape_cast %336 : vector<2x1x256xf32> to vector<2x256xf32>
    %338 = vector.extract_strided_slice %181 {offsets = [0, 14, 0], sizes = [16, 1, 256], strides = [1, 1, 1]} : vector<16x16x256xbf16> to vector<16x1x256xbf16>
    %339 = vector.shape_cast %338 : vector<16x1x256xbf16> to vector<16x256xbf16>
    %340 = arith.extf %339 : vector<16x256xbf16> to vector<16x256xf32>
    %341 = vector.shape_cast %337 : vector<2x256xf32> to vector<2x1x256xf32>
    %342 = vector.shape_cast %340 : vector<16x256xf32> to vector<1x16x256xf32>
    %343 = vector.broadcast %341 : vector<2x1x256xf32> to vector<2x16x256xf32>
    %344 = vector.broadcast %342 : vector<1x16x256xf32> to vector<2x16x256xf32>
    %345 = arith.mulf %343, %344 : vector<2x16x256xf32>
    %346 = arith.addf %335, %345 : vector<2x16x256xf32>
    %347 = vector.extract_strided_slice %180 {offsets = [0, 15, 0], sizes = [2, 1, 256], strides = [1, 1, 1]} : vector<2x16x256xf32> to vector<2x1x256xf32>
    %348 = vector.shape_cast %347 : vector<2x1x256xf32> to vector<2x256xf32>
    %349 = vector.extract_strided_slice %181 {offsets = [0, 15, 0], sizes = [16, 1, 256], strides = [1, 1, 1]} : vector<16x16x256xbf16> to vector<16x1x256xbf16>
    %350 = vector.shape_cast %349 : vector<16x1x256xbf16> to vector<16x256xbf16>
    %351 = arith.extf %350 : vector<16x256xbf16> to vector<16x256xf32>
    %352 = vector.shape_cast %348 : vector<2x256xf32> to vector<2x1x256xf32>
    %353 = vector.shape_cast %351 : vector<16x256xf32> to vector<1x16x256xf32>
    %354 = vector.broadcast %352 : vector<2x1x256xf32> to vector<2x16x256xf32>
    %355 = vector.broadcast %353 : vector<1x16x256xf32> to vector<2x16x256xf32>
    %356 = arith.mulf %354, %355 : vector<2x16x256xf32>
    %357 = arith.addf %346, %356 : vector<2x16x256xf32>
    %c0_11 = arith.constant 0 : index
    %c32 = arith.constant 32 : index
    %c0_12 = arith.constant 0 : index
    %358 = vector.load %arg0[%c0_11, %c32, %c0_12] : memref<2x48x256xf32, #tpu.memory_space<vmem>>, vector<2x16x256xf32>
    %c0_13 = arith.constant 0 : index
    %c32_14 = arith.constant 32 : index
    %c0_15 = arith.constant 0 : index
    %359 = vector.load %arg1[%c0_13, %c32_14, %c0_15] : memref<16x48x256xbf16, #tpu.memory_space<vmem>>, vector<16x16x256xbf16>
    %360 = vector.extract_strided_slice %358 {offsets = [0, 0, 0], sizes = [2, 1, 256], strides = [1, 1, 1]} : vector<2x16x256xf32> to vector<2x1x256xf32>
    %361 = vector.shape_cast %360 : vector<2x1x256xf32> to vector<2x256xf32>
    %362 = vector.extract_strided_slice %359 {offsets = [0, 0, 0], sizes = [16, 1, 256], strides = [1, 1, 1]} : vector<16x16x256xbf16> to vector<16x1x256xbf16>
    %363 = vector.shape_cast %362 : vector<16x1x256xbf16> to vector<16x256xbf16>
    %364 = arith.extf %363 : vector<16x256xbf16> to vector<16x256xf32>
    %365 = vector.shape_cast %361 : vector<2x256xf32> to vector<2x1x256xf32>
    %366 = vector.shape_cast %364 : vector<16x256xf32> to vector<1x16x256xf32>
    %367 = vector.broadcast %365 : vector<2x1x256xf32> to vector<2x16x256xf32>
    %368 = vector.broadcast %366 : vector<1x16x256xf32> to vector<2x16x256xf32>
    %369 = arith.mulf %367, %368 : vector<2x16x256xf32>
    %370 = arith.addf %357, %369 : vector<2x16x256xf32>
    %371 = vector.extract_strided_slice %358 {offsets = [0, 1, 0], sizes = [2, 1, 256], strides = [1, 1, 1]} : vector<2x16x256xf32> to vector<2x1x256xf32>
    %372 = vector.shape_cast %371 : vector<2x1x256xf32> to vector<2x256xf32>
    %373 = vector.extract_strided_slice %359 {offsets = [0, 1, 0], sizes = [16, 1, 256], strides = [1, 1, 1]} : vector<16x16x256xbf16> to vector<16x1x256xbf16>
    %374 = vector.shape_cast %373 : vector<16x1x256xbf16> to vector<16x256xbf16>
    %375 = arith.extf %374 : vector<16x256xbf16> to vector<16x256xf32>
    %376 = vector.shape_cast %372 : vector<2x256xf32> to vector<2x1x256xf32>
    %377 = vector.shape_cast %375 : vector<16x256xf32> to vector<1x16x256xf32>
    %378 = vector.broadcast %376 : vector<2x1x256xf32> to vector<2x16x256xf32>
    %379 = vector.broadcast %377 : vector<1x16x256xf32> to vector<2x16x256xf32>
    %380 = arith.mulf %378, %379 : vector<2x16x256xf32>
    %381 = arith.addf %370, %380 : vector<2x16x256xf32>
    %382 = vector.extract_strided_slice %358 {offsets = [0, 2, 0], sizes = [2, 1, 256], strides = [1, 1, 1]} : vector<2x16x256xf32> to vector<2x1x256xf32>
    %383 = vector.shape_cast %382 : vector<2x1x256xf32> to vector<2x256xf32>
    %384 = vector.extract_strided_slice %359 {offsets = [0, 2, 0], sizes = [16, 1, 256], strides = [1, 1, 1]} : vector<16x16x256xbf16> to vector<16x1x256xbf16>
    %385 = vector.shape_cast %384 : vector<16x1x256xbf16> to vector<16x256xbf16>
    %386 = arith.extf %385 : vector<16x256xbf16> to vector<16x256xf32>
    %387 = vector.shape_cast %383 : vector<2x256xf32> to vector<2x1x256xf32>
    %388 = vector.shape_cast %386 : vector<16x256xf32> to vector<1x16x256xf32>
    %389 = vector.broadcast %387 : vector<2x1x256xf32> to vector<2x16x256xf32>
    %390 = vector.broadcast %388 : vector<1x16x256xf32> to vector<2x16x256xf32>
    %391 = arith.mulf %389, %390 : vector<2x16x256xf32>
    %392 = arith.addf %381, %391 : vector<2x16x256xf32>
    %393 = vector.extract_strided_slice %358 {offsets = [0, 3, 0], sizes = [2, 1, 256], strides = [1, 1, 1]} : vector<2x16x256xf32> to vector<2x1x256xf32>
    %394 = vector.shape_cast %393 : vector<2x1x256xf32> to vector<2x256xf32>
    %395 = vector.extract_strided_slice %359 {offsets = [0, 3, 0], sizes = [16, 1, 256], strides = [1, 1, 1]} : vector<16x16x256xbf16> to vector<16x1x256xbf16>
    %396 = vector.shape_cast %395 : vector<16x1x256xbf16> to vector<16x256xbf16>
    %397 = arith.extf %396 : vector<16x256xbf16> to vector<16x256xf32>
    %398 = vector.shape_cast %394 : vector<2x256xf32> to vector<2x1x256xf32>
    %399 = vector.shape_cast %397 : vector<16x256xf32> to vector<1x16x256xf32>
    %400 = vector.broadcast %398 : vector<2x1x256xf32> to vector<2x16x256xf32>
    %401 = vector.broadcast %399 : vector<1x16x256xf32> to vector<2x16x256xf32>
    %402 = arith.mulf %400, %401 : vector<2x16x256xf32>
    %403 = arith.addf %392, %402 : vector<2x16x256xf32>
    %404 = vector.extract_strided_slice %358 {offsets = [0, 4, 0], sizes = [2, 1, 256], strides = [1, 1, 1]} : vector<2x16x256xf32> to vector<2x1x256xf32>
    %405 = vector.shape_cast %404 : vector<2x1x256xf32> to vector<2x256xf32>
    %406 = vector.extract_strided_slice %359 {offsets = [0, 4, 0], sizes = [16, 1, 256], strides = [1, 1, 1]} : vector<16x16x256xbf16> to vector<16x1x256xbf16>
    %407 = vector.shape_cast %406 : vector<16x1x256xbf16> to vector<16x256xbf16>
    %408 = arith.extf %407 : vector<16x256xbf16> to vector<16x256xf32>
    %409 = vector.shape_cast %405 : vector<2x256xf32> to vector<2x1x256xf32>
    %410 = vector.shape_cast %408 : vector<16x256xf32> to vector<1x16x256xf32>
    %411 = vector.broadcast %409 : vector<2x1x256xf32> to vector<2x16x256xf32>
    %412 = vector.broadcast %410 : vector<1x16x256xf32> to vector<2x16x256xf32>
    %413 = arith.mulf %411, %412 : vector<2x16x256xf32>
    %414 = arith.addf %403, %413 : vector<2x16x256xf32>
    %415 = vector.extract_strided_slice %358 {offsets = [0, 5, 0], sizes = [2, 1, 256], strides = [1, 1, 1]} : vector<2x16x256xf32> to vector<2x1x256xf32>
    %416 = vector.shape_cast %415 : vector<2x1x256xf32> to vector<2x256xf32>
    %417 = vector.extract_strided_slice %359 {offsets = [0, 5, 0], sizes = [16, 1, 256], strides = [1, 1, 1]} : vector<16x16x256xbf16> to vector<16x1x256xbf16>
    %418 = vector.shape_cast %417 : vector<16x1x256xbf16> to vector<16x256xbf16>
    %419 = arith.extf %418 : vector<16x256xbf16> to vector<16x256xf32>
    %420 = vector.shape_cast %416 : vector<2x256xf32> to vector<2x1x256xf32>
    %421 = vector.shape_cast %419 : vector<16x256xf32> to vector<1x16x256xf32>
    %422 = vector.broadcast %420 : vector<2x1x256xf32> to vector<2x16x256xf32>
    %423 = vector.broadcast %421 : vector<1x16x256xf32> to vector<2x16x256xf32>
    %424 = arith.mulf %422, %423 : vector<2x16x256xf32>
    %425 = arith.addf %414, %424 : vector<2x16x256xf32>
    %426 = vector.extract_strided_slice %358 {offsets = [0, 6, 0], sizes = [2, 1, 256], strides = [1, 1, 1]} : vector<2x16x256xf32> to vector<2x1x256xf32>
    %427 = vector.shape_cast %426 : vector<2x1x256xf32> to vector<2x256xf32>
    %428 = vector.extract_strided_slice %359 {offsets = [0, 6, 0], sizes = [16, 1, 256], strides = [1, 1, 1]} : vector<16x16x256xbf16> to vector<16x1x256xbf16>
    %429 = vector.shape_cast %428 : vector<16x1x256xbf16> to vector<16x256xbf16>
    %430 = arith.extf %429 : vector<16x256xbf16> to vector<16x256xf32>
    %431 = vector.shape_cast %427 : vector<2x256xf32> to vector<2x1x256xf32>
    %432 = vector.shape_cast %430 : vector<16x256xf32> to vector<1x16x256xf32>
    %433 = vector.broadcast %431 : vector<2x1x256xf32> to vector<2x16x256xf32>
    %434 = vector.broadcast %432 : vector<1x16x256xf32> to vector<2x16x256xf32>
    %435 = arith.mulf %433, %434 : vector<2x16x256xf32>
    %436 = arith.addf %425, %435 : vector<2x16x256xf32>
    %437 = vector.extract_strided_slice %358 {offsets = [0, 7, 0], sizes = [2, 1, 256], strides = [1, 1, 1]} : vector<2x16x256xf32> to vector<2x1x256xf32>
    %438 = vector.shape_cast %437 : vector<2x1x256xf32> to vector<2x256xf32>
    %439 = vector.extract_strided_slice %359 {offsets = [0, 7, 0], sizes = [16, 1, 256], strides = [1, 1, 1]} : vector<16x16x256xbf16> to vector<16x1x256xbf16>
    %440 = vector.shape_cast %439 : vector<16x1x256xbf16> to vector<16x256xbf16>
    %441 = arith.extf %440 : vector<16x256xbf16> to vector<16x256xf32>
    %442 = vector.shape_cast %438 : vector<2x256xf32> to vector<2x1x256xf32>
    %443 = vector.shape_cast %441 : vector<16x256xf32> to vector<1x16x256xf32>
    %444 = vector.broadcast %442 : vector<2x1x256xf32> to vector<2x16x256xf32>
    %445 = vector.broadcast %443 : vector<1x16x256xf32> to vector<2x16x256xf32>
    %446 = arith.mulf %444, %445 : vector<2x16x256xf32>
    %447 = arith.addf %436, %446 : vector<2x16x256xf32>
    %448 = vector.extract_strided_slice %358 {offsets = [0, 8, 0], sizes = [2, 1, 256], strides = [1, 1, 1]} : vector<2x16x256xf32> to vector<2x1x256xf32>
    %449 = vector.shape_cast %448 : vector<2x1x256xf32> to vector<2x256xf32>
    %450 = vector.extract_strided_slice %359 {offsets = [0, 8, 0], sizes = [16, 1, 256], strides = [1, 1, 1]} : vector<16x16x256xbf16> to vector<16x1x256xbf16>
    %451 = vector.shape_cast %450 : vector<16x1x256xbf16> to vector<16x256xbf16>
    %452 = arith.extf %451 : vector<16x256xbf16> to vector<16x256xf32>
    %453 = vector.shape_cast %449 : vector<2x256xf32> to vector<2x1x256xf32>
    %454 = vector.shape_cast %452 : vector<16x256xf32> to vector<1x16x256xf32>
    %455 = vector.broadcast %453 : vector<2x1x256xf32> to vector<2x16x256xf32>
    %456 = vector.broadcast %454 : vector<1x16x256xf32> to vector<2x16x256xf32>
    %457 = arith.mulf %455, %456 : vector<2x16x256xf32>
    %458 = arith.addf %447, %457 : vector<2x16x256xf32>
    %459 = vector.extract_strided_slice %358 {offsets = [0, 9, 0], sizes = [2, 1, 256], strides = [1, 1, 1]} : vector<2x16x256xf32> to vector<2x1x256xf32>
    %460 = vector.shape_cast %459 : vector<2x1x256xf32> to vector<2x256xf32>
    %461 = vector.extract_strided_slice %359 {offsets = [0, 9, 0], sizes = [16, 1, 256], strides = [1, 1, 1]} : vector<16x16x256xbf16> to vector<16x1x256xbf16>
    %462 = vector.shape_cast %461 : vector<16x1x256xbf16> to vector<16x256xbf16>
    %463 = arith.extf %462 : vector<16x256xbf16> to vector<16x256xf32>
    %464 = vector.shape_cast %460 : vector<2x256xf32> to vector<2x1x256xf32>
    %465 = vector.shape_cast %463 : vector<16x256xf32> to vector<1x16x256xf32>
    %466 = vector.broadcast %464 : vector<2x1x256xf32> to vector<2x16x256xf32>
    %467 = vector.broadcast %465 : vector<1x16x256xf32> to vector<2x16x256xf32>
    %468 = arith.mulf %466, %467 : vector<2x16x256xf32>
    %469 = arith.addf %458, %468 : vector<2x16x256xf32>
    %470 = vector.extract_strided_slice %358 {offsets = [0, 10, 0], sizes = [2, 1, 256], strides = [1, 1, 1]} : vector<2x16x256xf32> to vector<2x1x256xf32>
    %471 = vector.shape_cast %470 : vector<2x1x256xf32> to vector<2x256xf32>
    %472 = vector.extract_strided_slice %359 {offsets = [0, 10, 0], sizes = [16, 1, 256], strides = [1, 1, 1]} : vector<16x16x256xbf16> to vector<16x1x256xbf16>
    %473 = vector.shape_cast %472 : vector<16x1x256xbf16> to vector<16x256xbf16>
    %474 = arith.extf %473 : vector<16x256xbf16> to vector<16x256xf32>
    %475 = vector.shape_cast %471 : vector<2x256xf32> to vector<2x1x256xf32>
    %476 = vector.shape_cast %474 : vector<16x256xf32> to vector<1x16x256xf32>
    %477 = vector.broadcast %475 : vector<2x1x256xf32> to vector<2x16x256xf32>
    %478 = vector.broadcast %476 : vector<1x16x256xf32> to vector<2x16x256xf32>
    %479 = arith.mulf %477, %478 : vector<2x16x256xf32>
    %480 = arith.addf %469, %479 : vector<2x16x256xf32>
    %481 = vector.extract_strided_slice %358 {offsets = [0, 11, 0], sizes = [2, 1, 256], strides = [1, 1, 1]} : vector<2x16x256xf32> to vector<2x1x256xf32>
    %482 = vector.shape_cast %481 : vector<2x1x256xf32> to vector<2x256xf32>
    %483 = vector.extract_strided_slice %359 {offsets = [0, 11, 0], sizes = [16, 1, 256], strides = [1, 1, 1]} : vector<16x16x256xbf16> to vector<16x1x256xbf16>
    %484 = vector.shape_cast %483 : vector<16x1x256xbf16> to vector<16x256xbf16>
    %485 = arith.extf %484 : vector<16x256xbf16> to vector<16x256xf32>
    %486 = vector.shape_cast %482 : vector<2x256xf32> to vector<2x1x256xf32>
    %487 = vector.shape_cast %485 : vector<16x256xf32> to vector<1x16x256xf32>
    %488 = vector.broadcast %486 : vector<2x1x256xf32> to vector<2x16x256xf32>
    %489 = vector.broadcast %487 : vector<1x16x256xf32> to vector<2x16x256xf32>
    %490 = arith.mulf %488, %489 : vector<2x16x256xf32>
    %491 = arith.addf %480, %490 : vector<2x16x256xf32>
    %492 = vector.extract_strided_slice %358 {offsets = [0, 12, 0], sizes = [2, 1, 256], strides = [1, 1, 1]} : vector<2x16x256xf32> to vector<2x1x256xf32>
    %493 = vector.shape_cast %492 : vector<2x1x256xf32> to vector<2x256xf32>
    %494 = vector.extract_strided_slice %359 {offsets = [0, 12, 0], sizes = [16, 1, 256], strides = [1, 1, 1]} : vector<16x16x256xbf16> to vector<16x1x256xbf16>
    %495 = vector.shape_cast %494 : vector<16x1x256xbf16> to vector<16x256xbf16>
    %496 = arith.extf %495 : vector<16x256xbf16> to vector<16x256xf32>
    %497 = vector.shape_cast %493 : vector<2x256xf32> to vector<2x1x256xf32>
    %498 = vector.shape_cast %496 : vector<16x256xf32> to vector<1x16x256xf32>
    %499 = vector.broadcast %497 : vector<2x1x256xf32> to vector<2x16x256xf32>
    %500 = vector.broadcast %498 : vector<1x16x256xf32> to vector<2x16x256xf32>
    %501 = arith.mulf %499, %500 : vector<2x16x256xf32>
    %502 = arith.addf %491, %501 : vector<2x16x256xf32>
    %503 = vector.extract_strided_slice %358 {offsets = [0, 13, 0], sizes = [2, 1, 256], strides = [1, 1, 1]} : vector<2x16x256xf32> to vector<2x1x256xf32>
    %504 = vector.shape_cast %503 : vector<2x1x256xf32> to vector<2x256xf32>
    %505 = vector.extract_strided_slice %359 {offsets = [0, 13, 0], sizes = [16, 1, 256], strides = [1, 1, 1]} : vector<16x16x256xbf16> to vector<16x1x256xbf16>
    %506 = vector.shape_cast %505 : vector<16x1x256xbf16> to vector<16x256xbf16>
    %507 = arith.extf %506 : vector<16x256xbf16> to vector<16x256xf32>
    %508 = vector.shape_cast %504 : vector<2x256xf32> to vector<2x1x256xf32>
    %509 = vector.shape_cast %507 : vector<16x256xf32> to vector<1x16x256xf32>
    %510 = vector.broadcast %508 : vector<2x1x256xf32> to vector<2x16x256xf32>
    %511 = vector.broadcast %509 : vector<1x16x256xf32> to vector<2x16x256xf32>
    %512 = arith.mulf %510, %511 : vector<2x16x256xf32>
    %513 = arith.addf %502, %512 : vector<2x16x256xf32>
    %514 = vector.extract_strided_slice %358 {offsets = [0, 14, 0], sizes = [2, 1, 256], strides = [1, 1, 1]} : vector<2x16x256xf32> to vector<2x1x256xf32>
    %515 = vector.shape_cast %514 : vector<2x1x256xf32> to vector<2x256xf32>
    %516 = vector.extract_strided_slice %359 {offsets = [0, 14, 0], sizes = [16, 1, 256], strides = [1, 1, 1]} : vector<16x16x256xbf16> to vector<16x1x256xbf16>
    %517 = vector.shape_cast %516 : vector<16x1x256xbf16> to vector<16x256xbf16>
    %518 = arith.extf %517 : vector<16x256xbf16> to vector<16x256xf32>
    %519 = vector.shape_cast %515 : vector<2x256xf32> to vector<2x1x256xf32>
    %520 = vector.shape_cast %518 : vector<16x256xf32> to vector<1x16x256xf32>
    %521 = vector.broadcast %519 : vector<2x1x256xf32> to vector<2x16x256xf32>
    %522 = vector.broadcast %520 : vector<1x16x256xf32> to vector<2x16x256xf32>
    %523 = arith.mulf %521, %522 : vector<2x16x256xf32>
    %524 = arith.addf %513, %523 : vector<2x16x256xf32>
    %525 = vector.extract_strided_slice %358 {offsets = [0, 15, 0], sizes = [2, 1, 256], strides = [1, 1, 1]} : vector<2x16x256xf32> to vector<2x1x256xf32>
    %526 = vector.shape_cast %525 : vector<2x1x256xf32> to vector<2x256xf32>
    %527 = vector.extract_strided_slice %359 {offsets = [0, 15, 0], sizes = [16, 1, 256], strides = [1, 1, 1]} : vector<16x16x256xbf16> to vector<16x1x256xbf16>
    %528 = vector.shape_cast %527 : vector<16x1x256xbf16> to vector<16x256xbf16>
    %529 = arith.extf %528 : vector<16x256xbf16> to vector<16x256xf32>
    %530 = vector.shape_cast %526 : vector<2x256xf32> to vector<2x1x256xf32>
    %531 = vector.shape_cast %529 : vector<16x256xf32> to vector<1x16x256xf32>
    %532 = vector.broadcast %530 : vector<2x1x256xf32> to vector<2x16x256xf32>
    %533 = vector.broadcast %531 : vector<1x16x256xf32> to vector<2x16x256xf32>
    %534 = arith.mulf %532, %533 : vector<2x16x256xf32>
    %535 = arith.addf %524, %534 : vector<2x16x256xf32>
    %536 = vector.broadcast %0 : f32 to vector<2x16x256xf32>
    %537 = arith.mulf %535, %536 : vector<2x16x256xf32>
    %c0_16 = arith.constant 0 : index
    %c0_17 = arith.constant 0 : index
    %538 = vector.load %arg2[%c0_16, %c0_17] : memref<16x256xf32, #tpu.memory_space<vmem>>, vector<16x256xf32>
    %539 = vector.shape_cast %538 : vector<16x256xf32> to vector<1x16x256xf32>
    %540 = vector.broadcast %539 : vector<1x16x256xf32> to vector<2x16x256xf32>
    %541 = arith.addf %537, %540 : vector<2x16x256xf32>
    %cst_18 = arith.constant dense<0.000000e+00> : vector<2x16xf32>
    %542 = vector.multi_reduction <add>, %541, %cst_18 [2] : vector<2x16x256xf32> to vector<2x16xf32>
    %543 = vector.shape_cast %542 : vector<2x16xf32> to vector<2x16x1xf32>
    %cst_19 = arith.constant dense<0.000000e+00> : vector<16x1xf32>
    %544 = vector.multi_reduction <add>, %543, %cst_19 [0] : vector<2x16x1xf32> to vector<16x1xf32>
    %545 = vector.shape_cast %544 : vector<16x1xf32> to vector<1x16x1xf32>
    %cst_20 = arith.constant 0.001953125 : f32
    %546 = vector.broadcast %cst_20 : f32 to vector<1x16x1xf32>
    %547 = arith.mulf %545, %546 : vector<1x16x1xf32>
    %548 = vector.broadcast %547 : vector<1x16x1xf32> to vector<2x16x256xf32>
    %549 = arith.subf %541, %548 : vector<2x16x256xf32>
    %550 = arith.mulf %549, %549 : vector<2x16x256xf32>
    %cst_21 = arith.constant dense<0.000000e+00> : vector<2x16xf32>
    %551 = vector.multi_reduction <add>, %550, %cst_21 [2] : vector<2x16x256xf32> to vector<2x16xf32>
    %552 = vector.shape_cast %551 : vector<2x16xf32> to vector<2x16x1xf32>
    %cst_22 = arith.constant dense<0.000000e+00> : vector<16x1xf32>
    %553 = vector.multi_reduction <add>, %552, %cst_22 [0] : vector<2x16x1xf32> to vector<16x1xf32>
    %554 = vector.shape_cast %553 : vector<16x1xf32> to vector<1x16x1xf32>
    %cst_23 = arith.constant 0.001953125 : f32
    %555 = vector.broadcast %cst_23 : f32 to vector<1x16x1xf32>
    %556 = arith.mulf %554, %555 : vector<1x16x1xf32>
    %c0_24 = arith.constant 0 : index
    %c0_25 = arith.constant 0 : index
    %557 = vector.load %arg3[%c0_24, %c0_25] : memref<16x1xf32, #tpu.memory_space<vmem>>, vector<16x1xf32>
    %558 = vector.shape_cast %557 : vector<16x1xf32> to vector<1x16x1xf32>
    %cst_26 = arith.constant 9.99999974E-6 : f32
    %559 = vector.broadcast %cst_26 : f32 to vector<1x16x1xf32>
    %560 = arith.addf %556, %559 : vector<1x16x1xf32>
    %561 = math.rsqrt %560 : vector<1x16x1xf32>
    %562 = arith.mulf %558, %561 : vector<1x16x1xf32>
    %563 = vector.broadcast %562 : vector<1x16x1xf32> to vector<2x16x256xf32>
    %564 = arith.mulf %549, %563 : vector<2x16x256xf32>
    %c0_27 = arith.constant 0 : index
    %c0_28 = arith.constant 0 : index
    %565 = vector.load %arg4[%c0_27, %c0_28] : memref<16x1xf32, #tpu.memory_space<vmem>>, vector<16x1xf32>
    %566 = vector.shape_cast %565 : vector<16x1xf32> to vector<1x16x1xf32>
    %567 = vector.broadcast %566 : vector<1x16x1xf32> to vector<2x16x256xf32>
    %568 = arith.addf %564, %567 : vector<2x16x256xf32>
    %cst_29 = arith.constant 0.000000e+00 : f32
    %569 = vector.broadcast %cst_29 : f32 to vector<2x16x256xf32>
    %570 = arith.maximumf %568, %569 : vector<2x16x256xf32>
    %571 = vector.shape_cast %570 : vector<2x16x256xf32> to vector<1x2x16x256xf32>
    %cst_30 = arith.constant dense<0.000000e+00> : vector<1xf32>
    %572 = vector.multi_reduction <add>, %571, %cst_30 [1, 2, 3] : vector<1x2x16x256xf32> to vector<1xf32>
    %573 = vector.shape_cast %572 : vector<1xf32> to vector<1x1x1x1xf32>
    %574 = vector.extract %573[0, 0, 0, 0] : f32 from vector<1x1x1x1xf32>
    %cst_31 = arith.constant 1.22070313E-4 : f32
    %575 = arith.mulf %574, %cst_31 : f32
    %cst_32 = arith.constant 0.000000e+00 : f32
    %576 = vector.broadcast %cst_32 : f32 to vector<2x16x256xf32>
    %577 = arith.cmpf ogt, %568, %576 : vector<2x16x256xf32>
    %cst_33 = arith.constant 0.000000e+00 : f32
    %578 = vector.broadcast %575 : f32 to vector<2x16x256xf32>
    %579 = vector.broadcast %cst_33 : f32 to vector<2x16x256xf32>
    %580 = arith.select %577, %578, %579 : vector<2x16x256xi1>, vector<2x16x256xf32>
    %c0_34 = arith.constant 0 : index
    %c0_35 = arith.constant 0 : index
    %c0_36 = arith.constant 0 : index
    %581 = vector.load %arg9[%c0_34, %c0_35, %c0_36] : memref<2x16x256xf32, #tpu.memory_space<vmem>>, vector<2x16x256xf32>
    tpu.vector_store %arg9[%c0_34, %c0_35, %c0_36], %580 {strides = array<i32>} : memref<2x16x256xf32, #tpu.memory_space<vmem>>, vector<2x16x256xf32>,
    %582 = vector.extract_strided_slice %580 {offsets = [0, 0, 0], sizes = [2, 1, 256], strides = [1, 1, 1]} : vector<2x16x256xf32> to vector<2x1x256xf32>
    %583 = vector.shape_cast %582 : vector<2x1x256xf32> to vector<2x256xf32>
    %584 = vector.extract_strided_slice %580 {offsets = [0, 1, 0], sizes = [2, 1, 256], strides = [1, 1, 1]} : vector<2x16x256xf32> to vector<2x1x256xf32>
    %585 = vector.shape_cast %584 : vector<2x1x256xf32> to vector<2x256xf32>
    %586 = vector.extract_strided_slice %580 {offsets = [0, 2, 0], sizes = [2, 1, 256], strides = [1, 1, 1]} : vector<2x16x256xf32> to vector<2x1x256xf32>
    %587 = vector.shape_cast %586 : vector<2x1x256xf32> to vector<2x256xf32>
    %588 = vector.extract_strided_slice %580 {offsets = [0, 3, 0], sizes = [2, 1, 256], strides = [1, 1, 1]} : vector<2x16x256xf32> to vector<2x1x256xf32>
    %589 = vector.shape_cast %588 : vector<2x1x256xf32> to vector<2x256xf32>
    %590 = vector.extract_strided_slice %580 {offsets = [0, 4, 0], sizes = [2, 1, 256], strides = [1, 1, 1]} : vector<2x16x256xf32> to vector<2x1x256xf32>
    %591 = vector.shape_cast %590 : vector<2x1x256xf32> to vector<2x256xf32>
    %592 = vector.extract_strided_slice %580 {offsets = [0, 5, 0], sizes = [2, 1, 256], strides = [1, 1, 1]} : vector<2x16x256xf32> to vector<2x1x256xf32>
    %593 = vector.shape_cast %592 : vector<2x1x256xf32> to vector<2x256xf32>
    %594 = vector.extract_strided_slice %580 {offsets = [0, 6, 0], sizes = [2, 1, 256], strides = [1, 1, 1]} : vector<2x16x256xf32> to vector<2x1x256xf32>
    %595 = vector.shape_cast %594 : vector<2x1x256xf32> to vector<2x256xf32>
    %596 = vector.extract_strided_slice %580 {offsets = [0, 7, 0], sizes = [2, 1, 256], strides = [1, 1, 1]} : vector<2x16x256xf32> to vector<2x1x256xf32>
    %597 = vector.shape_cast %596 : vector<2x1x256xf32> to vector<2x256xf32>
    %598 = vector.extract_strided_slice %580 {offsets = [0, 8, 0], sizes = [2, 1, 256], strides = [1, 1, 1]} : vector<2x16x256xf32> to vector<2x1x256xf32>
    %599 = vector.shape_cast %598 : vector<2x1x256xf32> to vector<2x256xf32>
    %600 = vector.extract_strided_slice %580 {offsets = [0, 9, 0], sizes = [2, 1, 256], strides = [1, 1, 1]} : vector<2x16x256xf32> to vector<2x1x256xf32>
    %601 = vector.shape_cast %600 : vector<2x1x256xf32> to vector<2x256xf32>
    %602 = vector.extract_strided_slice %580 {offsets = [0, 10, 0], sizes = [2, 1, 256], strides = [1, 1, 1]} : vector<2x16x256xf32> to vector<2x1x256xf32>
    %603 = vector.shape_cast %602 : vector<2x1x256xf32> to vector<2x256xf32>
    %604 = vector.extract_strided_slice %580 {offsets = [0, 11, 0], sizes = [2, 1, 256], strides = [1, 1, 1]} : vector<2x16x256xf32> to vector<2x1x256xf32>
    %605 = vector.shape_cast %604 : vector<2x1x256xf32> to vector<2x256xf32>
    %606 = vector.extract_strided_slice %580 {offsets = [0, 12, 0], sizes = [2, 1, 256], strides = [1, 1, 1]} : vector<2x16x256xf32> to vector<2x1x256xf32>
    %607 = vector.shape_cast %606 : vector<2x1x256xf32> to vector<2x256xf32>
    %608 = vector.extract_strided_slice %580 {offsets = [0, 13, 0], sizes = [2, 1, 256], strides = [1, 1, 1]} : vector<2x16x256xf32> to vector<2x1x256xf32>
    %609 = vector.shape_cast %608 : vector<2x1x256xf32> to vector<2x256xf32>
    %610 = vector.extract_strided_slice %580 {offsets = [0, 14, 0], sizes = [2, 1, 256], strides = [1, 1, 1]} : vector<2x16x256xf32> to vector<2x1x256xf32>
    %611 = vector.shape_cast %610 : vector<2x1x256xf32> to vector<2x256xf32>
    %612 = vector.extract_strided_slice %580 {offsets = [0, 15, 0], sizes = [2, 1, 256], strides = [1, 1, 1]} : vector<2x16x256xf32> to vector<2x1x256xf32>
    %613 = vector.shape_cast %612 : vector<2x1x256xf32> to vector<2x256xf32>
    %614 = tpu.concatenate %583, %585, %587, %589, %591, %593, %595, %597, %599, %601, %603, %605, %607, %609, %611, %613 in 1 : vector<2x256xf32>, vector<2x256xf32>, vector<2x256xf32>, vector<2x256xf32>, vector<2x256xf32>, vector<2x256xf32>, vector<2x256xf32>, vector<2x256xf32>, vector<2x256xf32>, vector<2x256xf32>, vector<2x256xf32>, vector<2x256xf32>, vector<2x256xf32>, vector<2x256xf32>, vector<2x256xf32>, vector<2x256xf32> -> vector<2x4096xf32>
    %615 = arith.truncf %614 : vector<2x4096xf32> to vector<2x4096xbf16>
    %c0_37 = arith.constant 0 : index
    %c0_38 = arith.constant 0 : index
    %616 = vector.load %arg5[%c0_37, %c0_38] : memref<4096x128xbf16, #tpu.memory_space<vmem>>, vector<4096x128xbf16>
    %cst_39 = arith.constant dense<0.000000e+00> : vector<2x128xf32>
    %617 = tpu.matmul %615, %616, %cst_39 {dimension_numbers = #tpu.dot_dimension_numbers<[1], [0], [0], [1], [0, 0, 1, 1], [], []>} : vector<2x4096xbf16>, vector<4096x128xbf16>, vector<2x128xf32> -> vector<2x128xf32>
    %c0_40 = arith.constant 0 : index
    %c0_41 = arith.constant 0 : index
    %618 = vector.load %arg6[%c0_40, %c0_41] : memref<1x128xf32, #tpu.memory_space<vmem>>, vector<1x128xf32>
    %619 = vector.broadcast %618 : vector<1x128xf32> to vector<2x128xf32>
    %620 = arith.addf %617, %619 : vector<2x128xf32>
    %c0_42 = arith.constant 0 : index
    %c0_43 = arith.constant 0 : index
    %621 = vector.load %arg8[%c0_42, %c0_43] : memref<2x128xf32, #tpu.memory_space<vmem>>, vector<2x128xf32>
    tpu.vector_store %arg8[%c0_42, %c0_43], %620 {strides = array<i32>} : memref<2x128xf32, #tpu.memory_space<vmem>>, vector<2x128xf32>,
    return
  }
}

</mosaic_0001>

<bundles_post_ra>
// kernel: tpu_custom_call.1
= control target key start
LH: loop header
LB: loop body
LE: loop exit
PB: predicated region body
PF: predicated region fallthrough
CT: control target
= control target key end

     0   :  { %16 = vsyncpa [#allocation4], 0  ;;  %s14649_s0 = inlined_call_operand.hbm [shape: f32[2,48,256], index: 0, kind: input, shape index: {}]   ;;  %s14650_s1 = inlined_call_operand.hbm [shape: bf16[16,48,256], index: 1, kind: input, shape index: {}]   ;;  %s14651_s2 = inlined_call_operand.vmem [shape: f32[16,256], index: 2, kind: input, shape index: {}]   ;;  %s14652_s3 = inlined_call_operand.vmem [shape: f32[16,1], index: 3, kind: input, shape index: {}]   ;;  %s14653_s4 = inlined_call_operand.vmem [shape: f32[16,1], index: 4, kind: input, shape index: {}]   ;;  %s14654_s5 = inlined_call_operand.hbm [shape: bf16[4096,128], index: 5, kind: input, shape index: {}]   ;;  %s14655_s6 = inlined_call_operand.vmem [shape: f32[1,128], index: 6, kind: input, shape index: {}]   ;;  %s14656_s7 = inlined_call_operand.<no memory space> [shape: f32[1], index: 7, kind: input, shape index: {}]   ;;  %s14657_s8 = inlined_call_operand.hbm [shape: f32[2,128], index: 8, kind: output, shape index: {0}]   ;;  %s14658_s9 = inlined_call_operand.hbm [shape: f32[2,16,256], index: 9, kind: output, shape index: {1}]  }
   0x1   :  { %17 = vsyncpa [#allocation7], 0 }
   0x2   :  { %18 = vsyncpa [#allocation5], 0 }
   0x3   :  { %19 = vsyncpa [#allocation11], 0  ;;  %s9052_s30 = smov [#allocation6]  }
   0x4   :  { %s37_s10 = sshll.u32 %s9052_s30, 4  ;;  %s38_s10 = int_to_ptr.vmem [resolvable:$true] %s37_s10 }
   0x5   :  { %s8952_s11 = scalar_lea.vmem %s38_s10, 12288  ;;  %p8957_p1 = scmp.lt.s32.totalorder %s38_s10, %s38_s10 }
   0x6   :  { %p8953_p0 = scmp.ne.s32.totalorder %s38_s10, %s8952_s11  ;;  %p8958_p2 = scmp.lt.s32.totalorder %s8952_s11, %s8952_s11 }
   0x8   :  { %p8959_p3 = por %p8958_p2, %p8957_p1 }
   0xa   :  { %p8960_p4 = pnand %p8959_p3, %p8953_p0 }
   0xc   :  { %8963 = shalt.err (!%p8960_p4)
}
   0xd   :  { %s9053_s12 = smov 128   ;;  %s9054_s13 = smov 8  }
   0xe   :  { %43 = dma.hbm_to_vmem [thread:$0]  %s14650_s1, 12288, %s38_s10, [#allocation7], %s9053_s12, %s9053_s12, %s9054_s13  }
   0xf   :  { %s9055_s16 = smov [#allocation3]  }
  0x10   :  { %s25_s17 = sshll.u32 %s9055_s16, 4  ;;  %s26_s17 = int_to_ptr.vmem [resolvable:$true] %s25_s17 }
  0x11   :  { %s8972_s18 = scalar_lea.vmem %s26_s17, 3072  ;;  %p8977_p6 = scmp.lt.s32.totalorder %s26_s17, %s26_s17 }
  0x12   :  { %p8973_p5 = scmp.ne.s32.totalorder %s26_s17, %s8972_s18  ;;  %p8978_p7 = scmp.lt.s32.totalorder %s8972_s18, %s8972_s18 }
  0x14   :  { %p8979_p8 = por %p8978_p7, %p8977_p6 }
  0x16   :  { %p8980_p9 = pnand %p8979_p8, %p8973_p5 }
  0x18   :  { %8983 = shalt.err (!%p8980_p9)
}
  0x19   :  { %s9056_s19 = smov 256   ;;  %s9057_s20 = smov 16  }
  0x1a   :  { %31 = dma.hbm_to_vmem [thread:$0]  %s14649_s0, 3072, %s26_s17, [#allocation4], %s9056_s19, %s9056_s19, %s9057_s20  }
  0x1b   :  { %s9058_s1 = smov [#allocation8]  }
  0x1c   :  { %s55_s23 = sshll.u32 %s9058_s1, 4  ;;  %s56_s23 = int_to_ptr.vmem [resolvable:$true] %s55_s23 }
  0x1d   :  { %s8992_s24 = scalar_lea.vmem %s56_s23, 32768  ;;  %p8997_p11 = scmp.lt.s32.totalorder %s56_s23, %s56_s23 }
  0x1e   :  { %p8993_p10 = scmp.ne.s32.totalorder %s56_s23, %s8992_s24  ;;  %p8998_p12 = scmp.lt.s32.totalorder %s8992_s24, %s8992_s24 }
  0x20   :  { %p8999_p13 = por %p8998_p12, %p8997_p11 }
  0x22   :  { %p9000_p0 = pnand %p8999_p13, %p8993_p10 }
  0x24   :  { %9003 = shalt.err (!%p9000_p0)
}
  0x25   :  { %s9059_s25 = smov 64   ;;  %s9060_s26 = smov 4  }
  0x26   :  { %61 = dma.hbm_to_vmem [thread:$0]  %s14654_s5, 32768, %s56_s23, [#allocation7], %s9059_s25, %s9059_s25, %s9060_s26  }
  0x27   :  { %9044 = dma.done.wait [#allocation4], 3072  }
  0x28   :  { %9045 = vsyncadd [#allocation4], 4294964224 }
  0x29   :  { %9046 = dma.done.wait [#allocation7], 45056  }
  0x2a   :  { %9047 = vsyncadd [#allocation7], 4294922240  ;;  %v149_v0 = vlaneseq  ;;  %vm198_vm0 = vcmask 1041409   ;;  %vm201_vm1 = vcmask 1042434   ;;  %vm204_vm2 = vcmask 1043459   ;;  %v9134_v6 = vld [vmem:[#allocation3] sm:$0xff] }
  0x2b   :  { %v9136_v7 = vld [vmem:[#allocation3 + $0x8] sm:$0xff]  ;;  %vm207_vm3 = vcmask 1044484   ;;  %v101_v12 = vld [vmem:[#allocation6 + $0x180] sm:$0xff]  ;;  %vm210_vm4 = vcmask 1045509   ;;  %v103_v17 = vld [vmem:[#allocation6 + $0x1b0] sm:$0xff]  ;;  %vm213_vm5 = vcmask 1046534  }
  0x2c   :  { %v150_v1 = vshrl.u32 %v149_v0, 7  ;;  %v105_v18 = vld [vmem:[#allocation6 + $0x1e0] sm:$0xff]  ;;  %v9162_v19 = vunpack.c.l.bf16 %v101_v12  ;;  %v9164_v20 = vunpack.c.h.bf16 %v101_v12  ;;  %v107_v23 = vld [vmem:[#allocation6 + $0x210] sm:$0xff]  ;;  %v9174_v24 = vunpack.c.l.bf16 %v103_v17 }
  0x2d   :  { %v9176_v25 = vunpack.c.h.bf16 %v103_v17  ;;  %v9178_v26 = vunpack.c.l.bf16 %v105_v18  ;;  %v9180_v27 = vunpack.c.h.bf16 %v105_v18  ;;  %vm216_vm6 = vcmask 1047559   ;;  %v109_v28 = vld [vmem:[#allocation6 + $0x240] sm:$0xff]  ;;  %v111_v29 = vld [vmem:[#allocation6 + $0x270] sm:$0xff] }
  0x2e   :  { %v9126_v2 = vsub.s32 0, %v150_v1  ;;  %v9128_v3 = vsub.s32 1, %v150_v1  ;;  %v9130_v4 = vsub.s32 2, %v150_v1  ;;  %v9132_v5 = vsub.s32 3, %v150_v1  ;;  %v113_v34 = vld [vmem:[#allocation6 + $0x2a0] sm:$0xff]  ;;  %v115_v39 = vld [vmem:[#allocation6 + $0x2d0] sm:$0xff] }
  0x2f   :  { %v9138_v8 = vsub.s32 4, %v150_v1  ;;  %v9140_v9 = vsub.s32 5, %v150_v1  ;;  %v9142_v10 = vsub.s32 6, %v150_v1  ;;  %v9144_v11 = vsub.s32 7, %v150_v1 }
  0x30   :  { %15001 = vst [vmem:[#allocation16_spill] sm:$0xff] %v9126_v2  ;;  %15002 = vst [vmem:[#allocation17_spill] sm:$0xff] %v9128_v3  ;;  %v9148_v13 = vrot.slane %v9134_v6, %v9126_v2  ;;  %v9152_v14 = vrot.slane %v9136_v7, %v9126_v2  ;;  %v9156_v15 = vrot.slane %v9134_v6, %v9128_v3  ;;  %v9182_v30 = vunpack.c.l.bf16 %v107_v23 }
  0x31   :  { %15003 = vst [vmem:[#allocation18_spill] sm:$0xff] %v9130_v4  ;;  %15004 = vst [vmem:[#allocation19_spill] sm:$0xff] %v9132_v5  ;;  %v9160_v16 = vrot.slane %v9136_v7, %v9128_v3  ;;  %v9168_v21 = vrot.slane %v9134_v6, %v9130_v4  ;;  %v9172_v22 = vrot.slane %v9136_v7, %v9130_v4  ;;  %v9184_v31 = vunpack.c.h.bf16 %v107_v23 }
  0x32   :  { %15005 = vst [vmem:[#allocation20_spill] sm:$0xff] %v9138_v8  ;;  %15006 = vst [vmem:[#allocation21_spill] sm:$0xff] %v9140_v9  ;;  %v324_v32 = vrot.slane %v9162_v19, 1  ;;  %v338_v33 = vrot.slane %v9164_v20, 1  ;;  %v9188_v35 = vunpack.c.l.bf16 %v109_v28  ;;  %v9190_v36 = vunpack.c.h.bf16 %v109_v28 }
  0x33   :  { %15007 = vst [vmem:[#allocation22_spill] sm:$0xff] %v9142_v10  ;;  %15008 = vst [vmem:[#allocation23_spill] sm:$0xff] %v9144_v11  ;;  %v9192_v37 = vunpack.c.l.bf16 %v111_v29  ;;  %v9194_v38 = vunpack.c.h.bf16 %v111_v29  ;;  %v9196_v40 = vunpack.c.l.bf16 %v113_v34  ;;  %v9198_v41 = vunpack.c.h.bf16 %v113_v34 }
  0x34   :  { %v232_v42 = vrot.slane %v9174_v24, 7  ;;  %v234_v43 = vrot.slane %v9178_v26, 6  ;;  %v9202_v44 = vunpack.c.l.bf16 %v115_v39  ;;  %v9204_v45 = vunpack.c.h.bf16 %v115_v39 }
  0x35   :  { %v236_v46 = vrot.slane %v9182_v30, 5  ;;  %v238_v47 = vrot.slane %v9188_v35, 4  ;;  %v240_v49 = vrot.slane %v9192_v37, 3  ;;  %v242_v50 = vrot.slane %v9196_v40, 2 }
  0x36   :  { %v233_v48 = vsel %vm198_vm0, %v232_v42, %v9162_v19  ;;  %v246_v51 = vrot.slane %v9176_v25, 7  ;;  %v244_v53 = vrot.slane %v9202_v44, 1  ;;  %v248_v54 = vrot.slane %v9180_v27, 6 }
  0x37   :  { %v235_v52 = vsel %vm201_vm1, %v234_v43, %v233_v48  ;;  %v250_v55 = vrot.slane %v9184_v31, 5  ;;  %v252_v58 = vrot.slane %v9190_v36, 4  ;;  %v254_v59 = vrot.slane %v9194_v38, 3 }
  0x38   :  { %v237_v56 = vsel %vm204_vm2, %v236_v46, %v235_v52  ;;  %v247_v57 = vsel %vm198_vm0, %v246_v51, %v9164_v20  ;;  %v256_v62 = vrot.slane %v9198_v41, 2  ;;  %v258_v63 = vrot.slane %v9204_v45, 1 }
  0x39   :  { %v239_v60 = vsel %vm207_vm3, %v238_v47, %v237_v56  ;;  %v249_v61 = vsel %vm201_vm1, %v248_v54, %v247_v57  ;;  %v325_v12 = vsel %vm198_vm0, %v9174_v24, %v324_v32  ;;  %v326_v17 = vrot.slane %v9178_v26, 7 }
  0x3a   :  { %v241_v0 = vsel %vm210_vm4, %v240_v49, %v239_v60  ;;  %v251_v1 = vsel %vm204_vm2, %v250_v55, %v249_v61  ;;  %v328_v28 = vrot.slane %v9182_v30, 6  ;;  %v330_v29 = vrot.slane %v9188_v35, 5 }
  0x3b   :  { %v243_v18 = vsel %vm213_vm5, %v242_v50, %v241_v0  ;;  %v253_v23 = vsel %vm207_vm3, %v252_v58, %v251_v1  ;;  %v327_v42 = vsel %vm201_vm1, %v326_v17, %v325_v12  ;;  %v332_v43 = vrot.slane %v9192_v37, 4 }
  0x3c   :  { %v9236_v34 = vsel %vm216_vm6, %v244_v53, %v243_v18  ;;  %v255_v39 = vsel %vm210_vm4, %v254_v59, %v253_v23  ;;  %v329_v47 = vsel %vm204_vm2, %v328_v28, %v327_v42  ;;  %v334_v48 = vrot.slane %v9196_v40, 3 }
  0x3d   :  { %15009 = vst [vmem:[#allocation24_spill] sm:$0xff] %v9236_v34  ;;  %v257_v32 = vsel %vm213_vm5, %v256_v62, %v255_v39  ;;  %v266_v46 = vmul.f32 %v9236_v34, %v9148_v13  ;;  %v331_v50 = vsel %vm207_vm3, %v330_v29, %v329_v47  ;;  %v336_v51 = vrot.slane %v9202_v44, 2 }
  0x3e   :  { %v9247_v49 = vsel %vm216_vm6, %v258_v63, %v257_v32  ;;  %v339_v52 = vsel %vm198_vm0, %v9176_v25, %v338_v33  ;;  %v333_v54 = vsel %vm210_vm4, %v332_v43, %v331_v50  ;;  %v340_v55 = vrot.slane %v9180_v27, 7 }
  0x3f   :  { %15010 = vst [vmem:[#allocation25_spill] sm:$0xff] %v9247_v49  ;;  %v267_v53 = vmul.f32 %v9247_v49, %v9152_v14  ;;  %v342_v56 = vrot.slane %v9184_v31, 6  ;;  %v335_v57 = vsel %vm213_vm5, %v334_v48, %v333_v54  ;;  %v344_v58 = vrot.slane %v9190_v36, 5 }
  0x40   :  { %v346_v59 = vrot.slane %v9194_v38, 4  ;;  %v348_v60 = vrot.slane %v9198_v41, 3  ;;  %v9263_v61 = vsel %vm216_vm6, %v336_v51, %v335_v57  ;;  %v341_v33 = vsel %vm201_vm1, %v340_v55, %v339_v52 }
  0x41   :  { %15011 = vst [vmem:[#allocation26_spill] sm:$0xff] %v9263_v61  ;;  %v350_v62 = vrot.slane %v9204_v45, 2  ;;  %v416_v63 = vrot.slane %v9162_v19, 2  ;;  %v343_v0 = vsel %vm204_vm2, %v342_v56, %v341_v33  ;;  %v358_v1 = vmul.f32 %v9263_v61, %v9156_v15 }
  0x42   :  { %v417_v12 = vrot.slane %v9174_v24, 1  ;;  %v420_v17 = vrot.slane %v9182_v30, 7  ;;  %v345_v18 = vsel %vm207_vm3, %v344_v58, %v343_v0  ;;  %v422_v23 = vrot.slane %v9188_v35, 6 }
  0x43   :  { %v424_v28 = vrot.slane %v9192_v37, 5  ;;  %v426_v29 = vrot.slane %v9196_v40, 4  ;;  %v347_v39 = vsel %vm210_vm4, %v346_v59, %v345_v18  ;;  %v366_v42 = vadd.f32 %v358_v1, %v266_v46 }
  0x44   :  { %v418_v43 = vsel %vm198_vm0, %v417_v12, %v416_v63  ;;  %v428_v32 = vrot.slane %v9202_v44, 3  ;;  %v349_v47 = vsel %vm213_vm5, %v348_v60, %v347_v39  ;;  %v430_v50 = vrot.slane %v9164_v20, 2 }
  0x45   :  { %v419_v48 = vsel %vm201_vm1, %v9178_v26, %v418_v43  ;;  %v431_v51 = vrot.slane %v9176_v25, 1  ;;  %v9286_v52 = vsel %vm216_vm6, %v350_v62, %v349_v47  ;;  %v434_v46 = vrot.slane %v9184_v31, 7 }
  0x46   :  { %15012 = vst [vmem:[#allocation27_spill] sm:$0xff] %v9286_v52  ;;  %v421_v54 = vsel %vm204_vm2, %v420_v17, %v419_v48  ;;  %v436_v55 = vrot.slane %v9190_v36, 6  ;;  %v359_v56 = vmul.f32 %v9286_v52, %v9160_v16  ;;  %v438_v59 = vrot.slane %v9194_v38, 5 }
  0x47   :  { %v423_v57 = vsel %vm207_vm3, %v422_v23, %v421_v54  ;;  %v432_v58 = vsel %vm198_vm0, %v431_v51, %v430_v50  ;;  %v440_v62 = vrot.slane %v9198_v41, 4  ;;  %v442_v63 = vrot.slane %v9204_v45, 3 }
  0x48   :  { %v425_v60 = vsel %vm210_vm4, %v424_v28, %v423_v57  ;;  %v433_v33 = vsel %vm201_vm1, %v9180_v27, %v432_v58  ;;  %v367_v0 = vadd.f32 %v359_v56, %v267_v53  ;;  %v9305_v17 = vrot.slane %v9134_v6, %v9132_v5 }
  0x49   :  { %v427_v1 = vsel %vm213_vm5, %v426_v29, %v425_v60  ;;  %v435_v12 = vsel %vm204_vm2, %v434_v46, %v433_v33  ;;  %v9313_v28 = vrot.slane %v9136_v7, %v9132_v5  ;;  %v508_v39 = vrot.slane %v9162_v19, 3 }
  0x4a   :  { %v9308_v18 = vsel %vm216_vm6, %v428_v32, %v427_v1  ;;  %v437_v23 = vsel %vm207_vm3, %v436_v55, %v435_v12  ;;  %v509_v43 = vrot.slane %v9174_v24, 2  ;;  %v511_v47 = vrot.slane %v9178_v26, 1 }
  0x4b   :  { %15013 = vst [vmem:[#allocation28_spill] sm:$0xff] %v9308_v18  ;;  %v439_v53 = vsel %vm210_vm4, %v438_v59, %v437_v23  ;;  %v450_v29 = vmul.f32 %v9308_v18, %v9168_v21  ;;  %v514_v48 = vrot.slane %v9188_v35, 7  ;;  %v516_v50 = vrot.slane %v9192_v37, 6 }
  0x4c   :  { %v441_v32 = vsel %vm213_vm5, %v440_v62, %v439_v53  ;;  %v518_v51 = vrot.slane %v9196_v40, 5  ;;  %v510_v55 = vsel %vm198_vm0, %v509_v43, %v508_v39  ;;  %v520_v56 = vrot.slane %v9202_v44, 4 }
  0x4d   :  { %v9326_v54 = vsel %vm216_vm6, %v442_v63, %v441_v32  ;;  %v458_v46 = vadd.f32 %v450_v29, %v366_v42  ;;  %v512_v58 = vsel %vm201_vm1, %v511_v47, %v510_v55  ;;  %v522_v59 = vrot.slane %v9164_v20, 3 }
  0x4e   :  { %15014 = vst [vmem:[#allocation29_spill] sm:$0xff] %v9326_v54  ;;  %v451_v57 = vmul.f32 %v9326_v54, %v9172_v22  ;;  %v523_v60 = vrot.slane %v9176_v25, 2  ;;  %v513_v33 = vsel %vm204_vm2, %v9182_v30, %v512_v58  ;;  %v525_v62 = vrot.slane %v9180_v27, 1 }
  0x4f   :  { %v528_v42 = vrot.slane %v9190_v36, 7  ;;  %v530_v63 = vrot.slane %v9194_v38, 6  ;;  %v515_v12 = vsel %vm207_vm3, %v514_v48, %v513_v33  ;;  %v532_v39 = vrot.slane %v9198_v41, 5 }
  0x50   :  { %v459_v1 = vadd.f32 %v451_v57, %v367_v0  ;;  %v524_v23 = vsel %vm198_vm0, %v523_v60, %v522_v59  ;;  %v517_v53 = vsel %vm210_vm4, %v516_v50, %v515_v12  ;;  %v534_v43 = vrot.slane %v9204_v45, 4 }
  0x51   :  { %v526_v29 = vsel %vm201_vm1, %v525_v62, %v524_v23  ;;  %v9348_v47 = vrot.slane %v9134_v6, %v9138_v8  ;;  %v519_v32 = vsel %vm213_vm5, %v518_v51, %v517_v53  ;;  %v9355_v48 = vrot.slane %v9136_v7, %v9138_v8 }
  0x52   :  { %v527_v0 = vsel %vm204_vm2, %v9184_v31, %v526_v29  ;;  %v600_v55 = vrot.slane %v9162_v19, 4  ;;  %v9359_v50 = vsel %vm216_vm6, %v520_v56, %v519_v32  ;;  %v601_v58 = vrot.slane %v9174_v24, 3 }
  0x53   :  { %15015 = vst [vmem:[#allocation30_spill] sm:$0xff] %v9359_v50  ;;  %v529_v57 = vsel %vm207_vm3, %v528_v42, %v527_v0  ;;  %v603_v59 = vrot.slane %v9178_v26, 2  ;;  %v542_v60 = vmul.f32 %v9359_v50, %v9305_v17  ;;  %v605_v33 = vrot.slane %v9182_v30, 1 }
  0x54   :  { %v531_v51 = vsel %vm210_vm4, %v530_v63, %v529_v57  ;;  %v608_v62 = vrot.slane %v9192_v37, 7  ;;  %v602_v56 = vsel %vm198_vm0, %v601_v58, %v600_v55  ;;  %v610_v23 = vrot.slane %v9196_v40, 6 }
  0x55   :  { %v533_v12 = vsel %vm213_vm5, %v532_v39, %v531_v51  ;;  %v612_v42 = vrot.slane %v9202_v44, 5  ;;  %v550_v29 = vadd.f32 %v542_v60, %v458_v46  ;;  %v604_v63 = vsel %vm201_vm1, %v603_v59, %v602_v56 }
  0x56   :  { %v9374_v53 = vsel %vm216_vm6, %v534_v43, %v533_v12  ;;  %v614_v32 = vrot.slane %v9164_v20, 4  ;;  %v606_v57 = vsel %vm204_vm2, %v605_v33, %v604_v63  ;;  %v615_v39 = vrot.slane %v9176_v25, 3 }
  0x57   :  { %15016 = vst [vmem:[#allocation31_spill] sm:$0xff] %v9374_v53  ;;  %v543_v0 = vmul.f32 %v9374_v53, %v9313_v28  ;;  %v617_v55 = vrot.slane %v9180_v27, 2  ;;  %v607_v58 = vsel %vm207_vm3, %v9188_v35, %v606_v57  ;;  %v619_v43 = vrot.slane %v9184_v31, 1 }
  0x58   :  { %v622_v46 = vrot.slane %v9194_v38, 7  ;;  %v624_v59 = vrot.slane %v9198_v41, 6  ;;  %v609_v60 = vsel %vm210_vm4, %v608_v62, %v607_v58  ;;  %v616_v12 = vsel %vm198_vm0, %v615_v39, %v614_v32 }
  0x59   :  { %v551_v51 = vadd.f32 %v543_v0, %v459_v1  ;;  %v626_v33 = vrot.slane %v9204_v45, 5  ;;  %v611_v56 = vsel %vm213_vm5, %v610_v23, %v609_v60  ;;  %v618_v63 = vsel %vm201_vm1, %v617_v55, %v616_v12 }
  0x5a   :  { %v9395_v57 = vrot.slane %v9134_v6, %v9140_v9  ;;  %v9399_v53 = vrot.slane %v9136_v7, %v9140_v9  ;;  %v9402_v1 = vsel %vm216_vm6, %v612_v42, %v611_v56  ;;  %v620_v62 = vsel %vm204_vm2, %v619_v43, %v618_v63 }
  0x5b   :  { %15017 = vst [vmem:[#allocation32_spill] sm:$0xff] %v9402_v1  ;;  %v692_v32 = vrot.slane %v9162_v19, 5  ;;  %v693_v0 = vrot.slane %v9174_v24, 4  ;;  %v621_v23 = vsel %vm207_vm3, %v9190_v36, %v620_v62  ;;  %v634_v39 = vmul.f32 %v9402_v1, %v9348_v47 }
  0x5c   :  { %v695_v55 = vrot.slane %v9178_v26, 3  ;;  %v697_v58 = vrot.slane %v9182_v30, 2  ;;  %v623_v60 = vsel %vm210_vm4, %v622_v46, %v621_v23  ;;  %v699_v43 = vrot.slane %v9188_v35, 1 }
  0x5d   :  { %v694_v42 = vsel %vm198_vm0, %v693_v0, %v692_v32  ;;  %v702_v12 = vrot.slane %v9196_v40, 7  ;;  %v625_v56 = vsel %vm213_vm5, %v624_v59, %v623_v60  ;;  %v642_v63 = vadd.f32 %v634_v39, %v550_v29 }
  0x5e   :  { %v696_v62 = vsel %vm201_vm1, %v695_v55, %v694_v42  ;;  %v704_v50 = vrot.slane %v9202_v44, 6  ;;  %v9421_v1 = vsel %vm216_vm6, %v626_v33, %v625_v56  ;;  %v706_v46 = vrot.slane %v9164_v20, 5 }
  0x5f   :  { %15018 = vst [vmem:[#allocation33_spill] sm:$0xff] %v9421_v1  ;;  %v698_v54 = vsel %vm204_vm2, %v697_v58, %v696_v62  ;;  %v707_v32 = vrot.slane %v9176_v25, 4  ;;  %v635_v0 = vmul.f32 %v9421_v1, %v9355_v48  ;;  %v709_v29 = vrot.slane %v9180_v27, 3 }
  0x60   :  { %v700_v23 = vsel %vm207_vm3, %v699_v43, %v698_v54  ;;  %v711_v59 = vrot.slane %v9184_v31, 2  ;;  %v713_v55 = vrot.slane %v9190_v36, 1  ;;  %v716_v58 = vrot.slane %v9198_v41, 7 }
  0x61   :  { %v701_v39 = vsel %vm210_vm4, %v9192_v37, %v700_v23  ;;  %v708_v33 = vsel %vm198_vm0, %v707_v32, %v706_v46  ;;  %v643_v60 = vadd.f32 %v635_v0, %v551_v51  ;;  %v718_v54 = vrot.slane %v9204_v45, 6 }
  0x62   :  { %v703_v42 = vsel %vm213_vm5, %v702_v12, %v701_v39  ;;  %v710_v56 = vsel %vm201_vm1, %v709_v29, %v708_v33  ;;  %v9445_v23 = vrot.slane %v9134_v6, %v9142_v10  ;;  %v9449_v46 = vrot.slane %v9136_v7, %v9142_v10 }
  0x63   :  { %v9440_v43 = vsel %vm216_vm6, %v704_v50, %v703_v42  ;;  %v712_v62 = vsel %vm204_vm2, %v711_v59, %v710_v56  ;;  %v784_v32 = vrot.slane %v9162_v19, 6  ;;  %v785_v50 = vrot.slane %v9174_v24, 5 }
  0x64   :  { %15019 = vst [vmem:[#allocation34_spill] sm:$0xff] %v9440_v43  ;;  %15020 = vst [vmem:[#allocation35_spill] sm:$0xff] %v9449_v46  ;;  %v714_v51 = vsel %vm207_vm3, %v713_v55, %v712_v62  ;;  %v726_v12 = vmul.f32 %v9440_v43, %v9395_v57  ;;  %v787_v29 = vrot.slane %v9178_v26, 4  ;;  %v789_v59 = vrot.slane %v9182_v30, 3 }
  0x65   :  { %v715_v0 = vsel %vm210_vm4, %v9194_v38, %v714_v51  ;;  %v791_v39 = vrot.slane %v9188_v35, 2  ;;  %v786_v55 = vsel %vm198_vm0, %v785_v50, %v784_v32  ;;  %v793_v56 = vrot.slane %v9192_v37, 1 }
  0x66   :  { %v717_v33 = vsel %vm213_vm5, %v716_v58, %v715_v0  ;;  %v734_v42 = vadd.f32 %v726_v12, %v642_v63  ;;  %v788_v43 = vsel %vm201_vm1, %v787_v29, %v786_v55  ;;  %v796_v51 = vrot.slane %v9202_v44, 7 }
  0x67   :  { %v9465_v62 = vsel %vm216_vm6, %v718_v54, %v717_v33  ;;  %v798_v1 = vrot.slane %v9164_v20, 6  ;;  %v790_v52 = vsel %vm204_vm2, %v789_v59, %v788_v43  ;;  %v799_v63 = vrot.slane %v9176_v25, 5 }
  0x68   :  { %15021 = vst [vmem:[#allocation36_spill] sm:$0xff] %v9465_v62  ;;  %v727_v18 = vmul.f32 %v9465_v62, %v9399_v53  ;;  %v801_v58 = vrot.slane %v9180_v27, 4  ;;  %v792_v12 = vsel %vm207_vm3, %v791_v39, %v790_v52  ;;  %v803_v54 = vrot.slane %v9184_v31, 3 }
  0x69   :  { %v805_v32 = vrot.slane %v9190_v36, 2  ;;  %v807_v50 = vrot.slane %v9194_v38, 1  ;;  %v794_v29 = vsel %vm210_vm4, %v793_v56, %v792_v12  ;;  %v800_v33 = vsel %vm198_vm0, %v799_v63, %v798_v1 }
  0x6a   :  { %v735_v0 = vadd.f32 %v727_v18, %v643_v60  ;;  %v810_v55 = vrot.slane %v9204_v45, 7  ;;  %v795_v43 = vsel %vm213_vm5, %v9196_v40, %v794_v29  ;;  %v802_v59 = vsel %vm201_vm1, %v801_v58, %v800_v33 }
  0x6b   :  { %v9487_v52 = vrot.slane %v9134_v6, %v9144_v11  ;;  %v9491_v39 = vrot.slane %v9136_v7, %v9144_v11  ;;  %v9494_v18 = vsel %vm216_vm6, %v796_v51, %v795_v43  ;;  %v804_v1 = vsel %vm204_vm2, %v803_v54, %v802_v59 }
  0x6c   :  { %15024 = vst [vmem:[#allocation39_spill] sm:$0xff] %v9494_v18  ;;  %v876_v60 = vrot.slane %v9162_v19, 7  ;;  %v877_v56 = vrot.slane %v9174_v24, 6  ;;  %v806_v63 = vsel %vm207_vm3, %v805_v32, %v804_v1  ;;  %v818_v58 = vmul.f32 %v9494_v18, %v9445_v23  ;;  %v102_v19 = vld [vmem:[#allocation6 + $0x188] sm:$0xff]  ;;  %v108_v1 = vld [vmem:[#allocation6 + $0x218] sm:$0xff] }
  0x6d   :  { %15022 = vst [vmem:[#allocation37_spill] sm:$0xff] %v9487_v52  ;;  %15023 = vst [vmem:[#allocation38_spill] sm:$0xff] %v9491_v39  ;;  %v879_v6 = vrot.slane %v9178_v26, 5  ;;  %v881_v12 = vrot.slane %v9182_v30, 4  ;;  %v808_v7 = vsel %vm210_vm4, %v807_v50, %v806_v63  ;;  %v883_v29 = vrot.slane %v9188_v35, 3  ;;  %v104_v26 = vld [vmem:[#allocation6 + $0x1b8] sm:$0xff] }
  0x6e   :  { %v878_v51 = vsel %vm198_vm0, %v877_v56, %v876_v60  ;;  %v885_v54 = vrot.slane %v9192_v37, 2  ;;  %v809_v24 = vsel %vm213_vm5, %v9198_v41, %v808_v7  ;;  %v826_v32 = vadd.f32 %v818_v58, %v734_v42  ;;  %v106_v37 = vld [vmem:[#allocation6 + $0x1e8] sm:$0xff] }
  0x6f   :  { %v880_v33 = vsel %vm201_vm1, %v879_v6, %v878_v51  ;;  %v887_v43 = vrot.slane %v9196_v40, 1  ;;  %v9513_v30 = vsel %vm216_vm6, %v810_v55, %v809_v24  ;;  %v890_v59 = vrot.slane %v9164_v20, 7  ;;  %v110_v63 = vld [vmem:[#allocation6 + $0x248] sm:$0xff]  ;;  %v112_v6 = vld [vmem:[#allocation6 + $0x278] sm:$0xff] }
  0x70   :  { %15025 = vst [vmem:[#allocation40_spill] sm:$0xff] %v9513_v30  ;;  %v882_v50 = vsel %vm204_vm2, %v881_v12, %v880_v33  ;;  %v891_v35 = vrot.slane %v9176_v25, 6  ;;  %v819_v60 = vmul.f32 %v9513_v30, %v9449_v46  ;;  %v893_v56 = vrot.slane %v9180_v27, 5  ;;  %v114_v27 = vld [vmem:[#allocation6 + $0x2a8] sm:$0xff]  ;;  %v116_v24 = vld [vmem:[#allocation6 + $0x2d8] sm:$0xff] }
  0x71   :  { %v884_v42 = vsel %vm207_vm3, %v883_v29, %v882_v50  ;;  %v895_v40 = vrot.slane %v9184_v31, 4  ;;  %v897_v20 = vrot.slane %v9190_v36, 3  ;;  %v899_v25 = vrot.slane %v9194_v38, 2  ;;  %v9539_v38 = vld [vmem:[#allocation3 + $0x10] sm:$0xff] }
  0x72   :  { %v886_v55 = vsel %vm210_vm4, %v885_v54, %v884_v42  ;;  %v892_v58 = vsel %vm198_vm0, %v891_v35, %v890_v59  ;;  %v827_v12 = vadd.f32 %v819_v60, %v735_v0  ;;  %v901_v29 = vrot.slane %v9198_v41, 1  ;;  %v9541_v0 = vld [vmem:[#allocation3 + $0x18] sm:$0xff] }
  0x73   :  { %v888_v7 = vsel %vm213_vm5, %v887_v43, %v886_v55  ;;  %v894_v51 = vsel %vm201_vm1, %v893_v56, %v892_v58  ;;  %v9535_v33 = vunpack.c.l.bf16 %v102_v19  ;;  %v9537_v36 = vunpack.c.h.bf16 %v102_v19 }
  0x74   :  { %v9532_v31 = vsel %vm216_vm6, %v9202_v44, %v888_v7  ;;  %v896_v54 = vsel %vm204_vm2, %v895_v40, %v894_v51  ;;  %v9546_v50 = vunpack.c.l.bf16 %v104_v26  ;;  %v9548_v59 = vunpack.c.h.bf16 %v104_v26 }
  0x75   :  { %15026 = vst [vmem:[#allocation41_spill] sm:$0xff] %v9532_v31  ;;  %v898_v43 = vsel %vm207_vm3, %v897_v20, %v896_v54  ;;  %v910_v41 = vmul.f32 %v9532_v31, %v9487_v52  ;;  %v9551_v35 = vunpack.c.l.bf16 %v106_v37  ;;  %v9553_v60 = vunpack.c.h.bf16 %v106_v37 }
  0x76   :  { %v900_v44 = vsel %vm210_vm4, %v899_v25, %v898_v43  ;;  %v9555_v19 = vunpack.c.l.bf16 %v108_v1  ;;  %v9558_v40 = vunpack.c.h.bf16 %v108_v1  ;;  %v9560_v55 = vunpack.c.l.bf16 %v110_v63 }
  0x77   :  { %v902_v42 = vsel %vm213_vm5, %v901_v29, %v900_v44  ;;  %v918_v56 = vadd.f32 %v910_v41, %v826_v32  ;;  %v9566_v26 = vunpack.c.h.bf16 %v110_v63  ;;  %v9568_v20 = vunpack.c.l.bf16 %v112_v6 }
  0x78   :  { %v9564_v58 = vsel %vm216_vm6, %v9204_v45, %v902_v42  ;;  %v9570_v25 = vunpack.c.h.bf16 %v112_v6  ;;  %v9574_v7 = vunpack.c.l.bf16 %v114_v27  ;;  %v9576_v32 = vunpack.c.h.bf16 %v114_v27 }
  0x79   :  { %15027 = vst [vmem:[#allocation42_spill] sm:$0xff] %v9564_v58  ;;  %v911_v37 = vmul.f32 %v9564_v58, %v9491_v39  ;;  %v9578_v1 = vunpack.c.l.bf16 %v116_v24  ;;  %v9580_v51 = vunpack.c.h.bf16 %v116_v24  ;;  %v9584_v45 = vrot.slane %v9539_v38, %v9126_v2 }
  0x7a   :  { %v9588_v63 = vrot.slane %v9541_v0, %v9126_v2  ;;  %v1032_v6 = vrot.slane %v9546_v50, 7  ;;  %v1034_v54 = vrot.slane %v9551_v35, 6  ;;  %v1036_v27 = vrot.slane %v9555_v19, 5 }
  0x7b   :  { %15028 = vst [vmem:[#allocation43_spill] sm:$0xff] %v9584_v45  ;;  %v919_v29 = vadd.f32 %v911_v37, %v827_v12  ;;  %v1038_v43 = vrot.slane %v9560_v55, 4  ;;  %v1040_v41 = vrot.slane %v9568_v20, 3  ;;  %v1042_v44 = vrot.slane %v9574_v7, 2 }
  0x7c   :  { %15029 = vst [vmem:[#allocation44_spill] sm:$0xff] %v9588_v63  ;;  %v1033_v24 = vsel %vm198_vm0, %v1032_v6, %v9535_v33  ;;  %v1044_v42 = vrot.slane %v9578_v1, 1  ;;  %v1046_v31 = vrot.slane %v9548_v59, 7  ;;  %v1048_v12 = vrot.slane %v9553_v60, 6 }
  0x7d   :  { %v1035_v58 = vsel %vm201_vm1, %v1034_v54, %v1033_v24  ;;  %v1050_v37 = vrot.slane %v9558_v40, 5  ;;  %v1052_v18 = vrot.slane %v9566_v26, 4  ;;  %v1054_v6 = vrot.slane %v9570_v25, 3 }
  0x7e   :  { %v1037_v30 = vsel %vm204_vm2, %v1036_v27, %v1035_v58  ;;  %v1056_v62 = vrot.slane %v9576_v32, 2  ;;  %v1047_v49 = vsel %vm198_vm0, %v1046_v31, %v9537_v36  ;;  %v1058_v54 = vrot.slane %v9580_v51, 1 }
  0x7f   :  { %v1039_v61 = vsel %vm207_vm3, %v1038_v43, %v1037_v30  ;;  %v9613_v24 = vrot.slane %v9539_v38, %v9128_v3  ;;  %v1049_v58 = vsel %vm201_vm1, %v1048_v12, %v1047_v49  ;;  %v9619_v27 = vrot.slane %v9541_v0, %v9128_v3 }
  0x80   :  { %v1041_v34 = vsel %vm210_vm4, %v1040_v41, %v1039_v61  ;;  %v1124_v39 = vrot.slane %v9535_v33, 1  ;;  %v1051_v31 = vsel %vm204_vm2, %v1050_v37, %v1049_v58  ;;  %v1126_v43 = vrot.slane %v9551_v35, 7 }
  0x81   :  { %15030 = vst [vmem:[#allocation45_spill] sm:$0xff] %v9613_v24  ;;  %15031 = vst [vmem:[#allocation46_spill] sm:$0xff] %v9619_v27  ;;  %v1043_v30 = vsel %vm213_vm5, %v1042_v44, %v1041_v34  ;;  %v1128_v52 = vrot.slane %v9555_v19, 6  ;;  %v1053_v61 = vsel %vm207_vm3, %v1052_v18, %v1051_v31  ;;  %v1130_v41 = vrot.slane %v9560_v55, 5 }
  0x82   :  { %v9627_v46 = vsel %vm216_vm6, %v1044_v42, %v1043_v30  ;;  %v1125_v49 = vsel %vm198_vm0, %v9546_v50, %v1124_v39  ;;  %v1055_v12 = vsel %vm210_vm4, %v1054_v6, %v1053_v61  ;;  %v1132_v37 = vrot.slane %v9568_v20, 4 }
  0x83   :  { %15032 = vst [vmem:[#allocation47_spill] sm:$0xff] %v9627_v46  ;;  %v1066_v34 = vmul.f32 %v9627_v46, %v9584_v45  ;;  %v1127_v44 = vsel %vm201_vm1, %v1126_v43, %v1125_v49  ;;  %v1057_v58 = vsel %vm213_vm5, %v1056_v62, %v1055_v12  ;;  %v1134_v18 = vrot.slane %v9574_v7, 3 }
  0x84   :  { %v1129_v42 = vsel %vm204_vm2, %v1128_v52, %v1127_v44  ;;  %v1136_v30 = vrot.slane %v9578_v1, 2  ;;  %v9643_v39 = vsel %vm216_vm6, %v1058_v54, %v1057_v58  ;;  %v1138_v61 = vrot.slane %v9537_v36, 1 }
  0x85   :  { %15033 = vst [vmem:[#allocation48_spill] sm:$0xff] %v9643_v39  ;;  %v1074_v31 = vadd.f32 %v1066_v34, %v918_v56  ;;  %v1131_v6 = vsel %vm207_vm3, %v1130_v41, %v1129_v42  ;;  %v1067_v43 = vmul.f32 %v9643_v39, %v9588_v63  ;;  %v1140_v62 = vrot.slane %v9553_v60, 7 }
  0x86   :  { %v1133_v49 = vsel %vm210_vm4, %v1132_v37, %v1131_v6  ;;  %v1142_v52 = vrot.slane %v9558_v40, 6  ;;  %v1139_v54 = vsel %vm198_vm0, %v9548_v59, %v1138_v61  ;;  %v1144_v56 = vrot.slane %v9566_v26, 5 }
  0x87   :  { %v1135_v12 = vsel %vm213_vm5, %v1134_v18, %v1133_v49  ;;  %v1146_v41 = vrot.slane %v9570_v25, 4  ;;  %v1075_v34 = vadd.f32 %v1067_v43, %v919_v29  ;;  %v1141_v58 = vsel %vm201_vm1, %v1140_v62, %v1139_v54 }
  0x88   :  { %v9658_v44 = vsel %vm216_vm6, %v1136_v30, %v1135_v12  ;;  %v1148_v37 = vrot.slane %v9576_v32, 3  ;;  %v1143_v42 = vsel %vm204_vm2, %v1142_v52, %v1141_v58  ;;  %v1150_v6 = vrot.slane %v9580_v51, 2 }
  0x89   :  { %15034 = vst [vmem:[#allocation49_spill] sm:$0xff] %v9658_v44  ;;  %v1158_v18 = vmul.f32 %v9658_v44, %v9613_v24  ;;  %v9668_v61 = vrot.slane %v9539_v38, %v9130_v4  ;;  %v1145_v29 = vsel %vm207_vm3, %v1144_v56, %v1143_v42  ;;  %v9673_v30 = vrot.slane %v9541_v0, %v9130_v4 }
  0x8a   :  { %v1216_v43 = vrot.slane %v9535_v33, 2  ;;  %v1217_v49 = vrot.slane %v9546_v50, 1  ;;  %v1147_v62 = vsel %vm210_vm4, %v1146_v41, %v1145_v29  ;;  %v1220_v12 = vrot.slane %v9555_v19, 7 }
  0x8b   :  { %15035 = vst [vmem:[#allocation50_spill] sm:$0xff] %v9668_v61  ;;  %15036 = vst [vmem:[#allocation51_spill] sm:$0xff] %v9673_v30  ;;  %v1166_v52 = vadd.f32 %v1158_v18, %v1074_v31  ;;  %v1222_v54 = vrot.slane %v9560_v55, 6  ;;  %v1149_v58 = vsel %vm213_vm5, %v1148_v37, %v1147_v62  ;;  %v1224_v56 = vrot.slane %v9568_v20, 5 }
  0x8c   :  { %v1218_v44 = vsel %vm198_vm0, %v1217_v49, %v1216_v43  ;;  %v1226_v42 = vrot.slane %v9574_v7, 4  ;;  %v9685_v39 = vsel %vm216_vm6, %v1150_v6, %v1149_v58  ;;  %v1228_v31 = vrot.slane %v9578_v1, 3 }
  0x8d   :  { %15037 = vst [vmem:[#allocation52_spill] sm:$0xff] %v9685_v39  ;;  %v1219_v46 = vsel %vm201_vm1, %v9551_v35, %v1218_v44  ;;  %v1230_v41 = vrot.slane %v9537_v36, 2  ;;  %v1159_v18 = vmul.f32 %v9685_v39, %v9619_v27  ;;  %v1231_v29 = vrot.slane %v9548_v59, 1 }
  0x8e   :  { %v1221_v37 = vsel %vm204_vm2, %v1220_v12, %v1219_v46  ;;  %v1234_v43 = vrot.slane %v9558_v40, 7  ;;  %v1236_v6 = vrot.slane %v9566_v26, 6  ;;  %v1238_v62 = vrot.slane %v9570_v25, 5 }
  0x8f   :  { %v1223_v49 = vsel %vm207_vm3, %v1222_v54, %v1221_v37  ;;  %v1240_v44 = vrot.slane %v9576_v32, 4  ;;  %v1167_v58 = vadd.f32 %v1159_v18, %v1075_v34  ;;  %v1232_v63 = vsel %vm198_vm0, %v1231_v29, %v1230_v41 }
  0x90   :  { %v1225_v24 = vsel %vm210_vm4, %v1224_v56, %v1223_v49  ;;  %v1242_v39 = vrot.slane %v9580_v51, 3  ;;  %v1233_v12 = vsel %vm201_vm1, %v9553_v60, %v1232_v63  ;;  %v9708_v54 = vrot.slane %v9539_v38, %v9132_v5 }
  0x91   :  { %v1227_v46 = vsel %vm213_vm5, %v1226_v42, %v1225_v24  ;;  %v9712_v37 = vrot.slane %v9541_v0, %v9132_v5  ;;  %v1235_v56 = vsel %vm204_vm2, %v1234_v43, %v1233_v12  ;;  %v1308_v41 = vrot.slane %v9535_v33, 3 }
  0x92   :  { %15038 = vst [vmem:[#allocation53_spill] sm:$0xff] %v9708_v54  ;;  %v9715_v34 = vsel %vm216_vm6, %v1228_v31, %v1227_v46  ;;  %v1309_v24 = vrot.slane %v9546_v50, 2  ;;  %v1237_v42 = vsel %vm207_vm3, %v1236_v6, %v1235_v56  ;;  %v1311_v18 = vrot.slane %v9551_v35, 1 }
  0x93   :  { %15039 = vst [vmem:[#allocation54_spill] sm:$0xff] %v9712_v37  ;;  %15040 = vst [vmem:[#allocation55_spill] sm:$0xff] %v9715_v34  ;;  %v1250_v63 = vmul.f32 %v9715_v34, %v9668_v61  ;;  %v1314_v29 = vrot.slane %v9560_v55, 7  ;;  %v1239_v49 = vsel %vm210_vm4, %v1238_v62, %v1237_v42  ;;  %v1316_v46 = vrot.slane %v9568_v20, 6 }
  0x94   :  { %v1310_v31 = vsel %vm198_vm0, %v1309_v24, %v1308_v41  ;;  %v1318_v43 = vrot.slane %v9574_v7, 5  ;;  %v1241_v12 = vsel %vm213_vm5, %v1240_v44, %v1239_v49  ;;  %v1320_v56 = vrot.slane %v9578_v1, 4 }
  0x95   :  { %v1258_v27 = vadd.f32 %v1250_v63, %v1166_v52  ;;  %v1312_v6 = vsel %vm201_vm1, %v1311_v18, %v1310_v31  ;;  %v9733_v34 = vsel %vm216_vm6, %v1242_v39, %v1241_v12  ;;  %v1322_v62 = vrot.slane %v9537_v36, 3 }
  0x96   :  { %15041 = vst [vmem:[#allocation56_spill] sm:$0xff] %v9733_v34  ;;  %v1313_v61 = vsel %vm204_vm2, %v9555_v19, %v1312_v6  ;;  %v1323_v41 = vrot.slane %v9548_v59, 2  ;;  %v1251_v24 = vmul.f32 %v9733_v34, %v9673_v30  ;;  %v1325_v52 = vrot.slane %v9553_v60, 1 }
  0x97   :  { %v1315_v44 = vsel %vm207_vm3, %v1314_v29, %v1313_v61  ;;  %v1328_v42 = vrot.slane %v9566_v26, 7  ;;  %v1330_v18 = vrot.slane %v9570_v25, 6  ;;  %v1332_v49 = vrot.slane %v9576_v32, 5 }
  0x98   :  { %v1317_v63 = vsel %vm210_vm4, %v1316_v46, %v1315_v44  ;;  %v1324_v39 = vsel %vm198_vm0, %v1323_v41, %v1322_v62  ;;  %v1259_v31 = vadd.f32 %v1251_v24, %v1167_v58  ;;  %v1334_v34 = vrot.slane %v9580_v51, 4 }
  0x99   :  { %v1319_v12 = vsel %vm213_vm5, %v1318_v43, %v1317_v63  ;;  %v1326_v6 = vsel %vm201_vm1, %v1325_v52, %v1324_v39  ;;  %v9758_v46 = vrot.slane %v9539_v38, %v9138_v8  ;;  %v9762_v62 = vrot.slane %v9541_v0, %v9138_v8 }
  0x9a   :  { %v9752_v61 = vsel %vm216_vm6, %v1320_v56, %v1319_v12  ;;  %v1327_v29 = vsel %vm204_vm2, %v9558_v40, %v1326_v6  ;;  %v1400_v41 = vrot.slane %v9535_v33, 4  ;;  %v1401_v56 = vrot.slane %v9546_v50, 3 }
  0x9b   :  { %15042 = vst [vmem:[#allocation57_spill] sm:$0xff] %v9752_v61  ;;  %15043 = vst [vmem:[#allocation58_spill] sm:$0xff] %v9758_v46  ;;  %v1329_v58 = vsel %vm207_vm3, %v1328_v42, %v1327_v29  ;;  %v1342_v43 = vmul.f32 %v9752_v61, %v9708_v54  ;;  %v1403_v44 = vrot.slane %v9551_v35, 2  ;;  %v1405_v52 = vrot.slane %v9555_v19, 1 }
  0x9c   :  { %15044 = vst [vmem:[#allocation59_spill] sm:$0xff] %v9762_v62  ;;  %v1331_v24 = vsel %vm210_vm4, %v1330_v18, %v1329_v58  ;;  %v1408_v63 = vrot.slane %v9568_v20, 7  ;;  %v1402_v42 = vsel %vm198_vm0, %v1401_v56, %v1400_v41  ;;  %v1410_v6 = vrot.slane %v9574_v7, 6 }
  0x9d   :  { %v1333_v39 = vsel %vm213_vm5, %v1332_v49, %v1331_v24  ;;  %v1350_v12 = vadd.f32 %v1342_v43, %v1258_v27  ;;  %v1404_v61 = vsel %vm201_vm1, %v1403_v44, %v1402_v42  ;;  %v1412_v18 = vrot.slane %v9578_v1, 5 }
  0x9e   :  { %v9777_v29 = vsel %vm216_vm6, %v1334_v34, %v1333_v39  ;;  %v1414_v58 = vrot.slane %v9537_v36, 4  ;;  %v1406_v30 = vsel %vm204_vm2, %v1405_v52, %v1404_v61  ;;  %v1415_v27 = vrot.slane %v9548_v59, 3 }
  0x9f   :  { %15045 = vst [vmem:[#allocation60_spill] sm:$0xff] %v9777_v29  ;;  %v1343_v54 = vmul.f32 %v9777_v29, %v9712_v37  ;;  %v1417_v49 = vrot.slane %v9553_v60, 2  ;;  %v1407_v43 = vsel %vm207_vm3, %v9560_v55, %v1406_v30  ;;  %v1419_v34 = vrot.slane %v9558_v40, 1 }
  0xa0   :  { %v1422_v41 = vrot.slane %v9570_v25, 7  ;;  %v1424_v56 = vrot.slane %v9576_v32, 6  ;;  %v1409_v44 = vsel %vm210_vm4, %v1408_v63, %v1407_v43  ;;  %v1416_v39 = vsel %vm198_vm0, %v1415_v27, %v1414_v58 }
  0xa1   :  { %v1351_v24 = vadd.f32 %v1343_v54, %v1259_v31  ;;  %v1426_v61 = vrot.slane %v9580_v51, 5  ;;  %v1411_v52 = vsel %vm213_vm5, %v1410_v6, %v1409_v44  ;;  %v1418_v42 = vsel %vm201_vm1, %v1417_v49, %v1416_v39 }
  0xa2   :  { %v9799_v30 = vrot.slane %v9539_v38, %v9140_v9  ;;  %v9803_v29 = vrot.slane %v9541_v0, %v9140_v9  ;;  %v9806_v54 = vsel %vm216_vm6, %v1412_v18, %v1411_v52  ;;  %v1420_v31 = vsel %vm204_vm2, %v1419_v34, %v1418_v42 }
  0xa3   :  { %15048 = vst [vmem:[#allocation63_spill] sm:$0xff] %v9806_v54  ;;  %v1492_v63 = vrot.slane %v9535_v33, 5  ;;  %v1493_v58 = vrot.slane %v9546_v50, 4  ;;  %v1421_v6 = vsel %vm207_vm3, %v9566_v26, %v1420_v31  ;;  %v1434_v27 = vmul.f32 %v9806_v54, %v9758_v46 }
  0xa4   :  { %15046 = vst [vmem:[#allocation61_spill] sm:$0xff] %v9799_v30  ;;  %15047 = vst [vmem:[#allocation62_spill] sm:$0xff] %v9803_v29  ;;  %v1495_v49 = vrot.slane %v9551_v35, 3  ;;  %v1497_v43 = vrot.slane %v9555_v19, 2  ;;  %v1423_v44 = vsel %vm210_vm4, %v1422_v41, %v1421_v6  ;;  %v1499_v34 = vrot.slane %v9560_v55, 1 }
  0xa5   :  { %v1494_v18 = vsel %vm198_vm0, %v1493_v58, %v1492_v63  ;;  %v1502_v39 = vrot.slane %v9574_v7, 7  ;;  %v1425_v52 = vsel %vm213_vm5, %v1424_v56, %v1423_v44  ;;  %v1442_v42 = vadd.f32 %v1434_v27, %v1350_v12 }
  0xa6   :  { %v1496_v31 = vsel %vm201_vm1, %v1495_v49, %v1494_v18  ;;  %v1504_v37 = vrot.slane %v9578_v1, 6  ;;  %v9825_v54 = vsel %vm216_vm6, %v1426_v61, %v1425_v52  ;;  %v1506_v41 = vrot.slane %v9537_v36, 5 }
  0xa7   :  { %15049 = vst [vmem:[#allocation64_spill] sm:$0xff] %v9825_v54  ;;  %v1498_v46 = vsel %vm204_vm2, %v1497_v43, %v1496_v31  ;;  %v1507_v63 = vrot.slane %v9548_v59, 4  ;;  %v1435_v58 = vmul.f32 %v9825_v54, %v9762_v62  ;;  %v1509_v12 = vrot.slane %v9553_v60, 3 }
  0xa8   :  { %v1500_v6 = vsel %vm207_vm3, %v1499_v34, %v1498_v46  ;;  %v1511_v56 = vrot.slane %v9558_v40, 2  ;;  %v1513_v49 = vrot.slane %v9566_v26, 1  ;;  %v1516_v43 = vrot.slane %v9576_v32, 7 }
  0xa9   :  { %v1501_v27 = vsel %vm210_vm4, %v9568_v20, %v1500_v6  ;;  %v1508_v61 = vsel %vm198_vm0, %v1507_v63, %v1506_v41  ;;  %v1443_v44 = vadd.f32 %v1435_v58, %v1351_v24  ;;  %v1518_v46 = vrot.slane %v9580_v51, 6 }
  0xaa   :  { %v1503_v18 = vsel %vm213_vm5, %v1502_v39, %v1501_v27  ;;  %v1510_v52 = vsel %vm201_vm1, %v1509_v12, %v1508_v61  ;;  %v9849_v6 = vrot.slane %v9539_v38, %v9142_v10  ;;  %v9853_v41 = vrot.slane %v9541_v0, %v9142_v10 }
  0xab   :  { %v9844_v34 = vsel %vm216_vm6, %v1504_v37, %v1503_v18  ;;  %v1512_v31 = vsel %vm204_vm2, %v1511_v56, %v1510_v52  ;;  %v1584_v63 = vrot.slane %v9535_v33, 6  ;;  %v1585_v37 = vrot.slane %v9546_v50, 5 }
  0xac   :  { %15050 = vst [vmem:[#allocation65_spill] sm:$0xff] %v9844_v34  ;;  %15051 = vst [vmem:[#allocation66_spill] sm:$0xff] %v9849_v6  ;;  %v1514_v24 = vsel %vm207_vm3, %v1513_v49, %v1512_v31  ;;  %v1526_v39 = vmul.f32 %v9844_v34, %v9799_v30  ;;  %v1587_v12 = vrot.slane %v9551_v35, 4  ;;  %v1589_v56 = vrot.slane %v9555_v19, 3 }
  0xad   :  { %15052 = vst [vmem:[#allocation67_spill] sm:$0xff] %v9853_v41  ;;  %v1515_v58 = vsel %vm210_vm4, %v9570_v25, %v1514_v24  ;;  %v1591_v27 = vrot.slane %v9560_v55, 2  ;;  %v1586_v49 = vsel %vm198_vm0, %v1585_v37, %v1584_v63  ;;  %v1593_v52 = vrot.slane %v9568_v20, 1 }
  0xae   :  { %v1517_v61 = vsel %vm213_vm5, %v1516_v43, %v1515_v58  ;;  %v1534_v18 = vadd.f32 %v1526_v39, %v1442_v42  ;;  %v1588_v34 = vsel %vm201_vm1, %v1587_v12, %v1586_v49  ;;  %v1596_v24 = vrot.slane %v9578_v1, 7 }
  0xaf   :  { %v9869_v31 = vsel %vm216_vm6, %v1518_v46, %v1517_v61  ;;  %v1598_v54 = vrot.slane %v9537_v36, 6  ;;  %v1590_v62 = vsel %vm204_vm2, %v1589_v56, %v1588_v34  ;;  %v1599_v42 = vrot.slane %v9548_v59, 5 }
  0xb0   :  { %15053 = vst [vmem:[#allocation68_spill] sm:$0xff] %v9869_v31  ;;  %v1527_v30 = vmul.f32 %v9869_v31, %v9803_v29  ;;  %v1601_v43 = vrot.slane %v9553_v60, 4  ;;  %v1592_v39 = vsel %vm207_vm3, %v1591_v27, %v1590_v62  ;;  %v1603_v46 = vrot.slane %v9558_v40, 3 }
  0xb1   :  { %v1605_v63 = vrot.slane %v9566_v26, 2  ;;  %v1607_v37 = vrot.slane %v9570_v25, 1  ;;  %v1594_v12 = vsel %vm210_vm4, %v1593_v52, %v1592_v39  ;;  %v1600_v61 = vsel %vm198_vm0, %v1599_v42, %v1598_v54 }
  0xb2   :  { %v1535_v58 = vadd.f32 %v1527_v30, %v1443_v44  ;;  %v1610_v49 = vrot.slane %v9580_v51, 7  ;;  %v1595_v34 = vsel %vm213_vm5, %v9574_v7, %v1594_v12  ;;  %v1602_v56 = vsel %vm201_vm1, %v1601_v43, %v1600_v61 }
  0xb3   :  { %v9891_v62 = vrot.slane %v9539_v38, %v9144_v11  ;;  %v9895_v27 = vrot.slane %v9541_v0, %v9144_v11  ;;  %v9898_v30 = vsel %vm216_vm6, %v1596_v24, %v1595_v34  ;;  %v1604_v54 = vsel %vm204_vm2, %v1603_v46, %v1602_v56  ;;  %v1748_v34 = vld [vmem:[#allocation6 + $0x190] sm:$0xff]  ;;  %v1750_v56 = vld [vmem:[#allocation6 + $0x1c0] sm:$0xff] }
  0xb4   :  { %15056 = vst [vmem:[#allocation71_spill] sm:$0xff] %v9898_v30  ;;  %v1676_v44 = vrot.slane %v9535_v33, 7  ;;  %v1677_v52 = vrot.slane %v9546_v50, 6  ;;  %v1606_v42 = vsel %vm207_vm3, %v1605_v63, %v1604_v54  ;;  %v1618_v43 = vmul.f32 %v9898_v30, %v9849_v6 }
  0xb5   :  { %15054 = vst [vmem:[#allocation69_spill] sm:$0xff] %v9891_v62  ;;  %15055 = vst [vmem:[#allocation70_spill] sm:$0xff] %v9895_v27  ;;  %v1679_v38 = vrot.slane %v9551_v35, 5  ;;  %v1681_v39 = vrot.slane %v9555_v19, 4  ;;  %v1608_v0 = vsel %vm210_vm4, %v1607_v37, %v1606_v42  ;;  %v1683_v12 = vrot.slane %v9560_v55, 3 }
  0xb6   :  { %v1678_v24 = vsel %vm198_vm0, %v1677_v52, %v1676_v44  ;;  %v1685_v46 = vrot.slane %v9568_v20, 2  ;;  %v1609_v33 = vsel %vm213_vm5, %v9576_v32, %v1608_v0  ;;  %v1626_v50 = vadd.f32 %v1618_v43, %v1534_v18  ;;  %v1752_v44 = vld [vmem:[#allocation6 + $0x1f0] sm:$0xff]  ;;  %v1754_v52 = vld [vmem:[#allocation6 + $0x220] sm:$0xff] }
  0xb7   :  { %v1680_v63 = vsel %vm201_vm1, %v1679_v38, %v1678_v24  ;;  %v1687_v61 = vrot.slane %v9574_v7, 1  ;;  %v9917_v35 = vsel %vm216_vm6, %v1610_v49, %v1609_v33  ;;  %v1690_v37 = vrot.slane %v9537_v36, 7  ;;  %v1756_v43 = vld [vmem:[#allocation6 + $0x250] sm:$0xff]  ;;  %v1758_v24 = vld [vmem:[#allocation6 + $0x280] sm:$0xff] }
  0xb8   :  { %15057 = vst [vmem:[#allocation72_spill] sm:$0xff] %v9917_v35  ;;  %v1682_v19 = vsel %vm204_vm2, %v1681_v39, %v1680_v63  ;;  %v1691_v55 = vrot.slane %v9548_v59, 6  ;;  %v1619_v20 = vmul.f32 %v9917_v35, %v9853_v41  ;;  %v1693_v54 = vrot.slane %v9553_v60, 5  ;;  %v1762_v33 = vld [vmem:[#allocation6 + $0x2e0] sm:$0xff] }
  0xb9   :  { %v1684_v18 = vsel %vm207_vm3, %v1683_v12, %v1682_v19  ;;  %v1695_v7 = vrot.slane %v9558_v40, 4  ;;  %v1697_v36 = vrot.slane %v9566_v26, 3  ;;  %v1699_v59 = vrot.slane %v9570_v25, 2 }
  0xba   :  { %v1686_v49 = vsel %vm210_vm4, %v1685_v46, %v1684_v18  ;;  %v1692_v42 = vsel %vm198_vm0, %v1691_v55, %v1690_v37  ;;  %v1627_v38 = vadd.f32 %v1619_v20, %v1535_v58  ;;  %v1701_v60 = vrot.slane %v9576_v32, 1  ;;  %v1760_v46 = vld [vmem:[#allocation6 + $0x2b0] sm:$0xff]  ;;  %v9948_v32 = vld [vmem:[#allocation3 + $0x28] sm:$0xff] }
  0xbb   :  { %v1688_v39 = vsel %vm213_vm5, %v1687_v61, %v1686_v49  ;;  %v1694_v0 = vsel %vm201_vm1, %v1693_v54, %v1692_v42  ;;  %v9939_v26 = vunpack.c.l.bf16 %v1748_v34  ;;  %v9941_v25 = vunpack.c.h.bf16 %v1748_v34  ;;  %v9946_v61 = vld [vmem:[#allocation3 + $0x20] sm:$0xff] }
  0xbc   :  { %v9936_v40 = vsel %vm216_vm6, %v9578_v1, %v1688_v39  ;;  %v1696_v12 = vsel %vm204_vm2, %v1695_v7, %v1694_v0  ;;  %v9950_v19 = vunpack.c.l.bf16 %v1750_v56  ;;  %v9952_v1 = vunpack.c.h.bf16 %v1750_v56 }
  0xbd   :  { %15058 = vst [vmem:[#allocation73_spill] sm:$0xff] %v9936_v40  ;;  %v1698_v58 = vsel %vm207_vm3, %v1697_v36, %v1696_v12  ;;  %v1710_v63 = vmul.f32 %v9936_v40, %v9891_v62  ;;  %v9955_v55 = vunpack.c.l.bf16 %v1752_v44  ;;  %v9957_v20 = vunpack.c.h.bf16 %v1752_v44 }
  0xbe   :  { %v1700_v37 = vsel %vm210_vm4, %v1699_v59, %v1698_v58  ;;  %v9959_v34 = vunpack.c.l.bf16 %v1754_v52  ;;  %v9962_v7 = vunpack.c.h.bf16 %v1754_v52  ;;  %v9964_v49 = vunpack.c.l.bf16 %v1756_v43 }
  0xbf   :  { %v1702_v18 = vsel %vm213_vm5, %v1701_v60, %v1700_v37  ;;  %v1718_v54 = vadd.f32 %v1710_v63, %v1626_v50  ;;  %v9970_v56 = vunpack.c.h.bf16 %v1756_v43  ;;  %v9972_v36 = vunpack.c.l.bf16 %v1758_v24 }
  0xc0   :  { %v9968_v42 = vsel %vm216_vm6, %v9580_v51, %v1702_v18  ;;  %v9974_v59 = vunpack.c.h.bf16 %v1758_v24  ;;  %v9978_v39 = vunpack.c.l.bf16 %v1760_v46  ;;  %v9980_v50 = vunpack.c.h.bf16 %v1760_v46 }
  0xc1   :  { %15059 = vst [vmem:[#allocation74_spill] sm:$0xff] %v9968_v42  ;;  %v1711_v44 = vmul.f32 %v9968_v42, %v9895_v27  ;;  %v9982_v52 = vunpack.c.l.bf16 %v1762_v33  ;;  %v9984_v0 = vunpack.c.h.bf16 %v1762_v33  ;;  %v9988_v51 = vrot.slane %v9946_v61, %v9126_v2 }
  0xc2   :  { %v9992_v43 = vrot.slane %v9948_v32, %v9126_v2  ;;  %v1872_v60 = vrot.slane %v9950_v19, 7  ;;  %v1874_v12 = vrot.slane %v9955_v55, 6  ;;  %v1876_v46 = vrot.slane %v9959_v34, 5 }
  0xc3   :  { %15060 = vst [vmem:[#allocation75_spill] sm:$0xff] %v9988_v51  ;;  %v1719_v24 = vadd.f32 %v1711_v44, %v1627_v38  ;;  %v1878_v58 = vrot.slane %v9964_v49, 4  ;;  %v1880_v63 = vrot.slane %v9972_v36, 3  ;;  %v1882_v37 = vrot.slane %v9978_v39, 2 }
  0xc4   :  { %15061 = vst [vmem:[#allocation76_spill] sm:$0xff] %v9992_v43  ;;  %v1873_v33 = vsel %vm198_vm0, %v1872_v60, %v9939_v26  ;;  %v1884_v18 = vrot.slane %v9982_v52, 1  ;;  %v1886_v40 = vrot.slane %v9952_v1, 7  ;;  %v1888_v38 = vrot.slane %v9957_v20, 6 }
  0xc5   :  { %v1875_v42 = vsel %vm201_vm1, %v1874_v12, %v1873_v33  ;;  %v1890_v44 = vrot.slane %v9962_v7, 5  ;;  %v1892_v30 = vrot.slane %v9970_v56, 4  ;;  %v1894_v60 = vrot.slane %v9974_v59, 3 }
  0xc6   :  { %v1877_v35 = vsel %vm204_vm2, %v1876_v46, %v1875_v42  ;;  %v1896_v31 = vrot.slane %v9980_v50, 2  ;;  %v1887_v62 = vsel %vm198_vm0, %v1886_v40, %v9941_v25  ;;  %v1898_v12 = vrot.slane %v9984_v0, 1 }
  0xc7   :  { %v1879_v27 = vsel %vm207_vm3, %v1878_v58, %v1877_v35  ;;  %v10017_v33 = vrot.slane %v9946_v61, %v9128_v3  ;;  %v1889_v42 = vsel %vm201_vm1, %v1888_v38, %v1887_v62  ;;  %v10023_v46 = vrot.slane %v9948_v32, %v9128_v3 }
  0xc8   :  { %v1881_v41 = vsel %vm210_vm4, %v1880_v63, %v1879_v27  ;;  %v1964_v6 = vrot.slane %v9939_v26, 1  ;;  %v1891_v40 = vsel %vm204_vm2, %v1890_v44, %v1889_v42  ;;  %v1966_v58 = vrot.slane %v9955_v55, 7 }
  0xc9   :  { %15062 = vst [vmem:[#allocation77_spill] sm:$0xff] %v10017_v33  ;;  %15063 = vst [vmem:[#allocation78_spill] sm:$0xff] %v10023_v46  ;;  %v1883_v35 = vsel %vm213_vm5, %v1882_v37, %v1881_v41  ;;  %v1968_v29 = vrot.slane %v9959_v34, 6  ;;  %v1893_v27 = vsel %vm207_vm3, %v1892_v30, %v1891_v40  ;;  %v1970_v63 = vrot.slane %v9964_v49, 5 }
  0xca   :  { %v10031_v45 = vsel %vm216_vm6, %v1884_v18, %v1883_v35  ;;  %v1965_v62 = vsel %vm198_vm0, %v9950_v19, %v1964_v6  ;;  %v1895_v38 = vsel %vm210_vm4, %v1894_v60, %v1893_v27  ;;  %v1972_v44 = vrot.slane %v9972_v36, 4 }
  0xcb   :  { %15064 = vst [vmem:[#allocation79_spill] sm:$0xff] %v10031_v45  ;;  %v1906_v41 = vmul.f32 %v10031_v45, %v9988_v51  ;;  %v1967_v37 = vsel %vm201_vm1, %v1966_v58, %v1965_v62  ;;  %v1897_v42 = vsel %vm213_vm5, %v1896_v31, %v1895_v38  ;;  %v1974_v30 = vrot.slane %v9978_v39, 3 }
  0xcc   :  { %v1969_v18 = vsel %vm204_vm2, %v1968_v29, %v1967_v37  ;;  %v1976_v35 = vrot.slane %v9982_v52, 2  ;;  %v10047_v6 = vsel %vm216_vm6, %v1898_v12, %v1897_v42  ;;  %v1978_v27 = vrot.slane %v9941_v25, 1 }
  0xcd   :  { %15065 = vst [vmem:[#allocation80_spill] sm:$0xff] %v10047_v6  ;;  %v1914_v40 = vadd.f32 %v1906_v41, %v1718_v54  ;;  %v1971_v60 = vsel %vm207_vm3, %v1970_v63, %v1969_v18  ;;  %v1907_v58 = vmul.f32 %v10047_v6, %v9992_v43  ;;  %v1980_v31 = vrot.slane %v9957_v20, 7 }
  0xce   :  { %v1973_v62 = vsel %vm210_vm4, %v1972_v44, %v1971_v60  ;;  %v1982_v29 = vrot.slane %v9962_v7, 6  ;;  %v1979_v12 = vsel %vm198_vm0, %v9952_v1, %v1978_v27  ;;  %v1984_v54 = vrot.slane %v9970_v56, 5 }
  0xcf   :  { %v1975_v38 = vsel %vm213_vm5, %v1974_v30, %v1973_v62  ;;  %v1986_v63 = vrot.slane %v9974_v59, 4  ;;  %v1915_v41 = vadd.f32 %v1907_v58, %v1719_v24  ;;  %v1981_v42 = vsel %vm201_vm1, %v1980_v31, %v1979_v12 }
  0xd0   :  { %v10062_v37 = vsel %vm216_vm6, %v1976_v35, %v1975_v38  ;;  %v1988_v44 = vrot.slane %v9980_v50, 3  ;;  %v1983_v18 = vsel %vm204_vm2, %v1982_v29, %v1981_v42  ;;  %v1990_v60 = vrot.slane %v9984_v0, 2 }
  0xd1   :  { %15066 = vst [vmem:[#allocation81_spill] sm:$0xff] %v10062_v37  ;;  %v1998_v30 = vmul.f32 %v10062_v37, %v10017_v33  ;;  %v10072_v27 = vrot.slane %v9946_v61, %v9130_v4  ;;  %v1985_v24 = vsel %vm207_vm3, %v1984_v54, %v1983_v18  ;;  %v10077_v35 = vrot.slane %v9948_v32, %v9130_v4 }
  0xd2   :  { %v2056_v58 = vrot.slane %v9939_v26, 2  ;;  %v2057_v62 = vrot.slane %v9950_v19, 1  ;;  %v1987_v31 = vsel %vm210_vm4, %v1986_v63, %v1985_v24  ;;  %v2060_v38 = vrot.slane %v9959_v34, 7 }
  0xd3   :  { %15067 = vst [vmem:[#allocation82_spill] sm:$0xff] %v10072_v27  ;;  %15068 = vst [vmem:[#allocation83_spill] sm:$0xff] %v10077_v35  ;;  %v2006_v29 = vadd.f32 %v1998_v30, %v1914_v40  ;;  %v2062_v12 = vrot.slane %v9964_v49, 6  ;;  %v1989_v42 = vsel %vm213_vm5, %v1988_v44, %v1987_v31  ;;  %v2064_v54 = vrot.slane %v9972_v36, 5 }
  0xd4   :  { %v2058_v37 = vsel %vm198_vm0, %v2057_v62, %v2056_v58  ;;  %v2066_v18 = vrot.slane %v9978_v39, 4  ;;  %v10089_v6 = vsel %vm216_vm6, %v1990_v60, %v1989_v42  ;;  %v2068_v40 = vrot.slane %v9982_v52, 3 }
  0xd5   :  { %15069 = vst [vmem:[#allocation84_spill] sm:$0xff] %v10089_v6  ;;  %v2059_v45 = vsel %vm201_vm1, %v9955_v55, %v2058_v37  ;;  %v2070_v63 = vrot.slane %v9941_v25, 2  ;;  %v1999_v30 = vmul.f32 %v10089_v6, %v10023_v46  ;;  %v2071_v24 = vrot.slane %v9952_v1, 1 }
  0xd6   :  { %v2061_v44 = vsel %vm204_vm2, %v2060_v38, %v2059_v45  ;;  %v2074_v58 = vrot.slane %v9962_v7, 7  ;;  %v2076_v60 = vrot.slane %v9970_v56, 6  ;;  %v2078_v31 = vrot.slane %v9974_v59, 5 }
  0xd7   :  { %v2063_v62 = vsel %vm207_vm3, %v2062_v12, %v2061_v44  ;;  %v2080_v37 = vrot.slane %v9980_v50, 4  ;;  %v2007_v42 = vadd.f32 %v1999_v30, %v1915_v41  ;;  %v2072_v43 = vsel %vm198_vm0, %v2071_v24, %v2070_v63 }
  0xd8   :  { %v2065_v33 = vsel %vm210_vm4, %v2064_v54, %v2063_v62  ;;  %v2082_v6 = vrot.slane %v9984_v0, 3  ;;  %v2073_v38 = vsel %vm201_vm1, %v9957_v20, %v2072_v43  ;;  %v10112_v12 = vrot.slane %v9946_v61, %v9132_v5 }
  0xd9   :  { %v2067_v45 = vsel %vm213_vm5, %v2066_v18, %v2065_v33  ;;  %v10116_v44 = vrot.slane %v9948_v32, %v9132_v5  ;;  %v2075_v54 = vsel %vm204_vm2, %v2074_v58, %v2073_v38  ;;  %v2148_v63 = vrot.slane %v9939_v26, 3 }
  0xda   :  { %15070 = vst [vmem:[#allocation85_spill] sm:$0xff] %v10112_v12  ;;  %v10119_v41 = vsel %vm216_vm6, %v2068_v40, %v2067_v45  ;;  %v2149_v33 = vrot.slane %v9950_v19, 2  ;;  %v2077_v18 = vsel %vm207_vm3, %v2076_v60, %v2075_v54  ;;  %v2151_v30 = vrot.slane %v9955_v55, 1 }
  0xdb   :  { %15071 = vst [vmem:[#allocation86_spill] sm:$0xff] %v10116_v44  ;;  %15072 = vst [vmem:[#allocation87_spill] sm:$0xff] %v10119_v41  ;;  %v2090_v43 = vmul.f32 %v10119_v41, %v10072_v27  ;;  %v2154_v24 = vrot.slane %v9964_v49, 7  ;;  %v2079_v62 = vsel %vm210_vm4, %v2078_v31, %v2077_v18  ;;  %v2156_v45 = vrot.slane %v9972_v36, 6 }
  0xdc   :  { %v2150_v40 = vsel %vm198_vm0, %v2149_v33, %v2148_v63  ;;  %v2158_v58 = vrot.slane %v9978_v39, 5  ;;  %v2081_v38 = vsel %vm213_vm5, %v2080_v37, %v2079_v62  ;;  %v2160_v54 = vrot.slane %v9982_v52, 4 }
  0xdd   :  { %v2098_v46 = vadd.f32 %v2090_v43, %v2006_v29  ;;  %v2152_v60 = vsel %vm201_vm1, %v2151_v30, %v2150_v40  ;;  %v10137_v41 = vsel %vm216_vm6, %v2082_v6, %v2081_v38  ;;  %v2162_v31 = vrot.slane %v9941_v25, 3 }
  0xde   :  { %15073 = vst [vmem:[#allocation88_spill] sm:$0xff] %v10137_v41  ;;  %v2153_v27 = vsel %vm204_vm2, %v9959_v34, %v2152_v60  ;;  %v2163_v63 = vrot.slane %v9952_v1, 2  ;;  %v2091_v33 = vmul.f32 %v10137_v41, %v10077_v35  ;;  %v2165_v29 = vrot.slane %v9957_v20, 1 }
  0xdf   :  { %v2155_v37 = vsel %vm207_vm3, %v2154_v24, %v2153_v27  ;;  %v2168_v18 = vrot.slane %v9970_v56, 7  ;;  %v2170_v30 = vrot.slane %v9974_v59, 6  ;;  %v2172_v62 = vrot.slane %v9980_v50, 5 }
  0xe0   :  { %v2157_v43 = vsel %vm210_vm4, %v2156_v45, %v2155_v37  ;;  %v2164_v6 = vsel %vm198_vm0, %v2163_v63, %v2162_v31  ;;  %v2099_v40 = vadd.f32 %v2091_v33, %v2007_v42  ;;  %v2174_v41 = vrot.slane %v9984_v0, 4 }
  0xe1   :  { %v2159_v38 = vsel %vm213_vm5, %v2158_v58, %v2157_v43  ;;  %v2166_v60 = vsel %vm201_vm1, %v2165_v29, %v2164_v6  ;;  %v10162_v45 = vrot.slane %v9946_v61, %v9138_v8  ;;  %v10166_v31 = vrot.slane %v9948_v32, %v9138_v8 }
  0xe2   :  { %v10156_v27 = vsel %vm216_vm6, %v2160_v54, %v2159_v38  ;;  %v2167_v24 = vsel %vm204_vm2, %v9962_v7, %v2166_v60  ;;  %v2240_v63 = vrot.slane %v9939_v26, 4  ;;  %v2241_v54 = vrot.slane %v9950_v19, 3 }
  0xe3   :  { %15074 = vst [vmem:[#allocation89_spill] sm:$0xff] %v10156_v27  ;;  %15075 = vst [vmem:[#allocation90_spill] sm:$0xff] %v10162_v45  ;;  %v2169_v42 = vsel %vm207_vm3, %v2168_v18, %v2167_v24  ;;  %v2182_v58 = vmul.f32 %v10156_v27, %v10112_v12  ;;  %v2243_v37 = vrot.slane %v9955_v55, 2  ;;  %v2245_v29 = vrot.slane %v9959_v34, 1 }
  0xe4   :  { %15076 = vst [vmem:[#allocation91_spill] sm:$0xff] %v10166_v31  ;;  %v2171_v33 = vsel %vm210_vm4, %v2170_v30, %v2169_v42  ;;  %v2248_v43 = vrot.slane %v9972_v36, 7  ;;  %v2242_v18 = vsel %vm198_vm0, %v2241_v54, %v2240_v63  ;;  %v2250_v60 = vrot.slane %v9978_v39, 6 }
  0xe5   :  { %v2173_v6 = vsel %vm213_vm5, %v2172_v62, %v2171_v33  ;;  %v2190_v38 = vadd.f32 %v2182_v58, %v2098_v46  ;;  %v2244_v27 = vsel %vm201_vm1, %v2243_v37, %v2242_v18  ;;  %v2252_v30 = vrot.slane %v9982_v52, 5 }
  0xe6   :  { %v10181_v24 = vsel %vm216_vm6, %v2174_v41, %v2173_v6  ;;  %v2254_v42 = vrot.slane %v9941_v25, 4  ;;  %v2246_v35 = vsel %vm204_vm2, %v2245_v29, %v2244_v27  ;;  %v2255_v46 = vrot.slane %v9952_v1, 3 }
  0xe7   :  { %15077 = vst [vmem:[#allocation92_spill] sm:$0xff] %v10181_v24  ;;  %v2183_v12 = vmul.f32 %v10181_v24, %v10116_v44  ;;  %v2257_v62 = vrot.slane %v9957_v20, 2  ;;  %v2247_v58 = vsel %vm207_vm3, %v9964_v49, %v2246_v35  ;;  %v2259_v41 = vrot.slane %v9962_v7, 1 }
  0xe8   :  { %v2262_v63 = vrot.slane %v9974_v59, 7  ;;  %v2264_v54 = vrot.slane %v9980_v50, 6  ;;  %v2249_v37 = vsel %vm210_vm4, %v2248_v43, %v2247_v58  ;;  %v2256_v6 = vsel %vm198_vm0, %v2255_v46, %v2254_v42 }
  0xe9   :  { %v2191_v33 = vadd.f32 %v2183_v12, %v2099_v40  ;;  %v2266_v27 = vrot.slane %v9984_v0, 5  ;;  %v2251_v29 = vsel %vm213_vm5, %v2250_v60, %v2249_v37  ;;  %v2258_v18 = vsel %vm201_vm1, %v2257_v62, %v2256_v6 }
  0xea   :  { %v10203_v35 = vrot.slane %v9946_v61, %v9140_v9  ;;  %v10207_v24 = vrot.slane %v9948_v32, %v9140_v9  ;;  %v10210_v12 = vsel %vm216_vm6, %v2252_v30, %v2251_v29  ;;  %v2260_v40 = vsel %vm204_vm2, %v2259_v41, %v2258_v18 }
  0xeb   :  { %15080 = vst [vmem:[#allocation95_spill] sm:$0xff] %v10210_v12  ;;  %v2332_v43 = vrot.slane %v9939_v26, 5  ;;  %v2333_v42 = vrot.slane %v9950_v19, 4  ;;  %v2261_v60 = vsel %vm207_vm3, %v9970_v56, %v2260_v40  ;;  %v2274_v46 = vmul.f32 %v10210_v12, %v10162_v45 }
  0xec   :  { %15078 = vst [vmem:[#allocation93_spill] sm:$0xff] %v10203_v35  ;;  %15079 = vst [vmem:[#allocation94_spill] sm:$0xff] %v10207_v24  ;;  %v2335_v62 = vrot.slane %v9955_v55, 3  ;;  %v2337_v58 = vrot.slane %v9959_v34, 2  ;;  %v2263_v37 = vsel %vm210_vm4, %v2262_v63, %v2261_v60  ;;  %v2339_v41 = vrot.slane %v9964_v49, 1 }
  0xed   :  { %v2334_v30 = vsel %vm198_vm0, %v2333_v42, %v2332_v43  ;;  %v2342_v6 = vrot.slane %v9978_v39, 7  ;;  %v2265_v29 = vsel %vm213_vm5, %v2264_v54, %v2263_v37  ;;  %v2282_v18 = vadd.f32 %v2274_v46, %v2190_v38 }
  0xee   :  { %v2336_v40 = vsel %vm201_vm1, %v2335_v62, %v2334_v30  ;;  %v2344_v44 = vrot.slane %v9982_v52, 6  ;;  %v10229_v12 = vsel %vm216_vm6, %v2266_v27, %v2265_v29  ;;  %v2346_v63 = vrot.slane %v9941_v25, 5 }
  0xef   :  { %15081 = vst [vmem:[#allocation96_spill] sm:$0xff] %v10229_v12  ;;  %v2338_v45 = vsel %vm204_vm2, %v2337_v58, %v2336_v40  ;;  %v2347_v43 = vrot.slane %v9952_v1, 4  ;;  %v2275_v42 = vmul.f32 %v10229_v12, %v10166_v31  ;;  %v2349_v38 = vrot.slane %v9957_v20, 3 }
  0xf0   :  { %v2340_v60 = vsel %vm207_vm3, %v2339_v41, %v2338_v45  ;;  %v2351_v54 = vrot.slane %v9962_v7, 2  ;;  %v2353_v62 = vrot.slane %v9970_v56, 1  ;;  %v2356_v58 = vrot.slane %v9980_v50, 7 }
  0xf1   :  { %v2341_v46 = vsel %vm210_vm4, %v9972_v36, %v2340_v60  ;;  %v2348_v27 = vsel %vm198_vm0, %v2347_v43, %v2346_v63  ;;  %v2283_v37 = vadd.f32 %v2275_v42, %v2191_v33  ;;  %v2358_v45 = vrot.slane %v9984_v0, 6 }
  0xf2   :  { %v2343_v30 = vsel %vm213_vm5, %v2342_v6, %v2341_v46  ;;  %v2350_v29 = vsel %vm201_vm1, %v2349_v38, %v2348_v27  ;;  %v10253_v60 = vrot.slane %v9946_v61, %v9142_v10  ;;  %v10257_v63 = vrot.slane %v9948_v32, %v9142_v10 }
  0xf3   :  { %v10248_v41 = vsel %vm216_vm6, %v2344_v44, %v2343_v30  ;;  %v2352_v40 = vsel %vm204_vm2, %v2351_v54, %v2350_v29  ;;  %v2424_v43 = vrot.slane %v9939_v26, 6  ;;  %v2425_v44 = vrot.slane %v9950_v19, 5 }
  0xf4   :  { %15082 = vst [vmem:[#allocation97_spill] sm:$0xff] %v10248_v41  ;;  %15083 = vst [vmem:[#allocation98_spill] sm:$0xff] %v10253_v60  ;;  %v2354_v33 = vsel %vm207_vm3, %v2353_v62, %v2352_v40  ;;  %v2366_v6 = vmul.f32 %v10248_v41, %v10203_v35  ;;  %v2427_v38 = vrot.slane %v9955_v55, 4  ;;  %v2429_v54 = vrot.slane %v9959_v34, 3 }
  0xf5   :  { %15084 = vst [vmem:[#allocation99_spill] sm:$0xff] %v10257_v63  ;;  %v2355_v42 = vsel %vm210_vm4, %v9974_v59, %v2354_v33  ;;  %v2431_v46 = vrot.slane %v9964_v49, 2  ;;  %v2426_v62 = vsel %vm198_vm0, %v2425_v44, %v2424_v43  ;;  %v2433_v29 = vrot.slane %v9972_v36, 1 }
  0xf6   :  { %v2357_v27 = vsel %vm213_vm5, %v2356_v58, %v2355_v42  ;;  %v2374_v30 = vadd.f32 %v2366_v6, %v2282_v18  ;;  %v2428_v41 = vsel %vm201_vm1, %v2427_v38, %v2426_v62  ;;  %v2436_v33 = vrot.slane %v9982_v52, 7 }
  0xf7   :  { %v10273_v40 = vsel %vm216_vm6, %v2358_v45, %v2357_v27  ;;  %v2438_v12 = vrot.slane %v9941_v25, 6  ;;  %v2430_v31 = vsel %vm204_vm2, %v2429_v54, %v2428_v41  ;;  %v2439_v18 = vrot.slane %v9952_v1, 5 }
  0xf8   :  { %15085 = vst [vmem:[#allocation100_spill] sm:$0xff] %v10273_v40  ;;  %v2367_v35 = vmul.f32 %v10273_v40, %v10207_v24  ;;  %v2441_v58 = vrot.slane %v9957_v20, 4  ;;  %v2432_v6 = vsel %vm207_vm3, %v2431_v46, %v2430_v31  ;;  %v2443_v45 = vrot.slane %v9962_v7, 3 }
  0xf9   :  { %v2445_v43 = vrot.slane %v9970_v56, 2  ;;  %v2447_v44 = vrot.slane %v9974_v59, 1  ;;  %v2434_v38 = vsel %vm210_vm4, %v2433_v29, %v2432_v6  ;;  %v2440_v27 = vsel %vm198_vm0, %v2439_v18, %v2438_v12 }
  0xfa   :  { %v2375_v42 = vadd.f32 %v2367_v35, %v2283_v37  ;;  %v2450_v62 = vrot.slane %v9984_v0, 7  ;;  %v2435_v41 = vsel %vm213_vm5, %v9978_v39, %v2434_v38  ;;  %v2442_v54 = vsel %vm201_vm1, %v2441_v58, %v2440_v27 }
  0xfb   :  { %v10295_v31 = vrot.slane %v9946_v61, %v9144_v11  ;;  %v10299_v46 = vrot.slane %v9948_v32, %v9144_v11  ;;  %v10302_v35 = vsel %vm216_vm6, %v2436_v33, %v2435_v41  ;;  %v2444_v12 = vsel %vm204_vm2, %v2443_v45, %v2442_v54 }
  0xfc   :  { %15088 = vst [vmem:[#allocation103_spill] sm:$0xff] %v10302_v35  ;;  %v2516_v37 = vrot.slane %v9939_v26, 7  ;;  %v2517_v29 = vrot.slane %v9950_v19, 6  ;;  %v2446_v18 = vsel %vm207_vm3, %v2445_v43, %v2444_v12  ;;  %v2458_v58 = vmul.f32 %v10302_v35, %v10253_v60  ;;  %v1749_v26 = vld [vmem:[#allocation6 + $0x198] sm:$0xff]  ;;  %v1755_v12 = vld [vmem:[#allocation6 + $0x228] sm:$0xff] }
  0xfd   :  { %15086 = vst [vmem:[#allocation101_spill] sm:$0xff] %v10295_v31  ;;  %15087 = vst [vmem:[#allocation102_spill] sm:$0xff] %v10299_v46  ;;  %v2519_v61 = vrot.slane %v9955_v55, 5  ;;  %v2521_v6 = vrot.slane %v9959_v34, 4  ;;  %v2448_v32 = vsel %vm210_vm4, %v2447_v44, %v2446_v18  ;;  %v2523_v38 = vrot.slane %v9964_v49, 3  ;;  %v1751_v55 = vld [vmem:[#allocation6 + $0x1c8] sm:$0xff] }
  0xfe   :  { %v2518_v33 = vsel %vm198_vm0, %v2517_v29, %v2516_v37  ;;  %v2525_v45 = vrot.slane %v9972_v36, 2  ;;  %v2449_v19 = vsel %vm213_vm5, %v9980_v50, %v2448_v32  ;;  %v2466_v43 = vadd.f32 %v2458_v58, %v2374_v30  ;;  %v1753_v36 = vld [vmem:[#allocation6 + $0x1f8] sm:$0xff] }
  0xff   :  { %v2520_v27 = vsel %vm201_vm1, %v2519_v61, %v2518_v33  ;;  %v2527_v41 = vrot.slane %v9978_v39, 1  ;;  %v10321_v34 = vsel %vm216_vm6, %v2450_v62, %v2449_v19  ;;  %v2530_v54 = vrot.slane %v9941_v25, 7  ;;  %v1757_v18 = vld [vmem:[#allocation6 + $0x258] sm:$0xff]  ;;  %v1759_v61 = vld [vmem:[#allocation6 + $0x288] sm:$0xff] }
 0x100   :  { %15089 = vst [vmem:[#allocation104_spill] sm:$0xff] %v10321_v34  ;;  %v2522_v44 = vsel %vm204_vm2, %v2521_v6, %v2520_v27  ;;  %v2531_v49 = vrot.slane %v9952_v1, 6  ;;  %v2459_v37 = vmul.f32 %v10321_v34, %v10257_v63  ;;  %v2533_v29 = vrot.slane %v9957_v20, 5  ;;  %v1761_v20 = vld [vmem:[#allocation6 + $0x2b8] sm:$0xff]  ;;  %v1763_v19 = vld [vmem:[#allocation6 + $0x2e8] sm:$0xff] }
 0x101   :  { %v2524_v30 = vsel %vm207_vm3, %v2523_v38, %v2522_v44  ;;  %v2535_v39 = vrot.slane %v9962_v7, 4  ;;  %v2537_v25 = vrot.slane %v9970_v56, 3  ;;  %v2539_v1 = vrot.slane %v9974_v59, 2  ;;  %v10347_v59 = vld [vmem:[#allocation3 + $0x30] sm:$0xff] }
 0x102   :  { %v2526_v62 = vsel %vm210_vm4, %v2525_v45, %v2524_v30  ;;  %v2532_v58 = vsel %vm198_vm0, %v2531_v49, %v2530_v54  ;;  %v2467_v6 = vadd.f32 %v2459_v37, %v2375_v42  ;;  %v2541_v38 = vrot.slane %v9980_v50, 1 }
 0x103   :  { %v2528_v32 = vsel %vm213_vm5, %v2527_v41, %v2526_v62  ;;  %v2534_v33 = vsel %vm201_vm1, %v2533_v29, %v2532_v58  ;;  %v10343_v27 = vunpack.c.l.bf16 %v1749_v26  ;;  %v10345_v56 = vunpack.c.h.bf16 %v1749_v26  ;;  %v10363_v26 = vld [vmem:[#allocation3 + $0x38] sm:$0xff] }
 0x104   :  { %v10340_v7 = vsel %vm216_vm6, %v9982_v52, %v2528_v32  ;;  %v2536_v45 = vsel %vm204_vm2, %v2535_v39, %v2534_v33  ;;  %v10352_v50 = vunpack.c.l.bf16 %v1751_v55  ;;  %v10354_v44 = vunpack.c.h.bf16 %v1751_v55 }
 0x105   :  { %15090 = vst [vmem:[#allocation105_spill] sm:$0xff] %v10340_v7  ;;  %v2538_v42 = vsel %vm207_vm3, %v2537_v25, %v2536_v45  ;;  %v2550_v41 = vmul.f32 %v10340_v7, %v10295_v31  ;;  %v10357_v54 = vunpack.c.l.bf16 %v1753_v36  ;;  %v10359_v49 = vunpack.c.h.bf16 %v1753_v36 }
 0x106   :  { %v2540_v52 = vsel %vm210_vm4, %v2539_v1, %v2538_v42  ;;  %v10361_v37 = vunpack.c.l.bf16 %v1755_v12  ;;  %v10366_v39 = vunpack.c.h.bf16 %v1755_v12  ;;  %v10368_v62 = vunpack.c.l.bf16 %v1757_v18 }
 0x107   :  { %v2542_v30 = vsel %vm213_vm5, %v2541_v38, %v2540_v52  ;;  %v2558_v29 = vadd.f32 %v2550_v41, %v2466_v43  ;;  %v10374_v58 = vunpack.c.h.bf16 %v1757_v18  ;;  %v10376_v25 = vunpack.c.l.bf16 %v1759_v61 }
 0x108   :  { %v10372_v55 = vsel %vm216_vm6, %v9984_v0, %v2542_v30  ;;  %v10378_v36 = vunpack.c.h.bf16 %v1759_v61  ;;  %v10382_v32 = vunpack.c.l.bf16 %v1761_v20  ;;  %v10384_v43 = vunpack.c.h.bf16 %v1761_v20 }
 0x109   :  { %15091 = vst [vmem:[#allocation106_spill] sm:$0xff] %v10372_v55  ;;  %v2551_v1 = vmul.f32 %v10372_v55, %v10299_v46  ;;  %v10386_v12 = vunpack.c.l.bf16 %v1763_v19  ;;  %v10388_v33 = vunpack.c.h.bf16 %v1763_v19  ;;  %v10392_v0 = vrot.slane %v10347_v59, %v9126_v2 }
 0x10a   :  { %v10396_v18 = vrot.slane %v10363_v26, %v9126_v2  ;;  %v2672_v61 = vrot.slane %v10352_v50, 7  ;;  %v2674_v45 = vrot.slane %v10357_v54, 6  ;;  %v2676_v20 = vrot.slane %v10361_v37, 5 }
 0x10b   :  { %15092 = vst [vmem:[#allocation107_spill] sm:$0xff] %v10392_v0  ;;  %v2559_v38 = vadd.f32 %v2551_v1, %v2467_v6  ;;  %v2678_v42 = vrot.slane %v10368_v62, 4  ;;  %v2680_v41 = vrot.slane %v10376_v25, 3  ;;  %v2682_v52 = vrot.slane %v10382_v32, 2 }
 0x10c   :  { %15093 = vst [vmem:[#allocation108_spill] sm:$0xff] %v10396_v18  ;;  %v2673_v19 = vsel %vm198_vm0, %v2672_v61, %v10343_v27  ;;  %v2684_v30 = vrot.slane %v10386_v12, 1  ;;  %v2686_v7 = vrot.slane %v10354_v44, 7  ;;  %v2688_v6 = vrot.slane %v10359_v49, 6 }
 0x10d   :  { %v2675_v55 = vsel %vm201_vm1, %v2674_v45, %v2673_v19  ;;  %v2690_v1 = vrot.slane %v10366_v39, 5  ;;  %v2692_v35 = vrot.slane %v10374_v58, 4  ;;  %v2694_v61 = vrot.slane %v10378_v36, 3 }
 0x10e   :  { %v2677_v34 = vsel %vm204_vm2, %v2676_v20, %v2675_v55  ;;  %v2696_v40 = vrot.slane %v10384_v43, 2  ;;  %v2687_v31 = vsel %vm198_vm0, %v2686_v7, %v10345_v56  ;;  %v2698_v45 = vrot.slane %v10388_v33, 1 }
 0x10f   :  { %v2679_v46 = vsel %vm207_vm3, %v2678_v42, %v2677_v34  ;;  %v10421_v19 = vrot.slane %v10347_v59, %v9128_v3  ;;  %v2689_v55 = vsel %vm201_vm1, %v2688_v6, %v2687_v31  ;;  %v10427_v20 = vrot.slane %v10363_v26, %v9128_v3 }
 0x110   :  { %v2681_v63 = vsel %vm210_vm4, %v2680_v41, %v2679_v46  ;;  %v2764_v60 = vrot.slane %v10343_v27, 1  ;;  %v2691_v7 = vsel %vm204_vm2, %v2690_v1, %v2689_v55  ;;  %v2766_v42 = vrot.slane %v10357_v54, 7 }
 0x111   :  { %15094 = vst [vmem:[#allocation109_spill] sm:$0xff] %v10421_v19  ;;  %15095 = vst [vmem:[#allocation110_spill] sm:$0xff] %v10427_v20  ;;  %v2683_v34 = vsel %vm213_vm5, %v2682_v52, %v2681_v63  ;;  %v2768_v24 = vrot.slane %v10361_v37, 6  ;;  %v2693_v46 = vsel %vm207_vm3, %v2692_v35, %v2691_v7  ;;  %v2770_v41 = vrot.slane %v10368_v62, 5 }
 0x112   :  { %v10435_v51 = vsel %vm216_vm6, %v2684_v30, %v2683_v34  ;;  %v2765_v31 = vsel %vm198_vm0, %v10352_v50, %v2764_v60  ;;  %v2695_v6 = vsel %vm210_vm4, %v2694_v61, %v2693_v46  ;;  %v2772_v1 = vrot.slane %v10376_v25, 4 }
 0x113   :  { %15096 = vst [vmem:[#allocation111_spill] sm:$0xff] %v10435_v51  ;;  %v2706_v63 = vmul.f32 %v10435_v51, %v10392_v0  ;;  %v2767_v52 = vsel %vm201_vm1, %v2766_v42, %v2765_v31  ;;  %v2697_v55 = vsel %vm213_vm5, %v2696_v40, %v2695_v6  ;;  %v2774_v35 = vrot.slane %v10382_v32, 3 }
 0x114   :  { %v2769_v30 = vsel %vm204_vm2, %v2768_v24, %v2767_v52  ;;  %v2776_v34 = vrot.slane %v10386_v12, 2  ;;  %v10451_v60 = vsel %vm216_vm6, %v2698_v45, %v2697_v55  ;;  %v2778_v46 = vrot.slane %v10345_v56, 1 }
 0x115   :  { %15097 = vst [vmem:[#allocation112_spill] sm:$0xff] %v10451_v60  ;;  %v2714_v7 = vadd.f32 %v2706_v63, %v2558_v29  ;;  %v2771_v61 = vsel %vm207_vm3, %v2770_v41, %v2769_v30  ;;  %v2707_v42 = vmul.f32 %v10451_v60, %v10396_v18  ;;  %v2780_v40 = vrot.slane %v10359_v49, 7 }
 0x116   :  { %v2773_v31 = vsel %vm210_vm4, %v2772_v1, %v2771_v61  ;;  %v2782_v24 = vrot.slane %v10366_v39, 6  ;;  %v2779_v45 = vsel %vm198_vm0, %v10354_v44, %v2778_v46  ;;  %v2784_v29 = vrot.slane %v10374_v58, 5 }
 0x117   :  { %v2775_v6 = vsel %vm213_vm5, %v2774_v35, %v2773_v31  ;;  %v2786_v41 = vrot.slane %v10378_v36, 4  ;;  %v2715_v63 = vadd.f32 %v2707_v42, %v2559_v38  ;;  %v2781_v55 = vsel %vm201_vm1, %v2780_v40, %v2779_v45 }
 0x118   :  { %v10466_v52 = vsel %vm216_vm6, %v2776_v34, %v2775_v6  ;;  %v2788_v1 = vrot.slane %v10384_v43, 3  ;;  %v2783_v30 = vsel %vm204_vm2, %v2782_v24, %v2781_v55  ;;  %v2790_v61 = vrot.slane %v10388_v33, 2 }
 0x119   :  { %15098 = vst [vmem:[#allocation113_spill] sm:$0xff] %v10466_v52  ;;  %v2798_v35 = vmul.f32 %v10466_v52, %v10421_v19  ;;  %v10476_v46 = vrot.slane %v10347_v59, %v9130_v4  ;;  %v2785_v38 = vsel %vm207_vm3, %v2784_v29, %v2783_v30  ;;  %v10481_v34 = vrot.slane %v10363_v26, %v9130_v4 }
 0x11a   :  { %v2856_v42 = vrot.slane %v10343_v27, 2  ;;  %v2857_v31 = vrot.slane %v10352_v50, 1  ;;  %v2787_v40 = vsel %vm210_vm4, %v2786_v41, %v2785_v38  ;;  %v2860_v6 = vrot.slane %v10361_v37, 7 }
 0x11b   :  { %15099 = vst [vmem:[#allocation114_spill] sm:$0xff] %v10476_v46  ;;  %15100 = vst [vmem:[#allocation115_spill] sm:$0xff] %v10481_v34  ;;  %v2806_v24 = vadd.f32 %v2798_v35, %v2714_v7  ;;  %v2862_v45 = vrot.slane %v10368_v62, 6  ;;  %v2789_v55 = vsel %vm213_vm5, %v2788_v1, %v2787_v40  ;;  %v2864_v29 = vrot.slane %v10376_v25, 5 }
 0x11c   :  { %v2858_v52 = vsel %vm198_vm0, %v2857_v31, %v2856_v42  ;;  %v2866_v30 = vrot.slane %v10382_v32, 4  ;;  %v10493_v60 = vsel %vm216_vm6, %v2790_v61, %v2789_v55  ;;  %v2868_v7 = vrot.slane %v10386_v12, 3 }
 0x11d   :  { %15101 = vst [vmem:[#allocation116_spill] sm:$0xff] %v10493_v60  ;;  %v2859_v51 = vsel %vm201_vm1, %v10357_v54, %v2858_v52  ;;  %v2870_v41 = vrot.slane %v10345_v56, 2  ;;  %v2799_v35 = vmul.f32 %v10493_v60, %v10427_v20  ;;  %v2871_v38 = vrot.slane %v10354_v44, 1 }
 0x11e   :  { %v2861_v1 = vsel %vm204_vm2, %v2860_v6, %v2859_v51  ;;  %v2874_v42 = vrot.slane %v10366_v39, 7  ;;  %v2876_v61 = vrot.slane %v10374_v58, 6  ;;  %v2878_v40 = vrot.slane %v10378_v36, 5 }
 0x11f   :  { %v2863_v31 = vsel %vm207_vm3, %v2862_v45, %v2861_v1  ;;  %v2880_v52 = vrot.slane %v10384_v43, 4  ;;  %v2807_v55 = vadd.f32 %v2799_v35, %v2715_v63  ;;  %v2872_v18 = vsel %vm198_vm0, %v2871_v38, %v2870_v41 }
 0x120   :  { %v2865_v19 = vsel %vm210_vm4, %v2864_v29, %v2863_v31  ;;  %v2882_v60 = vrot.slane %v10388_v33, 3  ;;  %v2873_v6 = vsel %vm201_vm1, %v10359_v49, %v2872_v18  ;;  %v10516_v45 = vrot.slane %v10347_v59, %v9132_v5 }
 0x121   :  { %v2867_v51 = vsel %vm213_vm5, %v2866_v30, %v2865_v19  ;;  %v10520_v1 = vrot.slane %v10363_v26, %v9132_v5  ;;  %v2875_v29 = vsel %vm204_vm2, %v2874_v42, %v2873_v6  ;;  %v2948_v41 = vrot.slane %v10343_v27, 3 }
 0x122   :  { %15102 = vst [vmem:[#allocation117_spill] sm:$0xff] %v10516_v45  ;;  %v10523_v63 = vsel %vm216_vm6, %v2868_v7, %v2867_v51  ;;  %v2949_v19 = vrot.slane %v10352_v50, 2  ;;  %v2877_v30 = vsel %vm207_vm3, %v2876_v61, %v2875_v29  ;;  %v2951_v35 = vrot.slane %v10357_v54, 1 }
 0x123   :  { %15103 = vst [vmem:[#allocation118_spill] sm:$0xff] %v10520_v1  ;;  %15104 = vst [vmem:[#allocation119_spill] sm:$0xff] %v10523_v63  ;;  %v2890_v18 = vmul.f32 %v10523_v63, %v10476_v46  ;;  %v2954_v38 = vrot.slane %v10368_v62, 7  ;;  %v2879_v31 = vsel %vm210_vm4, %v2878_v40, %v2877_v30  ;;  %v2956_v51 = vrot.slane %v10376_v25, 6 }
 0x124   :  { %v2950_v7 = vsel %vm198_vm0, %v2949_v19, %v2948_v41  ;;  %v2958_v42 = vrot.slane %v10382_v32, 5  ;;  %v2881_v6 = vsel %vm213_vm5, %v2880_v52, %v2879_v31  ;;  %v2960_v29 = vrot.slane %v10386_v12, 4 }
 0x125   :  { %v2898_v20 = vadd.f32 %v2890_v18, %v2806_v24  ;;  %v2952_v61 = vsel %vm201_vm1, %v2951_v35, %v2950_v7  ;;  %v10541_v63 = vsel %vm216_vm6, %v2882_v60, %v2881_v6  ;;  %v2962_v40 = vrot.slane %v10345_v56, 3 }
 0x126   :  { %15105 = vst [vmem:[#allocation120_spill] sm:$0xff] %v10541_v63  ;;  %v2953_v46 = vsel %vm204_vm2, %v10361_v37, %v2952_v61  ;;  %v2963_v41 = vrot.slane %v10354_v44, 2  ;;  %v2891_v19 = vmul.f32 %v10541_v63, %v10481_v34  ;;  %v2965_v24 = vrot.slane %v10359_v49, 1 }
 0x127   :  { %v2955_v52 = vsel %vm207_vm3, %v2954_v38, %v2953_v46  ;;  %v2968_v30 = vrot.slane %v10374_v58, 7  ;;  %v2970_v35 = vrot.slane %v10378_v36, 6  ;;  %v2972_v31 = vrot.slane %v10384_v43, 5 }
 0x128   :  { %v2957_v18 = vsel %vm210_vm4, %v2956_v51, %v2955_v52  ;;  %v2964_v60 = vsel %vm198_vm0, %v2963_v41, %v2962_v40  ;;  %v2899_v7 = vadd.f32 %v2891_v19, %v2807_v55  ;;  %v2974_v63 = vrot.slane %v10388_v33, 4 }
 0x129   :  { %v2959_v6 = vsel %vm213_vm5, %v2958_v42, %v2957_v18  ;;  %v2966_v61 = vsel %vm201_vm1, %v2965_v24, %v2964_v60  ;;  %v10566_v51 = vrot.slane %v10347_v59, %v9138_v8  ;;  %v10570_v40 = vrot.slane %v10363_v26, %v9138_v8 }
 0x12a   :  { %v10560_v46 = vsel %vm216_vm6, %v2960_v29, %v2959_v6  ;;  %v2967_v38 = vsel %vm204_vm2, %v10366_v39, %v2966_v61  ;;  %v3040_v41 = vrot.slane %v10343_v27, 4  ;;  %v3041_v29 = vrot.slane %v10352_v50, 3 }
 0x12b   :  { %15106 = vst [vmem:[#allocation121_spill] sm:$0xff] %v10560_v46  ;;  %15107 = vst [vmem:[#allocation122_spill] sm:$0xff] %v10566_v51  ;;  %v2969_v55 = vsel %vm207_vm3, %v2968_v30, %v2967_v38  ;;  %v2982_v42 = vmul.f32 %v10560_v46, %v10516_v45  ;;  %v3043_v52 = vrot.slane %v10357_v54, 2  ;;  %v3045_v24 = vrot.slane %v10361_v37, 1 }
 0x12c   :  { %15108 = vst [vmem:[#allocation123_spill] sm:$0xff] %v10570_v40  ;;  %v2971_v19 = vsel %vm210_vm4, %v2970_v35, %v2969_v55  ;;  %v3048_v18 = vrot.slane %v10376_v25, 7  ;;  %v3042_v30 = vsel %vm198_vm0, %v3041_v29, %v3040_v41  ;;  %v3050_v61 = vrot.slane %v10382_v32, 6 }
 0x12d   :  { %v2973_v60 = vsel %vm213_vm5, %v2972_v31, %v2971_v19  ;;  %v2990_v6 = vadd.f32 %v2982_v42, %v2898_v20  ;;  %v3044_v46 = vsel %vm201_vm1, %v3043_v52, %v3042_v30  ;;  %v3052_v35 = vrot.slane %v10386_v12, 5 }
 0x12e   :  { %v10585_v38 = vsel %vm216_vm6, %v2974_v63, %v2973_v60  ;;  %v3054_v55 = vrot.slane %v10345_v56, 4  ;;  %v3046_v34 = vsel %vm204_vm2, %v3045_v24, %v3044_v46  ;;  %v3055_v20 = vrot.slane %v10354_v44, 3 }
 0x12f   :  { %15109 = vst [vmem:[#allocation124_spill] sm:$0xff] %v10585_v38  ;;  %v2983_v45 = vmul.f32 %v10585_v38, %v10520_v1  ;;  %v3057_v31 = vrot.slane %v10359_v49, 2  ;;  %v3047_v42 = vsel %vm207_vm3, %v10368_v62, %v3046_v34  ;;  %v3059_v63 = vrot.slane %v10366_v39, 1 }
 0x130   :  { %v3062_v41 = vrot.slane %v10378_v36, 7  ;;  %v3064_v29 = vrot.slane %v10384_v43, 6  ;;  %v3049_v52 = vsel %vm210_vm4, %v3048_v18, %v3047_v42  ;;  %v3056_v60 = vsel %vm198_vm0, %v3055_v20, %v3054_v55 }
 0x131   :  { %v2991_v19 = vadd.f32 %v2983_v45, %v2899_v7  ;;  %v3066_v46 = vrot.slane %v10388_v33, 5  ;;  %v3051_v24 = vsel %vm213_vm5, %v3050_v61, %v3049_v52  ;;  %v3058_v30 = vsel %vm201_vm1, %v3057_v31, %v3056_v60 }
 0x132   :  { %v10607_v34 = vrot.slane %v10347_v59, %v9140_v9  ;;  %v10611_v38 = vrot.slane %v10363_v26, %v9140_v9  ;;  %v10614_v45 = vsel %vm216_vm6, %v3052_v35, %v3051_v24  ;;  %v3060_v7 = vsel %vm204_vm2, %v3059_v63, %v3058_v30 }
 0x133   :  { %15112 = vst [vmem:[#allocation127_spill] sm:$0xff] %v10614_v45  ;;  %v3132_v18 = vrot.slane %v10343_v27, 5  ;;  %v3133_v55 = vrot.slane %v10352_v50, 4  ;;  %v3061_v61 = vsel %vm207_vm3, %v10374_v58, %v3060_v7  ;;  %v3074_v20 = vmul.f32 %v10614_v45, %v10566_v51 }
 0x134   :  { %15110 = vst [vmem:[#allocation125_spill] sm:$0xff] %v10607_v34  ;;  %15111 = vst [vmem:[#allocation126_spill] sm:$0xff] %v10611_v38  ;;  %v3135_v31 = vrot.slane %v10357_v54, 3  ;;  %v3137_v42 = vrot.slane %v10361_v37, 2  ;;  %v3063_v52 = vsel %vm210_vm4, %v3062_v41, %v3061_v61  ;;  %v3139_v63 = vrot.slane %v10368_v62, 1 }
 0x135   :  { %v3134_v35 = vsel %vm198_vm0, %v3133_v55, %v3132_v18  ;;  %v3142_v60 = vrot.slane %v10382_v32, 7  ;;  %v3065_v24 = vsel %vm213_vm5, %v3064_v29, %v3063_v52  ;;  %v3082_v30 = vadd.f32 %v3074_v20, %v2990_v6 }
 0x136   :  { %v3136_v7 = vsel %vm201_vm1, %v3135_v31, %v3134_v35  ;;  %v3144_v1 = vrot.slane %v10386_v12, 6  ;;  %v10633_v45 = vsel %vm216_vm6, %v3066_v46, %v3065_v24  ;;  %v3146_v41 = vrot.slane %v10345_v56, 5 }
 0x137   :  { %15113 = vst [vmem:[#allocation128_spill] sm:$0xff] %v10633_v45  ;;  %v3138_v51 = vsel %vm204_vm2, %v3137_v42, %v3136_v7  ;;  %v3147_v18 = vrot.slane %v10354_v44, 4  ;;  %v3075_v55 = vmul.f32 %v10633_v45, %v10570_v40  ;;  %v3149_v6 = vrot.slane %v10359_v49, 3 }
 0x138   :  { %v3140_v61 = vsel %vm207_vm3, %v3139_v63, %v3138_v51  ;;  %v3151_v29 = vrot.slane %v10366_v39, 2  ;;  %v3153_v31 = vrot.slane %v10374_v58, 1  ;;  %v3156_v42 = vrot.slane %v10384_v43, 7 }
 0x139   :  { %v3141_v20 = vsel %vm210_vm4, %v10376_v25, %v3140_v61  ;;  %v3148_v46 = vsel %vm198_vm0, %v3147_v18, %v3146_v41  ;;  %v3083_v52 = vadd.f32 %v3075_v55, %v2991_v19  ;;  %v3158_v51 = vrot.slane %v10388_v33, 6 }
 0x13a   :  { %v3143_v35 = vsel %vm213_vm5, %v3142_v60, %v3141_v20  ;;  %v3150_v24 = vsel %vm201_vm1, %v3149_v6, %v3148_v46  ;;  %v10657_v61 = vrot.slane %v10347_v59, %v9142_v10  ;;  %v10661_v41 = vrot.slane %v10363_v26, %v9142_v10 }
 0x13b   :  { %v10652_v63 = vsel %vm216_vm6, %v3144_v1, %v3143_v35  ;;  %v3152_v7 = vsel %vm204_vm2, %v3151_v29, %v3150_v24  ;;  %v3224_v18 = vrot.slane %v10343_v27, 6  ;;  %v3225_v1 = vrot.slane %v10352_v50, 5 }
 0x13c   :  { %15114 = vst [vmem:[#allocation129_spill] sm:$0xff] %v10652_v63  ;;  %15115 = vst [vmem:[#allocation130_spill] sm:$0xff] %v10657_v61  ;;  %v3154_v19 = vsel %vm207_vm3, %v3153_v31, %v3152_v7  ;;  %v3166_v60 = vmul.f32 %v10652_v63, %v10607_v34  ;;  %v3227_v6 = vrot.slane %v10357_v54, 4  ;;  %v3229_v29 = vrot.slane %v10361_v37, 3 }
 0x13d   :  { %15116 = vst [vmem:[#allocation131_spill] sm:$0xff] %v10661_v41  ;;  %v3155_v55 = vsel %vm210_vm4, %v10378_v36, %v3154_v19  ;;  %v3231_v20 = vrot.slane %v10368_v62, 2  ;;  %v3226_v31 = vsel %vm198_vm0, %v3225_v1, %v3224_v18  ;;  %v3233_v24 = vrot.slane %v10376_v25, 1 }
 0x13e   :  { %v3157_v46 = vsel %vm213_vm5, %v3156_v42, %v3155_v55  ;;  %v3174_v35 = vadd.f32 %v3166_v60, %v3082_v30  ;;  %v3228_v63 = vsel %vm201_vm1, %v3227_v6, %v3226_v31  ;;  %v3236_v19 = vrot.slane %v10386_v12, 7 }
 0x13f   :  { %v10677_v7 = vsel %vm216_vm6, %v3158_v51, %v3157_v46  ;;  %v3238_v45 = vrot.slane %v10345_v56, 6  ;;  %v3230_v40 = vsel %vm204_vm2, %v3229_v29, %v3228_v63  ;;  %v3239_v30 = vrot.slane %v10354_v44, 5 }
 0x140   :  { %15117 = vst [vmem:[#allocation132_spill] sm:$0xff] %v10677_v7  ;;  %v3167_v34 = vmul.f32 %v10677_v7, %v10611_v38  ;;  %v3241_v42 = vrot.slane %v10359_v49, 4  ;;  %v3232_v60 = vsel %vm207_vm3, %v3231_v20, %v3230_v40  ;;  %v3243_v51 = vrot.slane %v10366_v39, 3 }
 0x141   :  { %v3245_v18 = vrot.slane %v10374_v58, 2  ;;  %v3247_v1 = vrot.slane %v10378_v36, 1  ;;  %v3234_v6 = vsel %vm210_vm4, %v3233_v24, %v3232_v60  ;;  %v3240_v46 = vsel %vm198_vm0, %v3239_v30, %v3238_v45 }
 0x142   :  { %v3175_v55 = vadd.f32 %v3167_v34, %v3083_v52  ;;  %v3250_v31 = vrot.slane %v10388_v33, 7  ;;  %v3235_v63 = vsel %vm213_vm5, %v10382_v32, %v3234_v6  ;;  %v3242_v29 = vsel %vm201_vm1, %v3241_v42, %v3240_v46 }
 0x143   :  { %v10699_v40 = vrot.slane %v10347_v59, %v9144_v11  ;;  %v10703_v20 = vrot.slane %v10363_v26, %v9144_v11  ;;  %v10706_v34 = vsel %vm216_vm6, %v3236_v19, %v3235_v63  ;;  %v3244_v45 = vsel %vm204_vm2, %v3243_v51, %v3242_v29 }
 0x144   :  { %15120 = vst [vmem:[#allocation135_spill] sm:$0xff] %v10706_v34  ;;  %v3316_v52 = vrot.slane %v10343_v27, 7  ;;  %v3317_v24 = vrot.slane %v10352_v50, 6  ;;  %v3246_v30 = vsel %vm207_vm3, %v3245_v18, %v3244_v45  ;;  %v3258_v42 = vmul.f32 %v10706_v34, %v10657_v61  ;;  %v3388_v45 = vld [vmem:[#allocation6 + $0x1a0] sm:$0xff] }
 0x145   :  { %15118 = vst [vmem:[#allocation133_spill] sm:$0xff] %v10699_v40  ;;  %15119 = vst [vmem:[#allocation134_spill] sm:$0xff] %v10703_v20  ;;  %v3319_v59 = vrot.slane %v10357_v54, 5  ;;  %v3321_v60 = vrot.slane %v10361_v37, 4  ;;  %v3248_v26 = vsel %vm210_vm4, %v3247_v1, %v3246_v30  ;;  %v3323_v6 = vrot.slane %v10368_v62, 3 }
 0x146   :  { %v3318_v19 = vsel %vm198_vm0, %v3317_v24, %v3316_v52  ;;  %v3325_v51 = vrot.slane %v10376_v25, 2  ;;  %v3249_v27 = vsel %vm213_vm5, %v10384_v43, %v3248_v26  ;;  %v3266_v50 = vadd.f32 %v3258_v42, %v3174_v35  ;;  %v3390_v24 = vld [vmem:[#allocation6 + $0x1d0] sm:$0xff] }
 0x147   :  { %v3320_v18 = vsel %vm201_vm1, %v3319_v59, %v3318_v19  ;;  %v3327_v46 = vrot.slane %v10382_v32, 1  ;;  %v10725_v54 = vsel %vm216_vm6, %v3250_v31, %v3249_v27  ;;  %v3330_v1 = vrot.slane %v10345_v56, 7  ;;  %v3396_v19 = vld [vmem:[#allocation6 + $0x260] sm:$0xff] }
 0x148   :  { %15121 = vst [vmem:[#allocation136_spill] sm:$0xff] %v10725_v54  ;;  %v3322_v37 = vsel %vm204_vm2, %v3321_v60, %v3320_v18  ;;  %v3331_v63 = vrot.slane %v10354_v44, 6  ;;  %v3259_v62 = vmul.f32 %v10725_v54, %v10661_v41  ;;  %v3333_v35 = vrot.slane %v10359_v49, 5  ;;  %v3392_v49 = vld [vmem:[#allocation6 + $0x200] sm:$0xff]  ;;  %v3394_v60 = vld [vmem:[#allocation6 + $0x230] sm:$0xff] }
 0x149   :  { %v3324_v25 = vsel %vm207_vm3, %v3323_v6, %v3322_v37  ;;  %v3335_v29 = vrot.slane %v10366_v39, 4  ;;  %v3337_v52 = vrot.slane %v10374_v58, 3  ;;  %v3339_v56 = vrot.slane %v10378_v36, 2  ;;  %v3400_v18 = vld [vmem:[#allocation6 + $0x2c0] sm:$0xff] }
 0x14a   :  { %v3326_v32 = vsel %vm210_vm4, %v3325_v51, %v3324_v25  ;;  %v3332_v31 = vsel %vm198_vm0, %v3331_v63, %v3330_v1  ;;  %v3267_v44 = vadd.f32 %v3259_v62, %v3175_v55  ;;  %v3341_v59 = vrot.slane %v10384_v43, 1  ;;  %v3398_v51 = vld [vmem:[#allocation6 + $0x290] sm:$0xff] }
 0x14b   :  { %v3328_v30 = vsel %vm213_vm5, %v3327_v46, %v3326_v32  ;;  %v3334_v42 = vsel %vm201_vm1, %v3333_v35, %v3332_v31  ;;  %v10747_v58 = vunpack.c.l.bf16 %v3388_v45  ;;  %v10749_v36 = vunpack.c.h.bf16 %v3388_v45  ;;  %v3402_v46 = vld [vmem:[#allocation6 + $0x2f0] sm:$0xff]  ;;  %v10766_v35 = vld [vmem:[#allocation3 + $0x40] sm:$0xff] }
 0x14c   :  { %v10744_v39 = vsel %vm216_vm6, %v10386_v12, %v3328_v30  ;;  %v3336_v26 = vsel %vm204_vm2, %v3335_v29, %v3334_v42  ;;  %v10754_v43 = vunpack.c.l.bf16 %v3390_v24  ;;  %v10756_v27 = vunpack.c.h.bf16 %v3390_v24  ;;  %v10768_v29 = vld [vmem:[#allocation3 + $0x48] sm:$0xff] }
 0x14d   :  { %15122 = vst [vmem:[#allocation137_spill] sm:$0xff] %v10744_v39  ;;  %v3338_v55 = vsel %vm207_vm3, %v3337_v52, %v3336_v26  ;;  %v3350_v6 = vmul.f32 %v10744_v39, %v10699_v40  ;;  %v10759_v37 = vunpack.c.l.bf16 %v3392_v49  ;;  %v10761_v1 = vunpack.c.h.bf16 %v3392_v49 }
 0x14e   :  { %v3340_v12 = vsel %vm210_vm4, %v3339_v56, %v3338_v55  ;;  %v10763_v63 = vunpack.c.l.bf16 %v3394_v60  ;;  %v10770_v45 = vunpack.c.h.bf16 %v3394_v60  ;;  %v10772_v32 = vunpack.c.l.bf16 %v3396_v19 }
 0x14f   :  { %v3342_v62 = vsel %vm213_vm5, %v3341_v59, %v3340_v12  ;;  %v3358_v25 = vadd.f32 %v3350_v6, %v3266_v50  ;;  %v10778_v52 = vunpack.c.h.bf16 %v3396_v19  ;;  %v10780_v56 = vunpack.c.l.bf16 %v3398_v51 }
 0x150   :  { %v10776_v31 = vsel %vm216_vm6, %v10388_v33, %v3342_v62  ;;  %v10782_v24 = vunpack.c.h.bf16 %v3398_v51  ;;  %v10786_v30 = vunpack.c.l.bf16 %v3400_v18  ;;  %v10788_v42 = vunpack.c.h.bf16 %v3400_v18 }
 0x151   :  { %15123 = vst [vmem:[#allocation138_spill] sm:$0xff] %v10776_v31  ;;  %v3351_v50 = vmul.f32 %v10776_v31, %v10703_v20  ;;  %v10790_v59 = vunpack.c.l.bf16 %v3402_v46  ;;  %v10792_v49 = vunpack.c.h.bf16 %v3402_v46  ;;  %v10796_v33 = vrot.slane %v10766_v35, %v9126_v2 }
 0x152   :  { %v10800_v60 = vrot.slane %v10768_v29, %v9126_v2  ;;  %v3512_v26 = vrot.slane %v10754_v43, 7  ;;  %v3514_v55 = vrot.slane %v10759_v37, 6  ;;  %v3516_v6 = vrot.slane %v10763_v63, 5 }
 0x153   :  { %v3359_v19 = vadd.f32 %v3351_v50, %v3267_v44  ;;  %v3518_v51 = vrot.slane %v10772_v32, 4  ;;  %v3520_v18 = vrot.slane %v10780_v56, 3  ;;  %v3522_v46 = vrot.slane %v10786_v30, 2 }
 0x154   :  { %15124 = vst [vmem:[#allocation139_spill] sm:$0xff] %v10800_v60  ;;  %v3513_v12 = vsel %vm198_vm0, %v3512_v26, %v10747_v58  ;;  %v3524_v62 = vrot.slane %v10790_v59, 1  ;;  %v3526_v39 = vrot.slane %v10756_v27, 7  ;;  %v3528_v44 = vrot.slane %v10761_v1, 6 }
 0x155   :  { %v3515_v31 = vsel %vm201_vm1, %v3514_v55, %v3513_v12  ;;  %v3530_v50 = vrot.slane %v10770_v45, 5  ;;  %v3532_v34 = vrot.slane %v10778_v52, 4  ;;  %v3534_v26 = vrot.slane %v10782_v24, 3 }
 0x156   :  { %v3517_v54 = vsel %vm204_vm2, %v3516_v6, %v3515_v31  ;;  %v3536_v7 = vrot.slane %v10788_v42, 2  ;;  %v3527_v40 = vsel %vm198_vm0, %v3526_v39, %v10749_v36  ;;  %v3538_v55 = vrot.slane %v10792_v49, 1 }
 0x157   :  { %v3519_v20 = vsel %vm207_vm3, %v3518_v51, %v3517_v54  ;;  %v10825_v12 = vrot.slane %v10766_v35, %v9128_v3  ;;  %v3529_v31 = vsel %vm201_vm1, %v3528_v44, %v3527_v40  ;;  %v10831_v6 = vrot.slane %v10768_v29, %v9128_v3 }
 0x158   :  { %v3521_v41 = vsel %vm210_vm4, %v3520_v18, %v3519_v20  ;;  %v3604_v61 = vrot.slane %v10747_v58, 1  ;;  %v3531_v39 = vsel %vm204_vm2, %v3530_v50, %v3529_v31  ;;  %v3606_v51 = vrot.slane %v10759_v37, 7 }
 0x159   :  { %15125 = vst [vmem:[#allocation140_spill] sm:$0xff] %v10825_v12  ;;  %15126 = vst [vmem:[#allocation141_spill] sm:$0xff] %v10831_v6  ;;  %v3523_v54 = vsel %vm213_vm5, %v3522_v46, %v3521_v41  ;;  %v3608_v38 = vrot.slane %v10763_v63, 6  ;;  %v3533_v20 = vsel %vm207_vm3, %v3532_v34, %v3531_v39  ;;  %v3610_v18 = vrot.slane %v10772_v32, 5 }
 0x15a   :  { %v10839_v0 = vsel %vm216_vm6, %v3524_v62, %v3523_v54  ;;  %v3605_v40 = vsel %vm198_vm0, %v10754_v43, %v3604_v61  ;;  %v3535_v44 = vsel %vm210_vm4, %v3534_v26, %v3533_v20  ;;  %v3612_v50 = vrot.slane %v10780_v56, 4 }
 0x15b   :  { %15127 = vst [vmem:[#allocation142_spill] sm:$0xff] %v10839_v0  ;;  %v3546_v41 = vmul.f32 %v10839_v0, %v10796_v33  ;;  %v3607_v46 = vsel %vm201_vm1, %v3606_v51, %v3605_v40  ;;  %v3537_v31 = vsel %vm213_vm5, %v3536_v7, %v3535_v44  ;;  %v3614_v34 = vrot.slane %v10786_v30, 3 }
 0x15c   :  { %v3609_v62 = vsel %vm204_vm2, %v3608_v38, %v3607_v46  ;;  %v3616_v54 = vrot.slane %v10790_v59, 2  ;;  %v10855_v61 = vsel %vm216_vm6, %v3538_v55, %v3537_v31  ;;  %v3618_v20 = vrot.slane %v10749_v36, 1 }
 0x15d   :  { %15128 = vst [vmem:[#allocation143_spill] sm:$0xff] %v10855_v61  ;;  %v3554_v39 = vadd.f32 %v3546_v41, %v3358_v25  ;;  %v3611_v26 = vsel %vm207_vm3, %v3610_v18, %v3609_v62  ;;  %v3547_v51 = vmul.f32 %v10855_v61, %v10800_v60  ;;  %v3620_v7 = vrot.slane %v10761_v1, 7 }
 0x15e   :  { %v3613_v40 = vsel %vm210_vm4, %v3612_v50, %v3611_v26  ;;  %v3622_v38 = vrot.slane %v10770_v45, 6  ;;  %v3619_v55 = vsel %vm198_vm0, %v10756_v27, %v3618_v20  ;;  %v3624_v25 = vrot.slane %v10778_v52, 5 }
 0x15f   :  { %v3615_v44 = vsel %vm213_vm5, %v3614_v34, %v3613_v40  ;;  %v3626_v18 = vrot.slane %v10782_v24, 4  ;;  %v3555_v41 = vadd.f32 %v3547_v51, %v3359_v19  ;;  %v3621_v31 = vsel %vm201_vm1, %v3620_v7, %v3619_v55 }
 0x160   :  { %v10870_v46 = vsel %vm216_vm6, %v3616_v54, %v3615_v44  ;;  %v3628_v50 = vrot.slane %v10788_v42, 3  ;;  %v3623_v62 = vsel %vm204_vm2, %v3622_v38, %v3621_v31  ;;  %v3630_v26 = vrot.slane %v10792_v49, 2 }
 0x161   :  { %15129 = vst [vmem:[#allocation144_spill] sm:$0xff] %v10870_v46  ;;  %v3638_v34 = vmul.f32 %v10870_v46, %v10825_v12  ;;  %v10880_v20 = vrot.slane %v10766_v35, %v9130_v4  ;;  %v3625_v19 = vsel %vm207_vm3, %v3624_v25, %v3623_v62  ;;  %v10885_v54 = vrot.slane %v10768_v29, %v9130_v4 }
 0x162   :  { %v3696_v51 = vrot.slane %v10747_v58, 2  ;;  %v3697_v40 = vrot.slane %v10754_v43, 1  ;;  %v3627_v7 = vsel %vm210_vm4, %v3626_v18, %v3625_v19  ;;  %v3700_v44 = vrot.slane %v10763_v63, 7 }
 0x163   :  { %15130 = vst [vmem:[#allocation145_spill] sm:$0xff] %v10880_v20  ;;  %15131 = vst [vmem:[#allocation146_spill] sm:$0xff] %v10885_v54  ;;  %v3646_v38 = vadd.f32 %v3638_v34, %v3554_v39  ;;  %v3702_v55 = vrot.slane %v10772_v32, 6  ;;  %v3629_v31 = vsel %vm213_vm5, %v3628_v50, %v3627_v7  ;;  %v3704_v25 = vrot.slane %v10780_v56, 5 }
 0x164   :  { %v3698_v46 = vsel %vm198_vm0, %v3697_v40, %v3696_v51  ;;  %v3706_v62 = vrot.slane %v10786_v30, 4  ;;  %v10897_v61 = vsel %vm216_vm6, %v3630_v26, %v3629_v31  ;;  %v3708_v39 = vrot.slane %v10790_v59, 3 }
 0x165   :  { %15132 = vst [vmem:[#allocation147_spill] sm:$0xff] %v10897_v61  ;;  %v3699_v0 = vsel %vm201_vm1, %v10759_v37, %v3698_v46  ;;  %v3710_v18 = vrot.slane %v10749_v36, 2  ;;  %v3639_v34 = vmul.f32 %v10897_v61, %v10831_v6  ;;  %v3711_v19 = vrot.slane %v10756_v27, 1 }
 0x166   :  { %v3701_v50 = vsel %vm204_vm2, %v3700_v44, %v3699_v0  ;;  %v3714_v51 = vrot.slane %v10770_v45, 7  ;;  %v3716_v26 = vrot.slane %v10778_v52, 6  ;;  %v3718_v7 = vrot.slane %v10782_v24, 5 }
 0x167   :  { %v3703_v40 = vsel %vm207_vm3, %v3702_v55, %v3701_v50  ;;  %v3720_v46 = vrot.slane %v10788_v42, 4  ;;  %v3647_v31 = vadd.f32 %v3639_v34, %v3555_v41  ;;  %v3712_v60 = vsel %vm198_vm0, %v3711_v19, %v3710_v18 }
 0x168   :  { %v3705_v12 = vsel %vm210_vm4, %v3704_v25, %v3703_v40  ;;  %v3722_v61 = vrot.slane %v10792_v49, 3  ;;  %v3713_v44 = vsel %vm201_vm1, %v10761_v1, %v3712_v60  ;;  %v10920_v55 = vrot.slane %v10766_v35, %v9132_v5 }
 0x169   :  { %v3707_v0 = vsel %vm213_vm5, %v3706_v62, %v3705_v12  ;;  %v10924_v50 = vrot.slane %v10768_v29, %v9132_v5  ;;  %v3715_v25 = vsel %vm204_vm2, %v3714_v51, %v3713_v44  ;;  %v3788_v18 = vrot.slane %v10747_v58, 3 }
 0x16a   :  { %15133 = vst [vmem:[#allocation148_spill] sm:$0xff] %v10920_v55  ;;  %v10927_v41 = vsel %vm216_vm6, %v3708_v39, %v3707_v0  ;;  %v3789_v12 = vrot.slane %v10754_v43, 2  ;;  %v3717_v62 = vsel %vm207_vm3, %v3716_v26, %v3715_v25  ;;  %v3791_v34 = vrot.slane %v10759_v37, 1 }
 0x16b   :  { %15134 = vst [vmem:[#allocation149_spill] sm:$0xff] %v10924_v50  ;;  %15135 = vst [vmem:[#allocation150_spill] sm:$0xff] %v10927_v41  ;;  %v3730_v60 = vmul.f32 %v10927_v41, %v10880_v20  ;;  %v3794_v19 = vrot.slane %v10772_v32, 7  ;;  %v3719_v40 = vsel %vm210_vm4, %v3718_v7, %v3717_v62  ;;  %v3796_v0 = vrot.slane %v10780_v56, 6 }
 0x16c   :  { %v3790_v39 = vsel %vm198_vm0, %v3789_v12, %v3788_v18  ;;  %v3798_v51 = vrot.slane %v10786_v30, 5  ;;  %v3721_v44 = vsel %vm213_vm5, %v3720_v46, %v3719_v40  ;;  %v3800_v25 = vrot.slane %v10790_v59, 4 }
 0x16d   :  { %v3738_v6 = vadd.f32 %v3730_v60, %v3646_v38  ;;  %v3792_v26 = vsel %vm201_vm1, %v3791_v34, %v3790_v39  ;;  %v10945_v41 = vsel %vm216_vm6, %v3722_v61, %v3721_v44  ;;  %v3802_v7 = vrot.slane %v10749_v36, 3 }
 0x16e   :  { %15136 = vst [vmem:[#allocation151_spill] sm:$0xff] %v10945_v41  ;;  %v3793_v20 = vsel %vm204_vm2, %v10763_v63, %v3792_v26  ;;  %v3803_v18 = vrot.slane %v10756_v27, 2  ;;  %v3731_v12 = vmul.f32 %v10945_v41, %v10885_v54  ;;  %v3805_v38 = vrot.slane %v10761_v1, 1 }
 0x16f   :  { %v3795_v46 = vsel %vm207_vm3, %v3794_v19, %v3793_v20  ;;  %v3808_v62 = vrot.slane %v10778_v52, 7  ;;  %v3810_v34 = vrot.slane %v10782_v24, 6  ;;  %v3812_v40 = vrot.slane %v10788_v42, 5 }
 0x170   :  { %v3797_v60 = vsel %vm210_vm4, %v3796_v0, %v3795_v46  ;;  %v3804_v61 = vsel %vm198_vm0, %v3803_v18, %v3802_v7  ;;  %v3739_v39 = vadd.f32 %v3731_v12, %v3647_v31  ;;  %v3814_v41 = vrot.slane %v10792_v49, 4 }
 0x171   :  { %v3799_v44 = vsel %vm213_vm5, %v3798_v51, %v3797_v60  ;;  %v3806_v26 = vsel %vm201_vm1, %v3805_v38, %v3804_v61  ;;  %v10970_v0 = vrot.slane %v10766_v35, %v9138_v8  ;;  %v10974_v7 = vrot.slane %v10768_v29, %v9138_v8 }
 0x172   :  { %v10964_v20 = vsel %vm216_vm6, %v3800_v25, %v3799_v44  ;;  %v3807_v19 = vsel %vm204_vm2, %v10770_v45, %v3806_v26  ;;  %v3880_v18 = vrot.slane %v10747_v58, 4  ;;  %v3881_v25 = vrot.slane %v10754_v43, 3 }
 0x173   :  { %15137 = vst [vmem:[#allocation152_spill] sm:$0xff] %v10964_v20  ;;  %15138 = vst [vmem:[#allocation153_spill] sm:$0xff] %v10970_v0  ;;  %v3809_v31 = vsel %vm207_vm3, %v3808_v62, %v3807_v19  ;;  %v3822_v51 = vmul.f32 %v10964_v20, %v10920_v55  ;;  %v3883_v46 = vrot.slane %v10759_v37, 2  ;;  %v3885_v38 = vrot.slane %v10763_v63, 1 }
 0x174   :  { %15139 = vst [vmem:[#allocation154_spill] sm:$0xff] %v10974_v7  ;;  %v3811_v12 = vsel %vm210_vm4, %v3810_v34, %v3809_v31  ;;  %v3888_v60 = vrot.slane %v10780_v56, 7  ;;  %v3882_v62 = vsel %vm198_vm0, %v3881_v25, %v3880_v18  ;;  %v3890_v26 = vrot.slane %v10786_v30, 6 }
 0x175   :  { %v3813_v61 = vsel %vm213_vm5, %v3812_v40, %v3811_v12  ;;  %v3830_v44 = vadd.f32 %v3822_v51, %v3738_v6  ;;  %v3884_v20 = vsel %vm201_vm1, %v3883_v46, %v3882_v62  ;;  %v3892_v34 = vrot.slane %v10790_v59, 5 }
 0x176   :  { %v10989_v19 = vsel %vm216_vm6, %v3814_v41, %v3813_v61  ;;  %v3894_v31 = vrot.slane %v10749_v36, 4  ;;  %v3886_v54 = vsel %vm204_vm2, %v3885_v38, %v3884_v20  ;;  %v3895_v6 = vrot.slane %v10756_v27, 3 }
 0x177   :  { %15140 = vst [vmem:[#allocation155_spill] sm:$0xff] %v10989_v19  ;;  %v3823_v55 = vmul.f32 %v10989_v19, %v10924_v50  ;;  %v3897_v40 = vrot.slane %v10761_v1, 2  ;;  %v3887_v51 = vsel %vm207_vm3, %v10772_v32, %v3886_v54  ;;  %v3899_v41 = vrot.slane %v10770_v45, 1 }
 0x178   :  { %v3902_v18 = vrot.slane %v10782_v24, 7  ;;  %v3904_v25 = vrot.slane %v10788_v42, 6  ;;  %v3889_v46 = vsel %vm210_vm4, %v3888_v60, %v3887_v51  ;;  %v3896_v61 = vsel %vm198_vm0, %v3895_v6, %v3894_v31 }
 0x179   :  { %v3831_v12 = vadd.f32 %v3823_v55, %v3739_v39  ;;  %v3906_v20 = vrot.slane %v10792_v49, 5  ;;  %v3891_v38 = vsel %vm213_vm5, %v3890_v26, %v3889_v46  ;;  %v3898_v62 = vsel %vm201_vm1, %v3897_v40, %v3896_v61 }
 0x17a   :  { %v11011_v54 = vrot.slane %v10766_v35, %v9140_v9  ;;  %v11015_v19 = vrot.slane %v10768_v29, %v9140_v9  ;;  %v11018_v55 = vsel %vm216_vm6, %v3892_v34, %v3891_v38  ;;  %v3900_v39 = vsel %vm204_vm2, %v3899_v41, %v3898_v62 }
 0x17b   :  { %15143 = vst [vmem:[#allocation158_spill] sm:$0xff] %v11018_v55  ;;  %v3972_v60 = vrot.slane %v10747_v58, 5  ;;  %v3973_v31 = vrot.slane %v10754_v43, 4  ;;  %v3901_v26 = vsel %vm207_vm3, %v10778_v52, %v3900_v39  ;;  %v3914_v6 = vmul.f32 %v11018_v55, %v10970_v0 }
 0x17c   :  { %15141 = vst [vmem:[#allocation156_spill] sm:$0xff] %v11011_v54  ;;  %15142 = vst [vmem:[#allocation157_spill] sm:$0xff] %v11015_v19  ;;  %v3975_v40 = vrot.slane %v10759_v37, 3  ;;  %v3977_v51 = vrot.slane %v10763_v63, 2  ;;  %v3903_v46 = vsel %vm210_vm4, %v3902_v18, %v3901_v26  ;;  %v3979_v41 = vrot.slane %v10772_v32, 1 }
 0x17d   :  { %v3974_v34 = vsel %vm198_vm0, %v3973_v31, %v3972_v60  ;;  %v3982_v61 = vrot.slane %v10786_v30, 7  ;;  %v3905_v38 = vsel %vm213_vm5, %v3904_v25, %v3903_v46  ;;  %v3922_v62 = vadd.f32 %v3914_v6, %v3830_v44 }
 0x17e   :  { %v3976_v39 = vsel %vm201_vm1, %v3975_v40, %v3974_v34  ;;  %v3984_v50 = vrot.slane %v10790_v59, 6  ;;  %v11037_v55 = vsel %vm216_vm6, %v3906_v20, %v3905_v38  ;;  %v3986_v18 = vrot.slane %v10749_v36, 5 }
 0x17f   :  { %15144 = vst [vmem:[#allocation159_spill] sm:$0xff] %v11037_v55  ;;  %v3978_v0 = vsel %vm204_vm2, %v3977_v51, %v3976_v39  ;;  %v3987_v60 = vrot.slane %v10756_v27, 4  ;;  %v3915_v31 = vmul.f32 %v11037_v55, %v10974_v7  ;;  %v3989_v44 = vrot.slane %v10761_v1, 3 }
 0x180   :  { %v3980_v26 = vsel %vm207_vm3, %v3979_v41, %v3978_v0  ;;  %v3991_v25 = vrot.slane %v10770_v45, 2  ;;  %v3993_v40 = vrot.slane %v10778_v52, 1  ;;  %v3996_v51 = vrot.slane %v10788_v42, 7 }
 0x181   :  { %v3981_v6 = vsel %vm210_vm4, %v10780_v56, %v3980_v26  ;;  %v3988_v20 = vsel %vm198_vm0, %v3987_v60, %v3986_v18  ;;  %v3923_v46 = vadd.f32 %v3915_v31, %v3831_v12  ;;  %v3998_v0 = vrot.slane %v10792_v49, 6 }
 0x182   :  { %v3983_v34 = vsel %vm213_vm5, %v3982_v61, %v3981_v6  ;;  %v3990_v38 = vsel %vm201_vm1, %v3989_v44, %v3988_v20  ;;  %v11061_v26 = vrot.slane %v10766_v35, %v9142_v10  ;;  %v11065_v18 = vrot.slane %v10768_v29, %v9142_v10 }
 0x183   :  { %v11056_v41 = vsel %vm216_vm6, %v3984_v50, %v3983_v34  ;;  %v3992_v39 = vsel %vm204_vm2, %v3991_v25, %v3990_v38  ;;  %v4064_v60 = vrot.slane %v10747_v58, 6  ;;  %v4065_v50 = vrot.slane %v10754_v43, 5 }
 0x184   :  { %15145 = vst [vmem:[#allocation160_spill] sm:$0xff] %v11056_v41  ;;  %15146 = vst [vmem:[#allocation161_spill] sm:$0xff] %v11061_v26  ;;  %v3994_v12 = vsel %vm207_vm3, %v3993_v40, %v3992_v39  ;;  %v4006_v61 = vmul.f32 %v11056_v41, %v11011_v54  ;;  %v4067_v44 = vrot.slane %v10759_v37, 4  ;;  %v4069_v25 = vrot.slane %v10763_v63, 3 }
 0x185   :  { %15147 = vst [vmem:[#allocation162_spill] sm:$0xff] %v11065_v18  ;;  %v3995_v31 = vsel %vm210_vm4, %v10782_v24, %v3994_v12  ;;  %v4071_v6 = vrot.slane %v10772_v32, 2  ;;  %v4066_v40 = vsel %vm198_vm0, %v4065_v50, %v4064_v60  ;;  %v4073_v38 = vrot.slane %v10780_v56, 1 }
 0x186   :  { %v3997_v20 = vsel %vm213_vm5, %v3996_v51, %v3995_v31  ;;  %v4014_v34 = vadd.f32 %v4006_v61, %v3922_v62  ;;  %v4068_v41 = vsel %vm201_vm1, %v4067_v44, %v4066_v40  ;;  %v4076_v12 = vrot.slane %v10790_v59, 7 }
 0x187   :  { %v11081_v39 = vsel %vm216_vm6, %v3998_v0, %v3997_v20  ;;  %v4078_v55 = vrot.slane %v10749_v36, 6  ;;  %v4070_v7 = vsel %vm204_vm2, %v4069_v25, %v4068_v41  ;;  %v4079_v62 = vrot.slane %v10756_v27, 5 }
 0x188   :  { %15148 = vst [vmem:[#allocation163_spill] sm:$0xff] %v11081_v39  ;;  %v4007_v54 = vmul.f32 %v11081_v39, %v11015_v19  ;;  %v4081_v51 = vrot.slane %v10761_v1, 4  ;;  %v4072_v61 = vsel %vm207_vm3, %v4071_v6, %v4070_v7  ;;  %v4083_v0 = vrot.slane %v10770_v45, 3 }
 0x189   :  { %v4085_v60 = vrot.slane %v10778_v52, 2  ;;  %v4087_v50 = vrot.slane %v10782_v24, 1  ;;  %v4074_v44 = vsel %vm210_vm4, %v4073_v38, %v4072_v61  ;;  %v4080_v20 = vsel %vm198_vm0, %v4079_v62, %v4078_v55 }
 0x18a   :  { %v4015_v31 = vadd.f32 %v4007_v54, %v3923_v46  ;;  %v4090_v40 = vrot.slane %v10792_v49, 7  ;;  %v4075_v41 = vsel %vm213_vm5, %v10786_v30, %v4074_v44  ;;  %v4082_v25 = vsel %vm201_vm1, %v4081_v51, %v4080_v20 }
 0x18b   :  { %v11103_v7 = vrot.slane %v10766_v35, %v9144_v11  ;;  %v11107_v6 = vrot.slane %v10768_v29, %v9144_v11  ;;  %v11110_v54 = vsel %vm216_vm6, %v4076_v12, %v4075_v41  ;;  %v4084_v55 = vsel %vm204_vm2, %v4083_v0, %v4082_v25 }
 0x18c   :  { %15151 = vst [vmem:[#allocation166_spill] sm:$0xff] %v11110_v54  ;;  %v4156_v46 = vrot.slane %v10747_v58, 7  ;;  %v4157_v38 = vrot.slane %v10754_v43, 6  ;;  %v4086_v62 = vsel %vm207_vm3, %v4085_v60, %v4084_v55  ;;  %v4098_v51 = vmul.f32 %v11110_v54, %v11061_v26 }
 0x18d   :  { %15149 = vst [vmem:[#allocation164_spill] sm:$0xff] %v11103_v7  ;;  %15150 = vst [vmem:[#allocation165_spill] sm:$0xff] %v11107_v6  ;;  %v4159_v35 = vrot.slane %v10759_v37, 5  ;;  %v4161_v61 = vrot.slane %v10763_v63, 4  ;;  %v4088_v29 = vsel %vm210_vm4, %v4087_v50, %v4086_v62  ;;  %v4163_v44 = vrot.slane %v10772_v32, 3  ;;  %v3389_v32 = vld [vmem:[#allocation6 + $0x1a8] sm:$0xff] }
 0x18e   :  { %v4158_v12 = vsel %vm198_vm0, %v4157_v38, %v4156_v46  ;;  %v4165_v0 = vrot.slane %v10780_v56, 2  ;;  %v4089_v58 = vsel %vm213_vm5, %v10788_v42, %v4088_v29  ;;  %v4106_v43 = vadd.f32 %v4098_v51, %v4014_v34  ;;  %v3395_v62 = vld [vmem:[#allocation6 + $0x238] sm:$0xff]  ;;  %v3397_v29 = vld [vmem:[#allocation6 + $0x268] sm:$0xff] }
 0x18f   :  { %v4160_v60 = vsel %vm201_vm1, %v4159_v35, %v4158_v12  ;;  %v4167_v20 = vrot.slane %v10786_v30, 1  ;;  %v11129_v37 = vsel %vm216_vm6, %v4090_v40, %v4089_v58  ;;  %v4170_v50 = vrot.slane %v10749_v36, 7  ;;  %v3391_v30 = vld [vmem:[#allocation6 + $0x1d8] sm:$0xff] }
 0x190   :  { %15152 = vst [vmem:[#allocation167_spill] sm:$0xff] %v11129_v37  ;;  %v4162_v63 = vsel %vm204_vm2, %v4161_v61, %v4160_v60  ;;  %v4171_v41 = vrot.slane %v10756_v27, 6  ;;  %v4099_v56 = vmul.f32 %v11129_v37, %v11065_v18  ;;  %v4173_v34 = vrot.slane %v10761_v1, 5  ;;  %v3393_v27 = vld [vmem:[#allocation6 + $0x208] sm:$0xff] }
 0x191   :  { %v4164_v25 = vsel %vm207_vm3, %v4163_v44, %v4162_v63  ;;  %v4175_v55 = vrot.slane %v10770_v45, 4  ;;  %v4177_v38 = vrot.slane %v10778_v52, 3  ;;  %v4179_v36 = vrot.slane %v10782_v24, 2  ;;  %v3399_v24 = vld [vmem:[#allocation6 + $0x298] sm:$0xff]  ;;  %v3401_v60 = vld [vmem:[#allocation6 + $0x2c8] sm:$0xff] }
 0x192   :  { %v4166_v40 = vsel %vm210_vm4, %v4165_v0, %v4164_v25  ;;  %v4172_v46 = vsel %vm198_vm0, %v4171_v41, %v4170_v50  ;;  %v4107_v51 = vadd.f32 %v4099_v56, %v4015_v31  ;;  %v4181_v1 = vrot.slane %v10788_v42, 1  ;;  %v11171_v56 = vld [vmem:[#allocation3 + $0x58] sm:$0xff] }
 0x193   :  { %v4168_v35 = vsel %vm213_vm5, %v4167_v20, %v4166_v40  ;;  %v4174_v61 = vsel %vm201_vm1, %v4173_v34, %v4172_v46  ;;  %v11151_v44 = vunpack.c.l.bf16 %v3389_v32  ;;  %v11153_v52 = vunpack.c.h.bf16 %v3389_v32  ;;  %v3403_v20 = vld [vmem:[#allocation6 + $0x2f8] sm:$0xff]  ;;  %v11169_v32 = vld [vmem:[#allocation3 + $0x50] sm:$0xff] }
 0x194   :  { %v11148_v45 = vsel %vm216_vm6, %v10790_v59, %v4168_v35  ;;  %v4176_v12 = vsel %vm204_vm2, %v4175_v55, %v4174_v61  ;;  %v11158_v58 = vunpack.c.l.bf16 %v3391_v30  ;;  %v11160_v42 = vunpack.c.h.bf16 %v3391_v30 }
 0x195   :  { %15153 = vst [vmem:[#allocation168_spill] sm:$0xff] %v11148_v45  ;;  %v4178_v31 = vsel %vm207_vm3, %v4177_v38, %v4176_v12  ;;  %v4190_v0 = vmul.f32 %v11148_v45, %v11103_v7  ;;  %v11163_v63 = vunpack.c.l.bf16 %v3393_v27  ;;  %v11165_v50 = vunpack.c.h.bf16 %v3393_v27 }
 0x196   :  { %v4180_v59 = vsel %vm210_vm4, %v4179_v36, %v4178_v31  ;;  %v11167_v41 = vunpack.c.l.bf16 %v3395_v62  ;;  %v11174_v55 = vunpack.c.h.bf16 %v3395_v62  ;;  %v11176_v30 = vunpack.c.l.bf16 %v3397_v29 }
 0x197   :  { %v4182_v25 = vsel %vm213_vm5, %v4181_v1, %v4180_v59  ;;  %v4198_v34 = vadd.f32 %v4190_v0, %v4106_v43  ;;  %v11182_v46 = vunpack.c.h.bf16 %v3397_v29  ;;  %v11184_v38 = vunpack.c.l.bf16 %v3399_v24 }
 0x198   :  { %v11180_v40 = vsel %vm216_vm6, %v10792_v49, %v4182_v25  ;;  %v11186_v36 = vunpack.c.h.bf16 %v3399_v24  ;;  %v11190_v35 = vunpack.c.l.bf16 %v3401_v60  ;;  %v11192_v43 = vunpack.c.h.bf16 %v3401_v60 }
 0x199   :  { %15154 = vst [vmem:[#allocation169_spill] sm:$0xff] %v11180_v40  ;;  %v4191_v27 = vmul.f32 %v11180_v40, %v11107_v6  ;;  %v11194_v62 = vunpack.c.l.bf16 %v3403_v20  ;;  %v11196_v61 = vunpack.c.h.bf16 %v3403_v20  ;;  %v11200_v49 = vrot.slane %v11169_v32, %v9126_v2 }
 0x19a   :  { %v11204_v1 = vrot.slane %v11171_v56, %v9126_v2  ;;  %v4312_v29 = vrot.slane %v11158_v58, 7  ;;  %v4314_v24 = vrot.slane %v11163_v63, 6  ;;  %v4316_v31 = vrot.slane %v11167_v41, 5 }
 0x19b   :  { %v4199_v12 = vadd.f32 %v4191_v27, %v4107_v51  ;;  %v4318_v0 = vrot.slane %v11176_v30, 4  ;;  %v4320_v20 = vrot.slane %v11184_v38, 3  ;;  %v4322_v59 = vrot.slane %v11190_v35, 2 }
 0x19c   :  { %v4313_v60 = vsel %vm198_vm0, %v4312_v29, %v11151_v44  ;;  %v4324_v25 = vrot.slane %v11194_v62, 1  ;;  %v4326_v45 = vrot.slane %v11160_v42, 7  ;;  %v4328_v51 = vrot.slane %v11165_v50, 6 }
 0x19d   :  { %v4315_v40 = vsel %vm201_vm1, %v4314_v24, %v4313_v60  ;;  %v4330_v27 = vrot.slane %v11174_v55, 5  ;;  %v4332_v54 = vrot.slane %v11182_v46, 4  ;;  %v4334_v29 = vrot.slane %v11186_v36, 3 }
 0x19e   :  { %v4317_v37 = vsel %vm204_vm2, %v4316_v31, %v4315_v40  ;;  %v4336_v39 = vrot.slane %v11192_v43, 2  ;;  %v4327_v6 = vsel %vm198_vm0, %v4326_v45, %v11153_v52  ;;  %v4338_v24 = vrot.slane %v11196_v61, 1 }
 0x19f   :  { %v4319_v2 = vsel %vm207_vm3, %v4318_v0, %v4317_v37  ;;  %v11229_v60 = vrot.slane %v11169_v32, %v9128_v3  ;;  %v4329_v40 = vsel %vm201_vm1, %v4328_v51, %v4327_v6  ;;  %v11235_v31 = vrot.slane %v11171_v56, %v9128_v3 }
 0x1a0   :  { %v4321_v7 = vsel %vm210_vm4, %v4320_v20, %v4319_v2  ;;  %v4404_v18 = vrot.slane %v11151_v44, 1  ;;  %v4331_v45 = vsel %vm204_vm2, %v4330_v27, %v4329_v40  ;;  %v4406_v0 = vrot.slane %v11163_v63, 7 }
 0x1a1   :  { %v4323_v37 = vsel %vm213_vm5, %v4322_v59, %v4321_v7  ;;  %v4408_v26 = vrot.slane %v11167_v41, 6  ;;  %v4333_v2 = vsel %vm207_vm3, %v4332_v54, %v4331_v45  ;;  %v4410_v20 = vrot.slane %v11176_v30, 5 }
 0x1a2   :  { %v11243_v19 = vsel %vm216_vm6, %v4324_v25, %v4323_v37  ;;  %v4405_v6 = vsel %vm198_vm0, %v11158_v58, %v4404_v18  ;;  %v4335_v51 = vsel %vm210_vm4, %v4334_v29, %v4333_v2  ;;  %v4412_v27 = vrot.slane %v11184_v38, 4 }
 0x1a3   :  { %15155 = vst [vmem:[#allocation170_spill] sm:$0xff] %v11243_v19  ;;  %v4346_v7 = vmul.f32 %v11243_v19, %v11200_v49  ;;  %v4407_v59 = vsel %vm201_vm1, %v4406_v0, %v4405_v6  ;;  %v4337_v40 = vsel %vm213_vm5, %v4336_v39, %v4335_v51  ;;  %v4414_v54 = vrot.slane %v11190_v35, 3 }
 0x1a4   :  { %v4409_v25 = vsel %vm204_vm2, %v4408_v26, %v4407_v59  ;;  %v4416_v37 = vrot.slane %v11194_v62, 2  ;;  %v11259_v18 = vsel %vm216_vm6, %v4338_v24, %v4337_v40  ;;  %v4418_v2 = vrot.slane %v11153_v52, 1 }
 0x1a5   :  { %15156 = vst [vmem:[#allocation171_spill] sm:$0xff] %v11259_v18  ;;  %v4354_v45 = vadd.f32 %v4346_v7, %v4198_v34  ;;  %v4411_v29 = vsel %vm207_vm3, %v4410_v20, %v4409_v25  ;;  %v4347_v0 = vmul.f32 %v11259_v18, %v11204_v1  ;;  %v4420_v39 = vrot.slane %v11165_v50, 7 }
 0x1a6   :  { %v4413_v6 = vsel %vm210_vm4, %v4412_v27, %v4411_v29  ;;  %v4422_v26 = vrot.slane %v11174_v55, 6  ;;  %v4419_v24 = vsel %vm198_vm0, %v11160_v42, %v4418_v2  ;;  %v4424_v34 = vrot.slane %v11182_v46, 5 }
 0x1a7   :  { %v4415_v51 = vsel %vm213_vm5, %v4414_v54, %v4413_v6  ;;  %v4426_v20 = vrot.slane %v11186_v36, 4  ;;  %v4355_v7 = vadd.f32 %v4347_v0, %v4199_v12  ;;  %v4421_v40 = vsel %vm201_vm1, %v4420_v39, %v4419_v24 }
 0x1a8   :  { %v11274_v59 = vsel %vm216_vm6, %v4416_v37, %v4415_v51  ;;  %v4428_v27 = vrot.slane %v11192_v43, 3  ;;  %v4423_v25 = vsel %vm204_vm2, %v4422_v26, %v4421_v40  ;;  %v4430_v29 = vrot.slane %v11196_v61, 2 }
 0x1a9   :  { %15157 = vst [vmem:[#allocation172_spill] sm:$0xff] %v11274_v59  ;;  %v4438_v54 = vmul.f32 %v11274_v59, %v11229_v60  ;;  %v11284_v2 = vrot.slane %v11169_v32, %v9130_v4  ;;  %v4425_v12 = vsel %vm207_vm3, %v4424_v34, %v4423_v25  ;;  %v11289_v37 = vrot.slane %v11171_v56, %v9130_v4 }
 0x1aa   :  { %v4496_v0 = vrot.slane %v11151_v44, 2  ;;  %v4497_v6 = vrot.slane %v11158_v58, 1  ;;  %v4427_v39 = vsel %vm210_vm4, %v4426_v20, %v4425_v12  ;;  %v4500_v51 = vrot.slane %v11167_v41, 7 }
 0x1ab   :  { %15158 = vst [vmem:[#allocation173_spill] sm:$0xff] %v11284_v2  ;;  %v4446_v26 = vadd.f32 %v4438_v54, %v4354_v45  ;;  %v4502_v24 = vrot.slane %v11176_v30, 6  ;;  %v4429_v40 = vsel %vm213_vm5, %v4428_v27, %v4427_v39  ;;  %v4504_v34 = vrot.slane %v11184_v38, 5 }
 0x1ac   :  { %v4498_v59 = vsel %vm198_vm0, %v4497_v6, %v4496_v0  ;;  %v4506_v25 = vrot.slane %v11190_v35, 4  ;;  %v11301_v18 = vsel %vm216_vm6, %v4430_v29, %v4429_v40  ;;  %v4508_v45 = vrot.slane %v11194_v62, 3 }
 0x1ad   :  { %15159 = vst [vmem:[#allocation174_spill] sm:$0xff] %v11301_v18  ;;  %v4499_v19 = vsel %vm201_vm1, %v11163_v63, %v4498_v59  ;;  %v4510_v20 = vrot.slane %v11153_v52, 2  ;;  %v4439_v54 = vmul.f32 %v11301_v18, %v11235_v31  ;;  %v4511_v12 = vrot.slane %v11160_v42, 1 }
 0x1ae   :  { %v4501_v27 = vsel %vm204_vm2, %v4500_v51, %v4499_v19  ;;  %v4514_v0 = vrot.slane %v11174_v55, 7  ;;  %v4516_v29 = vrot.slane %v11182_v46, 6  ;;  %v4518_v39 = vrot.slane %v11186_v36, 5 }
 0x1af   :  { %v4503_v6 = vsel %vm207_vm3, %v4502_v24, %v4501_v27  ;;  %v4520_v59 = vrot.slane %v11192_v43, 4  ;;  %v4447_v40 = vadd.f32 %v4439_v54, %v4355_v7  ;;  %v4512_v3 = vsel %vm198_vm0, %v4511_v12, %v4510_v20 }
 0x1b0   :  { %v4505_v4 = vsel %vm210_vm4, %v4504_v34, %v4503_v6  ;;  %v4522_v18 = vrot.slane %v11196_v61, 3  ;;  %v4513_v51 = vsel %vm201_vm1, %v11165_v50, %v4512_v3  ;;  %v11324_v24 = vrot.slane %v11169_v32, %v9132_v5 }
 0x1b1   :  { %v4507_v19 = vsel %vm213_vm5, %v4506_v25, %v4505_v4  ;;  %v11328_v27 = vrot.slane %v11171_v56, %v9132_v5  ;;  %v4515_v34 = vsel %vm204_vm2, %v4514_v0, %v4513_v51  ;;  %v4588_v20 = vrot.slane %v11151_v44, 3 }
 0x1b2   :  { %15160 = vst [vmem:[#allocation175_spill] sm:$0xff] %v11324_v24  ;;  %v11331_v7 = vsel %vm216_vm6, %v4508_v45, %v4507_v19  ;;  %v4589_v4 = vrot.slane %v11158_v58, 2  ;;  %v4517_v25 = vsel %vm207_vm3, %v4516_v29, %v4515_v34  ;;  %v4591_v54 = vrot.slane %v11163_v63, 1 }
 0x1b3   :  { %15161 = vst [vmem:[#allocation176_spill] sm:$0xff] %v11331_v7  ;;  %v4530_v3 = vmul.f32 %v11331_v7, %v11284_v2  ;;  %v4594_v12 = vrot.slane %v11176_v30, 7  ;;  %v4519_v6 = vsel %vm210_vm4, %v4518_v39, %v4517_v25  ;;  %v4596_v19 = vrot.slane %v11184_v38, 6 }
 0x1b4   :  { %v4590_v45 = vsel %vm198_vm0, %v4589_v4, %v4588_v20  ;;  %v4598_v0 = vrot.slane %v11190_v35, 5  ;;  %v4521_v51 = vsel %vm213_vm5, %v4520_v59, %v4519_v6  ;;  %v4600_v34 = vrot.slane %v11194_v62, 4 }
 0x1b5   :  { %v4538_v5 = vadd.f32 %v4530_v3, %v4446_v26  ;;  %v4592_v29 = vsel %vm201_vm1, %v4591_v54, %v4590_v45  ;;  %v11349_v7 = vsel %vm216_vm6, %v4522_v18, %v4521_v51  ;;  %v4602_v39 = vrot.slane %v11153_v52, 3 }
 0x1b6   :  { %15162 = vst [vmem:[#allocation177_spill] sm:$0xff] %v11349_v7  ;;  %v4593_v2 = vsel %vm204_vm2, %v11167_v41, %v4592_v29  ;;  %v4603_v20 = vrot.slane %v11160_v42, 2  ;;  %v4531_v4 = vmul.f32 %v11349_v7, %v11289_v37  ;;  %v4605_v26 = vrot.slane %v11165_v50, 1 }
 0x1b7   :  { %v4595_v59 = vsel %vm207_vm3, %v4594_v12, %v4593_v2  ;;  %v4608_v25 = vrot.slane %v11182_v46, 7  ;;  %v4610_v54 = vrot.slane %v11186_v36, 6  ;;  %v4612_v6 = vrot.slane %v11192_v43, 5 }
 0x1b8   :  { %v4597_v3 = vsel %vm210_vm4, %v4596_v19, %v4595_v59  ;;  %v4604_v18 = vsel %vm198_vm0, %v4603_v20, %v4602_v39  ;;  %v4539_v45 = vadd.f32 %v4531_v4, %v4447_v40  ;;  %v4614_v7 = vrot.slane %v11196_v61, 4 }
 0x1b9   :  { %v4599_v51 = vsel %vm213_vm5, %v4598_v0, %v4597_v3  ;;  %v4606_v29 = vsel %vm201_vm1, %v4605_v26, %v4604_v18  ;;  %v11374_v19 = vrot.slane %v11169_v32, %v9138_v8  ;;  %v11378_v39 = vrot.slane %v11171_v56, %v9138_v8 }
 0x1ba   :  { %v11368_v2 = vsel %vm216_vm6, %v4600_v34, %v4599_v51  ;;  %v4607_v12 = vsel %vm204_vm2, %v11174_v55, %v4606_v29  ;;  %v4680_v20 = vrot.slane %v11151_v44, 4  ;;  %v4681_v34 = vrot.slane %v11158_v58, 3 }
 0x1bb   :  { %15163 = vst [vmem:[#allocation178_spill] sm:$0xff] %v11368_v2  ;;  %15164 = vst [vmem:[#allocation179_spill] sm:$0xff] %v11374_v19  ;;  %v4609_v40 = vsel %vm207_vm3, %v4608_v25, %v4607_v12  ;;  %v4622_v0 = vmul.f32 %v11368_v2, %v11324_v24  ;;  %v4683_v59 = vrot.slane %v11163_v63, 2  ;;  %v4685_v26 = vrot.slane %v11167_v41, 1 }
 0x1bc   :  { %v4611_v4 = vsel %vm210_vm4, %v4610_v54, %v4609_v40  ;;  %v4688_v3 = vrot.slane %v11184_v38, 7  ;;  %v4682_v25 = vsel %vm198_vm0, %v4681_v34, %v4680_v20  ;;  %v4690_v29 = vrot.slane %v11190_v35, 6 }
 0x1bd   :  { %v4613_v18 = vsel %vm213_vm5, %v4612_v6, %v4611_v4  ;;  %v4630_v51 = vadd.f32 %v4622_v0, %v4538_v5  ;;  %v4684_v2 = vsel %vm201_vm1, %v4683_v59, %v4682_v25  ;;  %v4692_v54 = vrot.slane %v11194_v62, 5 }
 0x1be   :  { %v11393_v12 = vsel %vm216_vm6, %v4614_v7, %v4613_v18  ;;  %v4694_v40 = vrot.slane %v11153_v52, 4  ;;  %v4686_v24 = vsel %vm204_vm2, %v4685_v26, %v4684_v2  ;;  %v4695_v5 = vrot.slane %v11160_v42, 3 }
 0x1bf   :  { %15165 = vst [vmem:[#allocation180_spill] sm:$0xff] %v11393_v12  ;;  %v4623_v8 = vmul.f32 %v11393_v12, %v11328_v27  ;;  %v4697_v6 = vrot.slane %v11165_v50, 2  ;;  %v4687_v0 = vsel %vm207_vm3, %v11176_v30, %v4686_v24  ;;  %v4699_v7 = vrot.slane %v11174_v55, 1 }
 0x1c0   :  { %v4702_v20 = vrot.slane %v11186_v36, 7  ;;  %v4704_v34 = vrot.slane %v11192_v43, 6  ;;  %v4689_v59 = vsel %vm210_vm4, %v4688_v3, %v4687_v0  ;;  %v4696_v18 = vsel %vm198_vm0, %v4695_v5, %v4694_v40 }
 0x1c1   :  { %v4631_v4 = vadd.f32 %v4623_v8, %v4539_v45  ;;  %v4706_v2 = vrot.slane %v11196_v61, 5  ;;  %v4691_v26 = vsel %vm213_vm5, %v4690_v29, %v4689_v59  ;;  %v4698_v25 = vsel %vm201_vm1, %v4697_v6, %v4696_v18 }
 0x1c2   :  { %v11415_v24 = vrot.slane %v11169_v32, %v9140_v9  ;;  %v11419_v12 = vrot.slane %v11171_v56, %v9140_v9  ;;  %v11422_v8 = vsel %vm216_vm6, %v4692_v54, %v4691_v26  ;;  %v4700_v45 = vsel %vm204_vm2, %v4699_v7, %v4698_v25 }
 0x1c3   :  { %15167 = vst [vmem:[#allocation182_spill] sm:$0xff] %v11422_v8  ;;  %v4772_v3 = vrot.slane %v11151_v44, 5  ;;  %v4773_v40 = vrot.slane %v11158_v58, 4  ;;  %v4701_v29 = vsel %vm207_vm3, %v11182_v46, %v4700_v45  ;;  %v4714_v5 = vmul.f32 %v11422_v8, %v11374_v19 }
 0x1c4   :  { %15166 = vst [vmem:[#allocation181_spill] sm:$0xff] %v11415_v24  ;;  %v4775_v6 = vrot.slane %v11163_v63, 3  ;;  %v4777_v0 = vrot.slane %v11167_v41, 2  ;;  %v4703_v59 = vsel %vm210_vm4, %v4702_v20, %v4701_v29  ;;  %v4779_v7 = vrot.slane %v11176_v30, 1 }
 0x1c5   :  { %v4774_v54 = vsel %vm198_vm0, %v4773_v40, %v4772_v3  ;;  %v4782_v18 = vrot.slane %v11190_v35, 7  ;;  %v4705_v26 = vsel %vm213_vm5, %v4704_v34, %v4703_v59  ;;  %v4722_v25 = vadd.f32 %v4714_v5, %v4630_v51 }
 0x1c6   :  { %v4776_v45 = vsel %vm201_vm1, %v4775_v6, %v4774_v54  ;;  %v4784_v9 = vrot.slane %v11194_v62, 6  ;;  %v11441_v8 = vsel %vm216_vm6, %v4706_v2, %v4705_v26  ;;  %v4786_v20 = vrot.slane %v11153_v52, 5 }
 0x1c7   :  { %15168 = vst [vmem:[#allocation183_spill] sm:$0xff] %v11441_v8  ;;  %v4778_v19 = vsel %vm204_vm2, %v4777_v0, %v4776_v45  ;;  %v4787_v3 = vrot.slane %v11160_v42, 4  ;;  %v4715_v40 = vmul.f32 %v11441_v8, %v11378_v39  ;;  %v4789_v51 = vrot.slane %v11165_v50, 3 }
 0x1c8   :  { %v4780_v29 = vsel %vm207_vm3, %v4779_v7, %v4778_v19  ;;  %v4791_v34 = vrot.slane %v11174_v55, 2  ;;  %v4793_v6 = vrot.slane %v11182_v46, 1  ;;  %v4796_v0 = vrot.slane %v11192_v43, 7 }
 0x1c9   :  { %v4781_v5 = vsel %vm210_vm4, %v11184_v38, %v4780_v29  ;;  %v4788_v2 = vsel %vm198_vm0, %v4787_v3, %v4786_v20  ;;  %v4723_v59 = vadd.f32 %v4715_v40, %v4631_v4  ;;  %v4798_v19 = vrot.slane %v11196_v61, 6 }
 0x1ca   :  { %v4783_v54 = vsel %vm213_vm5, %v4782_v18, %v4781_v5  ;;  %v4790_v26 = vsel %vm201_vm1, %v4789_v51, %v4788_v2  ;;  %v11465_v29 = vrot.slane %v11169_v32, %v9142_v10  ;;  %v11469_v20 = vrot.slane %v11171_v56, %v9142_v10 }
 0x1cb   :  { %v11460_v7 = vsel %vm216_vm6, %v4784_v9, %v4783_v54  ;;  %v4792_v45 = vsel %vm204_vm2, %v4791_v34, %v4790_v26  ;;  %v4864_v3 = vrot.slane %v11151_v44, 6  ;;  %v4865_v9 = vrot.slane %v11158_v58, 5 }
 0x1cc   :  { %15169 = vst [vmem:[#allocation184_spill] sm:$0xff] %v11460_v7  ;;  %v4794_v4 = vsel %vm207_vm3, %v4793_v6, %v4792_v45  ;;  %v4806_v18 = vmul.f32 %v11460_v7, %v11415_v24  ;;  %v4867_v51 = vrot.slane %v11163_v63, 4  ;;  %v4869_v34 = vrot.slane %v11167_v41, 3 }
 0x1cd   :  { %v4795_v40 = vsel %vm210_vm4, %v11186_v36, %v4794_v4  ;;  %v4871_v5 = vrot.slane %v11176_v30, 2  ;;  %v4866_v6 = vsel %vm198_vm0, %v4865_v9, %v4864_v3  ;;  %v4873_v26 = vrot.slane %v11184_v38, 1 }
 0x1ce   :  { %v4797_v2 = vsel %vm213_vm5, %v4796_v0, %v4795_v40  ;;  %v4814_v54 = vadd.f32 %v4806_v18, %v4722_v25  ;;  %v4868_v7 = vsel %vm201_vm1, %v4867_v51, %v4866_v6  ;;  %v4876_v4 = vrot.slane %v11194_v62, 7 }
 0x1cf   :  { %v11485_v45 = vsel %vm216_vm6, %v4798_v19, %v4797_v2  ;;  %v4878_v8 = vrot.slane %v11153_v52, 6  ;;  %v4870_v24 = vsel %vm204_vm2, %v4869_v34, %v4868_v7  ;;  %v4879_v25 = vrot.slane %v11160_v42, 5 }
 0x1d0   :  { %15170 = vst [vmem:[#allocation185_spill] sm:$0xff] %v11485_v45  ;;  %v4807_v10 = vmul.f32 %v11485_v45, %v11419_v12  ;;  %v4881_v0 = vrot.slane %v11165_v50, 4  ;;  %v4872_v18 = vsel %vm207_vm3, %v4871_v5, %v4870_v24  ;;  %v4883_v19 = vrot.slane %v11174_v55, 3 }
 0x1d1   :  { %v4885_v3 = vrot.slane %v11182_v46, 2  ;;  %v4887_v9 = vrot.slane %v11186_v36, 1  ;;  %v4874_v51 = vsel %vm210_vm4, %v4873_v26, %v4872_v18  ;;  %v4880_v2 = vsel %vm198_vm0, %v4879_v25, %v4878_v8 }
 0x1d2   :  { %v4815_v40 = vadd.f32 %v4807_v10, %v4723_v59  ;;  %v4890_v6 = vrot.slane %v11196_v61, 7  ;;  %v4875_v7 = vsel %vm213_vm5, %v11190_v35, %v4874_v51  ;;  %v4882_v34 = vsel %vm201_vm1, %v4881_v0, %v4880_v2 }
 0x1d3   :  { %v11507_v24 = vrot.slane %v11169_v32, %v9144_v11  ;;  %v11511_v5 = vrot.slane %v11171_v56, %v9144_v11  ;;  %v11514_v10 = vsel %vm216_vm6, %v4876_v4, %v4875_v7  ;;  %v4884_v8 = vsel %vm204_vm2, %v4883_v19, %v4882_v34 }
 0x1d4   :  { %15171 = vst [vmem:[#allocation186_spill] sm:$0xff] %v11514_v10  ;;  %v4956_v59 = vrot.slane %v11151_v44, 7  ;;  %v4957_v26 = vrot.slane %v11158_v58, 6  ;;  %v4886_v25 = vsel %vm207_vm3, %v4885_v3, %v4884_v8  ;;  %v4898_v0 = vmul.f32 %v11514_v10, %v11465_v29  ;;  %v85_v8 = vld [vmem:[#allocation6] sm:$0xff] }
 0x1d5   :  { %v4959_v32 = vrot.slane %v11163_v63, 5  ;;  %v4961_v18 = vrot.slane %v11167_v41, 4  ;;  %v4888_v56 = vsel %vm210_vm4, %v4887_v9, %v4886_v25  ;;  %v4963_v51 = vrot.slane %v11176_v30, 3 }
 0x1d6   :  { %v4958_v4 = vsel %vm198_vm0, %v4957_v26, %v4956_v59  ;;  %v4965_v19 = vrot.slane %v11184_v38, 2  ;;  %v4889_v44 = vsel %vm213_vm5, %v11192_v43, %v4888_v56  ;;  %v4906_v58 = vadd.f32 %v4898_v0, %v4814_v54  ;;  %v87_v26 = vld [vmem:[#allocation6 + $0x30] sm:$0xff] }
 0x1d7   :  { %v4960_v3 = vsel %vm201_vm1, %v4959_v32, %v4958_v4  ;;  %v4967_v2 = vrot.slane %v11190_v35, 1  ;;  %v11533_v63 = vsel %vm216_vm6, %v4890_v6, %v4889_v44  ;;  %v4970_v9 = vrot.slane %v11153_v52, 7  ;;  %v93_v4 = vld [vmem:[#allocation6 + $0xc0] sm:$0xff] }
 0x1d8   :  { %15172 = vst [vmem:[#allocation187_spill] sm:$0xff] %v11533_v63  ;;  %v4962_v41 = vsel %vm204_vm2, %v4961_v18, %v4960_v3  ;;  %v4971_v7 = vrot.slane %v11160_v42, 6  ;;  %v4899_v30 = vmul.f32 %v11533_v63, %v11469_v20  ;;  %v4973_v54 = vrot.slane %v11165_v50, 5  ;;  %v89_v50 = vld [vmem:[#allocation6 + $0x60] sm:$0xff] }
 0x1d9   :  { %v4964_v38 = vsel %vm207_vm3, %v4963_v51, %v4962_v41  ;;  %v4975_v34 = vrot.slane %v11174_v55, 4  ;;  %v4977_v59 = vrot.slane %v11182_v46, 3  ;;  %v4979_v52 = vrot.slane %v11186_v36, 2  ;;  %v91_v36 = vld [vmem:[#allocation6 + $0x90] sm:$0xff]  ;;  %v97_v3 = vld [vmem:[#allocation6 + $0x120] sm:$0xff] }
 0x1da   :  { %v4966_v35 = vsel %vm210_vm4, %v4965_v19, %v4964_v38  ;;  %v4972_v6 = vsel %vm198_vm0, %v4971_v7, %v4970_v9  ;;  %v4907_v42 = vadd.f32 %v4899_v30, %v4815_v40  ;;  %v4981_v32 = vrot.slane %v11192_v43, 1  ;;  %v95_v51 = vld [vmem:[#allocation6 + $0xf0] sm:$0xff] }
 0x1db   :  { %v4968_v25 = vsel %vm213_vm5, %v4967_v2, %v4966_v35  ;;  %v4974_v0 = vsel %vm201_vm1, %v4973_v54, %v4972_v6  ;;  %v11558_v46 = vstv %s14656_s7  ;;  %v11560_v40 = vunpack.c.l.bf16 %v85_v8  ;;  %v99_v38 = vld [vmem:[#allocation6 + $0x150] sm:$0xff] }
 0x1dc   :  { %v11552_v55 = vsel %vm216_vm6, %v11194_v62, %v4968_v25  ;;  %v4976_v18 = vsel %vm204_vm2, %v4975_v34, %v4974_v0  ;;  %15174 = vst [vmem:[#allocation189_spill] sm:$0xff] %v11558_v46  ;;  %v11565_v19 = vunpack.c.h.bf16 %v85_v8  ;;  %v11567_v62 = vunpack.c.l.bf16 %v87_v26  ;;  %v5015_v35 = vld [vmem:[%s14651_s2 + $0x10] sm:$0xff] }
 0x1dd   :  { %15173 = vst [vmem:[#allocation188_spill] sm:$0xff] %v11552_v55  ;;  %v4978_v56 = vsel %vm207_vm3, %v4977_v59, %v4976_v18  ;;  %v4990_v43 = vmul.f32 %v11552_v55, %v11507_v24  ;;  %v11570_v2 = vunpack.c.h.bf16 %v87_v26  ;;  %v11572_v41 = vunpack.c.l.bf16 %v89_v50 }
 0x1de   :  { %v4980_v44 = vsel %vm210_vm4, %v4979_v52, %v4978_v56  ;;  %v11574_v9 = vunpack.c.h.bf16 %v89_v50  ;;  %v11577_v54 = vunpack.c.l.bf16 %v91_v36  ;;  %v11579_v34 = vunpack.c.h.bf16 %v91_v36 }
 0x1df   :  { %v4982_v7 = vsel %vm213_vm5, %v4981_v32, %v4980_v44  ;;  %v4998_v30 = vadd.f32 %v4990_v43, %v4906_v58  ;;  %v11588_v6 = vunpack.c.l.bf16 %v93_v4  ;;  %v11590_v59 = vunpack.c.h.bf16 %v93_v4 }
 0x1e0   :  { %v11583_v8 = vsel %vm216_vm6, %v11196_v61, %v4982_v7  ;;  %v11592_v52 = vunpack.c.l.bf16 %v95_v51  ;;  %v11597_v25 = vunpack.c.h.bf16 %v95_v51  ;;  %v11599_v0 = vunpack.c.l.bf16 %v97_v3  ;;  %v5016_v51 = vld [vmem:[%s14651_s2 + $0x18] sm:$0xff] }
 0x1e1   :  { %15175 = vst [vmem:[#allocation190_spill] sm:$0xff] %v11583_v8  ;;  %v4991_v58 = vmul.f32 %v11583_v8, %v11511_v5  ;;  %v5007_v26 = vmul.f32 %v11558_v46, %v4998_v30  ;;  %v11601_v61 = vunpack.c.h.bf16 %v97_v3  ;;  %v11603_v32 = vunpack.c.l.bf16 %v99_v38 }
 0x1e2   :  { %v11605_v50 = vunpack.c.h.bf16 %v99_v38  ;;  %v197_v18 = vrot.slane %v11567_v62, 7  ;;  %v200_v43 = vrot.slane %v11572_v41, 6  ;;  %v203_v4 = vrot.slane %v11577_v54, 5 }
 0x1e3   :  { %v4999_v36 = vadd.f32 %v4991_v58, %v4907_v42  ;;  %v11608_v56 = vadd.f32 %v5015_v35, %v5007_v26  ;;  %v206_v3 = vrot.slane %v11588_v6, 4  ;;  %v209_v7 = vrot.slane %v11592_v52, 3 }
 0x1e4   :  { %v199_v44 = vsel %vm198_vm0, %v197_v18, %v11560_v40  ;;  %v212_v30 = vrot.slane %v11599_v0, 2  ;;  %v215_v35 = vrot.slane %v11603_v32, 1  ;;  %v218_v58 = vrot.slane %v11570_v2, 7 }
 0x1e5   :  { %15176 = vst [vmem:[#allocation191_spill] sm:$0xff] %v11608_v56  ;;  %v5008_v42 = vmul.f32 %v11558_v46, %v4999_v36  ;;  %v202_v38 = vsel %vm201_vm1, %v200_v43, %v199_v44  ;;  %v220_v8 = vrot.slane %v11574_v9, 6  ;;  %v222_v18 = vrot.slane %v11579_v34, 5 }
 0x1e6   :  { %v205_v26 = vsel %vm204_vm2, %v203_v4, %v202_v38  ;;  %v224_v55 = vrot.slane %v11590_v59, 4  ;;  %v219_v36 = vsel %vm198_vm0, %v218_v58, %v11565_v19  ;;  %v226_v43 = vrot.slane %v11597_v25, 3 }
 0x1e7   :  { %v11628_v63 = vadd.f32 %v5016_v51, %v5008_v42  ;;  %v208_v10 = vsel %vm207_vm3, %v206_v3, %v205_v26  ;;  %v221_v45 = vsel %vm201_vm1, %v220_v8, %v219_v36  ;;  %v228_v4 = vrot.slane %v11601_v61, 2 }
 0x1e8   :  { %v211_v44 = vsel %vm210_vm4, %v209_v7, %v208_v10  ;;  %v230_v38 = vrot.slane %v11605_v50, 1  ;;  %v223_v3 = vsel %vm204_vm2, %v222_v18, %v221_v45  ;;  %v296_v42 = vrot.slane %v11560_v40, 1 }
 0x1e9   :  { %15177 = vst [vmem:[#allocation192_spill] sm:$0xff] %v11628_v63  ;;  %v5028_v11 = vadd.f32 %v11628_v63, %v11608_v56  ;;  %v214_v51 = vsel %vm213_vm5, %v212_v30, %v211_v44  ;;  %v225_v10 = vsel %vm207_vm3, %v224_v55, %v223_v3  ;;  %v298_v8 = vrot.slane %v11572_v41, 7 }
 0x1ea   :  { %v11644_v58 = vsel %vm216_vm6, %v215_v35, %v214_v51  ;;  %v300_v7 = vrot.slane %v11577_v54, 6  ;;  %v227_v26 = vsel %vm210_vm4, %v226_v43, %v225_v10  ;;  %v297_v45 = vsel %vm198_vm0, %v11567_v62, %v296_v42 }
 0x1eb   :  { %5029 = vadd.xlane.f32.xlu1 %v5028_v11  ;;  %v264_v36 = vmul.f32 %v11644_v58, %v9148_v13  ;;  %v302_v30 = vrot.slane %v11588_v6, 5  ;;  %v229_v35 = vsel %vm213_vm5, %v228_v4, %v227_v26  ;;  %v299_v18 = vsel %vm201_vm1, %v298_v8, %v297_v45 }
 0x1ec   :  { %v304_v55 = vrot.slane %v11592_v52, 4  ;;  %v306_v44 = vrot.slane %v11599_v0, 3  ;;  %v11660_v11 = vsel %vm216_vm6, %v230_v38, %v229_v35  ;;  %v301_v43 = vsel %vm204_vm2, %v300_v7, %v299_v18 }
 0x1ed   :  { %v308_v13 = vrot.slane %v11603_v32, 2  ;;  %v310_v51 = vrot.slane %v11565_v19, 1  ;;  %v265_v3 = vmul.f32 %v11660_v11, %v9152_v14  ;;  %v303_v4 = vsel %vm207_vm3, %v302_v30, %v301_v43 }
 0x1ee   :  { %v312_v42 = vrot.slane %v11574_v9, 7  ;;  %v314_v10 = vrot.slane %v11579_v34, 6  ;;  %v305_v8 = vsel %vm210_vm4, %v304_v55, %v303_v4  ;;  %v316_v7 = vrot.slane %v11590_v59, 5 }
 0x1ef   :  { %v311_v38 = vsel %vm198_vm0, %v11570_v2, %v310_v51  ;;  %v318_v26 = vrot.slane %v11597_v25, 4  ;;  %v307_v45 = vsel %vm213_vm5, %v306_v44, %v305_v8  ;;  %v320_v14 = vrot.slane %v11601_v61, 3 }
 0x1f0   :  { %v313_v35 = vsel %vm201_vm1, %v312_v42, %v311_v38  ;;  %v322_v30 = vrot.slane %v11605_v50, 2  ;;  %v11680_v18 = vsel %vm216_vm6, %v308_v13, %v307_v45  ;;  %v388_v43 = vrot.slane %v11560_v40, 2 }
 0x1f1   :  { %v315_v55 = vsel %vm204_vm2, %v314_v10, %v313_v35  ;;  %v389_v51 = vrot.slane %v11567_v62, 1  ;;  %v356_v44 = vmul.f32 %v11680_v18, %v9156_v15  ;;  %v392_v42 = vrot.slane %v11577_v54, 7 }
 0x1f2   :  { %v317_v4 = vsel %vm207_vm3, %v316_v7, %v315_v55  ;;  %v394_v8 = vrot.slane %v11588_v6, 6  ;;  %v396_v45 = vrot.slane %v11592_v52, 5  ;;  %v398_v10 = vrot.slane %v11599_v0, 4 }
 0x1f3   :  { %v319_v38 = vsel %vm210_vm4, %v318_v26, %v317_v4  ;;  %v390_v13 = vsel %vm198_vm0, %v389_v51, %v388_v43  ;;  %v364_v63 = vadd.f32 %v356_v44, %v264_v36  ;;  %v400_v15 = vrot.slane %v11603_v32, 3 }
 0x1f4   :  { %v321_v35 = vsel %vm213_vm5, %v320_v14, %v319_v38  ;;  %v391_v7 = vsel %vm201_vm1, %v11572_v41, %v390_v13  ;;  %v402_v26 = vrot.slane %v11565_v19, 2  ;;  %v403_v43 = vrot.slane %v11570_v2, 1 }
 0x1f5   :  { %v11699_v55 = vsel %vm216_vm6, %v322_v30, %v321_v35  ;;  %v393_v56 = vsel %vm204_vm2, %v392_v42, %v391_v7  ;;  %v406_v36 = vrot.slane %v11579_v34, 7  ;;  %v408_v4 = vrot.slane %v11590_v59, 6 }
 0x1f6   :  { %v357_v51 = vmul.f32 %v11699_v55, %v9160_v16  ;;  %v395_v14 = vsel %vm207_vm3, %v394_v8, %v393_v56  ;;  %v404_v30 = vsel %vm198_vm0, %v403_v43, %v402_v26  ;;  %v410_v38 = vrot.slane %v11597_v25, 5 }
 0x1f7   :  { %v397_v44 = vsel %vm210_vm4, %v396_v45, %v395_v14  ;;  %v412_v42 = vrot.slane %v11601_v61, 4  ;;  %v405_v16 = vsel %vm201_vm1, %v11574_v9, %v404_v30  ;;  %v414_v56 = vrot.slane %v11605_v50, 3 }
 0x1f8   :  { %v365_v13 = vadd.f32 %v357_v51, %v265_v3  ;;  %v399_v35 = vsel %vm213_vm5, %v398_v10, %v397_v44  ;;  %v407_v7 = vsel %vm204_vm2, %v406_v36, %v405_v16  ;;  %v480_v45 = vrot.slane %v11560_v40, 3 }
 0x1f9   :  { %v11718_v8 = vsel %vm216_vm6, %v400_v15, %v399_v35  ;;  %v481_v26 = vrot.slane %v11567_v62, 2  ;;  %v409_v43 = vsel %vm207_vm3, %v408_v4, %v407_v7  ;;  %v483_v10 = vrot.slane %v11572_v41, 1 }
 0x1fa   :  { %v448_v3 = vmul.f32 %v11718_v8, %v9168_v21  ;;  %v486_v51 = vrot.slane %v11588_v6, 7  ;;  %v411_v14 = vsel %vm210_vm4, %v410_v38, %v409_v43  ;;  %v488_v44 = vrot.slane %v11592_v52, 6 }
 0x1fb   :  { %v482_v15 = vsel %vm198_vm0, %v481_v26, %v480_v45  ;;  %v490_v36 = vrot.slane %v11599_v0, 5  ;;  %v413_v30 = vsel %vm213_vm5, %v412_v42, %v411_v14  ;;  %v492_v16 = vrot.slane %v11603_v32, 4 }
 0x1fc   :  { %v456_v35 = vadd.f32 %v448_v3, %v364_v63  ;;  %v484_v4 = vsel %vm201_vm1, %v483_v10, %v482_v15  ;;  %v11736_v21 = vsel %vm216_vm6, %v414_v56, %v413_v30  ;;  %v494_v38 = vrot.slane %v11565_v19, 3 }
 0x1fd   :  { %v485_v7 = vsel %vm204_vm2, %v11577_v54, %v484_v4  ;;  %v495_v45 = vrot.slane %v11570_v2, 2  ;;  %v449_v26 = vmul.f32 %v11736_v21, %v9172_v22  ;;  %v497_v63 = vrot.slane %v11574_v9, 1 }
 0x1fe   :  { %v487_v42 = vsel %vm207_vm3, %v486_v51, %v485_v7  ;;  %v500_v43 = vrot.slane %v11590_v59, 7  ;;  %v502_v10 = vrot.slane %v11597_v25, 6  ;;  %v504_v14 = vrot.slane %v11601_v61, 5 }
 0x1ff   :  { %v489_v3 = vsel %vm210_vm4, %v488_v44, %v487_v42  ;;  %v496_v56 = vsel %vm198_vm0, %v495_v45, %v494_v38  ;;  %v457_v15 = vadd.f32 %v449_v26, %v365_v13  ;;  %v506_v22 = vrot.slane %v11605_v50, 4 }
 0x200   :  { %v491_v30 = vsel %vm213_vm5, %v490_v36, %v489_v3  ;;  %v498_v4 = vsel %vm201_vm1, %v497_v63, %v496_v56  ;;  %v572_v44 = vrot.slane %v11560_v40, 4  ;;  %v573_v38 = vrot.slane %v11567_v62, 3 }
 0x201   :  { %v11755_v51 = vsel %vm216_vm6, %v492_v16, %v491_v30  ;;  %v499_v7 = vsel %vm204_vm2, %v11579_v34, %v498_v4  ;;  %v575_v36 = vrot.slane %v11572_v41, 2  ;;  %v577_v26 = vrot.slane %v11577_v54, 1 }
 0x202   :  { %v501_v45 = vsel %vm207_vm3, %v500_v43, %v499_v7  ;;  %v540_v13 = vmul.f32 %v11755_v51, %v9305_v17  ;;  %v574_v16 = vsel %vm198_vm0, %v573_v38, %v572_v44  ;;  %v580_v63 = vrot.slane %v11592_v52, 7 }
 0x203   :  { %v503_v42 = vsel %vm210_vm4, %v502_v10, %v501_v45  ;;  %v582_v3 = vrot.slane %v11599_v0, 6  ;;  %v576_v43 = vsel %vm201_vm1, %v575_v36, %v574_v16  ;;  %v584_v4 = vrot.slane %v11603_v32, 5 }
 0x204   :  { %v505_v56 = vsel %vm213_vm5, %v504_v14, %v503_v42  ;;  %v548_v30 = vadd.f32 %v540_v13, %v456_v35  ;;  %v578_v7 = vsel %vm204_vm2, %v577_v26, %v576_v43  ;;  %v586_v10 = vrot.slane %v11565_v19, 4 }
 0x205   :  { %v11774_v17 = vsel %vm216_vm6, %v506_v22, %v505_v56  ;;  %v587_v44 = vrot.slane %v11570_v2, 3  ;;  %v579_v14 = vsel %vm207_vm3, %v11588_v6, %v578_v7  ;;  %v589_v35 = vrot.slane %v11574_v9, 2 }
 0x206   :  { %v541_v38 = vmul.f32 %v11774_v17, %v9313_v28  ;;  %v591_v45 = vrot.slane %v11579_v34, 1  ;;  %v581_v13 = vsel %vm210_vm4, %v580_v63, %v579_v14  ;;  %v594_v36 = vrot.slane %v11597_v25, 7 }
 0x207   :  { %v588_v22 = vsel %vm198_vm0, %v587_v44, %v586_v10  ;;  %v596_v26 = vrot.slane %v11601_v61, 6  ;;  %v583_v16 = vsel %vm213_vm5, %v582_v3, %v581_v13  ;;  %v598_v56 = vrot.slane %v11605_v50, 5 }
 0x208   :  { %v549_v42 = vadd.f32 %v541_v38, %v457_v15  ;;  %v590_v28 = vsel %vm201_vm1, %v589_v35, %v588_v22  ;;  %v11793_v43 = vsel %vm216_vm6, %v584_v4, %v583_v16  ;;  %v664_v63 = vrot.slane %v11560_v40, 5 }
 0x209   :  { %v592_v7 = vsel %vm204_vm2, %v591_v45, %v590_v28  ;;  %v665_v10 = vrot.slane %v11567_v62, 4  ;;  %v632_v15 = vmul.f32 %v11793_v43, %v9348_v47  ;;  %v667_v3 = vrot.slane %v11572_v41, 3 }
 0x20a   :  { %v593_v44 = vsel %vm207_vm3, %v11590_v59, %v592_v7  ;;  %v669_v38 = vrot.slane %v11577_v54, 2  ;;  %v671_v35 = vrot.slane %v11588_v6, 1  ;;  %v674_v45 = vrot.slane %v11599_v0, 7 }
 0x20b   :  { %v595_v14 = vsel %vm210_vm4, %v594_v36, %v593_v44  ;;  %v666_v4 = vsel %vm198_vm0, %v665_v10, %v664_v63  ;;  %v640_v22 = vadd.f32 %v632_v15, %v548_v30  ;;  %v676_v28 = vrot.slane %v11603_v32, 6 }
 0x20c   :  { %v597_v13 = vsel %vm213_vm5, %v596_v26, %v595_v14  ;;  %v668_v16 = vsel %vm201_vm1, %v667_v3, %v666_v4  ;;  %v678_v36 = vrot.slane %v11565_v19, 5  ;;  %v679_v63 = vrot.slane %v11570_v2, 4 }
 0x20d   :  { %v11812_v47 = vsel %vm216_vm6, %v598_v56, %v597_v13  ;;  %v670_v7 = vsel %vm204_vm2, %v669_v38, %v668_v16  ;;  %v681_v30 = vrot.slane %v11574_v9, 3  ;;  %v683_v26 = vrot.slane %v11579_v34, 2 }
 0x20e   :  { %v633_v10 = vmul.f32 %v11812_v47, %v9355_v48  ;;  %v672_v44 = vsel %vm207_vm3, %v671_v35, %v670_v7  ;;  %v680_v56 = vsel %vm198_vm0, %v679_v63, %v678_v36  ;;  %v685_v3 = vrot.slane %v11590_v59, 1 }
 0x20f   :  { %v673_v15 = vsel %vm210_vm4, %v11592_v52, %v672_v44  ;;  %v688_v38 = vrot.slane %v11601_v61, 7  ;;  %v682_v48 = vsel %vm201_vm1, %v681_v30, %v680_v56  ;;  %v690_v35 = vrot.slane %v11605_v50, 6 }
 0x210   :  { %v641_v14 = vadd.f32 %v633_v10, %v549_v42  ;;  %v675_v4 = vsel %vm213_vm5, %v674_v45, %v673_v15  ;;  %v684_v16 = vsel %vm204_vm2, %v683_v26, %v682_v48  ;;  %v756_v7 = vrot.slane %v11560_v40, 6 }
 0x211   :  { %v11831_v13 = vsel %vm216_vm6, %v676_v28, %v675_v4  ;;  %v757_v36 = vrot.slane %v11567_v62, 5  ;;  %v686_v63 = vsel %vm207_vm3, %v685_v3, %v684_v16  ;;  %v759_v45 = vrot.slane %v11572_v41, 4 }
 0x212   :  { %15178 = vst [vmem:[#allocation193_spill] sm:$0xff] %v11831_v13  ;;  %v724_v42 = vmul.f32 %v11831_v13, %v9395_v57  ;;  %v761_v10 = vrot.slane %v11577_v54, 3  ;;  %v687_v44 = vsel %vm210_vm4, %v11597_v25, %v686_v63  ;;  %v763_v30 = vrot.slane %v11588_v6, 2 }
 0x213   :  { %v758_v28 = vsel %vm198_vm0, %v757_v36, %v756_v7  ;;  %v765_v26 = vrot.slane %v11592_v52, 1  ;;  %v689_v15 = vsel %vm213_vm5, %v688_v38, %v687_v44  ;;  %v768_v57 = vrot.slane %v11603_v32, 7 }
 0x214   :  { %v732_v56 = vadd.f32 %v724_v42, %v640_v22  ;;  %v760_v3 = vsel %vm201_vm1, %v759_v45, %v758_v28  ;;  %v11850_v4 = vsel %vm216_vm6, %v690_v35, %v689_v15  ;;  %v770_v16 = vrot.slane %v11565_v19, 6 }
 0x215   :  { %15179 = vst [vmem:[#allocation194_spill] sm:$0xff] %v11850_v4  ;;  %v762_v48 = vsel %vm204_vm2, %v761_v10, %v760_v3  ;;  %v771_v7 = vrot.slane %v11570_v2, 5  ;;  %v725_v36 = vmul.f32 %v11850_v4, %v9399_v53  ;;  %v773_v22 = vrot.slane %v11574_v9, 4 }
 0x216   :  { %v764_v63 = vsel %vm207_vm3, %v763_v30, %v762_v48  ;;  %v775_v38 = vrot.slane %v11579_v34, 3  ;;  %v777_v45 = vrot.slane %v11590_v59, 2  ;;  %v779_v10 = vrot.slane %v11597_v25, 1 }
 0x217   :  { %v766_v42 = vsel %vm210_vm4, %v765_v26, %v764_v63  ;;  %v772_v35 = vsel %vm198_vm0, %v771_v7, %v770_v16  ;;  %v733_v44 = vadd.f32 %v725_v36, %v641_v14  ;;  %v782_v30 = vrot.slane %v11605_v50, 7 }
 0x218   :  { %v767_v28 = vsel %vm213_vm5, %v11599_v0, %v766_v42  ;;  %v774_v53 = vsel %vm201_vm1, %v773_v22, %v772_v35  ;;  %v848_v26 = vrot.slane %v11560_v40, 7  ;;  %v849_v48 = vrot.slane %v11567_v62, 6 }
 0x219   :  { %v11869_v15 = vsel %vm216_vm6, %v768_v57, %v767_v28  ;;  %v776_v3 = vsel %vm204_vm2, %v775_v38, %v774_v53  ;;  %v851_v7 = vrot.slane %v11572_v41, 5  ;;  %v853_v36 = vrot.slane %v11577_v54, 4 }
 0x21a   :  { %15180 = vst [vmem:[#allocation195_spill] sm:$0xff] %v11869_v15  ;;  %v778_v16 = vsel %vm207_vm3, %v777_v45, %v776_v3  ;;  %v816_v14 = vmul.f32 %v11869_v15, %v9445_v23  ;;  %v850_v57 = vsel %vm198_vm0, %v849_v48, %v848_v26  ;;  %v855_v22 = vrot.slane %v11588_v6, 3  ;;  %v86_v6 = vld [vmem:[#allocation6 + $0x8] sm:$0xff]  ;;  %v92_v48 = vld [vmem:[#allocation6 + $0x98] sm:$0xff] }
 0x21b   :  { %v780_v63 = vsel %vm210_vm4, %v779_v10, %v778_v16  ;;  %v857_v38 = vrot.slane %v11592_v52, 2  ;;  %v852_v42 = vsel %vm201_vm1, %v851_v7, %v850_v57  ;;  %v859_v23 = vrot.slane %v11599_v0, 1  ;;  %v15182_v10 = vld [vmem:[#allocation35_spill] sm:$0xff] }
 0x21c   :  { %v781_v40 = vsel %vm213_vm5, %v11601_v61, %v780_v63  ;;  %v824_v62 = vadd.f32 %v816_v14, %v732_v56  ;;  %v854_v54 = vsel %vm204_vm2, %v853_v36, %v852_v42  ;;  %v862_v35 = vrot.slane %v11565_v19, 7  ;;  %v88_v0 = vld [vmem:[#allocation6 + $0x38] sm:$0xff]  ;;  %v94_v36 = vld [vmem:[#allocation6 + $0xc8] sm:$0xff] }
 0x21d   :  { %v11888_v41 = vsel %vm216_vm6, %v782_v30, %v781_v40  ;;  %v863_v45 = vrot.slane %v11570_v2, 6  ;;  %v856_v28 = vsel %vm207_vm3, %v855_v22, %v854_v54  ;;  %v865_v56 = vrot.slane %v11574_v9, 5  ;;  %v90_v2 = vld [vmem:[#allocation6 + $0x68] sm:$0xff] }
 0x21e   :  { %15181 = vst [vmem:[#allocation196_spill] sm:$0xff] %v11888_v41  ;;  %v817_v52 = vmul.f32 %v11888_v41, %v15182_v10  ;;  %v867_v53 = vrot.slane %v11579_v34, 4  ;;  %v858_v30 = vsel %vm210_vm4, %v857_v38, %v856_v28  ;;  %v869_v26 = vrot.slane %v11590_v59, 3  ;;  %v15184_v22 = vld [vmem:[#allocation37_spill] sm:$0xff] }
 0x21f   :  { %v864_v3 = vsel %vm198_vm0, %v863_v45, %v862_v35  ;;  %v871_v19 = vrot.slane %v11597_v25, 2  ;;  %v860_v14 = vsel %vm213_vm5, %v859_v23, %v858_v30  ;;  %v873_v9 = vrot.slane %v11601_v61, 1  ;;  %v96_v25 = vld [vmem:[#allocation6 + $0xf8] sm:$0xff]  ;;  %v98_v42 = vld [vmem:[#allocation6 + $0x128] sm:$0xff] }
 0x220   :  { %v825_v16 = vadd.f32 %v817_v52, %v733_v44  ;;  %v866_v7 = vsel %vm201_vm1, %v865_v56, %v864_v3  ;;  %v11907_v34 = vsel %vm216_vm6, %v11603_v32, %v860_v14  ;;  %v11910_v57 = vunpack.c.l.bf16 %v86_v6  ;;  %v100_v23 = vld [vmem:[#allocation6 + $0x158] sm:$0xff] }
 0x221   :  { %15183 = vst [vmem:[#allocation35_spill] sm:$0xff] %v11907_v34  ;;  %v868_v63 = vsel %vm204_vm2, %v867_v53, %v866_v7  ;;  %v11912_v59 = vunpack.c.h.bf16 %v86_v6  ;;  %v908_v38 = vmul.f32 %v11907_v34, %v15184_v22  ;;  %v11917_v40 = vunpack.c.l.bf16 %v88_v0  ;;  %v15186_v3 = vld [vmem:[#allocation38_spill] sm:$0xff] }
 0x222   :  { %v870_v44 = vsel %vm207_vm3, %v869_v26, %v868_v63  ;;  %v11919_v61 = vunpack.c.h.bf16 %v88_v0  ;;  %v11922_v54 = vunpack.c.l.bf16 %v90_v2  ;;  %v11924_v35 = vunpack.c.h.bf16 %v90_v2 }
 0x223   :  { %v872_v32 = vsel %vm210_vm4, %v871_v19, %v870_v44  ;;  %v11926_v45 = vunpack.c.l.bf16 %v92_v48  ;;  %v916_v10 = vadd.f32 %v908_v38, %v824_v62  ;;  %v11929_v52 = vunpack.c.h.bf16 %v92_v48 }
 0x224   :  { %v874_v6 = vsel %vm213_vm5, %v873_v9, %v872_v32  ;;  %v11931_v28 = vunpack.c.l.bf16 %v94_v36  ;;  %v11937_v53 = vunpack.c.h.bf16 %v94_v36  ;;  %v11939_v0 = vunpack.c.l.bf16 %v96_v25 }
 0x225   :  { %v11935_v56 = vsel %vm216_vm6, %v11605_v50, %v874_v6  ;;  %v11941_v30 = vunpack.c.h.bf16 %v96_v25  ;;  %v11945_v19 = vunpack.c.l.bf16 %v98_v42  ;;  %v11947_v62 = vunpack.c.h.bf16 %v98_v42 }
 0x226   :  { %15185 = vst [vmem:[#allocation37_spill] sm:$0xff] %v11935_v56  ;;  %v909_v26 = vmul.f32 %v11935_v56, %v15186_v3  ;;  %v11949_v2 = vunpack.c.l.bf16 %v100_v23  ;;  %v11951_v48 = vunpack.c.h.bf16 %v100_v23  ;;  %v1004_v50 = vrot.slane %v11917_v40, 7 }
 0x227   :  { %v1006_v14 = vrot.slane %v11922_v54, 6  ;;  %v1008_v7 = vrot.slane %v11926_v45, 5  ;;  %v1010_v36 = vrot.slane %v11931_v28, 4  ;;  %v1012_v63 = vrot.slane %v11939_v0, 3 }
 0x228   :  { %v917_v9 = vadd.f32 %v909_v26, %v825_v16  ;;  %v1014_v25 = vrot.slane %v11945_v19, 2  ;;  %v1005_v44 = vsel %vm198_vm0, %v1004_v50, %v11910_v57  ;;  %v1016_v22 = vrot.slane %v11949_v2, 1 }
 0x229   :  { %v1018_v38 = vrot.slane %v11919_v61, 7  ;;  %v1020_v42 = vrot.slane %v11924_v35, 6  ;;  %v1007_v23 = vsel %vm201_vm1, %v1006_v14, %v1005_v44  ;;  %v1022_v32 = vrot.slane %v11929_v52, 5 }
 0x22a   :  { %v1024_v16 = vrot.slane %v11937_v53, 4  ;;  %v1026_v6 = vrot.slane %v11941_v30, 3  ;;  %v1009_v3 = vsel %vm204_vm2, %v1008_v7, %v1007_v23  ;;  %v1028_v50 = vrot.slane %v11947_v62, 2 }
 0x22b   :  { %v1019_v26 = vsel %vm198_vm0, %v1018_v38, %v11912_v59  ;;  %v1030_v56 = vrot.slane %v11951_v48, 1  ;;  %v1011_v34 = vsel %vm207_vm3, %v1010_v36, %v1009_v3  ;;  %v1096_v14 = vrot.slane %v11910_v57, 1 }
 0x22c   :  { %v1021_v41 = vsel %vm201_vm1, %v1020_v42, %v1019_v26  ;;  %v1098_v44 = vrot.slane %v11922_v54, 7  ;;  %v1013_v15 = vsel %vm210_vm4, %v1012_v63, %v1011_v34  ;;  %v1100_v7 = vrot.slane %v11926_v45, 6  ;;  %v15188_v26 = vld [vmem:[#allocation43_spill] sm:$0xff] }
 0x22d   :  { %v1023_v4 = vsel %vm204_vm2, %v1022_v32, %v1021_v41  ;;  %v1102_v38 = vrot.slane %v11931_v28, 5  ;;  %v1015_v23 = vsel %vm213_vm5, %v1014_v25, %v1013_v15  ;;  %v1097_v36 = vsel %vm198_vm0, %v11917_v40, %v1096_v14  ;;  %v15190_v14 = vld [vmem:[#allocation44_spill] sm:$0xff] }
 0x22e   :  { %v1025_v13 = vsel %vm207_vm3, %v1024_v16, %v1023_v4  ;;  %v1104_v42 = vrot.slane %v11939_v0, 4  ;;  %v11987_v3 = vsel %vm216_vm6, %v1016_v22, %v1015_v23  ;;  %v1099_v41 = vsel %vm201_vm1, %v1098_v44, %v1097_v36 }
 0x22f   :  { %15187 = vst [vmem:[#allocation38_spill] sm:$0xff] %v11987_v3  ;;  %v1027_v34 = vsel %vm210_vm4, %v1026_v6, %v1025_v13  ;;  %v1106_v63 = vrot.slane %v11945_v19, 3  ;;  %v1064_v15 = vmul.f32 %v11987_v3, %v15188_v26  ;;  %v1101_v4 = vsel %vm204_vm2, %v1100_v7, %v1099_v41 }
 0x230   :  { %v1029_v32 = vsel %vm213_vm5, %v1028_v50, %v1027_v34  ;;  %v1108_v25 = vrot.slane %v11949_v2, 2  ;;  %v1103_v22 = vsel %vm207_vm3, %v1102_v38, %v1101_v4  ;;  %v1110_v13 = vrot.slane %v11912_v59, 1 }
 0x231   :  { %v11998_v16 = vsel %vm216_vm6, %v1030_v56, %v1029_v32  ;;  %v1112_v6 = vrot.slane %v11924_v35, 7  ;;  %v1072_v50 = vadd.f32 %v1064_v15, %v916_v10  ;;  %v1105_v23 = vsel %vm210_vm4, %v1104_v42, %v1103_v22 }
 0x232   :  { %15189 = vst [vmem:[#allocation43_spill] sm:$0xff] %v11998_v16  ;;  %v1065_v44 = vmul.f32 %v11998_v16, %v15190_v14  ;;  %v1114_v36 = vrot.slane %v11929_v52, 6  ;;  %v1107_v7 = vsel %vm213_vm5, %v1106_v63, %v1105_v23  ;;  %v1111_v56 = vsel %vm198_vm0, %v11919_v61, %v1110_v13  ;;  %v15192_v63 = vld [vmem:[#allocation45_spill] sm:$0xff] }
 0x233   :  { %v1116_v34 = vrot.slane %v11937_v53, 5  ;;  %v1118_v38 = vrot.slane %v11941_v30, 4  ;;  %v12013_v32 = vsel %vm216_vm6, %v1108_v25, %v1107_v7  ;;  %v1113_v26 = vsel %vm201_vm1, %v1112_v6, %v1111_v56 }
 0x234   :  { %v1073_v41 = vadd.f32 %v1065_v44, %v917_v9  ;;  %15191 = vst [vmem:[#allocation44_spill] sm:$0xff] %v12013_v32  ;;  %v1120_v10 = vrot.slane %v11947_v62, 3  ;;  %v1115_v42 = vsel %vm204_vm2, %v1114_v36, %v1113_v26  ;;  %v1122_v15 = vrot.slane %v11951_v48, 2 }
 0x235   :  { %v1156_v4 = vmul.f32 %v12013_v32, %v15192_v63  ;;  %v1188_v22 = vrot.slane %v11910_v57, 2  ;;  %v1117_v13 = vsel %vm207_vm3, %v1116_v34, %v1115_v42  ;;  %v1189_v9 = vrot.slane %v11917_v40, 1 }
 0x236   :  { %v1192_v25 = vrot.slane %v11926_v45, 7  ;;  %v1194_v14 = vrot.slane %v11931_v28, 6  ;;  %v1119_v6 = vsel %vm210_vm4, %v1118_v38, %v1117_v13  ;;  %v1196_v23 = vrot.slane %v11939_v0, 5 }
 0x237   :  { %v1164_v44 = vadd.f32 %v1156_v4, %v1072_v50  ;;  %v1198_v36 = vrot.slane %v11945_v19, 4  ;;  %v1121_v7 = vsel %vm213_vm5, %v1120_v10, %v1119_v6  ;;  %v1190_v56 = vsel %vm198_vm0, %v1189_v9, %v1188_v22  ;;  %v15194_v4 = vld [vmem:[#allocation46_spill] sm:$0xff] }
 0x238   :  { %v1200_v26 = vrot.slane %v11949_v2, 3  ;;  %v1202_v34 = vrot.slane %v11912_v59, 2  ;;  %v12034_v42 = vsel %vm216_vm6, %v1122_v15, %v1121_v7  ;;  %v1191_v63 = vsel %vm201_vm1, %v11922_v54, %v1190_v56 }
 0x239   :  { %15193 = vst [vmem:[#allocation45_spill] sm:$0xff] %v12034_v42  ;;  %v1203_v50 = vrot.slane %v11919_v61, 1  ;;  %v1206_v38 = vrot.slane %v11929_v52, 7  ;;  %v1157_v13 = vmul.f32 %v12034_v42, %v15194_v4  ;;  %v1193_v10 = vsel %vm204_vm2, %v1192_v25, %v1191_v63 }
 0x23a   :  { %v1208_v22 = vrot.slane %v11937_v53, 6  ;;  %v1210_v9 = vrot.slane %v11941_v30, 5  ;;  %v1195_v6 = vsel %vm207_vm3, %v1194_v14, %v1193_v10  ;;  %v1212_v7 = vrot.slane %v11947_v62, 4 }
 0x23b   :  { %v1204_v15 = vsel %vm198_vm0, %v1203_v50, %v1202_v34  ;;  %v1214_v56 = vrot.slane %v11951_v48, 3  ;;  %v1165_v32 = vadd.f32 %v1157_v13, %v1073_v41  ;;  %v1197_v16 = vsel %vm210_vm4, %v1196_v23, %v1195_v6  ;;  %v15196_v6 = vld [vmem:[#allocation50_spill] sm:$0xff] }
 0x23c   :  { %v1205_v4 = vsel %vm201_vm1, %v11924_v35, %v1204_v15  ;;  %v1280_v25 = vrot.slane %v11910_v57, 3  ;;  %v1199_v63 = vsel %vm213_vm5, %v1198_v36, %v1197_v16  ;;  %v1281_v14 = vrot.slane %v11917_v40, 2 }
 0x23d   :  { %v1207_v42 = vsel %vm204_vm2, %v1206_v38, %v1205_v4  ;;  %v1283_v34 = vrot.slane %v11922_v54, 1  ;;  %v12058_v50 = vsel %vm216_vm6, %v1200_v26, %v1199_v63  ;;  %v1286_v23 = vrot.slane %v11931_v28, 7 }
 0x23e   :  { %15195 = vst [vmem:[#allocation46_spill] sm:$0xff] %v12058_v50  ;;  %v1209_v41 = vsel %vm207_vm3, %v1208_v22, %v1207_v42  ;;  %v1288_v13 = vrot.slane %v11939_v0, 6  ;;  %v1248_v16 = vmul.f32 %v12058_v50, %v15196_v6  ;;  %v1282_v36 = vsel %vm198_vm0, %v1281_v14, %v1280_v25  ;;  %v15198_v25 = vld [vmem:[#allocation51_spill] sm:$0xff] }
 0x23f   :  { %v1211_v10 = vsel %vm210_vm4, %v1210_v9, %v1209_v41  ;;  %v1290_v38 = vrot.slane %v11945_v19, 5  ;;  %v1284_v26 = vsel %vm201_vm1, %v1283_v34, %v1282_v36  ;;  %v1292_v4 = vrot.slane %v11949_v2, 4 }
 0x240   :  { %v1213_v15 = vsel %vm213_vm5, %v1212_v7, %v1211_v10  ;;  %v1294_v42 = vrot.slane %v11912_v59, 3  ;;  %v1256_v63 = vadd.f32 %v1248_v16, %v1164_v44  ;;  %v1285_v9 = vsel %vm204_vm2, %v11926_v45, %v1284_v26 }
 0x241   :  { %v12073_v22 = vsel %vm216_vm6, %v1214_v56, %v1213_v15  ;;  %v1295_v41 = vrot.slane %v11919_v61, 2  ;;  %v1287_v7 = vsel %vm207_vm3, %v1286_v23, %v1285_v9  ;;  %v1297_v34 = vrot.slane %v11924_v35, 1 }
 0x242   :  { %15197 = vst [vmem:[#allocation50_spill] sm:$0xff] %v12073_v22  ;;  %v1249_v14 = vmul.f32 %v12073_v22, %v15198_v25  ;;  %v1300_v10 = vrot.slane %v11937_v53, 7  ;;  %v1289_v6 = vsel %vm210_vm4, %v1288_v13, %v1287_v7  ;;  %v1302_v44 = vrot.slane %v11941_v30, 6  ;;  %v15200_v7 = vld [vmem:[#allocation53_spill] sm:$0xff] }
 0x243   :  { %v1296_v56 = vsel %vm198_vm0, %v1295_v41, %v1294_v42  ;;  %v1304_v16 = vrot.slane %v11947_v62, 5  ;;  %v1291_v15 = vsel %vm213_vm5, %v1290_v38, %v1289_v6  ;;  %v1306_v25 = vrot.slane %v11951_v48, 4 }
 0x244   :  { %v1257_v36 = vadd.f32 %v1249_v14, %v1165_v32  ;;  %v1298_v26 = vsel %vm201_vm1, %v1297_v34, %v1296_v56  ;;  %v12091_v23 = vsel %vm216_vm6, %v1292_v4, %v1291_v15  ;;  %v1372_v13 = vrot.slane %v11910_v57, 4 }
 0x245   :  { %15199 = vst [vmem:[#allocation51_spill] sm:$0xff] %v12091_v23  ;;  %v1299_v9 = vsel %vm204_vm2, %v11929_v52, %v1298_v26  ;;  %v1373_v42 = vrot.slane %v11917_v40, 3  ;;  %v1340_v32 = vmul.f32 %v12091_v23, %v15200_v7  ;;  %v1375_v38 = vrot.slane %v11922_v54, 2 }
 0x246   :  { %v1301_v41 = vsel %vm207_vm3, %v1300_v10, %v1299_v9  ;;  %v1377_v14 = vrot.slane %v11926_v45, 1  ;;  %v1380_v6 = vrot.slane %v11939_v0, 7  ;;  %v1382_v56 = vrot.slane %v11945_v19, 6 }
 0x247   :  { %v1303_v34 = vsel %vm210_vm4, %v1302_v44, %v1301_v41  ;;  %v1374_v4 = vsel %vm198_vm0, %v1373_v42, %v1372_v13  ;;  %v1348_v26 = vadd.f32 %v1340_v32, %v1256_v63  ;;  %v1384_v9 = vrot.slane %v11949_v2, 5  ;;  %v15202_v42 = vld [vmem:[#allocation54_spill] sm:$0xff] }
 0x248   :  { %v1305_v15 = vsel %vm213_vm5, %v1304_v16, %v1303_v34  ;;  %v1376_v10 = vsel %vm201_vm1, %v1375_v38, %v1374_v4  ;;  %v1386_v44 = vrot.slane %v11912_v59, 4  ;;  %v1387_v13 = vrot.slane %v11919_v61, 3 }
 0x249   :  { %v12110_v7 = vsel %vm216_vm6, %v1306_v25, %v1305_v15  ;;  %v1378_v23 = vsel %vm204_vm2, %v1377_v14, %v1376_v10  ;;  %v1389_v63 = vrot.slane %v11924_v35, 2  ;;  %v1391_v32 = vrot.slane %v11929_v52, 1 }
 0x24a   :  { %15201 = vst [vmem:[#allocation53_spill] sm:$0xff] %v12110_v7  ;;  %v1341_v41 = vmul.f32 %v12110_v7, %v15202_v42  ;;  %v1379_v16 = vsel %vm207_vm3, %v11931_v28, %v1378_v23  ;;  %v1388_v25 = vsel %vm198_vm0, %v1387_v13, %v1386_v44  ;;  %v1394_v14 = vrot.slane %v11941_v30, 7 }
 0x24b   :  { %v1381_v38 = vsel %vm210_vm4, %v1380_v6, %v1379_v16  ;;  %v1396_v34 = vrot.slane %v11947_v62, 6  ;;  %v1390_v10 = vsel %vm201_vm1, %v1389_v63, %v1388_v25  ;;  %v1398_v42 = vrot.slane %v11951_v48, 5  ;;  %v15204_v16 = vld [vmem:[#allocation58_spill] sm:$0xff] }
 0x24c   :  { %v1349_v4 = vadd.f32 %v1341_v41, %v1257_v36  ;;  %v1383_v15 = vsel %vm213_vm5, %v1382_v56, %v1381_v38  ;;  %v1392_v7 = vsel %vm204_vm2, %v1391_v32, %v1390_v10  ;;  %v1464_v6 = vrot.slane %v11910_v57, 5 }
 0x24d   :  { %v12129_v23 = vsel %vm216_vm6, %v1384_v9, %v1383_v15  ;;  %v1465_v44 = vrot.slane %v11917_v40, 4  ;;  %v1393_v13 = vsel %vm207_vm3, %v11937_v53, %v1392_v7  ;;  %v1467_v56 = vrot.slane %v11922_v54, 3 }
 0x24e   :  { %15203 = vst [vmem:[#allocation54_spill] sm:$0xff] %v12129_v23  ;;  %v1432_v36 = vmul.f32 %v12129_v23, %v15204_v16  ;;  %v1469_v41 = vrot.slane %v11926_v45, 2  ;;  %v1395_v63 = vsel %vm210_vm4, %v1394_v14, %v1393_v13  ;;  %v1471_v32 = vrot.slane %v11931_v28, 1 }
 0x24f   :  { %v1466_v9 = vsel %vm198_vm0, %v1465_v44, %v1464_v6  ;;  %v1474_v38 = vrot.slane %v11945_v19, 7  ;;  %v1397_v25 = vsel %vm213_vm5, %v1396_v34, %v1395_v63  ;;  %v1476_v10 = vrot.slane %v11949_v2, 6  ;;  %v15206_v44 = vld [vmem:[#allocation59_spill] sm:$0xff] }
 0x250   :  { %v1440_v15 = vadd.f32 %v1432_v36, %v1348_v26  ;;  %v1468_v7 = vsel %vm201_vm1, %v1467_v56, %v1466_v9  ;;  %v12148_v16 = vsel %vm216_vm6, %v1398_v42, %v1397_v25  ;;  %v1478_v14 = vrot.slane %v11912_v59, 5 }
 0x251   :  { %15205 = vst [vmem:[#allocation58_spill] sm:$0xff] %v12148_v16  ;;  %v1470_v23 = vsel %vm204_vm2, %v1469_v41, %v1468_v7  ;;  %v1479_v6 = vrot.slane %v11919_v61, 4  ;;  %v1433_v13 = vmul.f32 %v12148_v16, %v15206_v44  ;;  %v1481_v26 = vrot.slane %v11924_v35, 3  ;;  %v15208_v44 = vld [vmem:[#allocation61_spill] sm:$0xff] }
 0x252   :  { %v1472_v22 = vsel %vm207_vm3, %v1471_v32, %v1470_v23  ;;  %v1483_v34 = vrot.slane %v11929_v52, 2  ;;  %v1485_v56 = vrot.slane %v11937_v53, 1  ;;  %v1488_v41 = vrot.slane %v11947_v62, 7 }
 0x253   :  { %v1473_v36 = vsel %vm210_vm4, %v11939_v0, %v1472_v22  ;;  %v1480_v42 = vsel %vm198_vm0, %v1479_v6, %v1478_v14  ;;  %v1441_v63 = vadd.f32 %v1433_v13, %v1349_v4  ;;  %v1490_v23 = vrot.slane %v11951_v48, 6 }
 0x254   :  { %v1475_v9 = vsel %vm213_vm5, %v1474_v38, %v1473_v36  ;;  %v1482_v25 = vsel %vm201_vm1, %v1481_v26, %v1480_v42  ;;  %v1556_v22 = vrot.slane %v11910_v57, 6  ;;  %v1557_v14 = vrot.slane %v11917_v40, 5 }
 0x255   :  { %v12167_v32 = vsel %vm216_vm6, %v1476_v10, %v1475_v9  ;;  %v1484_v7 = vsel %vm204_vm2, %v1483_v34, %v1482_v25  ;;  %v1559_v38 = vrot.slane %v11922_v54, 4  ;;  %v1561_v13 = vrot.slane %v11926_v45, 3 }
 0x256   :  { %15207 = vst [vmem:[#allocation59_spill] sm:$0xff] %v12167_v32  ;;  %v1486_v6 = vsel %vm207_vm3, %v1485_v56, %v1484_v7  ;;  %v1524_v4 = vmul.f32 %v12167_v32, %v15208_v44  ;;  %v1558_v10 = vsel %vm198_vm0, %v1557_v14, %v1556_v22  ;;  %v1563_v34 = vrot.slane %v11931_v28, 2  ;;  %v15210_v14 = vld [vmem:[#allocation62_spill] sm:$0xff] }
 0x257   :  { %v1487_v26 = vsel %vm210_vm4, %v11941_v30, %v1486_v6  ;;  %v1565_v36 = vrot.slane %v11939_v0, 1  ;;  %v1560_v56 = vsel %vm201_vm1, %v1559_v38, %v1558_v10  ;;  %v1568_v25 = vrot.slane %v11949_v2, 7 }
 0x258   :  { %v1489_v42 = vsel %vm213_vm5, %v1488_v41, %v1487_v26  ;;  %v1532_v9 = vadd.f32 %v1524_v4, %v1440_v15  ;;  %v1562_v44 = vsel %vm204_vm2, %v1561_v13, %v1560_v56  ;;  %v1570_v6 = vrot.slane %v11912_v59, 6 }
 0x259   :  { %v12186_v7 = vsel %vm216_vm6, %v1490_v23, %v1489_v42  ;;  %v1571_v22 = vrot.slane %v11919_v61, 5  ;;  %v1564_v16 = vsel %vm207_vm3, %v1563_v34, %v1562_v44  ;;  %v1573_v15 = vrot.slane %v11924_v35, 4 }
 0x25a   :  { %15209 = vst [vmem:[#allocation61_spill] sm:$0xff] %v12186_v7  ;;  %v1525_v32 = vmul.f32 %v12186_v7, %v15210_v14  ;;  %v1575_v41 = vrot.slane %v11929_v52, 3  ;;  %v1566_v4 = vsel %vm210_vm4, %v1565_v36, %v1564_v16  ;;  %v1577_v38 = vrot.slane %v11937_v53, 2 }
 0x25b   :  { %v1572_v23 = vsel %vm198_vm0, %v1571_v22, %v1570_v6  ;;  %v1579_v13 = vrot.slane %v11941_v30, 1  ;;  %v1567_v10 = vsel %vm213_vm5, %v11945_v19, %v1566_v4  ;;  %v1582_v34 = vrot.slane %v11951_v48, 7  ;;  %v15212_v22 = vld [vmem:[#allocation66_spill] sm:$0xff] }
 0x25c   :  { %v1533_v26 = vadd.f32 %v1525_v32, %v1441_v63  ;;  %v1574_v42 = vsel %vm201_vm1, %v1573_v15, %v1572_v23  ;;  %v12205_v56 = vsel %vm216_vm6, %v1568_v25, %v1567_v10  ;;  %v1648_v16 = vrot.slane %v11910_v57, 7 }
 0x25d   :  { %15211 = vst [vmem:[#allocation62_spill] sm:$0xff] %v12205_v56  ;;  %v1576_v44 = vsel %vm204_vm2, %v1575_v41, %v1574_v42  ;;  %v1649_v36 = vrot.slane %v11917_v40, 6  ;;  %v1616_v63 = vmul.f32 %v12205_v56, %v15212_v22  ;;  %v1651_v32 = vrot.slane %v11922_v54, 5 }
 0x25e   :  { %v1578_v6 = vsel %vm207_vm3, %v1577_v38, %v1576_v44  ;;  %v1653_v14 = vrot.slane %v11926_v45, 4  ;;  %v1655_v4 = vrot.slane %v11931_v28, 3  ;;  %v1657_v41 = vrot.slane %v11939_v0, 2  ;;  %v15214_v28 = vld [vmem:[#allocation67_spill] sm:$0xff] }
 0x25f   :  { %v1580_v15 = vsel %vm210_vm4, %v1579_v13, %v1578_v6  ;;  %v1650_v25 = vsel %vm198_vm0, %v1649_v36, %v1648_v16  ;;  %v1624_v40 = vadd.f32 %v1616_v63, %v1532_v9  ;;  %v1659_v38 = vrot.slane %v11945_v19, 1  ;;  %v1732_v16 = vld [vmem:[#allocation6 + $0x10] sm:$0xff]  ;;  %v1734_v6 = vld [vmem:[#allocation6 + $0x40] sm:$0xff] }
 0x260   :  { %v1581_v57 = vsel %vm213_vm5, %v11947_v62, %v1580_v15  ;;  %v1652_v23 = vsel %vm201_vm1, %v1651_v32, %v1650_v25  ;;  %v1662_v13 = vrot.slane %v11912_v59, 7  ;;  %v1663_v10 = vrot.slane %v11919_v61, 6  ;;  %v1740_v25 = vld [vmem:[#allocation6 + $0xd0] sm:$0xff] }
 0x261   :  { %v12224_v54 = vsel %vm216_vm6, %v1582_v34, %v1581_v57  ;;  %v1654_v45 = vsel %vm204_vm2, %v1653_v14, %v1652_v23  ;;  %v1665_v9 = vrot.slane %v11924_v35, 5  ;;  %v1667_v44 = vrot.slane %v11929_v52, 4  ;;  %v1736_v35 = vld [vmem:[#allocation6 + $0x70] sm:$0xff]  ;;  %v1738_v14 = vld [vmem:[#allocation6 + $0xa0] sm:$0xff] }
 0x262   :  { %15213 = vst [vmem:[#allocation66_spill] sm:$0xff] %v12224_v54  ;;  %v1617_v0 = vmul.f32 %v12224_v54, %v15214_v28  ;;  %v1656_v42 = vsel %vm207_vm3, %v1655_v4, %v1654_v45  ;;  %v1664_v34 = vsel %vm198_vm0, %v1663_v10, %v1662_v13  ;;  %v1669_v36 = vrot.slane %v11937_v53, 3  ;;  %v15216_v4 = vld [vmem:[#allocation69_spill] sm:$0xff]  ;;  %v1742_v57 = vld [vmem:[#allocation6 + $0x100] sm:$0xff] }
 0x263   :  { %v1658_v19 = vsel %vm210_vm4, %v1657_v41, %v1656_v42  ;;  %v1671_v59 = vrot.slane %v11941_v30, 2  ;;  %v1666_v63 = vsel %vm201_vm1, %v1665_v9, %v1664_v34  ;;  %v1673_v32 = vrot.slane %v11947_v62, 1  ;;  %v1746_v45 = vld [vmem:[#allocation6 + $0x160] sm:$0xff] }
 0x264   :  { %v1625_v61 = vadd.f32 %v1617_v0, %v1533_v26  ;;  %v1660_v22 = vsel %vm213_vm5, %v1659_v38, %v1658_v19  ;;  %v1668_v15 = vsel %vm204_vm2, %v1667_v44, %v1666_v63  ;;  %v12246_v53 = vunpack.c.l.bf16 %v1732_v16  ;;  %v1744_v38 = vld [vmem:[#allocation6 + $0x130] sm:$0xff] }
 0x265   :  { %v12243_v52 = vsel %vm216_vm6, %v11949_v2, %v1660_v22  ;;  %v12248_v30 = vunpack.c.h.bf16 %v1732_v16  ;;  %v1670_v26 = vsel %vm207_vm3, %v1669_v36, %v1668_v15  ;;  %v12253_v62 = vunpack.c.l.bf16 %v1734_v6 }
 0x266   :  { %15215 = vst [vmem:[#allocation67_spill] sm:$0xff] %v12243_v52  ;;  %v1708_v41 = vmul.f32 %v12243_v52, %v15216_v4  ;;  %v12255_v23 = vunpack.c.h.bf16 %v1734_v6  ;;  %v1672_v2 = vsel %vm210_vm4, %v1671_v59, %v1670_v26  ;;  %v12258_v13 = vunpack.c.l.bf16 %v1736_v35  ;;  %v15218_v59 = vld [vmem:[#allocation70_spill] sm:$0xff] }
 0x267   :  { %v12260_v10 = vunpack.c.h.bf16 %v1736_v35  ;;  %v12262_v28 = vunpack.c.l.bf16 %v1738_v14  ;;  %v1674_v0 = vsel %vm213_vm5, %v1673_v32, %v1672_v2  ;;  %v12265_v9 = vunpack.c.h.bf16 %v1738_v14 }
 0x268   :  { %v1716_v42 = vadd.f32 %v1708_v41, %v1624_v40  ;;  %v12267_v44 = vunpack.c.l.bf16 %v1740_v25  ;;  %v12271_v16 = vsel %vm216_vm6, %v11951_v48, %v1674_v0  ;;  %v12273_v19 = vunpack.c.h.bf16 %v1740_v25 }
 0x269   :  { %15217 = vst [vmem:[#allocation69_spill] sm:$0xff] %v12271_v16  ;;  %v12275_v34 = vunpack.c.l.bf16 %v1742_v57  ;;  %v12277_v36 = vunpack.c.h.bf16 %v1742_v57  ;;  %v1709_v6 = vmul.f32 %v12271_v16, %v15218_v59  ;;  %v12281_v22 = vunpack.c.l.bf16 %v1744_v38 }
 0x26a   :  { %v12283_v40 = vunpack.c.h.bf16 %v1744_v38  ;;  %v12285_v63 = vunpack.c.l.bf16 %v1746_v45  ;;  %v12287_v32 = vunpack.c.h.bf16 %v1746_v45  ;;  %v1844_v48 = vrot.slane %v12253_v62, 7 }
 0x26b   :  { %v1846_v35 = vrot.slane %v12258_v13, 6  ;;  %v1848_v14 = vrot.slane %v12262_v28, 5  ;;  %v1717_v15 = vadd.f32 %v1709_v6, %v1625_v61  ;;  %v1850_v25 = vrot.slane %v12267_v44, 4 }
 0x26c   :  { %v1852_v26 = vrot.slane %v12275_v34, 3  ;;  %v1854_v4 = vrot.slane %v12281_v22, 2  ;;  %v1845_v41 = vsel %vm198_vm0, %v1844_v48, %v12246_v53  ;;  %v1856_v57 = vrot.slane %v12285_v63, 1 }
 0x26d   :  { %v1858_v2 = vrot.slane %v12255_v23, 7  ;;  %v1860_v38 = vrot.slane %v12260_v10, 6  ;;  %v1847_v45 = vsel %vm201_vm1, %v1846_v35, %v1845_v41  ;;  %v1862_v0 = vrot.slane %v12265_v9, 5 }
 0x26e   :  { %v1864_v61 = vrot.slane %v12273_v19, 4  ;;  %v1866_v59 = vrot.slane %v12277_v36, 3  ;;  %v1849_v6 = vsel %vm204_vm2, %v1848_v14, %v1847_v45  ;;  %v1868_v48 = vrot.slane %v12283_v40, 2 }
 0x26f   :  { %v1859_v16 = vsel %vm198_vm0, %v1858_v2, %v12248_v30  ;;  %v1870_v52 = vrot.slane %v12287_v32, 1  ;;  %v1851_v54 = vsel %vm207_vm3, %v1850_v25, %v1849_v6  ;;  %v1936_v35 = vrot.slane %v12246_v53, 1  ;;  %v15220_v6 = vld [vmem:[#allocation75_spill] sm:$0xff] }
 0x270   :  { %v1861_v56 = vsel %vm201_vm1, %v1860_v38, %v1859_v16  ;;  %v1938_v41 = vrot.slane %v12258_v13, 7  ;;  %v1853_v7 = vsel %vm210_vm4, %v1852_v26, %v1851_v54  ;;  %v1940_v14 = vrot.slane %v12262_v28, 6 }
 0x271   :  { %v1863_v50 = vsel %vm204_vm2, %v1862_v0, %v1861_v56  ;;  %v1942_v2 = vrot.slane %v12267_v44, 5  ;;  %v1855_v45 = vsel %vm213_vm5, %v1854_v4, %v1853_v7  ;;  %v1937_v25 = vsel %vm198_vm0, %v12253_v62, %v1936_v35  ;;  %v15222_v35 = vld [vmem:[#allocation76_spill] sm:$0xff] }
 0x272   :  { %v1865_v3 = vsel %vm207_vm3, %v1864_v61, %v1863_v50  ;;  %v1944_v16 = vrot.slane %v12275_v34, 4  ;;  %v12323_v38 = vsel %vm216_vm6, %v1856_v57, %v1855_v45  ;;  %v1939_v56 = vsel %vm201_vm1, %v1938_v41, %v1937_v25 }
 0x273   :  { %15219 = vst [vmem:[#allocation70_spill] sm:$0xff] %v12323_v38  ;;  %v1867_v54 = vsel %vm210_vm4, %v1866_v59, %v1865_v3  ;;  %v1946_v26 = vrot.slane %v12281_v22, 3  ;;  %v1904_v7 = vmul.f32 %v12323_v38, %v15220_v6  ;;  %v1941_v50 = vsel %vm204_vm2, %v1940_v14, %v1939_v56 }
 0x274   :  { %v1869_v0 = vsel %vm213_vm5, %v1868_v48, %v1867_v54  ;;  %v1948_v4 = vrot.slane %v12285_v63, 2  ;;  %v1943_v57 = vsel %vm207_vm3, %v1942_v2, %v1941_v50  ;;  %v1950_v3 = vrot.slane %v12248_v30, 1 }
 0x275   :  { %v12334_v61 = vsel %vm216_vm6, %v1870_v52, %v1869_v0  ;;  %v1952_v59 = vrot.slane %v12260_v10, 7  ;;  %v1912_v48 = vadd.f32 %v1904_v7, %v1716_v42  ;;  %v1945_v45 = vsel %vm210_vm4, %v1944_v16, %v1943_v57 }
 0x276   :  { %15221 = vst [vmem:[#allocation75_spill] sm:$0xff] %v12334_v61  ;;  %v1905_v41 = vmul.f32 %v12334_v61, %v15222_v35  ;;  %v1954_v25 = vrot.slane %v12265_v9, 6  ;;  %v1947_v14 = vsel %vm213_vm5, %v1946_v26, %v1945_v45  ;;  %v1951_v52 = vsel %vm198_vm0, %v12255_v23, %v1950_v3  ;;  %v15224_v26 = vld [vmem:[#allocation77_spill] sm:$0xff] }
 0x277   :  { %v1956_v54 = vrot.slane %v12273_v19, 5  ;;  %v1958_v2 = vrot.slane %v12277_v36, 4  ;;  %v12349_v0 = vsel %vm216_vm6, %v1948_v4, %v1947_v14  ;;  %v1953_v6 = vsel %vm201_vm1, %v1952_v59, %v1951_v52 }
 0x278   :  { %v1913_v56 = vadd.f32 %v1905_v41, %v1717_v15  ;;  %15223 = vst [vmem:[#allocation76_spill] sm:$0xff] %v12349_v0  ;;  %v1960_v42 = vrot.slane %v12283_v40, 3  ;;  %v1955_v16 = vsel %vm204_vm2, %v1954_v25, %v1953_v6  ;;  %v1962_v7 = vrot.slane %v12287_v32, 2 }
 0x279   :  { %v1996_v50 = vmul.f32 %v12349_v0, %v15224_v26  ;;  %v2028_v57 = vrot.slane %v12246_v53, 2  ;;  %v1957_v3 = vsel %vm207_vm3, %v1956_v54, %v1955_v16  ;;  %v2029_v15 = vrot.slane %v12253_v62, 1 }
 0x27a   :  { %v2032_v4 = vrot.slane %v12262_v28, 7  ;;  %v2034_v35 = vrot.slane %v12267_v44, 6  ;;  %v1959_v59 = vsel %vm210_vm4, %v1958_v2, %v1957_v3  ;;  %v2036_v45 = vrot.slane %v12275_v34, 5 }
 0x27b   :  { %v2004_v41 = vadd.f32 %v1996_v50, %v1912_v48  ;;  %v2038_v25 = vrot.slane %v12281_v22, 4  ;;  %v1961_v14 = vsel %vm213_vm5, %v1960_v42, %v1959_v59  ;;  %v2030_v52 = vsel %vm198_vm0, %v2029_v15, %v2028_v57  ;;  %v15226_v50 = vld [vmem:[#allocation78_spill] sm:$0xff] }
 0x27c   :  { %v2040_v6 = vrot.slane %v12285_v63, 3  ;;  %v2042_v54 = vrot.slane %v12248_v30, 2  ;;  %v12370_v16 = vsel %vm216_vm6, %v1962_v7, %v1961_v14  ;;  %v2031_v26 = vsel %vm201_vm1, %v12258_v13, %v2030_v52 }
 0x27d   :  { %15225 = vst [vmem:[#allocation77_spill] sm:$0xff] %v12370_v16  ;;  %v2043_v48 = vrot.slane %v12255_v23, 1  ;;  %v2046_v2 = vrot.slane %v12265_v9, 7  ;;  %v1997_v3 = vmul.f32 %v12370_v16, %v15226_v50  ;;  %v2033_v42 = vsel %vm204_vm2, %v2032_v4, %v2031_v26 }
 0x27e   :  { %v2048_v57 = vrot.slane %v12273_v19, 6  ;;  %v2050_v15 = vrot.slane %v12277_v36, 5  ;;  %v2035_v59 = vsel %vm207_vm3, %v2034_v35, %v2033_v42  ;;  %v2052_v14 = vrot.slane %v12283_v40, 4 }
 0x27f   :  { %v2044_v7 = vsel %vm198_vm0, %v2043_v48, %v2042_v54  ;;  %v2054_v52 = vrot.slane %v12287_v32, 3  ;;  %v2005_v0 = vadd.f32 %v1997_v3, %v1913_v56  ;;  %v2037_v61 = vsel %vm210_vm4, %v2036_v45, %v2035_v59  ;;  %v15228_v59 = vld [vmem:[#allocation82_spill] sm:$0xff] }
 0x280   :  { %v2045_v50 = vsel %vm201_vm1, %v12260_v10, %v2044_v7  ;;  %v2120_v4 = vrot.slane %v12246_v53, 3  ;;  %v2039_v26 = vsel %vm213_vm5, %v2038_v25, %v2037_v61  ;;  %v2121_v35 = vrot.slane %v12253_v62, 2 }
 0x281   :  { %v2047_v16 = vsel %vm204_vm2, %v2046_v2, %v2045_v50  ;;  %v2123_v54 = vrot.slane %v12258_v13, 1  ;;  %v12394_v48 = vsel %vm216_vm6, %v2040_v6, %v2039_v26  ;;  %v2126_v45 = vrot.slane %v12267_v44, 7 }
 0x282   :  { %15227 = vst [vmem:[#allocation78_spill] sm:$0xff] %v12394_v48  ;;  %v2049_v56 = vsel %vm207_vm3, %v2048_v57, %v2047_v16  ;;  %v2128_v3 = vrot.slane %v12275_v34, 6  ;;  %v2088_v61 = vmul.f32 %v12394_v48, %v15228_v59  ;;  %v2122_v25 = vsel %vm198_vm0, %v2121_v35, %v2120_v4  ;;  %v15230_v4 = vld [vmem:[#allocation83_spill] sm:$0xff] }
 0x283   :  { %v2051_v42 = vsel %vm210_vm4, %v2050_v15, %v2049_v56  ;;  %v2130_v2 = vrot.slane %v12281_v22, 5  ;;  %v2124_v6 = vsel %vm201_vm1, %v2123_v54, %v2122_v25  ;;  %v2132_v50 = vrot.slane %v12285_v63, 4 }
 0x284   :  { %v2053_v7 = vsel %vm213_vm5, %v2052_v14, %v2051_v42  ;;  %v2134_v16 = vrot.slane %v12248_v30, 3  ;;  %v2096_v26 = vadd.f32 %v2088_v61, %v2004_v41  ;;  %v2125_v15 = vsel %vm204_vm2, %v12262_v28, %v2124_v6 }
 0x285   :  { %v12409_v57 = vsel %vm216_vm6, %v2054_v52, %v2053_v7  ;;  %v2135_v56 = vrot.slane %v12255_v23, 2  ;;  %v2127_v14 = vsel %vm207_vm3, %v2126_v45, %v2125_v15  ;;  %v2137_v54 = vrot.slane %v12260_v10, 1 }
 0x286   :  { %15229 = vst [vmem:[#allocation82_spill] sm:$0xff] %v12409_v57  ;;  %v2089_v35 = vmul.f32 %v12409_v57, %v15230_v4  ;;  %v2140_v42 = vrot.slane %v12273_v19, 7  ;;  %v2129_v59 = vsel %vm210_vm4, %v2128_v3, %v2127_v14  ;;  %v2142_v41 = vrot.slane %v12277_v36, 6  ;;  %v15232_v14 = vld [vmem:[#allocation85_spill] sm:$0xff] }
 0x287   :  { %v2136_v52 = vsel %vm198_vm0, %v2135_v56, %v2134_v16  ;;  %v2144_v61 = vrot.slane %v12283_v40, 5  ;;  %v2131_v7 = vsel %vm213_vm5, %v2130_v2, %v2129_v59  ;;  %v2146_v4 = vrot.slane %v12287_v32, 4 }
 0x288   :  { %v2097_v25 = vadd.f32 %v2089_v35, %v2005_v0  ;;  %v2138_v6 = vsel %vm201_vm1, %v2137_v54, %v2136_v52  ;;  %v12427_v45 = vsel %vm216_vm6, %v2132_v50, %v2131_v7  ;;  %v2212_v3 = vrot.slane %v12246_v53, 4 }
 0x289   :  { %15231 = vst [vmem:[#allocation83_spill] sm:$0xff] %v12427_v45  ;;  %v2139_v15 = vsel %vm204_vm2, %v12265_v9, %v2138_v6  ;;  %v2213_v16 = vrot.slane %v12253_v62, 3  ;;  %v2180_v0 = vmul.f32 %v12427_v45, %v15232_v14  ;;  %v2215_v2 = vrot.slane %v12258_v13, 2 }
 0x28a   :  { %v2141_v56 = vsel %vm207_vm3, %v2140_v42, %v2139_v15  ;;  %v2217_v35 = vrot.slane %v12262_v28, 1  ;;  %v2220_v59 = vrot.slane %v12275_v34, 7  ;;  %v2222_v52 = vrot.slane %v12281_v22, 6 }
 0x28b   :  { %v2143_v54 = vsel %vm210_vm4, %v2142_v41, %v2141_v56  ;;  %v2214_v50 = vsel %vm198_vm0, %v2213_v16, %v2212_v3  ;;  %v2188_v6 = vadd.f32 %v2180_v0, %v2096_v26  ;;  %v2224_v15 = vrot.slane %v12285_v63, 5  ;;  %v15234_v16 = vld [vmem:[#allocation86_spill] sm:$0xff] }
 0x28c   :  { %v2145_v7 = vsel %vm213_vm5, %v2144_v61, %v2143_v54  ;;  %v2216_v42 = vsel %vm201_vm1, %v2215_v2, %v2214_v50  ;;  %v2226_v41 = vrot.slane %v12248_v30, 4  ;;  %v2227_v3 = vrot.slane %v12255_v23, 3 }
 0x28d   :  { %v12446_v14 = vsel %vm216_vm6, %v2146_v4, %v2145_v7  ;;  %v2218_v45 = vsel %vm204_vm2, %v2217_v35, %v2216_v42  ;;  %v2229_v26 = vrot.slane %v12260_v10, 2  ;;  %v2231_v0 = vrot.slane %v12265_v9, 1 }
 0x28e   :  { %15233 = vst [vmem:[#allocation85_spill] sm:$0xff] %v12446_v14  ;;  %v2181_v56 = vmul.f32 %v12446_v14, %v15234_v16  ;;  %v2219_v61 = vsel %vm207_vm3, %v12267_v44, %v2218_v45  ;;  %v2228_v4 = vsel %vm198_vm0, %v2227_v3, %v2226_v41  ;;  %v2234_v35 = vrot.slane %v12277_v36, 7 }
 0x28f   :  { %v2221_v2 = vsel %vm210_vm4, %v2220_v59, %v2219_v61  ;;  %v2236_v54 = vrot.slane %v12283_v40, 6  ;;  %v2230_v42 = vsel %vm201_vm1, %v2229_v26, %v2228_v4  ;;  %v2238_v16 = vrot.slane %v12287_v32, 5  ;;  %v15236_v61 = vld [vmem:[#allocation90_spill] sm:$0xff] }
 0x290   :  { %v2189_v50 = vadd.f32 %v2181_v56, %v2097_v25  ;;  %v2223_v7 = vsel %vm213_vm5, %v2222_v52, %v2221_v2  ;;  %v2232_v14 = vsel %vm204_vm2, %v2231_v0, %v2230_v42  ;;  %v2304_v59 = vrot.slane %v12246_v53, 5 }
 0x291   :  { %v12465_v45 = vsel %vm216_vm6, %v2224_v15, %v2223_v7  ;;  %v2305_v41 = vrot.slane %v12253_v62, 4  ;;  %v2233_v3 = vsel %vm207_vm3, %v12273_v19, %v2232_v14  ;;  %v2307_v52 = vrot.slane %v12258_v13, 3 }
 0x292   :  { %15235 = vst [vmem:[#allocation86_spill] sm:$0xff] %v12465_v45  ;;  %v2272_v25 = vmul.f32 %v12465_v45, %v15236_v61  ;;  %v2309_v56 = vrot.slane %v12262_v28, 2  ;;  %v2235_v26 = vsel %vm210_vm4, %v2234_v35, %v2233_v3  ;;  %v2311_v0 = vrot.slane %v12267_v44, 1 }
 0x293   :  { %v2306_v15 = vsel %vm198_vm0, %v2305_v41, %v2304_v59  ;;  %v2314_v2 = vrot.slane %v12281_v22, 7  ;;  %v2237_v4 = vsel %vm213_vm5, %v2236_v54, %v2235_v26  ;;  %v2316_v42 = vrot.slane %v12285_v63, 6  ;;  %v15238_v41 = vld [vmem:[#allocation91_spill] sm:$0xff] }
 0x294   :  { %v2280_v7 = vadd.f32 %v2272_v25, %v2188_v6  ;;  %v2308_v14 = vsel %vm201_vm1, %v2307_v52, %v2306_v15  ;;  %v12484_v61 = vsel %vm216_vm6, %v2238_v16, %v2237_v4  ;;  %v2318_v35 = vrot.slane %v12248_v30, 5 }
 0x295   :  { %15237 = vst [vmem:[#allocation90_spill] sm:$0xff] %v12484_v61  ;;  %v2310_v45 = vsel %vm204_vm2, %v2309_v56, %v2308_v14  ;;  %v2319_v59 = vrot.slane %v12255_v23, 4  ;;  %v2273_v3 = vmul.f32 %v12484_v61, %v15238_v41  ;;  %v2321_v6 = vrot.slane %v12260_v10, 3  ;;  %v15240_v41 = vld [vmem:[#allocation93_spill] sm:$0xff] }
 0x296   :  { %v2312_v57 = vsel %vm207_vm3, %v2311_v0, %v2310_v45  ;;  %v2323_v54 = vrot.slane %v12265_v9, 2  ;;  %v2325_v52 = vrot.slane %v12273_v19, 1  ;;  %v2328_v56 = vrot.slane %v12283_v40, 7 }
 0x297   :  { %v2313_v25 = vsel %vm210_vm4, %v12275_v34, %v2312_v57  ;;  %v2320_v16 = vsel %vm198_vm0, %v2319_v59, %v2318_v35  ;;  %v2281_v26 = vadd.f32 %v2273_v3, %v2189_v50  ;;  %v2330_v45 = vrot.slane %v12287_v32, 6 }
 0x298   :  { %v2315_v15 = vsel %vm213_vm5, %v2314_v2, %v2313_v25  ;;  %v2322_v4 = vsel %vm201_vm1, %v2321_v6, %v2320_v16  ;;  %v2396_v57 = vrot.slane %v12246_v53, 6  ;;  %v2397_v35 = vrot.slane %v12253_v62, 5 }
 0x299   :  { %v12503_v0 = vsel %vm216_vm6, %v2316_v42, %v2315_v15  ;;  %v2324_v14 = vsel %vm204_vm2, %v2323_v54, %v2322_v4  ;;  %v2399_v2 = vrot.slane %v12258_v13, 4  ;;  %v2401_v3 = vrot.slane %v12262_v28, 3 }
 0x29a   :  { %15239 = vst [vmem:[#allocation91_spill] sm:$0xff] %v12503_v0  ;;  %v2326_v59 = vsel %vm207_vm3, %v2325_v52, %v2324_v14  ;;  %v2364_v50 = vmul.f32 %v12503_v0, %v15240_v41  ;;  %v2398_v42 = vsel %vm198_vm0, %v2397_v35, %v2396_v57  ;;  %v2403_v54 = vrot.slane %v12267_v44, 2  ;;  %v15242_v35 = vld [vmem:[#allocation94_spill] sm:$0xff] }
 0x29b   :  { %v2327_v6 = vsel %vm210_vm4, %v12277_v36, %v2326_v59  ;;  %v2405_v25 = vrot.slane %v12275_v34, 1  ;;  %v2400_v52 = vsel %vm201_vm1, %v2399_v2, %v2398_v42  ;;  %v2408_v4 = vrot.slane %v12285_v63, 7 }
 0x29c   :  { %v2329_v16 = vsel %vm213_vm5, %v2328_v56, %v2327_v6  ;;  %v2372_v15 = vadd.f32 %v2364_v50, %v2280_v7  ;;  %v2402_v41 = vsel %vm204_vm2, %v2401_v3, %v2400_v52  ;;  %v2410_v59 = vrot.slane %v12248_v30, 6 }
 0x29d   :  { %v12522_v14 = vsel %vm216_vm6, %v2330_v45, %v2329_v16  ;;  %v2411_v57 = vrot.slane %v12255_v23, 5  ;;  %v2404_v61 = vsel %vm207_vm3, %v2403_v54, %v2402_v41  ;;  %v2413_v7 = vrot.slane %v12260_v10, 4 }
 0x29e   :  { %15241 = vst [vmem:[#allocation93_spill] sm:$0xff] %v12522_v14  ;;  %v2365_v0 = vmul.f32 %v12522_v14, %v15242_v35  ;;  %v2415_v56 = vrot.slane %v12265_v9, 3  ;;  %v2406_v50 = vsel %vm210_vm4, %v2405_v25, %v2404_v61  ;;  %v2417_v2 = vrot.slane %v12273_v19, 2 }
 0x29f   :  { %v2412_v45 = vsel %vm198_vm0, %v2411_v57, %v2410_v59  ;;  %v2419_v3 = vrot.slane %v12277_v36, 1  ;;  %v2407_v42 = vsel %vm213_vm5, %v12281_v22, %v2406_v50  ;;  %v2422_v54 = vrot.slane %v12287_v32, 7  ;;  %v15244_v57 = vld [vmem:[#allocation98_spill] sm:$0xff] }
 0x2a0   :  { %v2373_v6 = vadd.f32 %v2365_v0, %v2281_v26  ;;  %v2414_v16 = vsel %vm201_vm1, %v2413_v7, %v2412_v45  ;;  %v12541_v52 = vsel %vm216_vm6, %v2408_v4, %v2407_v42  ;;  %v2488_v61 = vrot.slane %v12246_v53, 7 }
 0x2a1   :  { %15243 = vst [vmem:[#allocation94_spill] sm:$0xff] %v12541_v52  ;;  %v2416_v41 = vsel %vm204_vm2, %v2415_v56, %v2414_v16  ;;  %v2489_v25 = vrot.slane %v12253_v62, 6  ;;  %v2456_v26 = vmul.f32 %v12541_v52, %v15244_v57  ;;  %v2491_v0 = vrot.slane %v12258_v13, 5  ;;  %v15246_v16 = vld [vmem:[#allocation99_spill] sm:$0xff]  ;;  %v1739_v57 = vld [vmem:[#allocation6 + $0xa8] sm:$0xff] }
 0x2a2   :  { %v2418_v59 = vsel %vm207_vm3, %v2417_v2, %v2416_v41  ;;  %v2493_v35 = vrot.slane %v12262_v28, 4  ;;  %v2495_v50 = vrot.slane %v12267_v44, 3  ;;  %v2497_v56 = vrot.slane %v12275_v34, 2  ;;  %v1733_v44 = vld [vmem:[#allocation6 + $0x18] sm:$0xff] }
 0x2a3   :  { %v2420_v7 = vsel %vm210_vm4, %v2419_v3, %v2418_v59  ;;  %v2490_v4 = vsel %vm198_vm0, %v2489_v25, %v2488_v61  ;;  %v2464_v62 = vadd.f32 %v2456_v26, %v2372_v15  ;;  %v2499_v2 = vrot.slane %v12281_v22, 1  ;;  %v1735_v22 = vld [vmem:[#allocation6 + $0x48] sm:$0xff] }
 0x2a4   :  { %v2421_v53 = vsel %vm213_vm5, %v12283_v40, %v2420_v7  ;;  %v2492_v45 = vsel %vm201_vm1, %v2491_v0, %v2490_v4  ;;  %v2502_v3 = vrot.slane %v12248_v30, 7  ;;  %v2503_v42 = vrot.slane %v12255_v23, 6  ;;  %v1737_v23 = vld [vmem:[#allocation6 + $0x78] sm:$0xff] }
 0x2a5   :  { %v12560_v13 = vsel %vm216_vm6, %v2422_v54, %v2421_v53  ;;  %v2494_v28 = vsel %vm204_vm2, %v2493_v35, %v2492_v45  ;;  %v2505_v15 = vrot.slane %v12260_v10, 5  ;;  %v2507_v61 = vrot.slane %v12265_v9, 4  ;;  %v1741_v7 = vld [vmem:[#allocation6 + $0xd8] sm:$0xff] }
 0x2a6   :  { %15245 = vst [vmem:[#allocation98_spill] sm:$0xff] %v12560_v13  ;;  %v2457_v34 = vmul.f32 %v12560_v13, %v15246_v16  ;;  %v2496_v41 = vsel %vm207_vm3, %v2495_v50, %v2494_v28  ;;  %v2504_v25 = vsel %vm198_vm0, %v2503_v42, %v2502_v3  ;;  %v2509_v59 = vrot.slane %v12273_v19, 3  ;;  %v1747_v28 = vld [vmem:[#allocation6 + $0x168] sm:$0xff] }
 0x2a7   :  { %v2498_v54 = vsel %vm210_vm4, %v2497_v56, %v2496_v41  ;;  %v2511_v30 = vrot.slane %v12277_v36, 2  ;;  %v2506_v35 = vsel %vm201_vm1, %v2505_v15, %v2504_v25  ;;  %v2513_v10 = vrot.slane %v12283_v40, 1  ;;  %v1743_v36 = vld [vmem:[#allocation6 + $0x108] sm:$0xff] }
 0x2a8   :  { %v2465_v26 = vadd.f32 %v2457_v34, %v2373_v6  ;;  %v2500_v0 = vsel %vm213_vm5, %v2499_v2, %v2498_v54  ;;  %v2508_v4 = vsel %vm204_vm2, %v2507_v61, %v2506_v35  ;;  %v12582_v50 = vunpack.c.l.bf16 %v1733_v44  ;;  %v15248_v56 = vld [vmem:[#allocation101_spill] sm:$0xff]  ;;  %v1745_v2 = vld [vmem:[#allocation6 + $0x138] sm:$0xff] }
 0x2a9   :  { %v12579_v9 = vsel %vm216_vm6, %v12285_v63, %v2500_v0  ;;  %v12584_v19 = vunpack.c.h.bf16 %v1733_v44  ;;  %v2510_v6 = vsel %vm207_vm3, %v2509_v59, %v2508_v4  ;;  %v12589_v45 = vunpack.c.l.bf16 %v1735_v22  ;;  %v15250_v59 = vld [vmem:[#allocation102_spill] sm:$0xff] }
 0x2aa   :  { %15247 = vst [vmem:[#allocation99_spill] sm:$0xff] %v12579_v9  ;;  %v2548_v53 = vmul.f32 %v12579_v9, %v15248_v56  ;;  %v12591_v40 = vunpack.c.h.bf16 %v1735_v22  ;;  %v2512_v63 = vsel %vm210_vm4, %v2511_v30, %v2510_v6  ;;  %v12594_v3 = vunpack.c.l.bf16 %v1737_v23 }
 0x2ab   :  { %v12596_v42 = vunpack.c.h.bf16 %v1737_v23  ;;  %v12598_v44 = vunpack.c.l.bf16 %v1739_v57  ;;  %v2514_v16 = vsel %vm213_vm5, %v2513_v10, %v2512_v63  ;;  %v12601_v41 = vunpack.c.h.bf16 %v1739_v57 }
 0x2ac   :  { %v2556_v34 = vadd.f32 %v2548_v53, %v2464_v62  ;;  %v12603_v15 = vunpack.c.l.bf16 %v1741_v7  ;;  %v12607_v61 = vsel %vm216_vm6, %v12287_v32, %v2514_v16  ;;  %v12609_v22 = vunpack.c.h.bf16 %v1741_v7 }
 0x2ad   :  { %15249 = vst [vmem:[#allocation101_spill] sm:$0xff] %v12607_v61  ;;  %v12611_v54 = vunpack.c.l.bf16 %v1743_v36  ;;  %v12613_v25 = vunpack.c.h.bf16 %v1743_v36  ;;  %v2549_v30 = vmul.f32 %v12607_v61, %v15250_v59  ;;  %v12617_v23 = vunpack.c.l.bf16 %v1745_v2 }
 0x2ae   :  { %v12619_v62 = vunpack.c.h.bf16 %v1745_v2  ;;  %v12621_v57 = vunpack.c.l.bf16 %v1747_v28  ;;  %v12623_v0 = vunpack.c.h.bf16 %v1747_v28  ;;  %v2644_v32 = vrot.slane %v12589_v45, 7 }
 0x2af   :  { %v2646_v35 = vrot.slane %v12594_v3, 6  ;;  %v2648_v10 = vrot.slane %v12598_v44, 5  ;;  %v2557_v7 = vadd.f32 %v2549_v30, %v2465_v26  ;;  %v2650_v4 = vrot.slane %v12603_v15, 4 }
 0x2b0   :  { %v2652_v36 = vrot.slane %v12611_v54, 3  ;;  %v2654_v6 = vrot.slane %v12617_v23, 2  ;;  %v2645_v56 = vsel %vm198_vm0, %v2644_v32, %v12582_v50  ;;  %v2656_v53 = vrot.slane %v12621_v57, 1 }
 0x2b1   :  { %v2658_v2 = vrot.slane %v12591_v40, 7  ;;  %v2660_v28 = vrot.slane %v12596_v42, 6  ;;  %v2647_v63 = vsel %vm201_vm1, %v2646_v35, %v2645_v56  ;;  %v2662_v16 = vrot.slane %v12601_v41, 5 }
 0x2b2   :  { %v2664_v26 = vrot.slane %v12609_v22, 4  ;;  %v2666_v59 = vrot.slane %v12613_v25, 3  ;;  %v2649_v30 = vsel %vm204_vm2, %v2648_v10, %v2647_v63  ;;  %v2668_v32 = vrot.slane %v12619_v62, 2 }
 0x2b3   :  { %v2659_v61 = vsel %vm198_vm0, %v2658_v2, %v12584_v19  ;;  %v2670_v9 = vrot.slane %v12623_v0, 1  ;;  %v2651_v13 = vsel %vm207_vm3, %v2650_v4, %v2649_v30  ;;  %v2736_v35 = vrot.slane %v12582_v50, 1  ;;  %v15252_v30 = vld [vmem:[#allocation107_spill] sm:$0xff] }
 0x2b4   :  { %v2661_v52 = vsel %vm201_vm1, %v2660_v28, %v2659_v61  ;;  %v2738_v56 = vrot.slane %v12594_v3, 7  ;;  %v2653_v14 = vsel %vm210_vm4, %v2652_v36, %v2651_v13  ;;  %v2740_v10 = vrot.slane %v12598_v44, 6 }
 0x2b5   :  { %v2663_v48 = vsel %vm204_vm2, %v2662_v16, %v2661_v52  ;;  %v2742_v2 = vrot.slane %v12603_v15, 5  ;;  %v2655_v63 = vsel %vm213_vm5, %v2654_v6, %v2653_v14  ;;  %v2737_v4 = vsel %vm198_vm0, %v12589_v45, %v2736_v35  ;;  %v15254_v35 = vld [vmem:[#allocation108_spill] sm:$0xff] }
 0x2b6   :  { %v2665_v38 = vsel %vm207_vm3, %v2664_v26, %v2663_v48  ;;  %v2744_v61 = vrot.slane %v12611_v54, 4  ;;  %v12659_v28 = vsel %vm216_vm6, %v2656_v53, %v2655_v63  ;;  %v2739_v52 = vsel %vm201_vm1, %v2738_v56, %v2737_v4 }
 0x2b7   :  { %15251 = vst [vmem:[#allocation102_spill] sm:$0xff] %v12659_v28  ;;  %v2667_v13 = vsel %vm210_vm4, %v2666_v59, %v2665_v38  ;;  %v2746_v36 = vrot.slane %v12617_v23, 3  ;;  %v2704_v14 = vmul.f32 %v12659_v28, %v15252_v30  ;;  %v2741_v48 = vsel %vm204_vm2, %v2740_v10, %v2739_v52 }
 0x2b8   :  { %v2669_v16 = vsel %vm213_vm5, %v2668_v32, %v2667_v13  ;;  %v2748_v6 = vrot.slane %v12621_v57, 2  ;;  %v2743_v53 = vsel %vm207_vm3, %v2742_v2, %v2741_v48  ;;  %v2750_v38 = vrot.slane %v12584_v19, 1 }
 0x2b9   :  { %v12670_v26 = vsel %vm216_vm6, %v2670_v9, %v2669_v16  ;;  %v2752_v59 = vrot.slane %v12596_v42, 7  ;;  %v2712_v32 = vadd.f32 %v2704_v14, %v2556_v34  ;;  %v2745_v63 = vsel %vm210_vm4, %v2744_v61, %v2743_v53 }
 0x2ba   :  { %15253 = vst [vmem:[#allocation107_spill] sm:$0xff] %v12670_v26  ;;  %v2705_v56 = vmul.f32 %v12670_v26, %v15254_v35  ;;  %v2754_v4 = vrot.slane %v12601_v41, 6  ;;  %v2747_v10 = vsel %vm213_vm5, %v2746_v36, %v2745_v63  ;;  %v2751_v9 = vsel %vm198_vm0, %v12591_v40, %v2750_v38  ;;  %v15256_v36 = vld [vmem:[#allocation109_spill] sm:$0xff] }
 0x2bb   :  { %v2756_v13 = vrot.slane %v12609_v22, 5  ;;  %v2758_v2 = vrot.slane %v12613_v25, 4  ;;  %v12685_v16 = vsel %vm216_vm6, %v2748_v6, %v2747_v10  ;;  %v2753_v30 = vsel %vm201_vm1, %v2752_v59, %v2751_v9 }
 0x2bc   :  { %v2713_v52 = vadd.f32 %v2705_v56, %v2557_v7  ;;  %15255 = vst [vmem:[#allocation108_spill] sm:$0xff] %v12685_v16  ;;  %v2760_v34 = vrot.slane %v12619_v62, 3  ;;  %v2755_v61 = vsel %vm204_vm2, %v2754_v4, %v2753_v30  ;;  %v2762_v14 = vrot.slane %v12623_v0, 2 }
 0x2bd   :  { %v2796_v48 = vmul.f32 %v12685_v16, %v15256_v36  ;;  %v2828_v53 = vrot.slane %v12582_v50, 2  ;;  %v2757_v38 = vsel %vm207_vm3, %v2756_v13, %v2755_v61  ;;  %v2829_v7 = vrot.slane %v12589_v45, 1 }
 0x2be   :  { %v2832_v6 = vrot.slane %v12598_v44, 7  ;;  %v2834_v35 = vrot.slane %v12603_v15, 6  ;;  %v2759_v59 = vsel %vm210_vm4, %v2758_v2, %v2757_v38  ;;  %v2836_v63 = vrot.slane %v12611_v54, 5 }
 0x2bf   :  { %v2804_v56 = vadd.f32 %v2796_v48, %v2712_v32  ;;  %v2838_v4 = vrot.slane %v12617_v23, 4  ;;  %v2761_v10 = vsel %vm213_vm5, %v2760_v34, %v2759_v59  ;;  %v2830_v9 = vsel %vm198_vm0, %v2829_v7, %v2828_v53  ;;  %v15258_v48 = vld [vmem:[#allocation110_spill] sm:$0xff] }
 0x2c0   :  { %v2840_v30 = vrot.slane %v12621_v57, 3  ;;  %v2842_v13 = vrot.slane %v12584_v19, 2  ;;  %v12706_v61 = vsel %vm216_vm6, %v2762_v14, %v2761_v10  ;;  %v2831_v36 = vsel %vm201_vm1, %v12594_v3, %v2830_v9 }
 0x2c1   :  { %15257 = vst [vmem:[#allocation109_spill] sm:$0xff] %v12706_v61  ;;  %v2843_v32 = vrot.slane %v12591_v40, 1  ;;  %v2846_v2 = vrot.slane %v12601_v41, 7  ;;  %v2797_v38 = vmul.f32 %v12706_v61, %v15258_v48  ;;  %v2833_v34 = vsel %vm204_vm2, %v2832_v6, %v2831_v36 }
 0x2c2   :  { %v2848_v53 = vrot.slane %v12609_v22, 6  ;;  %v2850_v7 = vrot.slane %v12613_v25, 5  ;;  %v2835_v59 = vsel %vm207_vm3, %v2834_v35, %v2833_v34  ;;  %v2852_v10 = vrot.slane %v12619_v62, 4 }
 0x2c3   :  { %v2844_v14 = vsel %vm198_vm0, %v2843_v32, %v2842_v13  ;;  %v2854_v9 = vrot.slane %v12623_v0, 3  ;;  %v2805_v16 = vadd.f32 %v2797_v38, %v2713_v52  ;;  %v2837_v26 = vsel %vm210_vm4, %v2836_v63, %v2835_v59  ;;  %v15260_v59 = vld [vmem:[#allocation114_spill] sm:$0xff] }
 0x2c4   :  { %v2845_v48 = vsel %vm201_vm1, %v12596_v42, %v2844_v14  ;;  %v2920_v6 = vrot.slane %v12582_v50, 3  ;;  %v2839_v36 = vsel %vm213_vm5, %v2838_v4, %v2837_v26  ;;  %v2921_v35 = vrot.slane %v12589_v45, 2 }
 0x2c5   :  { %v2847_v61 = vsel %vm204_vm2, %v2846_v2, %v2845_v48  ;;  %v2923_v13 = vrot.slane %v12594_v3, 1  ;;  %v12730_v32 = vsel %vm216_vm6, %v2840_v30, %v2839_v36  ;;  %v2926_v63 = vrot.slane %v12603_v15, 7 }
 0x2c6   :  { %15259 = vst [vmem:[#allocation110_spill] sm:$0xff] %v12730_v32  ;;  %v2849_v52 = vsel %vm207_vm3, %v2848_v53, %v2847_v61  ;;  %v2928_v38 = vrot.slane %v12611_v54, 6  ;;  %v2888_v26 = vmul.f32 %v12730_v32, %v15260_v59  ;;  %v2922_v4 = vsel %vm198_vm0, %v2921_v35, %v2920_v6  ;;  %v15262_v6 = vld [vmem:[#allocation115_spill] sm:$0xff] }
 0x2c7   :  { %v2851_v34 = vsel %vm210_vm4, %v2850_v7, %v2849_v52  ;;  %v2930_v2 = vrot.slane %v12617_v23, 5  ;;  %v2924_v30 = vsel %vm201_vm1, %v2923_v13, %v2922_v4  ;;  %v2932_v48 = vrot.slane %v12621_v57, 4 }
 0x2c8   :  { %v2853_v14 = vsel %vm213_vm5, %v2852_v10, %v2851_v34  ;;  %v2934_v61 = vrot.slane %v12584_v19, 3  ;;  %v2896_v36 = vadd.f32 %v2888_v26, %v2804_v56  ;;  %v2925_v7 = vsel %vm204_vm2, %v12598_v44, %v2924_v30 }
 0x2c9   :  { %v12745_v53 = vsel %vm216_vm6, %v2854_v9, %v2853_v14  ;;  %v2935_v52 = vrot.slane %v12591_v40, 2  ;;  %v2927_v10 = vsel %vm207_vm3, %v2926_v63, %v2925_v7  ;;  %v2937_v13 = vrot.slane %v12596_v42, 1 }
 0x2ca   :  { %15261 = vst [vmem:[#allocation114_spill] sm:$0xff] %v12745_v53  ;;  %v2889_v35 = vmul.f32 %v12745_v53, %v15262_v6  ;;  %v2940_v34 = vrot.slane %v12609_v22, 7  ;;  %v2929_v59 = vsel %vm210_vm4, %v2928_v38, %v2927_v10  ;;  %v2942_v56 = vrot.slane %v12613_v25, 6  ;;  %v15264_v10 = vld [vmem:[#allocation117_spill] sm:$0xff] }
 0x2cb   :  { %v2936_v9 = vsel %vm198_vm0, %v2935_v52, %v2934_v61  ;;  %v2944_v26 = vrot.slane %v12619_v62, 5  ;;  %v2931_v14 = vsel %vm213_vm5, %v2930_v2, %v2929_v59  ;;  %v2946_v6 = vrot.slane %v12623_v0, 4 }
 0x2cc   :  { %v2897_v4 = vadd.f32 %v2889_v35, %v2805_v16  ;;  %v2938_v30 = vsel %vm201_vm1, %v2937_v13, %v2936_v9  ;;  %v12763_v63 = vsel %vm216_vm6, %v2932_v48, %v2931_v14  ;;  %v3012_v38 = vrot.slane %v12582_v50, 4 }
 0x2cd   :  { %15263 = vst [vmem:[#allocation115_spill] sm:$0xff] %v12763_v63  ;;  %v2939_v7 = vsel %vm204_vm2, %v12601_v41, %v2938_v30  ;;  %v3013_v61 = vrot.slane %v12589_v45, 3  ;;  %v2980_v16 = vmul.f32 %v12763_v63, %v15264_v10  ;;  %v3015_v2 = vrot.slane %v12594_v3, 2 }
 0x2ce   :  { %v2941_v52 = vsel %vm207_vm3, %v2940_v34, %v2939_v7  ;;  %v3017_v35 = vrot.slane %v12598_v44, 1  ;;  %v3020_v59 = vrot.slane %v12611_v54, 7  ;;  %v3022_v9 = vrot.slane %v12617_v23, 6 }
 0x2cf   :  { %v2943_v13 = vsel %vm210_vm4, %v2942_v56, %v2941_v52  ;;  %v3014_v48 = vsel %vm198_vm0, %v3013_v61, %v3012_v38  ;;  %v2988_v30 = vadd.f32 %v2980_v16, %v2896_v36  ;;  %v3024_v7 = vrot.slane %v12621_v57, 5  ;;  %v15266_v61 = vld [vmem:[#allocation118_spill] sm:$0xff] }
 0x2d0   :  { %v2945_v14 = vsel %vm213_vm5, %v2944_v26, %v2943_v13  ;;  %v3016_v34 = vsel %vm201_vm1, %v3015_v2, %v3014_v48  ;;  %v3026_v56 = vrot.slane %v12584_v19, 4  ;;  %v3027_v38 = vrot.slane %v12591_v40, 3 }
 0x2d1   :  { %v12782_v10 = vsel %vm216_vm6, %v2946_v6, %v2945_v14  ;;  %v3018_v63 = vsel %vm204_vm2, %v3017_v35, %v3016_v34  ;;  %v3029_v36 = vrot.slane %v12596_v42, 2  ;;  %v3031_v16 = vrot.slane %v12601_v41, 1 }
 0x2d2   :  { %15265 = vst [vmem:[#allocation117_spill] sm:$0xff] %v12782_v10  ;;  %v2981_v52 = vmul.f32 %v12782_v10, %v15266_v61  ;;  %v3019_v26 = vsel %vm207_vm3, %v12603_v15, %v3018_v63  ;;  %v3028_v6 = vsel %vm198_vm0, %v3027_v38, %v3026_v56  ;;  %v3034_v35 = vrot.slane %v12613_v25, 7 }
 0x2d3   :  { %v3021_v2 = vsel %vm210_vm4, %v3020_v59, %v3019_v26  ;;  %v3036_v13 = vrot.slane %v12619_v62, 6  ;;  %v3030_v34 = vsel %vm201_vm1, %v3029_v36, %v3028_v6  ;;  %v3038_v61 = vrot.slane %v12623_v0, 5  ;;  %v15268_v26 = vld [vmem:[#allocation122_spill] sm:$0xff] }
 0x2d4   :  { %v2989_v48 = vadd.f32 %v2981_v52, %v2897_v4  ;;  %v3023_v14 = vsel %vm213_vm5, %v3022_v9, %v3021_v2  ;;  %v3032_v10 = vsel %vm204_vm2, %v3031_v16, %v3030_v34  ;;  %v3104_v59 = vrot.slane %v12582_v50, 5 }
 0x2d5   :  { %v12801_v63 = vsel %vm216_vm6, %v3024_v7, %v3023_v14  ;;  %v3105_v56 = vrot.slane %v12589_v45, 4  ;;  %v3033_v38 = vsel %vm207_vm3, %v12609_v22, %v3032_v10  ;;  %v3107_v9 = vrot.slane %v12594_v3, 3 }
 0x2d6   :  { %15267 = vst [vmem:[#allocation118_spill] sm:$0xff] %v12801_v63  ;;  %v3072_v4 = vmul.f32 %v12801_v63, %v15268_v26  ;;  %v3109_v52 = vrot.slane %v12598_v44, 2  ;;  %v3035_v36 = vsel %vm210_vm4, %v3034_v35, %v3033_v38  ;;  %v3111_v16 = vrot.slane %v12603_v15, 1 }
 0x2d7   :  { %v3106_v7 = vsel %vm198_vm0, %v3105_v56, %v3104_v59  ;;  %v3114_v2 = vrot.slane %v12617_v23, 7  ;;  %v3037_v6 = vsel %vm213_vm5, %v3036_v13, %v3035_v36  ;;  %v3116_v34 = vrot.slane %v12621_v57, 6  ;;  %v15270_v56 = vld [vmem:[#allocation123_spill] sm:$0xff] }
 0x2d8   :  { %v3080_v14 = vadd.f32 %v3072_v4, %v2988_v30  ;;  %v3108_v10 = vsel %vm201_vm1, %v3107_v9, %v3106_v7  ;;  %v12820_v26 = vsel %vm216_vm6, %v3038_v61, %v3037_v6  ;;  %v3118_v35 = vrot.slane %v12584_v19, 5 }
 0x2d9   :  { %15269 = vst [vmem:[#allocation122_spill] sm:$0xff] %v12820_v26  ;;  %v3110_v63 = vsel %vm204_vm2, %v3109_v52, %v3108_v10  ;;  %v3119_v59 = vrot.slane %v12591_v40, 4  ;;  %v3073_v38 = vmul.f32 %v12820_v26, %v15270_v56  ;;  %v3121_v30 = vrot.slane %v12596_v42, 3  ;;  %v15272_v56 = vld [vmem:[#allocation125_spill] sm:$0xff] }
 0x2da   :  { %v3112_v53 = vsel %vm207_vm3, %v3111_v16, %v3110_v63  ;;  %v3123_v13 = vrot.slane %v12601_v41, 2  ;;  %v3125_v9 = vrot.slane %v12609_v22, 1  ;;  %v3128_v52 = vrot.slane %v12619_v62, 7 }
 0x2db   :  { %v3113_v4 = vsel %vm210_vm4, %v12611_v54, %v3112_v53  ;;  %v3120_v61 = vsel %vm198_vm0, %v3119_v59, %v3118_v35  ;;  %v3081_v36 = vadd.f32 %v3073_v38, %v2989_v48  ;;  %v3130_v63 = vrot.slane %v12623_v0, 6 }
 0x2dc   :  { %v3115_v7 = vsel %vm213_vm5, %v3114_v2, %v3113_v4  ;;  %v3122_v6 = vsel %vm201_vm1, %v3121_v30, %v3120_v61  ;;  %v3196_v53 = vrot.slane %v12582_v50, 6  ;;  %v3197_v35 = vrot.slane %v12589_v45, 5 }
 0x2dd   :  { %v12839_v16 = vsel %vm216_vm6, %v3116_v34, %v3115_v7  ;;  %v3124_v10 = vsel %vm204_vm2, %v3123_v13, %v3122_v6  ;;  %v3199_v2 = vrot.slane %v12594_v3, 4  ;;  %v3201_v38 = vrot.slane %v12598_v44, 3 }
 0x2de   :  { %15271 = vst [vmem:[#allocation123_spill] sm:$0xff] %v12839_v16  ;;  %v3126_v59 = vsel %vm207_vm3, %v3125_v9, %v3124_v10  ;;  %v3164_v48 = vmul.f32 %v12839_v16, %v15272_v56  ;;  %v3198_v34 = vsel %vm198_vm0, %v3197_v35, %v3196_v53  ;;  %v3203_v13 = vrot.slane %v12603_v15, 2  ;;  %v15274_v35 = vld [vmem:[#allocation126_spill] sm:$0xff] }
 0x2df   :  { %v3127_v30 = vsel %vm210_vm4, %v12613_v25, %v3126_v59  ;;  %v3205_v4 = vrot.slane %v12611_v54, 1  ;;  %v3200_v9 = vsel %vm201_vm1, %v3199_v2, %v3198_v34  ;;  %v3208_v6 = vrot.slane %v12621_v57, 7 }
 0x2e0   :  { %v3129_v61 = vsel %vm213_vm5, %v3128_v52, %v3127_v30  ;;  %v3172_v7 = vadd.f32 %v3164_v48, %v3080_v14  ;;  %v3202_v56 = vsel %vm204_vm2, %v3201_v38, %v3200_v9  ;;  %v3210_v59 = vrot.slane %v12584_v19, 6 }
 0x2e1   :  { %v12858_v10 = vsel %vm216_vm6, %v3130_v63, %v3129_v61  ;;  %v3211_v53 = vrot.slane %v12591_v40, 5  ;;  %v3204_v26 = vsel %vm207_vm3, %v3203_v13, %v3202_v56  ;;  %v3213_v14 = vrot.slane %v12596_v42, 4 }
 0x2e2   :  { %15273 = vst [vmem:[#allocation125_spill] sm:$0xff] %v12858_v10  ;;  %v3165_v16 = vmul.f32 %v12858_v10, %v15274_v35  ;;  %v3215_v52 = vrot.slane %v12601_v41, 3  ;;  %v3206_v48 = vsel %vm210_vm4, %v3205_v4, %v3204_v26  ;;  %v3217_v2 = vrot.slane %v12609_v22, 2 }
 0x2e3   :  { %v3212_v63 = vsel %vm198_vm0, %v3211_v53, %v3210_v59  ;;  %v3219_v38 = vrot.slane %v12613_v25, 1  ;;  %v3207_v34 = vsel %vm213_vm5, %v12617_v23, %v3206_v48  ;;  %v3222_v13 = vrot.slane %v12623_v0, 7  ;;  %v15276_v53 = vld [vmem:[#allocation130_spill] sm:$0xff] }
 0x2e4   :  { %v3173_v30 = vadd.f32 %v3165_v16, %v3081_v36  ;;  %v3214_v61 = vsel %vm201_vm1, %v3213_v14, %v3212_v63  ;;  %v12877_v9 = vsel %vm216_vm6, %v3208_v6, %v3207_v34  ;;  %v3288_v26 = vrot.slane %v12582_v50, 7 }
 0x2e5   :  { %15275 = vst [vmem:[#allocation126_spill] sm:$0xff] %v12877_v9  ;;  %v3216_v56 = vsel %vm204_vm2, %v3215_v52, %v3214_v61  ;;  %v3289_v4 = vrot.slane %v12589_v45, 6  ;;  %v3256_v36 = vmul.f32 %v12877_v9, %v15276_v53  ;;  %v3291_v16 = vrot.slane %v12594_v3, 5 }
 0x2e6   :  { %v3218_v59 = vsel %vm207_vm3, %v3217_v2, %v3216_v56  ;;  %v3293_v35 = vrot.slane %v12598_v44, 4  ;;  %v3295_v48 = vrot.slane %v12603_v15, 3  ;;  %v3297_v52 = vrot.slane %v12611_v54, 2  ;;  %v15278_v15 = vld [vmem:[#allocation131_spill] sm:$0xff] }
 0x2e7   :  { %v3220_v14 = vsel %vm210_vm4, %v3219_v38, %v3218_v59  ;;  %v3290_v6 = vsel %vm198_vm0, %v3289_v4, %v3288_v26  ;;  %v3264_v45 = vadd.f32 %v3256_v36, %v3172_v7  ;;  %v3299_v2 = vrot.slane %v12617_v23, 1  ;;  %v3372_v26 = vld [vmem:[#allocation6 + $0x20] sm:$0xff]  ;;  %v3374_v59 = vld [vmem:[#allocation6 + $0x50] sm:$0xff] }
 0x2e8   :  { %v3221_v50 = vsel %vm213_vm5, %v12619_v62, %v3220_v14  ;;  %v3292_v63 = vsel %vm201_vm1, %v3291_v16, %v3290_v6  ;;  %v3302_v38 = vrot.slane %v12584_v19, 7  ;;  %v3303_v34 = vrot.slane %v12591_v40, 6  ;;  %v3380_v6 = vld [vmem:[#allocation6 + $0xe0] sm:$0xff] }
 0x2e9   :  { %v12896_v3 = vsel %vm216_vm6, %v3222_v13, %v3221_v50  ;;  %v3294_v44 = vsel %vm204_vm2, %v3293_v35, %v3292_v63  ;;  %v3305_v7 = vrot.slane %v12596_v42, 5  ;;  %v3307_v56 = vrot.slane %v12601_v41, 4  ;;  %v3376_v42 = vld [vmem:[#allocation6 + $0x80] sm:$0xff]  ;;  %v3378_v35 = vld [vmem:[#allocation6 + $0xb0] sm:$0xff] }
 0x2ea   :  { %15277 = vst [vmem:[#allocation130_spill] sm:$0xff] %v12896_v3  ;;  %v3257_v54 = vmul.f32 %v12896_v3, %v15278_v15  ;;  %v3296_v61 = vsel %vm207_vm3, %v3295_v48, %v3294_v44  ;;  %v3304_v13 = vsel %vm198_vm0, %v3303_v34, %v3302_v38  ;;  %v3309_v4 = vrot.slane %v12609_v22, 3  ;;  %v15280_v48 = vld [vmem:[#allocation133_spill] sm:$0xff] }
 0x2eb   :  { %v3298_v23 = vsel %vm210_vm4, %v3297_v52, %v3296_v61  ;;  %v3311_v19 = vrot.slane %v12613_v25, 2  ;;  %v3306_v36 = vsel %vm201_vm1, %v3305_v7, %v3304_v13  ;;  %v3313_v16 = vrot.slane %v12619_v62, 1  ;;  %v3382_v50 = vld [vmem:[#allocation6 + $0x110] sm:$0xff] }
 0x2ec   :  { %v3265_v40 = vadd.f32 %v3257_v54, %v3173_v30  ;;  %v3300_v53 = vsel %vm213_vm5, %v3299_v2, %v3298_v23  ;;  %v3308_v14 = vsel %vm204_vm2, %v3307_v56, %v3306_v36  ;;  %v12918_v22 = vunpack.c.l.bf16 %v3372_v26  ;;  %v3384_v2 = vld [vmem:[#allocation6 + $0x140] sm:$0xff]  ;;  %v3386_v44 = vld [vmem:[#allocation6 + $0x170] sm:$0xff] }
 0x2ed   :  { %v12915_v41 = vsel %vm216_vm6, %v12621_v57, %v3300_v53  ;;  %v12920_v25 = vunpack.c.h.bf16 %v3372_v26  ;;  %v3310_v30 = vsel %vm207_vm3, %v3309_v4, %v3308_v14  ;;  %v12925_v62 = vunpack.c.l.bf16 %v3374_v59 }
 0x2ee   :  { %15279 = vst [vmem:[#allocation131_spill] sm:$0xff] %v12915_v41  ;;  %v3348_v52 = vmul.f32 %v12915_v41, %v15280_v48  ;;  %v12927_v63 = vunpack.c.h.bf16 %v3374_v59  ;;  %v3312_v57 = vsel %vm210_vm4, %v3311_v19, %v3310_v30  ;;  %v12930_v38 = vunpack.c.l.bf16 %v3376_v42  ;;  %v15282_v19 = vld [vmem:[#allocation134_spill] sm:$0xff] }
 0x2ef   :  { %v12932_v34 = vunpack.c.h.bf16 %v3376_v42  ;;  %v12934_v15 = vunpack.c.l.bf16 %v3378_v35  ;;  %v3314_v54 = vsel %vm213_vm5, %v3313_v16, %v3312_v57  ;;  %v12937_v7 = vunpack.c.h.bf16 %v3378_v35 }
 0x2f0   :  { %v3356_v61 = vadd.f32 %v3348_v52, %v3264_v45  ;;  %v12939_v56 = vunpack.c.l.bf16 %v3380_v6  ;;  %v12943_v26 = vsel %vm216_vm6, %v12623_v0, %v3314_v54  ;;  %v12945_v23 = vunpack.c.h.bf16 %v3380_v6 }
 0x2f1   :  { %15281 = vst [vmem:[#allocation133_spill] sm:$0xff] %v12943_v26  ;;  %v12947_v13 = vunpack.c.l.bf16 %v3382_v50  ;;  %v12949_v4 = vunpack.c.h.bf16 %v3382_v50  ;;  %v3349_v59 = vmul.f32 %v12943_v26, %v15282_v19  ;;  %v12953_v53 = vunpack.c.l.bf16 %v3384_v2 }
 0x2f2   :  { %v12955_v45 = vunpack.c.h.bf16 %v3384_v2  ;;  %v12957_v36 = vunpack.c.l.bf16 %v3386_v44  ;;  %v12959_v16 = vunpack.c.h.bf16 %v3386_v44  ;;  %v3484_v0 = vrot.slane %v12925_v62, 7 }
 0x2f3   :  { %v3486_v42 = vrot.slane %v12930_v38, 6  ;;  %v3488_v35 = vrot.slane %v12934_v15, 5  ;;  %v3357_v14 = vadd.f32 %v3349_v59, %v3265_v40  ;;  %v3490_v6 = vrot.slane %v12939_v56, 4 }
 0x2f4   :  { %v3492_v30 = vrot.slane %v12947_v13, 3  ;;  %v3494_v48 = vrot.slane %v12953_v53, 2  ;;  %v3485_v52 = vsel %vm198_vm0, %v3484_v0, %v12918_v22  ;;  %v3496_v50 = vrot.slane %v12957_v36, 1 }
 0x2f5   :  { %v3498_v57 = vrot.slane %v12927_v63, 7  ;;  %v3500_v2 = vrot.slane %v12932_v34, 6  ;;  %v3487_v44 = vsel %vm201_vm1, %v3486_v42, %v3485_v52  ;;  %v3502_v54 = vrot.slane %v12937_v7, 5 }
 0x2f6   :  { %v3504_v40 = vrot.slane %v12945_v23, 4  ;;  %v3506_v19 = vrot.slane %v12949_v4, 3  ;;  %v3489_v59 = vsel %vm204_vm2, %v3488_v35, %v3487_v44  ;;  %v3508_v0 = vrot.slane %v12955_v45, 2 }
 0x2f7   :  { %v3499_v26 = vsel %vm198_vm0, %v3498_v57, %v12920_v25  ;;  %v3510_v41 = vrot.slane %v12959_v16, 1  ;;  %v3491_v3 = vsel %vm207_vm3, %v3490_v6, %v3489_v59  ;;  %v3576_v42 = vrot.slane %v12918_v22, 1  ;;  %v15285_v59 = vld [vmem:[#allocation139_spill] sm:$0xff] }
 0x2f8   :  { %v3501_v9 = vsel %vm201_vm1, %v3500_v2, %v3499_v26  ;;  %v3578_v52 = vrot.slane %v12930_v38, 7  ;;  %v3493_v10 = vsel %vm210_vm4, %v3492_v30, %v3491_v3  ;;  %v3580_v35 = vrot.slane %v12934_v15, 6 }
 0x2f9   :  { %v3503_v32 = vsel %vm204_vm2, %v3502_v54, %v3501_v9  ;;  %v3582_v57 = vrot.slane %v12939_v56, 5  ;;  %v3495_v44 = vsel %vm213_vm5, %v3494_v48, %v3493_v10  ;;  %v3577_v6 = vsel %vm198_vm0, %v12925_v62, %v3576_v42 }
 0x2fa   :  { %v3505_v28 = vsel %vm207_vm3, %v3504_v40, %v3503_v32  ;;  %v3584_v26 = vrot.slane %v12947_v13, 4  ;;  %v12995_v2 = vsel %vm216_vm6, %v3496_v50, %v3495_v44  ;;  %v3579_v9 = vsel %vm201_vm1, %v3578_v52, %v3577_v6 }
 0x2fb   :  { %15283 = vst [vmem:[#allocation134_spill] sm:$0xff] %v12995_v2  ;;  %v3507_v3 = vsel %vm210_vm4, %v3506_v19, %v3505_v28  ;;  %v3586_v30 = vrot.slane %v12953_v53, 3  ;;  %v3544_v10 = vmul.f32 %v12995_v2, %v10796_v33  ;;  %v3581_v32 = vsel %vm204_vm2, %v3580_v35, %v3579_v9 }
 0x2fc   :  { %v3509_v54 = vsel %vm213_vm5, %v3508_v0, %v3507_v3  ;;  %v3588_v48 = vrot.slane %v12957_v36, 2  ;;  %v3583_v50 = vsel %vm207_vm3, %v3582_v57, %v3581_v32  ;;  %v3590_v28 = vrot.slane %v12920_v25, 1 }
 0x2fd   :  { %v13006_v40 = vsel %vm216_vm6, %v3510_v41, %v3509_v54  ;;  %v3592_v19 = vrot.slane %v12932_v34, 7  ;;  %v3552_v0 = vadd.f32 %v3544_v10, %v3356_v61  ;;  %v3585_v52 = vsel %vm210_vm4, %v3584_v26, %v3583_v50 }
 0x2fe   :  { %15284 = vst [vmem:[#allocation197_spill] sm:$0xff] %v13006_v40  ;;  %v3545_v42 = vmul.f32 %v13006_v40, %v15285_v59  ;;  %v3594_v33 = vrot.slane %v12937_v7, 6  ;;  %v3587_v35 = vsel %vm213_vm5, %v3586_v30, %v3585_v52  ;;  %v3591_v41 = vsel %vm198_vm0, %v12927_v63, %v3590_v28  ;;  %v15287_v30 = vld [vmem:[#allocation140_spill] sm:$0xff] }
 0x2ff   :  { %v3596_v44 = vrot.slane %v12945_v23, 5  ;;  %v3598_v57 = vrot.slane %v12949_v4, 4  ;;  %v13021_v3 = vsel %vm216_vm6, %v3588_v48, %v3587_v35  ;;  %v3593_v9 = vsel %vm201_vm1, %v3592_v19, %v3591_v41 }
 0x300   :  { %v3553_v6 = vadd.f32 %v3545_v42, %v3357_v14  ;;  %15286 = vst [vmem:[#allocation139_spill] sm:$0xff] %v13021_v3  ;;  %v3600_v61 = vrot.slane %v12955_v45, 3  ;;  %v3595_v26 = vsel %vm204_vm2, %v3594_v33, %v3593_v9  ;;  %v3602_v54 = vrot.slane %v12959_v16, 2 }
 0x301   :  { %v3636_v10 = vmul.f32 %v13021_v3, %v15287_v30  ;;  %v3668_v32 = vrot.slane %v12918_v22, 2  ;;  %v3597_v50 = vsel %vm207_vm3, %v3596_v44, %v3595_v26  ;;  %v3669_v14 = vrot.slane %v12925_v62, 1  ;;  %v15289_v30 = vld [vmem:[#allocation141_spill] sm:$0xff] }
 0x302   :  { %v3672_v48 = vrot.slane %v12934_v15, 7  ;;  %v3674_v28 = vrot.slane %v12939_v56, 6  ;;  %v3599_v19 = vsel %vm210_vm4, %v3598_v57, %v3597_v50  ;;  %v3676_v42 = vrot.slane %v12947_v13, 5 }
 0x303   :  { %v3644_v59 = vadd.f32 %v3636_v10, %v3552_v0  ;;  %v3678_v52 = vrot.slane %v12953_v53, 4  ;;  %v3601_v33 = vsel %vm213_vm5, %v3600_v61, %v3599_v19  ;;  %v3670_v35 = vsel %vm198_vm0, %v3669_v14, %v3668_v32 }
 0x304   :  { %v3680_v41 = vrot.slane %v12957_v36, 3  ;;  %v3682_v44 = vrot.slane %v12920_v25, 2  ;;  %v13042_v9 = vsel %vm216_vm6, %v3602_v54, %v3601_v33  ;;  %v3671_v26 = vsel %vm201_vm1, %v12930_v38, %v3670_v35 }
 0x305   :  { %15288 = vst [vmem:[#allocation140_spill] sm:$0xff] %v13042_v9  ;;  %v3683_v0 = vrot.slane %v12927_v63, 1  ;;  %v3686_v57 = vrot.slane %v12937_v7, 7  ;;  %v3637_v10 = vmul.f32 %v13042_v9, %v15289_v30  ;;  %v3673_v61 = vsel %vm204_vm2, %v3672_v48, %v3671_v26 }
 0x306   :  { %v3688_v32 = vrot.slane %v12945_v23, 6  ;;  %v3690_v50 = vrot.slane %v12949_v4, 5  ;;  %v3675_v14 = vsel %vm207_vm3, %v3674_v28, %v3673_v61  ;;  %v3692_v19 = vrot.slane %v12955_v45, 4 }
 0x307   :  { %v3684_v54 = vsel %vm198_vm0, %v3683_v0, %v3682_v44  ;;  %v3694_v33 = vrot.slane %v12959_v16, 3  ;;  %v3645_v35 = vadd.f32 %v3637_v10, %v3553_v6  ;;  %v3677_v3 = vsel %vm210_vm4, %v3676_v42, %v3675_v14  ;;  %v15291_v14 = vld [vmem:[#allocation145_spill] sm:$0xff] }
 0x308   :  { %v3685_v30 = vsel %vm201_vm1, %v12932_v34, %v3684_v54  ;;  %v3760_v48 = vrot.slane %v12918_v22, 3  ;;  %v3679_v26 = vsel %vm213_vm5, %v3678_v52, %v3677_v3  ;;  %v3761_v28 = vrot.slane %v12925_v62, 2 }
 0x309   :  { %v3687_v9 = vsel %vm204_vm2, %v3686_v57, %v3685_v30  ;;  %v3763_v44 = vrot.slane %v12930_v38, 1  ;;  %v13066_v0 = vsel %vm216_vm6, %v3680_v41, %v3679_v26  ;;  %v3766_v42 = vrot.slane %v12939_v56, 7 }
 0x30a   :  { %15290 = vst [vmem:[#allocation141_spill] sm:$0xff] %v13066_v0  ;;  %v3689_v6 = vsel %vm207_vm3, %v3688_v32, %v3687_v9  ;;  %v3768_v10 = vrot.slane %v12947_v13, 6  ;;  %v3728_v3 = vmul.f32 %v13066_v0, %v15291_v14  ;;  %v3762_v52 = vsel %vm198_vm0, %v3761_v28, %v3760_v48  ;;  %v15293_v48 = vld [vmem:[#allocation146_spill] sm:$0xff] }
 0x30b   :  { %v3691_v61 = vsel %vm210_vm4, %v3690_v50, %v3689_v6  ;;  %v3770_v57 = vrot.slane %v12953_v53, 5  ;;  %v3764_v41 = vsel %vm201_vm1, %v3763_v44, %v3762_v52  ;;  %v3772_v30 = vrot.slane %v12957_v36, 4 }
 0x30c   :  { %v3693_v54 = vsel %vm213_vm5, %v3692_v19, %v3691_v61  ;;  %v3774_v9 = vrot.slane %v12920_v25, 3  ;;  %v3736_v26 = vadd.f32 %v3728_v3, %v3644_v59  ;;  %v3765_v50 = vsel %vm204_vm2, %v12934_v15, %v3764_v41 }
 0x30d   :  { %v13081_v32 = vsel %vm216_vm6, %v3694_v33, %v3693_v54  ;;  %v3775_v6 = vrot.slane %v12927_v63, 2  ;;  %v3767_v19 = vsel %vm207_vm3, %v3766_v42, %v3765_v50  ;;  %v3777_v44 = vrot.slane %v12932_v34, 1 }
 0x30e   :  { %15292 = vst [vmem:[#allocation145_spill] sm:$0xff] %v13081_v32  ;;  %v3729_v28 = vmul.f32 %v13081_v32, %v15293_v48  ;;  %v3780_v61 = vrot.slane %v12945_v23, 7  ;;  %v3769_v14 = vsel %vm210_vm4, %v3768_v10, %v3767_v19  ;;  %v3782_v59 = vrot.slane %v12949_v4, 6  ;;  %v15295_v19 = vld [vmem:[#allocation148_spill] sm:$0xff] }
 0x30f   :  { %v3776_v33 = vsel %vm198_vm0, %v3775_v6, %v3774_v9  ;;  %v3784_v3 = vrot.slane %v12955_v45, 5  ;;  %v3771_v54 = vsel %vm213_vm5, %v3770_v57, %v3769_v14  ;;  %v3786_v48 = vrot.slane %v12959_v16, 4 }
 0x310   :  { %v3737_v52 = vadd.f32 %v3729_v28, %v3645_v35  ;;  %v3778_v41 = vsel %vm201_vm1, %v3777_v44, %v3776_v33  ;;  %v13099_v42 = vsel %vm216_vm6, %v3772_v30, %v3771_v54  ;;  %v3852_v10 = vrot.slane %v12918_v22, 4 }
 0x311   :  { %15294 = vst [vmem:[#allocation146_spill] sm:$0xff] %v13099_v42  ;;  %v3779_v50 = vsel %vm204_vm2, %v12937_v7, %v3778_v41  ;;  %v3853_v9 = vrot.slane %v12925_v62, 3  ;;  %v3820_v35 = vmul.f32 %v13099_v42, %v15295_v19  ;;  %v3855_v57 = vrot.slane %v12930_v38, 2 }
 0x312   :  { %v3781_v6 = vsel %vm207_vm3, %v3780_v61, %v3779_v50  ;;  %v3857_v28 = vrot.slane %v12934_v15, 1  ;;  %v3860_v14 = vrot.slane %v12947_v13, 7  ;;  %v3862_v33 = vrot.slane %v12953_v53, 6 }
 0x313   :  { %v3783_v44 = vsel %vm210_vm4, %v3782_v59, %v3781_v6  ;;  %v3854_v30 = vsel %vm198_vm0, %v3853_v9, %v3852_v10  ;;  %v3828_v41 = vadd.f32 %v3820_v35, %v3736_v26  ;;  %v3864_v50 = vrot.slane %v12957_v36, 5  ;;  %v15297_v9 = vld [vmem:[#allocation149_spill] sm:$0xff] }
 0x314   :  { %v3785_v54 = vsel %vm213_vm5, %v3784_v3, %v3783_v44  ;;  %v3856_v61 = vsel %vm201_vm1, %v3855_v57, %v3854_v30  ;;  %v3866_v59 = vrot.slane %v12920_v25, 4  ;;  %v3867_v10 = vrot.slane %v12927_v63, 3 }
 0x315   :  { %v13118_v19 = vsel %vm216_vm6, %v3786_v48, %v3785_v54  ;;  %v3858_v42 = vsel %vm204_vm2, %v3857_v28, %v3856_v61  ;;  %v3869_v26 = vrot.slane %v12932_v34, 2  ;;  %v3871_v35 = vrot.slane %v12937_v7, 1 }
 0x316   :  { %15296 = vst [vmem:[#allocation148_spill] sm:$0xff] %v13118_v19  ;;  %v3821_v6 = vmul.f32 %v13118_v19, %v15297_v9  ;;  %v3859_v3 = vsel %vm207_vm3, %v12939_v56, %v3858_v42  ;;  %v3868_v48 = vsel %vm198_vm0, %v3867_v10, %v3866_v59  ;;  %v3874_v28 = vrot.slane %v12949_v4, 7 }
 0x317   :  { %v3861_v57 = vsel %vm210_vm4, %v3860_v14, %v3859_v3  ;;  %v3876_v44 = vrot.slane %v12955_v45, 6  ;;  %v3870_v61 = vsel %vm201_vm1, %v3869_v26, %v3868_v48  ;;  %v3878_v9 = vrot.slane %v12959_v16, 5  ;;  %v15299_v3 = vld [vmem:[#allocation153_spill] sm:$0xff] }
 0x318   :  { %v3829_v30 = vadd.f32 %v3821_v6, %v3737_v52  ;;  %v3863_v54 = vsel %vm213_vm5, %v3862_v33, %v3861_v57  ;;  %v3872_v19 = vsel %vm204_vm2, %v3871_v35, %v3870_v61  ;;  %v3944_v14 = vrot.slane %v12918_v22, 5 }
 0x319   :  { %v13137_v42 = vsel %vm216_vm6, %v3864_v50, %v3863_v54  ;;  %v3945_v59 = vrot.slane %v12925_v62, 4  ;;  %v3873_v10 = vsel %vm207_vm3, %v12945_v23, %v3872_v19  ;;  %v3947_v33 = vrot.slane %v12930_v38, 3 }
 0x31a   :  { %15298 = vst [vmem:[#allocation149_spill] sm:$0xff] %v13137_v42  ;;  %v3912_v52 = vmul.f32 %v13137_v42, %v15299_v3  ;;  %v3949_v6 = vrot.slane %v12934_v15, 2  ;;  %v3875_v26 = vsel %vm210_vm4, %v3874_v28, %v3873_v10  ;;  %v3951_v35 = vrot.slane %v12939_v56, 1 }
 0x31b   :  { %v3946_v50 = vsel %vm198_vm0, %v3945_v59, %v3944_v14  ;;  %v3954_v57 = vrot.slane %v12953_v53, 7  ;;  %v3877_v48 = vsel %vm213_vm5, %v3876_v44, %v3875_v26  ;;  %v3956_v61 = vrot.slane %v12957_v36, 6  ;;  %v15301_v59 = vld [vmem:[#allocation154_spill] sm:$0xff] }
 0x31c   :  { %v3920_v54 = vadd.f32 %v3912_v52, %v3828_v41  ;;  %v3948_v19 = vsel %vm201_vm1, %v3947_v33, %v3946_v50  ;;  %v13156_v3 = vsel %vm216_vm6, %v3878_v9, %v3877_v48  ;;  %v3958_v28 = vrot.slane %v12920_v25, 5 }
 0x31d   :  { %15300 = vst [vmem:[#allocation153_spill] sm:$0xff] %v13156_v3  ;;  %v3950_v42 = vsel %vm204_vm2, %v3949_v6, %v3948_v19  ;;  %v3959_v14 = vrot.slane %v12927_v63, 4  ;;  %v3913_v10 = vmul.f32 %v13156_v3, %v15301_v59  ;;  %v3961_v41 = vrot.slane %v12932_v34, 3  ;;  %v15303_v59 = vld [vmem:[#allocation156_spill] sm:$0xff] }
 0x31e   :  { %v3952_v32 = vsel %vm207_vm3, %v3951_v35, %v3950_v42  ;;  %v3963_v44 = vrot.slane %v12937_v7, 2  ;;  %v3965_v33 = vrot.slane %v12945_v23, 1  ;;  %v3968_v6 = vrot.slane %v12955_v45, 7 }
 0x31f   :  { %v3953_v52 = vsel %vm210_vm4, %v12947_v13, %v3952_v32  ;;  %v3960_v9 = vsel %vm198_vm0, %v3959_v14, %v3958_v28  ;;  %v3921_v26 = vadd.f32 %v3913_v10, %v3829_v30  ;;  %v3970_v42 = vrot.slane %v12959_v16, 6 }
 0x320   :  { %v3955_v50 = vsel %vm213_vm5, %v3954_v57, %v3953_v52  ;;  %v3962_v48 = vsel %vm201_vm1, %v3961_v41, %v3960_v9  ;;  %v4036_v32 = vrot.slane %v12918_v22, 6  ;;  %v4037_v28 = vrot.slane %v12925_v62, 5 }
 0x321   :  { %v13175_v35 = vsel %vm216_vm6, %v3956_v61, %v3955_v50  ;;  %v3964_v19 = vsel %vm204_vm2, %v3963_v44, %v3962_v48  ;;  %v4039_v57 = vrot.slane %v12930_v38, 4  ;;  %v4041_v10 = vrot.slane %v12934_v15, 3 }
 0x322   :  { %15302 = vst [vmem:[#allocation154_spill] sm:$0xff] %v13175_v35  ;;  %v3966_v14 = vsel %vm207_vm3, %v3965_v33, %v3964_v19  ;;  %v4004_v30 = vmul.f32 %v13175_v35, %v15303_v59  ;;  %v4038_v61 = vsel %vm198_vm0, %v4037_v28, %v4036_v32  ;;  %v4043_v44 = vrot.slane %v12939_v56, 2  ;;  %v15305_v28 = vld [vmem:[#allocation157_spill] sm:$0xff] }
 0x323   :  { %v3967_v41 = vsel %vm210_vm4, %v12949_v4, %v3966_v14  ;;  %v4045_v52 = vrot.slane %v12947_v13, 1  ;;  %v4040_v33 = vsel %vm201_vm1, %v4039_v57, %v4038_v61  ;;  %v4048_v48 = vrot.slane %v12957_v36, 7 }
 0x324   :  { %v3969_v9 = vsel %vm213_vm5, %v3968_v6, %v3967_v41  ;;  %v4012_v50 = vadd.f32 %v4004_v30, %v3920_v54  ;;  %v4042_v59 = vsel %vm204_vm2, %v4041_v10, %v4040_v33  ;;  %v4050_v14 = vrot.slane %v12920_v25, 6 }
 0x325   :  { %v13194_v19 = vsel %vm216_vm6, %v3970_v42, %v3969_v9  ;;  %v4051_v32 = vrot.slane %v12927_v63, 5  ;;  %v4044_v3 = vsel %vm207_vm3, %v4043_v44, %v4042_v59  ;;  %v4053_v54 = vrot.slane %v12932_v34, 4 }
 0x326   :  { %15304 = vst [vmem:[#allocation156_spill] sm:$0xff] %v13194_v19  ;;  %v4005_v35 = vmul.f32 %v13194_v19, %v15305_v28  ;;  %v4055_v6 = vrot.slane %v12937_v7, 3  ;;  %v4046_v30 = vsel %vm210_vm4, %v4045_v52, %v4044_v3  ;;  %v4057_v57 = vrot.slane %v12945_v23, 2 }
 0x327   :  { %v4052_v42 = vsel %vm198_vm0, %v4051_v32, %v4050_v14  ;;  %v4059_v10 = vrot.slane %v12949_v4, 1  ;;  %v4047_v61 = vsel %vm213_vm5, %v12953_v53, %v4046_v30  ;;  %v4062_v44 = vrot.slane %v12959_v16, 7  ;;  %v15307_v32 = vld [vmem:[#allocation161_spill] sm:$0xff] }
 0x328   :  { %v4013_v41 = vadd.f32 %v4005_v35, %v3921_v26  ;;  %v4054_v9 = vsel %vm201_vm1, %v4053_v54, %v4052_v42  ;;  %v13213_v33 = vsel %vm216_vm6, %v4048_v48, %v4047_v61  ;;  %v4128_v3 = vrot.slane %v12918_v22, 7 }
 0x329   :  { %15306 = vst [vmem:[#allocation157_spill] sm:$0xff] %v13213_v33  ;;  %v4056_v59 = vsel %vm204_vm2, %v4055_v6, %v4054_v9  ;;  %v4129_v52 = vrot.slane %v12925_v62, 6  ;;  %v4096_v26 = vmul.f32 %v13213_v33, %v15307_v32  ;;  %v4131_v35 = vrot.slane %v12930_v38, 5  ;;  %v15309_v9 = vld [vmem:[#allocation162_spill] sm:$0xff] }
 0x32a   :  { %v4058_v14 = vsel %vm207_vm3, %v4057_v57, %v4056_v59  ;;  %v4133_v28 = vrot.slane %v12934_v15, 4  ;;  %v4135_v30 = vrot.slane %v12939_v56, 3  ;;  %v4137_v6 = vrot.slane %v12947_v13, 2  ;;  %v3373_v56 = vld [vmem:[#allocation6 + $0x28] sm:$0xff]  ;;  %v3379_v32 = vld [vmem:[#allocation6 + $0xb8] sm:$0xff] }
 0x32b   :  { %v4060_v54 = vsel %vm210_vm4, %v4059_v10, %v4058_v14  ;;  %v4130_v48 = vsel %vm198_vm0, %v4129_v52, %v4128_v3  ;;  %v4104_v62 = vadd.f32 %v4096_v26, %v4012_v50  ;;  %v4139_v57 = vrot.slane %v12953_v53, 1  ;;  %v3375_v53 = vld [vmem:[#allocation6 + $0x58] sm:$0xff] }
 0x32c   :  { %v4061_v22 = vsel %vm213_vm5, %v12955_v45, %v4060_v54  ;;  %v4132_v42 = vsel %vm201_vm1, %v4131_v35, %v4130_v48  ;;  %v4142_v10 = vrot.slane %v12920_v25, 7  ;;  %v4143_v61 = vrot.slane %v12927_v63, 6  ;;  %v3377_v63 = vld [vmem:[#allocation6 + $0x88] sm:$0xff] }
 0x32d   :  { %v13232_v38 = vsel %vm216_vm6, %v4062_v44, %v4061_v22  ;;  %v4134_v15 = vsel %vm204_vm2, %v4133_v28, %v4132_v42  ;;  %v4145_v50 = vrot.slane %v12932_v34, 5  ;;  %v4147_v3 = vrot.slane %v12937_v7, 4  ;;  %v3381_v54 = vld [vmem:[#allocation6 + $0xe8] sm:$0xff] }
 0x32e   :  { %15308 = vst [vmem:[#allocation161_spill] sm:$0xff] %v13232_v38  ;;  %v4097_v13 = vmul.f32 %v13232_v38, %v15309_v9  ;;  %v4136_v59 = vsel %vm207_vm3, %v4135_v30, %v4134_v15  ;;  %v4144_v52 = vsel %vm198_vm0, %v4143_v61, %v4142_v10  ;;  %v4149_v14 = vrot.slane %v12945_v23, 3  ;;  %v3387_v15 = vld [vmem:[#allocation6 + $0x178] sm:$0xff] }
 0x32f   :  { %v4138_v44 = vsel %vm210_vm4, %v4137_v6, %v4136_v59  ;;  %v4151_v25 = vrot.slane %v12949_v4, 2  ;;  %v4146_v28 = vsel %vm201_vm1, %v4145_v50, %v4144_v52  ;;  %v4153_v34 = vrot.slane %v12955_v45, 1  ;;  %v3383_v4 = vld [vmem:[#allocation6 + $0x118] sm:$0xff]  ;;  %v15311_v6 = vld [vmem:[#allocation164_spill] sm:$0xff] }
 0x330   :  { %v4105_v26 = vadd.f32 %v4097_v13, %v4013_v41  ;;  %v4140_v35 = vsel %vm213_vm5, %v4139_v57, %v4138_v44  ;;  %v4148_v48 = vsel %vm204_vm2, %v4147_v3, %v4146_v28  ;;  %v13254_v30 = vunpack.c.l.bf16 %v3373_v56  ;;  %v3385_v57 = vld [vmem:[#allocation6 + $0x148] sm:$0xff] }
 0x331   :  { %v13251_v7 = vsel %vm216_vm6, %v12957_v36, %v4140_v35  ;;  %v13256_v23 = vunpack.c.h.bf16 %v3373_v56  ;;  %v4150_v41 = vsel %vm207_vm3, %v4149_v14, %v4148_v48  ;;  %v13261_v42 = vunpack.c.l.bf16 %v3375_v53  ;;  %v15313_v14 = vld [vmem:[#allocation165_spill] sm:$0xff] }
 0x332   :  { %15310 = vst [vmem:[#allocation162_spill] sm:$0xff] %v13251_v7  ;;  %v4188_v22 = vmul.f32 %v13251_v7, %v15311_v6  ;;  %v13263_v45 = vunpack.c.h.bf16 %v3375_v53  ;;  %v4152_v36 = vsel %vm210_vm4, %v4151_v25, %v4150_v41  ;;  %v13266_v10 = vunpack.c.l.bf16 %v3377_v63 }
 0x333   :  { %v13268_v61 = vunpack.c.h.bf16 %v3377_v63  ;;  %v13270_v56 = vunpack.c.l.bf16 %v3379_v32  ;;  %v4154_v9 = vsel %vm213_vm5, %v4153_v34, %v4152_v36  ;;  %v13273_v59 = vunpack.c.h.bf16 %v3379_v32 }
 0x334   :  { %v4196_v13 = vadd.f32 %v4188_v22, %v4104_v62  ;;  %v13275_v50 = vunpack.c.l.bf16 %v3381_v54  ;;  %v13279_v3 = vsel %vm216_vm6, %v12959_v16, %v4154_v9  ;;  %v13281_v53 = vunpack.c.h.bf16 %v3381_v54 }
 0x335   :  { %15312 = vst [vmem:[#allocation164_spill] sm:$0xff] %v13279_v3  ;;  %v13283_v44 = vunpack.c.l.bf16 %v3383_v4  ;;  %v13285_v52 = vunpack.c.h.bf16 %v3383_v4  ;;  %v4189_v25 = vmul.f32 %v13279_v3, %v15313_v14  ;;  %v13289_v63 = vunpack.c.l.bf16 %v3385_v57 }
 0x336   :  { %v13291_v62 = vunpack.c.h.bf16 %v3385_v57  ;;  %v13293_v32 = vunpack.c.l.bf16 %v3387_v15  ;;  %v13295_v35 = vunpack.c.h.bf16 %v3387_v15  ;;  %v4284_v16 = vrot.slane %v13261_v42, 7 }
 0x337   :  { %v4286_v28 = vrot.slane %v13266_v10, 6  ;;  %v4288_v34 = vrot.slane %v13270_v56, 5  ;;  %v4197_v54 = vadd.f32 %v4189_v25, %v4105_v26  ;;  %v4290_v48 = vrot.slane %v13275_v50, 4 }
 0x338   :  { %v4292_v4 = vrot.slane %v13283_v44, 3  ;;  %v4294_v41 = vrot.slane %v13289_v63, 2  ;;  %v4285_v6 = vsel %vm198_vm0, %v4284_v16, %v13254_v30  ;;  %v4296_v22 = vrot.slane %v13293_v32, 1 }
 0x339   :  { %v4298_v57 = vrot.slane %v13263_v45, 7  ;;  %v4300_v15 = vrot.slane %v13268_v61, 6  ;;  %v4287_v36 = vsel %vm201_vm1, %v4286_v28, %v4285_v6  ;;  %v4302_v9 = vrot.slane %v13273_v59, 5 }
 0x33a   :  { %v4304_v26 = vrot.slane %v13281_v53, 4  ;;  %v4306_v14 = vrot.slane %v13285_v52, 3  ;;  %v4289_v25 = vsel %vm204_vm2, %v4288_v34, %v4287_v36  ;;  %v4308_v16 = vrot.slane %v13291_v62, 2 }
 0x33b   :  { %v4299_v3 = vsel %vm198_vm0, %v4298_v57, %v13256_v23  ;;  %v4310_v7 = vrot.slane %v13295_v35, 1  ;;  %v4291_v38 = vsel %vm207_vm3, %v4290_v48, %v4289_v25  ;;  %v4376_v28 = vrot.slane %v13254_v30, 1 }
 0x33c   :  { %v4301_v33 = vsel %vm201_vm1, %v4300_v15, %v4299_v3  ;;  %v4378_v6 = vrot.slane %v13266_v10, 7  ;;  %v4293_v19 = vsel %vm210_vm4, %v4292_v4, %v4291_v38  ;;  %v4380_v34 = vrot.slane %v13270_v56, 6 }
 0x33d   :  { %v4303_v0 = vsel %vm204_vm2, %v4302_v9, %v4301_v33  ;;  %v4382_v57 = vrot.slane %v13275_v50, 5  ;;  %v4295_v36 = vsel %vm213_vm5, %v4294_v41, %v4293_v19  ;;  %v4377_v48 = vsel %vm198_vm0, %v13261_v42, %v4376_v28 }
 0x33e   :  { %v4305_v40 = vsel %vm207_vm3, %v4304_v26, %v4303_v0  ;;  %v4384_v3 = vrot.slane %v13283_v44, 4  ;;  %v13331_v15 = vsel %vm216_vm6, %v4296_v22, %v4295_v36  ;;  %v4379_v33 = vsel %vm201_vm1, %v4378_v6, %v4377_v48 }
 0x33f   :  { %15314 = vst [vmem:[#allocation165_spill] sm:$0xff] %v13331_v15  ;;  %v4307_v38 = vsel %vm210_vm4, %v4306_v14, %v4305_v40  ;;  %v4386_v4 = vrot.slane %v13289_v63, 3  ;;  %v4344_v19 = vmul.f32 %v13331_v15, %v11200_v49  ;;  %v4381_v0 = vsel %vm204_vm2, %v4380_v34, %v4379_v33 }
 0x340   :  { %v4309_v9 = vsel %vm213_vm5, %v4308_v16, %v4307_v38  ;;  %v4388_v41 = vrot.slane %v13293_v32, 2  ;;  %v4383_v22 = vsel %vm207_vm3, %v4382_v57, %v4381_v0  ;;  %v4390_v40 = vrot.slane %v13256_v23, 1 }
 0x341   :  { %v13342_v26 = vsel %vm216_vm6, %v4310_v7, %v4309_v9  ;;  %v4392_v14 = vrot.slane %v13268_v61, 7  ;;  %v4352_v16 = vadd.f32 %v4344_v19, %v4196_v13  ;;  %v4385_v28 = vsel %vm210_vm4, %v4384_v3, %v4383_v22 }
 0x342   :  { %15315 = vst [vmem:[#allocation198_spill] sm:$0xff] %v13342_v26  ;;  %v4345_v25 = vmul.f32 %v13342_v26, %v11204_v1  ;;  %v4394_v49 = vrot.slane %v13273_v59, 6  ;;  %v4387_v6 = vsel %vm213_vm5, %v4386_v4, %v4385_v28  ;;  %v4391_v7 = vsel %vm198_vm0, %v13263_v45, %v4390_v40 }
 0x343   :  { %v4396_v34 = vrot.slane %v13281_v53, 5  ;;  %v4398_v57 = vrot.slane %v13285_v52, 4  ;;  %v13357_v48 = vsel %vm216_vm6, %v4388_v41, %v4387_v6  ;;  %v4393_v1 = vsel %vm201_vm1, %v4392_v14, %v4391_v7 }
 0x344   :  { %v4353_v36 = vadd.f32 %v4345_v25, %v4197_v54  ;;  %15316 = vst [vmem:[#allocation199_spill] sm:$0xff] %v13357_v48  ;;  %v4400_v13 = vrot.slane %v13291_v62, 3  ;;  %v4395_v3 = vsel %vm204_vm2, %v4394_v49, %v4393_v1  ;;  %v4402_v38 = vrot.slane %v13295_v35, 2 }
 0x345   :  { %v4436_v33 = vmul.f32 %v13357_v48, %v11229_v60  ;;  %v4468_v4 = vrot.slane %v13254_v30, 2  ;;  %v4397_v9 = vsel %vm207_vm3, %v4396_v34, %v4395_v3  ;;  %v4469_v54 = vrot.slane %v13261_v42, 1 }
 0x346   :  { %v4472_v19 = vrot.slane %v13270_v56, 7  ;;  %v4474_v0 = vrot.slane %v13275_v50, 6  ;;  %v4399_v41 = vsel %vm210_vm4, %v4398_v57, %v4397_v9  ;;  %v4476_v40 = vrot.slane %v13283_v44, 5 }
 0x347   :  { %v4444_v22 = vadd.f32 %v4436_v33, %v4352_v16  ;;  %v4478_v14 = vrot.slane %v13289_v63, 4  ;;  %v4401_v25 = vsel %vm213_vm5, %v4400_v13, %v4399_v41  ;;  %v4470_v60 = vsel %vm198_vm0, %v4469_v54, %v4468_v4 }
 0x348   :  { %v4480_v28 = vrot.slane %v13293_v32, 3  ;;  %v4482_v49 = vrot.slane %v13256_v23, 2  ;;  %v13378_v6 = vsel %vm216_vm6, %v4402_v38, %v4401_v25  ;;  %v4471_v7 = vsel %vm201_vm1, %v13266_v10, %v4470_v60 }
 0x349   :  { %15317 = vst [vmem:[#allocation200_spill] sm:$0xff] %v13378_v6  ;;  %v4483_v16 = vrot.slane %v13263_v45, 1  ;;  %v4486_v34 = vrot.slane %v13273_v59, 7  ;;  %v4437_v57 = vmul.f32 %v13378_v6, %v11235_v31  ;;  %v4473_v1 = vsel %vm204_vm2, %v4472_v19, %v4471_v7 }
 0x34a   :  { %v4488_v13 = vrot.slane %v13281_v53, 6  ;;  %v4490_v3 = vrot.slane %v13285_v52, 5  ;;  %v4475_v33 = vsel %vm207_vm3, %v4474_v0, %v4473_v1  ;;  %v4492_v4 = vrot.slane %v13291_v62, 4  ;;  %v15319_v1 = vld [vmem:[#allocation173_spill] sm:$0xff] }
 0x34b   :  { %v4484_v38 = vsel %vm198_vm0, %v4483_v16, %v4482_v49  ;;  %v4494_v9 = vrot.slane %v13295_v35, 3  ;;  %v4445_v54 = vadd.f32 %v4437_v57, %v4353_v36  ;;  %v4477_v41 = vsel %vm210_vm4, %v4476_v40, %v4475_v33 }
 0x34c   :  { %v4485_v31 = vsel %vm201_vm1, %v13268_v61, %v4484_v38  ;;  %v4560_v19 = vrot.slane %v13254_v30, 3  ;;  %v4479_v25 = vsel %vm213_vm5, %v4478_v14, %v4477_v41  ;;  %v4561_v0 = vrot.slane %v13261_v42, 2 }
 0x34d   :  { %v4487_v60 = vsel %vm204_vm2, %v4486_v34, %v4485_v31  ;;  %v4563_v49 = vrot.slane %v13266_v10, 1  ;;  %v13402_v7 = vsel %vm216_vm6, %v4480_v28, %v4479_v25  ;;  %v4566_v40 = vrot.slane %v13275_v50, 7 }
 0x34e   :  { %15318 = vst [vmem:[#allocation201_spill] sm:$0xff] %v13402_v7  ;;  %v4489_v36 = vsel %vm207_vm3, %v4488_v13, %v4487_v60  ;;  %v4568_v16 = vrot.slane %v13283_v44, 6  ;;  %v4528_v14 = vmul.f32 %v13402_v7, %v15319_v1  ;;  %v4562_v34 = vsel %vm198_vm0, %v4561_v0, %v4560_v19 }
 0x34f   :  { %v4491_v57 = vsel %vm210_vm4, %v4490_v3, %v4489_v36  ;;  %v4570_v33 = vrot.slane %v13289_v63, 5  ;;  %v4564_v28 = vsel %vm201_vm1, %v4563_v49, %v4562_v34  ;;  %v4572_v41 = vrot.slane %v13293_v32, 4 }
 0x350   :  { %v4493_v38 = vsel %vm213_vm5, %v4492_v4, %v4491_v57  ;;  %v4574_v13 = vrot.slane %v13256_v23, 3  ;;  %v4536_v25 = vadd.f32 %v4528_v14, %v4444_v22  ;;  %v4565_v3 = vsel %vm204_vm2, %v13270_v56, %v4564_v28 }
 0x351   :  { %v13417_v31 = vsel %vm216_vm6, %v4494_v9, %v4493_v38  ;;  %v4575_v60 = vrot.slane %v13263_v45, 2  ;;  %v4567_v4 = vsel %vm207_vm3, %v4566_v40, %v4565_v3  ;;  %v4577_v0 = vrot.slane %v13268_v61, 1  ;;  %v15322_v3 = vld [vmem:[#allocation175_spill] sm:$0xff] }
 0x352   :  { %15320 = vst [vmem:[#allocation173_spill] sm:$0xff] %v13417_v31  ;;  %v4529_v19 = vmul.f32 %v13417_v31, %v11289_v37  ;;  %v4580_v49 = vrot.slane %v13281_v53, 7  ;;  %v4569_v36 = vsel %vm210_vm4, %v4568_v16, %v4567_v4  ;;  %v4582_v22 = vrot.slane %v13285_v52, 6  ;;  %v15378_v31 = vld [vmem:[#allocation52_spill] sm:$0xff] }
 0x353   :  { %v4576_v9 = vsel %vm198_vm0, %v4575_v60, %v4574_v13  ;;  %v4584_v57 = vrot.slane %v13291_v62, 5  ;;  %v4571_v14 = vsel %vm213_vm5, %v4570_v33, %v4569_v36  ;;  %v4586_v37 = vrot.slane %v13295_v35, 4 }
 0x354   :  { %v4537_v1 = vadd.f32 %v4529_v19, %v4445_v54  ;;  %v4578_v34 = vsel %vm201_vm1, %v4577_v0, %v4576_v9  ;;  %v13435_v40 = vsel %vm216_vm6, %v4572_v41, %v4571_v14  ;;  %v4652_v16 = vrot.slane %v13254_v30, 4 }
 0x355   :  { %15321 = vst [vmem:[#allocation202_spill] sm:$0xff] %v13435_v40  ;;  %v4579_v38 = vsel %vm204_vm2, %v13273_v59, %v4578_v34  ;;  %v4653_v28 = vrot.slane %v13261_v42, 3  ;;  %v4620_v54 = vmul.f32 %v13435_v40, %v15322_v3  ;;  %v4655_v33 = vrot.slane %v13266_v10, 2 }
 0x356   :  { %v4581_v13 = vsel %vm207_vm3, %v4580_v49, %v4579_v38  ;;  %v4657_v60 = vrot.slane %v13270_v56, 1  ;;  %v4660_v4 = vrot.slane %v13283_v44, 7  ;;  %v4662_v0 = vrot.slane %v13289_v63, 6 }
 0x357   :  { %v4583_v19 = vsel %vm210_vm4, %v4582_v22, %v4581_v13  ;;  %v4654_v41 = vsel %vm198_vm0, %v4653_v28, %v4652_v16  ;;  %v4628_v9 = vadd.f32 %v4620_v54, %v4536_v25  ;;  %v4664_v14 = vrot.slane %v13293_v32, 5 }
 0x358   :  { %v4585_v36 = vsel %vm213_vm5, %v4584_v57, %v4583_v19  ;;  %v4656_v49 = vsel %vm201_vm1, %v4655_v33, %v4654_v41  ;;  %v4666_v22 = vrot.slane %v13256_v23, 4  ;;  %v4667_v16 = vrot.slane %v13263_v45, 3 }
 0x359   :  { %v13454_v34 = vsel %vm216_vm6, %v4586_v37, %v4585_v36  ;;  %v4658_v38 = vsel %vm204_vm2, %v4657_v60, %v4656_v49  ;;  %v4669_v25 = vrot.slane %v13268_v61, 2  ;;  %v4671_v13 = vrot.slane %v13273_v59, 1 }
 0x35a   :  { %15323 = vst [vmem:[#allocation175_spill] sm:$0xff] %v13454_v34  ;;  %v4621_v28 = vmul.f32 %v13454_v34, %v11328_v27  ;;  %v4659_v57 = vsel %vm207_vm3, %v13275_v50, %v4658_v38  ;;  %v4668_v37 = vsel %vm198_vm0, %v4667_v16, %v4666_v22  ;;  %v4674_v54 = vrot.slane %v13285_v52, 7  ;;  %v15325_v16 = vld [vmem:[#allocation179_spill] sm:$0xff] }
 0x35b   :  { %v4661_v3 = vsel %vm210_vm4, %v4660_v4, %v4659_v57  ;;  %v4676_v33 = vrot.slane %v13291_v62, 6  ;;  %v4670_v27 = vsel %vm201_vm1, %v4669_v25, %v4668_v37  ;;  %v4678_v41 = vrot.slane %v13295_v35, 5 }
 0x35c   :  { %v4629_v60 = vadd.f32 %v4621_v28, %v4537_v1  ;;  %v4663_v19 = vsel %vm213_vm5, %v4662_v0, %v4661_v3  ;;  %v4672_v49 = vsel %vm204_vm2, %v4671_v13, %v4670_v27  ;;  %v4744_v4 = vrot.slane %v13254_v30, 5 }
 0x35d   :  { %v13473_v36 = vsel %vm216_vm6, %v4664_v14, %v4663_v19  ;;  %v4745_v38 = vrot.slane %v13261_v42, 4  ;;  %v4673_v22 = vsel %vm207_vm3, %v13281_v53, %v4672_v49  ;;  %v4747_v0 = vrot.slane %v13266_v10, 3 }
 0x35e   :  { %15324 = vst [vmem:[#allocation203_spill] sm:$0xff] %v13473_v36  ;;  %v4712_v1 = vmul.f32 %v13473_v36, %v15325_v16  ;;  %v4749_v28 = vrot.slane %v13270_v56, 2  ;;  %v4675_v57 = vsel %vm210_vm4, %v4674_v54, %v4673_v22  ;;  %v4751_v25 = vrot.slane %v13275_v50, 1 }
 0x35f   :  { %v4746_v14 = vsel %vm198_vm0, %v4745_v38, %v4744_v4  ;;  %v4754_v13 = vrot.slane %v13289_v63, 7  ;;  %v4677_v3 = vsel %vm213_vm5, %v4676_v33, %v4675_v57  ;;  %v4756_v27 = vrot.slane %v13293_v32, 6 }
 0x360   :  { %v4720_v37 = vadd.f32 %v4712_v1, %v4628_v9  ;;  %v4748_v19 = vsel %vm201_vm1, %v4747_v0, %v4746_v14  ;;  %v13492_v49 = vsel %vm216_vm6, %v4678_v41, %v4677_v3  ;;  %v4758_v54 = vrot.slane %v13256_v23, 5 }
 0x361   :  { %15326 = vst [vmem:[#allocation179_spill] sm:$0xff] %v13492_v49  ;;  %v4750_v16 = vsel %vm204_vm2, %v4749_v28, %v4748_v19  ;;  %v4759_v4 = vrot.slane %v13263_v45, 4  ;;  %v4713_v38 = vmul.f32 %v13492_v49, %v11378_v39  ;;  %v4761_v9 = vrot.slane %v13268_v61, 3  ;;  %v15364_v49 = vld [vmem:[#allocation40_spill] sm:$0xff] }
 0x362   :  { %v4752_v22 = vsel %vm207_vm3, %v4751_v25, %v4750_v16  ;;  %v4763_v33 = vrot.slane %v13273_v59, 2  ;;  %v4765_v0 = vrot.slane %v13281_v53, 1  ;;  %v4768_v28 = vrot.slane %v13291_v62, 7 }
 0x363   :  { %v4753_v1 = vsel %vm210_vm4, %v13283_v44, %v4752_v22  ;;  %v4760_v41 = vsel %vm198_vm0, %v4759_v4, %v4758_v54  ;;  %v4721_v57 = vadd.f32 %v4713_v38, %v4629_v60  ;;  %v4770_v25 = vrot.slane %v13295_v35, 6  ;;  %v15328_v22 = vld [vmem:[#allocation181_spill] sm:$0xff] }
 0x364   :  { %v4755_v14 = vsel %vm213_vm5, %v4754_v13, %v4753_v1  ;;  %v4762_v39 = vsel %vm201_vm1, %v4761_v9, %v4760_v41  ;;  %v4836_v16 = vrot.slane %v13254_v30, 6  ;;  %v4837_v54 = vrot.slane %v13261_v42, 5 }
 0x365   :  { %v13511_v3 = vsel %vm216_vm6, %v4756_v27, %v4755_v14  ;;  %v4764_v19 = vsel %vm204_vm2, %v4763_v33, %v4762_v39  ;;  %v4839_v13 = vrot.slane %v13266_v10, 4  ;;  %v4841_v38 = vrot.slane %v13270_v56, 3 }
 0x366   :  { %15327 = vst [vmem:[#allocation204_spill] sm:$0xff] %v13511_v3  ;;  %v4766_v4 = vsel %vm207_vm3, %v4765_v0, %v4764_v19  ;;  %v4804_v60 = vmul.f32 %v13511_v3, %v15328_v22  ;;  %v4838_v27 = vsel %vm198_vm0, %v4837_v54, %v4836_v16  ;;  %v4843_v33 = vrot.slane %v13275_v50, 2 }
 0x367   :  { %v4767_v9 = vsel %vm210_vm4, %v13285_v52, %v4766_v4  ;;  %v4845_v1 = vrot.slane %v13283_v44, 1  ;;  %v4840_v0 = vsel %vm201_vm1, %v4839_v13, %v4838_v27  ;;  %v4848_v39 = vrot.slane %v13293_v32, 7 }
 0x368   :  { %v4769_v41 = vsel %vm213_vm5, %v4768_v28, %v4767_v9  ;;  %v4812_v14 = vadd.f32 %v4804_v60, %v4720_v37  ;;  %v4842_v22 = vsel %vm204_vm2, %v4841_v38, %v4840_v0  ;;  %v4850_v4 = vrot.slane %v13256_v23, 6 }
 0x369   :  { %v13530_v19 = vsel %vm216_vm6, %v4770_v25, %v4769_v41  ;;  %v4851_v16 = vrot.slane %v13263_v45, 5  ;;  %v4844_v3 = vsel %vm207_vm3, %v4843_v33, %v4842_v22  ;;  %v4853_v37 = vrot.slane %v13268_v61, 4 }
 0x36a   :  { %15329 = vst [vmem:[#allocation181_spill] sm:$0xff] %v13530_v19  ;;  %v4805_v54 = vmul.f32 %v13530_v19, %v11419_v12  ;;  %v4855_v28 = vrot.slane %v13273_v59, 3  ;;  %v4846_v60 = vsel %vm210_vm4, %v4845_v1, %v4844_v3  ;;  %v4857_v13 = vrot.slane %v13281_v53, 2 }
 0x36b   :  { %v4852_v25 = vsel %vm198_vm0, %v4851_v16, %v4850_v4  ;;  %v4859_v38 = vrot.slane %v13285_v52, 1  ;;  %v4847_v27 = vsel %vm213_vm5, %v13289_v63, %v4846_v60  ;;  %v4862_v33 = vrot.slane %v13295_v35, 7 }
 0x36c   :  { %v4813_v9 = vadd.f32 %v4805_v54, %v4721_v57  ;;  %v4854_v12 = vsel %vm201_vm1, %v4853_v37, %v4852_v25  ;;  %v13549_v41 = vsel %vm216_vm6, %v4848_v39, %v4847_v27  ;;  %v4928_v3 = vrot.slane %v13254_v30, 7  ;;  %v81_v27 = vld [vmem:[#allocation3 + $0x60] sm:$0xff] }
 0x36d   :  { %15330 = vst [vmem:[#allocation205_spill] sm:$0xff] %v13549_v41  ;;  %v4856_v0 = vsel %vm204_vm2, %v4855_v28, %v4854_v12  ;;  %v4929_v1 = vrot.slane %v13261_v42, 6  ;;  %v4896_v57 = vmul.f32 %v13549_v41, %v11465_v29  ;;  %v4931_v4 = vrot.slane %v13266_v10, 5  ;;  %v15361_v41 = vld [vmem:[#allocation23_spill] sm:$0xff] }
 0x36e   :  { %v4858_v22 = vsel %vm207_vm3, %v4857_v13, %v4856_v0  ;;  %v4933_v16 = vrot.slane %v13270_v56, 4  ;;  %v4935_v37 = vrot.slane %v13275_v50, 3  ;;  %v4937_v28 = vrot.slane %v13283_v44, 2 }
 0x36f   :  { %v4860_v54 = vsel %vm210_vm4, %v4859_v38, %v4858_v22  ;;  %v4930_v39 = vsel %vm198_vm0, %v4929_v1, %v4928_v3  ;;  %v4904_v42 = vadd.f32 %v4896_v57, %v4812_v14  ;;  %v4939_v29 = vrot.slane %v13289_v63, 1  ;;  %v13578_v63 = vld [vmem:[#allocation3 + $0x68] sm:$0xff] }
 0x370   :  { %v4861_v30 = vsel %vm213_vm5, %v13291_v62, %v4860_v54  ;;  %v4932_v60 = vsel %vm201_vm1, %v4931_v4, %v4930_v39  ;;  %v4942_v25 = vrot.slane %v13256_v23, 7  ;;  %v4943_v13 = vrot.slane %v13263_v45, 6  ;;  %v15333_v22 = vld [vmem:[#allocation16_spill] sm:$0xff]  ;;  %v15334_v4 = vld [vmem:[#allocation17_spill] sm:$0xff] }
 0x371   :  { %v13568_v10 = vsel %vm216_vm6, %v4862_v33, %v4861_v30  ;;  %v4934_v56 = vsel %vm204_vm2, %v4933_v16, %v4932_v60  ;;  %v4945_v14 = vrot.slane %v13268_v61, 5  ;;  %v4947_v38 = vrot.slane %v13273_v59, 4  ;;  %v15335_v54 = vld [vmem:[#allocation24_spill] sm:$0xff]  ;;  %v15337_v30 = vld [vmem:[#allocation18_spill] sm:$0xff] }
 0x372   :  { %15331 = vst [vmem:[#allocation206_spill] sm:$0xff] %v13568_v10  ;;  %v4897_v50 = vmul.f32 %v13568_v10, %v11469_v20  ;;  %v4936_v44 = vsel %vm207_vm3, %v4935_v37, %v4934_v56  ;;  %v4944_v33 = vsel %vm198_vm0, %v4943_v13, %v4942_v25  ;;  %v4949_v23 = vrot.slane %v13281_v53, 3  ;;  %v15336_v37 = vld [vmem:[#allocation25_spill] sm:$0xff]  ;;  %v15338_v56 = vld [vmem:[#allocation26_spill] sm:$0xff]  ;;  %v15339_v13 = vld [vmem:[#allocation27_spill] sm:$0xff] }
 0x373   :  { %v4938_v12 = vsel %vm210_vm4, %v4937_v28, %v4936_v44  ;;  %v4951_v45 = vrot.slane %v13285_v52, 2  ;;  %v4946_v3 = vsel %vm201_vm1, %v4945_v14, %v4944_v33  ;;  %v4953_v61 = vrot.slane %v13291_v62, 1  ;;  %v13629_v14 = vld [vmem:[%s14651_s2] sm:$0xff] }
 0x374   :  { %v4905_v0 = vadd.f32 %v4897_v50, %v4813_v9  ;;  %v4940_v20 = vsel %vm213_vm5, %v4939_v29, %v4938_v12  ;;  %v4948_v1 = vsel %vm204_vm2, %v4947_v38, %v4946_v3  ;;  %v13593_v57 = vrot.slane %v81_v27, %v15333_v22  ;;  %15341 = vst [vmem:[#allocation17_spill] sm:$0xff] %v13629_v14  ;;  %v15343_v33 = vld [vmem:[#allocation19_spill] sm:$0xff] }
 0x375   :  { %v13589_v59 = vsel %vm216_vm6, %v13293_v32, %v4940_v20  ;;  %v13597_v53 = vrot.slane %v13578_v63, %v15333_v22  ;;  %v4950_v52 = vsel %vm207_vm3, %v4949_v23, %v4948_v1  ;;  %v13603_v62 = vrot.slane %v81_v27, %v15334_v4 }
 0x376   :  { %15332 = vst [vmem:[#allocation207_spill] sm:$0xff] %v13589_v59  ;;  %v4988_v9 = vmul.f32 %v13589_v59, %v11507_v24  ;;  %v13607_v32 = vrot.slane %v13578_v63, %v15334_v4  ;;  %v4952_v16 = vsel %vm210_vm4, %v4951_v45, %v4950_v52  ;;  %v270_v39 = vmul.f32 %v15335_v54, %v13593_v57  ;;  %v15346_v54 = vld [vmem:[#allocation20_spill] sm:$0xff] }
 0x377   :  { %v271_v28 = vmul.f32 %v15336_v37, %v13597_v53  ;;  %v13615_v60 = vrot.slane %v81_v27, %v15337_v30  ;;  %v4954_v24 = vsel %vm213_vm5, %v4953_v61, %v4952_v16  ;;  %v362_v25 = vmul.f32 %v15338_v56, %v13603_v62  ;;  %v15344_v61 = vld [vmem:[#allocation29_spill] sm:$0xff] }
 0x378   :  { %v4996_v29 = vadd.f32 %v4988_v9, %v4904_v42  ;;  %v363_v50 = vmul.f32 %v15339_v13, %v13607_v32  ;;  %v13624_v44 = vsel %vm216_vm6, %v13295_v35, %v4954_v24  ;;  %v13633_v38 = vrot.slane %v13578_v63, %v15337_v30  ;;  %v15342_v42 = vld [vmem:[#allocation28_spill] sm:$0xff]  ;;  %v15345_v9 = vld [vmem:[#allocation30_spill] sm:$0xff] }
 0x379   :  { %15340 = vst [vmem:[#allocation16_spill] sm:$0xff] %v13624_v44  ;;  %v454_v12 = vmul.f32 %v15342_v42, %v13615_v60  ;;  %v13638_v23 = vrot.slane %v81_v27, %v15343_v33  ;;  %v4989_v45 = vmul.f32 %v13624_v44, %v11511_v5  ;;  %v370_v20 = vadd.f32 %v362_v25, %v270_v39  ;;  %v15349_v25 = vld [vmem:[#allocation31_spill] sm:$0xff]  ;;  %v15351_v42 = vld [vmem:[#allocation21_spill] sm:$0xff]  ;;  %v15356_v44 = vld [vmem:[#allocation22_spill] sm:$0xff] }
 0x37a   :  { %v5005_v35 = vmul.f32 %v11558_v46, %v4996_v29  ;;  %v371_v3 = vadd.f32 %v363_v50, %v271_v28  ;;  %v455_v1 = vmul.f32 %v15344_v61, %v13633_v38  ;;  %v13647_v52 = vrot.slane %v13578_v63, %v15343_v33  ;;  %v13664_v28 = vld [vmem:[%s14651_s2 + $0x8] sm:$0xff] }
 0x37b   :  { %v546_v16 = vmul.f32 %v15345_v9, %v13638_v23  ;;  %v13652_v37 = vrot.slane %v81_v27, %v15346_v54  ;;  %v4997_v24 = vadd.f32 %v4989_v45, %v4905_v0  ;;  %v462_v29 = vadd.f32 %v454_v12, %v370_v20  ;;  %15348 = vst [vmem:[#allocation25_spill] sm:$0xff] %v13664_v28  ;;  %v15350_v50 = vld [vmem:[#allocation32_spill] sm:$0xff]  ;;  %v15353_v20 = vld [vmem:[#allocation33_spill] sm:$0xff] }
 0x37c   :  { %v13655_v5 = vadd.f32 %v13629_v14, %v5005_v35  ;;  %v13659_v39 = vrot.slane %v13578_v63, %v15346_v54  ;;  %v463_v56 = vadd.f32 %v455_v1, %v371_v3  ;;  %v547_v13 = vmul.f32 %v15349_v25, %v13647_v52  ;;  %v83_v3 = vld [vmem:[#allocation3 + $0x70] sm:$0xff] }
 0x37d   :  { %v638_v0 = vmul.f32 %v15350_v50, %v13652_v37  ;;  %v13671_v45 = vrot.slane %v81_v27, %v15351_v42  ;;  %v5006_v12 = vmul.f32 %v11558_v46, %v4997_v24  ;;  %v554_v35 = vadd.f32 %v546_v16, %v462_v29  ;;  %v15355_v25 = vld [vmem:[#allocation34_spill] sm:$0xff] }
 0x37e   :  { %15347 = vst [vmem:[#allocation24_spill] sm:$0xff] %v13655_v5  ;;  %v639_v61 = vmul.f32 %v15353_v20, %v13659_v39  ;;  %v13678_v9 = vrot.slane %v13578_v63, %v15351_v42  ;;  %v555_v1 = vadd.f32 %v547_v13, %v463_v56  ;;  %v13683_v50 = vrot.slane %v81_v27, %v15356_v44  ;;  %v84_v24 = vld [vmem:[#allocation3 + $0x78] sm:$0xff]  ;;  %v15360_v20 = vld [vmem:[#allocation36_spill] sm:$0xff] }
 0x37f   :  { %15352 = vst [vmem:[#allocation18_spill] sm:$0xff] %v13671_v45  ;;  %v730_v14 = vmul.f32 %v15355_v25, %v13671_v45  ;;  %v13687_v59 = vrot.slane %v13578_v63, %v15356_v44  ;;  %v13690_v16 = vadd.f32 %v13664_v28, %v5006_v12  ;;  %v646_v29 = vadd.f32 %v638_v0, %v554_v35  ;;  %v15363_v25 = vld [vmem:[#allocation39_spill] sm:$0xff]  ;;  %v15366_v35 = vld [vmem:[#allocation41_spill] sm:$0xff] }
 0x380   :  { %15354 = vst [vmem:[#allocation26_spill] sm:$0xff] %v13678_v9  ;;  %15357 = vst [vmem:[#allocation27_spill] sm:$0xff] %v13683_v50  ;;  %v731_v10 = vmul.f32 %v15360_v20, %v13678_v9  ;;  %v13695_v56 = vrot.slane %v81_v27, %v15361_v41  ;;  %v647_v13 = vadd.f32 %v639_v61, %v555_v1  ;;  %v15368_v1 = vld [vmem:[#allocation42_spill] sm:$0xff] }
 0x381   :  { %15358 = vst [vmem:[#allocation28_spill] sm:$0xff] %v13687_v59  ;;  %15359 = vst [vmem:[#allocation19_spill] sm:$0xff] %v13690_v16  ;;  %v822_v19 = vmul.f32 %v15363_v25, %v13683_v50  ;;  %v823_v36 = vmul.f32 %v15364_v49, %v13687_v59  ;;  %v13703_v34 = vrot.slane %v13578_v63, %v15361_v41  ;;  %v15468_v50 = vld [vmem:[#allocation137_spill] sm:$0xff] }
 0x382   :  { %15362 = vst [vmem:[#allocation29_spill] sm:$0xff] %v13695_v56  ;;  %v5025_v0 = vadd.f32 %v13690_v16, %v13655_v5  ;;  %v738_v12 = vadd.f32 %v730_v14, %v646_v29  ;;  %v914_v20 = vmul.f32 %v15366_v35, %v13695_v56  ;;  %v13710_v27 = vrot.slane %v83_v3, %v15333_v22  ;;  %v15371_v14 = vld [vmem:[#allocation47_spill] sm:$0xff] }
 0x383   :  { %15365 = vst [vmem:[#allocation30_spill] sm:$0xff] %v13703_v34  ;;  %v739_v61 = vadd.f32 %v731_v10, %v647_v13  ;;  %v915_v25 = vmul.f32 %v15368_v1, %v13703_v34  ;;  %v13715_v49 = vrot.slane %v84_v24, %v15333_v22  ;;  %v13718_v63 = vrot.slane %v83_v3, %v15334_v4  ;;  %v15374_v13 = vld [vmem:[#allocation48_spill] sm:$0xff] }
 0x384   :  { %15367 = vst [vmem:[#allocation20_spill] sm:$0xff] %v13710_v27  ;;  %5026 = vadd.xlane.f32.xlu0 %v5025_v0  ;;  %v830_v28 = vadd.f32 %v822_v19, %v738_v12  ;;  %v1070_v29 = vmul.f32 %v15371_v14, %v13710_v27  ;;  %v13723_v35 = vrot.slane %v84_v24, %v15334_v4  ;;  %v15376_v0 = vld [vmem:[#allocation49_spill] sm:$0xff]  ;;  %v15445_v34 = vld [vmem:[#allocation116_spill] sm:$0xff] }
 0x385   :  { %15369 = vst [vmem:[#allocation31_spill] sm:$0xff] %v13715_v49  ;;  %15370 = vst [vmem:[#allocation32_spill] sm:$0xff] %v13718_v63  ;;  %v13726_v16 = vrot.slane %v83_v3, %v15337_v30  ;;  %v831_v10 = vadd.f32 %v823_v36, %v739_v61  ;;  %v1071_v1 = vmul.f32 %v15374_v13, %v13715_v49  ;;  %v15380_v61 = vld [vmem:[#allocation55_spill] sm:$0xff] }
 0x386   :  { %15372 = vst [vmem:[#allocation33_spill] sm:$0xff] %v13723_v35  ;;  %v13731_v5 = vrot.slane %v84_v24, %v15337_v30  ;;  %v922_v40 = vadd.f32 %v914_v20, %v830_v28  ;;  %v1162_v19 = vmul.f32 %v15376_v0, %v13718_v63  ;;  %v13736_v12 = vrot.slane %v83_v3, %v15343_v33  ;;  %v15382_v20 = vld [vmem:[#allocation56_spill] sm:$0xff] }
 0x387   :  { %15373 = vst [vmem:[#allocation34_spill] sm:$0xff] %v13726_v16  ;;  %v923_v14 = vadd.f32 %v915_v25, %v831_v10  ;;  %v1163_v7 = vmul.f32 %v15378_v31, %v13723_v35  ;;  %v13741_v6 = vrot.slane %v84_v24, %v15343_v33  ;;  %v1254_v13 = vmul.f32 %v15380_v61, %v13726_v16  ;;  %v15384_v31 = vld [vmem:[#allocation57_spill] sm:$0xff]  ;;  %v15424_v16 = vld [vmem:[#allocation96_spill] sm:$0xff] }
 0x388   :  { %15375 = vst [vmem:[#allocation36_spill] sm:$0xff] %v13731_v5  ;;  %15377 = vst [vmem:[#allocation39_spill] sm:$0xff] %v13736_v12  ;;  %v1078_v36 = vadd.f32 %v1070_v29, %v922_v40  ;;  %v13746_v48 = vrot.slane %v83_v3, %v15346_v54  ;;  %v1255_v0 = vmul.f32 %v15382_v20, %v13731_v5  ;;  %v15386_v29 = vld [vmem:[#allocation60_spill] sm:$0xff] }
 0x389   :  { %15379 = vst [vmem:[#allocation40_spill] sm:$0xff] %v13741_v6  ;;  %v1079_v28 = vadd.f32 %v1071_v1, %v923_v14  ;;  %v13751_v26 = vrot.slane %v84_v24, %v15346_v54  ;;  %v1346_v10 = vmul.f32 %v15384_v31, %v13736_v12  ;;  %v13756_v15 = vrot.slane %v83_v3, %v15351_v42  ;;  %v15388_v14 = vld [vmem:[#allocation63_spill] sm:$0xff] }
 0x38a   :  { %15381 = vst [vmem:[#allocation41_spill] sm:$0xff] %v13746_v48  ;;  %v1170_v25 = vadd.f32 %v1162_v19, %v1078_v36  ;;  %v1347_v61 = vmul.f32 %v15386_v29, %v13741_v6  ;;  %v13761_v2 = vrot.slane %v84_v24, %v15351_v42  ;;  %v1438_v20 = vmul.f32 %v15388_v14, %v13746_v48  ;;  %v15390_v36 = vld [vmem:[#allocation64_spill] sm:$0xff]  ;;  %v15392_v29 = vld [vmem:[#allocation65_spill] sm:$0xff] }
 0x38b   :  { %15383 = vst [vmem:[#allocation42_spill] sm:$0xff] %v13751_v26  ;;  %15385 = vst [vmem:[#allocation47_spill] sm:$0xff] %v13756_v15  ;;  %v1171_v40 = vadd.f32 %v1163_v7, %v1079_v28  ;;  %v13766_v46 = vrot.slane %v83_v3, %v15356_v44  ;;  %v1439_v31 = vmul.f32 %v15390_v36, %v13751_v26  ;;  %v1728_v7 = vld [vmem:[#allocation3 + $0x80] sm:$0xff] }
 0x38c   :  { %15387 = vst [vmem:[#allocation48_spill] sm:$0xff] %v13761_v2  ;;  %v1262_v1 = vadd.f32 %v1254_v13, %v1170_v25  ;;  %v13771_v12 = vrot.slane %v84_v24, %v15356_v44  ;;  %v1530_v6 = vmul.f32 %v15392_v29, %v13756_v15  ;;  %v13776_v13 = vrot.slane %v83_v3, %v15361_v41  ;;  %v1729_v25 = vld [vmem:[#allocation3 + $0x88] sm:$0xff]  ;;  %v15396_v36 = vld [vmem:[#allocation71_spill] sm:$0xff] }
 0x38d   :  { %15389 = vst [vmem:[#allocation49_spill] sm:$0xff] %v13766_v46  ;;  %v1263_v19 = vadd.f32 %v1255_v0, %v1171_v40  ;;  %v15394_v48 = vld [vmem:[#allocation68_spill] sm:$0xff]  ;;  %v13781_v0 = vrot.slane %v84_v24, %v15361_v41  ;;  %v1622_v26 = vmul.f32 %v15396_v36, %v13766_v46  ;;  %v13791_v15 = vrot.slane %v1729_v25, %v15333_v22 }
 0x38e   :  { %15391 = vst [vmem:[#allocation52_spill] sm:$0xff] %v13771_v12  ;;  %v1354_v28 = vadd.f32 %v1346_v10, %v1262_v1  ;;  %15393 = vst [vmem:[#allocation55_spill] sm:$0xff] %v13776_v13  ;;  %v1531_v5 = vmul.f32 %v15394_v48, %v13761_v2  ;;  %v13786_v10 = vrot.slane %v1728_v7, %v15333_v22  ;;  %v15398_v29 = vld [vmem:[#allocation72_spill] sm:$0xff]  ;;  %v15400_v48 = vld [vmem:[#allocation73_spill] sm:$0xff] }
 0x38f   :  { %v1355_v14 = vadd.f32 %v1347_v61, %v1263_v19  ;;  %15395 = vst [vmem:[#allocation56_spill] sm:$0xff] %v13781_v0  ;;  %v1623_v3 = vmul.f32 %v15398_v29, %v13771_v12  ;;  %15399 = vst [vmem:[#allocation60_spill] sm:$0xff] %v13791_v15  ;;  %v1714_v19 = vmul.f32 %v15400_v48, %v13776_v13 }
 0x390   :  { %v1446_v40 = vadd.f32 %v1438_v20, %v1354_v28  ;;  %15397 = vst [vmem:[#allocation57_spill] sm:$0xff] %v13786_v10  ;;  %v13796_v24 = vrot.slane %v1728_v7, %v15334_v4  ;;  %v15402_v28 = vld [vmem:[#allocation74_spill] sm:$0xff]  ;;  %v13801_v46 = vrot.slane %v1729_v25, %v15334_v4  ;;  %v13806_v12 = vrot.slane %v1728_v7, %v15337_v30 }
 0x391   :  { %v1447_v1 = vadd.f32 %v1439_v31, %v1355_v14  ;;  %v1715_v36 = vmul.f32 %v15402_v28, %v13781_v0  ;;  %v15404_v14 = vld [vmem:[#allocation79_spill] sm:$0xff]  ;;  %v13811_v13 = vrot.slane %v1729_v25, %v15337_v30  ;;  %v15409_v28 = vld [vmem:[#allocation81_spill] sm:$0xff]  ;;  %v13821_v0 = vrot.slane %v1729_v25, %v15343_v33 }
 0x392   :  { %v1538_v61 = vadd.f32 %v1530_v6, %v1446_v40  ;;  %15401 = vst [vmem:[#allocation63_spill] sm:$0xff] %v13796_v24  ;;  %15403 = vst [vmem:[#allocation64_spill] sm:$0xff] %v13801_v46  ;;  %v1910_v29 = vmul.f32 %v15404_v14, %v13786_v10  ;;  %v15406_v40 = vld [vmem:[#allocation80_spill] sm:$0xff] }
 0x393   :  { %v1539_v20 = vadd.f32 %v1531_v5, %v1447_v1  ;;  %15405 = vst [vmem:[#allocation65_spill] sm:$0xff] %v13806_v12  ;;  %v1911_v48 = vmul.f32 %v15406_v40, %v13791_v15  ;;  %15407 = vst [vmem:[#allocation68_spill] sm:$0xff] %v13811_v13  ;;  %v13814_v5 = vrot.slane %v1728_v7, %v15343_v33  ;;  %v15410_v14 = vld [vmem:[#allocation84_spill] sm:$0xff] }
 0x394   :  { %v1630_v31 = vadd.f32 %v1622_v26, %v1538_v61  ;;  %v2002_v26 = vmul.f32 %v15409_v28, %v13796_v24  ;;  %v2003_v10 = vmul.f32 %v15410_v14, %v13801_v46  ;;  %15411 = vst [vmem:[#allocation72_spill] sm:$0xff] %v13821_v0  ;;  %v13826_v15 = vrot.slane %v1728_v7, %v15346_v54  ;;  %v15415_v28 = vld [vmem:[#allocation89_spill] sm:$0xff] }
 0x395   :  { %v1631_v6 = vadd.f32 %v1623_v3, %v1539_v20  ;;  %15408 = vst [vmem:[#allocation71_spill] sm:$0xff] %v13814_v5  ;;  %v15412_v20 = vld [vmem:[#allocation87_spill] sm:$0xff]  ;;  %v13836_v46 = vrot.slane %v1728_v7, %v15351_v42 }
 0x396   :  { %v1722_v1 = vadd.f32 %v1714_v19, %v1630_v31  ;;  %v2094_v40 = vmul.f32 %v15412_v20, %v13806_v12  ;;  %15413 = vst [vmem:[#allocation73_spill] sm:$0xff] %v13826_v15  ;;  %v15414_v19 = vld [vmem:[#allocation88_spill] sm:$0xff]  ;;  %v1731_v12 = vld [vmem:[#allocation3 + $0x98] sm:$0xff] }
 0x397   :  { %v1723_v61 = vadd.f32 %v1715_v36, %v1631_v6  ;;  %v2095_v31 = vmul.f32 %v15414_v19, %v13811_v13  ;;  %v2186_v36 = vmul.f32 %v15415_v28, %v13814_v5  ;;  %v13833_v6 = vrot.slane %v1729_v25, %v15346_v54  ;;  %15417 = vst [vmem:[#allocation79_spill] sm:$0xff] %v13836_v46  ;;  %v1730_v28 = vld [vmem:[#allocation3 + $0x90] sm:$0xff] }
 0x398   :  { %v1918_v3 = vadd.f32 %v1910_v29, %v1722_v1  ;;  %v13839_v29 = vrot.slane %v1729_v25, %v15351_v42  ;;  %v13842_v1 = vrot.slane %v1728_v7, %v15356_v44  ;;  %v13847_v19 = vrot.slane %v1729_v25, %v15356_v44 }
 0x399   :  { %v1919_v2 = vadd.f32 %v1911_v48, %v1723_v61  ;;  %15416 = vst [vmem:[#allocation74_spill] sm:$0xff] %v13833_v6  ;;  %v15420_v61 = vld [vmem:[#allocation92_spill] sm:$0xff]  ;;  %v13852_v13 = vrot.slane %v1728_v7, %v15361_v41  ;;  %v2279_v35 = vmul.f32 %v15424_v16, %v13833_v6 }
 0x39a   :  { %v2010_v14 = vadd.f32 %v2002_v26, %v1918_v3  ;;  %15418 = vst [vmem:[#allocation80_spill] sm:$0xff] %v13839_v29  ;;  %15419 = vst [vmem:[#allocation81_spill] sm:$0xff] %v13842_v1  ;;  %v2187_v20 = vmul.f32 %v15420_v61, %v13821_v0  ;;  %v15422_v26 = vld [vmem:[#allocation95_spill] sm:$0xff]  ;;  %v15426_v0 = vld [vmem:[#allocation100_spill] sm:$0xff] }
 0x39b   :  { %v2011_v48 = vadd.f32 %v2003_v10, %v1919_v2  ;;  %15421 = vst [vmem:[#allocation84_spill] sm:$0xff] %v13847_v19  ;;  %v2278_v3 = vmul.f32 %v15422_v26, %v13826_v15  ;;  %15423 = vst [vmem:[#allocation87_spill] sm:$0xff] %v13852_v13  ;;  %v15425_v10 = vld [vmem:[#allocation97_spill] sm:$0xff]  ;;  %v2371_v63 = vmul.f32 %v15426_v0, %v13839_v29  ;;  %v15428_v26 = vld [vmem:[#allocation104_spill] sm:$0xff] }
 0x39c   :  { %v2102_v5 = vadd.f32 %v2094_v40, %v2010_v14  ;;  %v2370_v61 = vmul.f32 %v15425_v10, %v13836_v46  ;;  %v15427_v40 = vld [vmem:[#allocation103_spill] sm:$0xff]  ;;  %v2463_v7 = vmul.f32 %v15428_v26, %v13847_v19  ;;  %v13865_v15 = vrot.slane %v1729_v25, %v15361_v41  ;;  %v15444_v46 = vld [vmem:[#allocation113_spill] sm:$0xff] }
 0x39d   :  { %v2103_v24 = vadd.f32 %v2095_v31, %v2011_v48  ;;  %v2462_v14 = vmul.f32 %v15427_v40, %v13842_v1  ;;  %v13868_v31 = vrot.slane %v1730_v28, %v15333_v22  ;;  %v13873_v48 = vrot.slane %v1731_v12, %v15333_v22  ;;  %v15442_v1 = vld [vmem:[#allocation111_spill] sm:$0xff] }
 0x39e   :  { %v2194_v2 = vadd.f32 %v2186_v36, %v2102_v5  ;;  %15429 = vst [vmem:[#allocation88_spill] sm:$0xff] %v13865_v15  ;;  %v15431_v5 = vld [vmem:[#allocation105_spill] sm:$0xff]  ;;  %v13876_v0 = vrot.slane %v1730_v28, %v15334_v4  ;;  %v13882_v25 = vrot.slane %v1730_v28, %v15337_v30  ;;  %v13885_v10 = vrot.slane %v1731_v12, %v15337_v30 }
 0x39f   :  { %v2195_v49 = vadd.f32 %v2187_v20, %v2103_v24  ;;  %15430 = vst [vmem:[#allocation89_spill] sm:$0xff] %v13868_v31  ;;  %v2554_v36 = vmul.f32 %v15431_v5, %v13852_v13  ;;  %15432 = vst [vmem:[#allocation92_spill] sm:$0xff] %v13873_v48  ;;  %v13879_v20 = vrot.slane %v1731_v12, %v15334_v4 }
 0x3a0   :  { %v2286_v16 = vadd.f32 %v2278_v3, %v2194_v2  ;;  %15433 = vst [vmem:[#allocation95_spill] sm:$0xff] %v13876_v0  ;;  %15435 = vst [vmem:[#allocation97_spill] sm:$0xff] %v13882_v25  ;;  %v13888_v2 = vrot.slane %v1730_v28, %v15343_v33  ;;  %v13891_v40 = vrot.slane %v1731_v12, %v15343_v33 }
 0x3a1   :  { %v2287_v24 = vadd.f32 %v2279_v35, %v2195_v49  ;;  %15434 = vst [vmem:[#allocation96_spill] sm:$0xff] %v13879_v20  ;;  %15436 = vst [vmem:[#allocation100_spill] sm:$0xff] %v13885_v10  ;;  %v13894_v26 = vrot.slane %v1730_v28, %v15346_v54  ;;  %v15440_v35 = vld [vmem:[#allocation106_spill] sm:$0xff]  ;;  %v13899_v13 = vrot.slane %v1731_v12, %v15346_v54 }
 0x3a2   :  { %v2378_v3 = vadd.f32 %v2370_v61, %v2286_v16  ;;  %15437 = vst [vmem:[#allocation103_spill] sm:$0xff] %v13888_v2  ;;  %15438 = vst [vmem:[#allocation104_spill] sm:$0xff] %v13891_v40  ;;  %v2555_v5 = vmul.f32 %v15440_v35, %v13865_v15  ;;  %v2710_v61 = vmul.f32 %v15442_v1, %v13868_v31  ;;  %v15443_v16 = vld [vmem:[#allocation112_spill] sm:$0xff] }
 0x3a3   :  { %15439 = vst [vmem:[#allocation105_spill] sm:$0xff] %v13894_v26  ;;  %v2379_v49 = vadd.f32 %v2371_v63, %v2287_v24  ;;  %15441 = vst [vmem:[#allocation106_spill] sm:$0xff] %v13899_v13  ;;  %v2711_v29 = vmul.f32 %v15443_v16, %v13873_v48  ;;  %v2802_v6 = vmul.f32 %v15444_v46, %v13876_v0  ;;  %v15446_v24 = vld [vmem:[#allocation119_spill] sm:$0xff]  ;;  %v15447_v15 = vld [vmem:[#allocation120_spill] sm:$0xff] }
 0x3a4   :  { %v2470_v19 = vadd.f32 %v2462_v14, %v2378_v3  ;;  %v2803_v63 = vmul.f32 %v15445_v34, %v13879_v20  ;;  %v2894_v35 = vmul.f32 %v15446_v24, %v13882_v25  ;;  %v2895_v56 = vmul.f32 %v15447_v15, %v13885_v10  ;;  %v15448_v3 = vld [vmem:[#allocation121_spill] sm:$0xff]  ;;  %v15449_v31 = vld [vmem:[#allocation124_spill] sm:$0xff]  ;;  %v15450_v48 = vld [vmem:[#allocation127_spill] sm:$0xff] }
 0x3a5   :  { %v2471_v27 = vadd.f32 %v2463_v7, %v2379_v49  ;;  %v2986_v1 = vmul.f32 %v15448_v3, %v13888_v2  ;;  %v2987_v16 = vmul.f32 %v15449_v31, %v13891_v40  ;;  %v3078_v46 = vmul.f32 %v15450_v48, %v13894_v26  ;;  %v3368_v7 = vld [vmem:[#allocation3 + $0xa0] sm:$0xff]  ;;  %v3369_v49 = vld [vmem:[#allocation3 + $0xa8] sm:$0xff] }
 0x3a6   :  { %v2562_v14 = vadd.f32 %v2554_v36, %v2470_v19  ;;  %v15451_v34 = vld [vmem:[#allocation128_spill] sm:$0xff]  ;;  %v13922_v24 = vrot.slane %v1730_v28, %v15351_v42  ;;  %v13925_v15 = vrot.slane %v1731_v12, %v15351_v42  ;;  %v13928_v36 = vrot.slane %v1730_v28, %v15356_v44 }
 0x3a7   :  { %v2563_v0 = vadd.f32 %v2555_v5, %v2471_v27  ;;  %v3079_v20 = vmul.f32 %v15451_v34, %v13899_v13  ;;  %v13931_v31 = vrot.slane %v1731_v12, %v15356_v44  ;;  %v13934_v48 = vrot.slane %v1730_v28, %v15361_v41  ;;  %v15464_v26 = vld [vmem:[#allocation132_spill] sm:$0xff] }
 0x3a8   :  { %15452 = vst [vmem:[#allocation111_spill] sm:$0xff] %v13922_v24  ;;  %15453 = vst [vmem:[#allocation112_spill] sm:$0xff] %v13925_v15  ;;  %v2718_v19 = vadd.f32 %v2710_v61, %v2562_v14  ;;  %v13937_v5 = vrot.slane %v1731_v12, %v15361_v41  ;;  %v13940_v3 = vrot.slane %v3368_v7, %v15333_v22  ;;  %v15463_v12 = vld [vmem:[#allocation129_spill] sm:$0xff]  ;;  %v15467_v25 = vld [vmem:[#allocation136_spill] sm:$0xff] }
 0x3a9   :  { %15454 = vst [vmem:[#allocation113_spill] sm:$0xff] %v13928_v36  ;;  %15455 = vst [vmem:[#allocation116_spill] sm:$0xff] %v13931_v31  ;;  %v2719_v27 = vadd.f32 %v2711_v29, %v2563_v0  ;;  %v13943_v34 = vrot.slane %v3369_v49, %v15333_v22  ;;  %v13946_v14 = vrot.slane %v3368_v7, %v15334_v4 }
 0x3aa   :  { %15456 = vst [vmem:[#allocation119_spill] sm:$0xff] %v13934_v48  ;;  %15457 = vst [vmem:[#allocation120_spill] sm:$0xff] %v13937_v5  ;;  %v2810_v61 = vadd.f32 %v2802_v6, %v2718_v19  ;;  %v13949_v13 = vrot.slane %v3369_v49, %v15334_v4  ;;  %v13952_v28 = vrot.slane %v3368_v7, %v15337_v30  ;;  %v15466_v19 = vld [vmem:[#allocation135_spill] sm:$0xff] }
 0x3ab   :  { %15458 = vst [vmem:[#allocation121_spill] sm:$0xff] %v13940_v3  ;;  %15459 = vst [vmem:[#allocation124_spill] sm:$0xff] %v13943_v34  ;;  %v2811_v29 = vadd.f32 %v2803_v63, %v2719_v27  ;;  %v3170_v0 = vmul.f32 %v15463_v12, %v13922_v24  ;;  %v3171_v40 = vmul.f32 %v15464_v26, %v13925_v15  ;;  %v15469_v27 = vld [vmem:[#allocation138_spill] sm:$0xff]  ;;  %v15471_v15 = vld [vmem:[#allocation143_spill] sm:$0xff] }
 0x3ac   :  { %15460 = vst [vmem:[#allocation127_spill] sm:$0xff] %v13946_v14  ;;  %15461 = vst [vmem:[#allocation128_spill] sm:$0xff] %v13949_v13  ;;  %v13959_v2 = vrot.slane %v3369_v49, %v15337_v30  ;;  %v2902_v6 = vadd.f32 %v2894_v35, %v2810_v61  ;;  %v3262_v10 = vmul.f32 %v15466_v19, %v13928_v36  ;;  %v15470_v24 = vld [vmem:[#allocation142_spill] sm:$0xff]  ;;  %v15472_v61 = vld [vmem:[#allocation144_spill] sm:$0xff] }
 0x3ad   :  { %15462 = vst [vmem:[#allocation208_spill] sm:$0xff] %v13952_v28  ;;  %v3263_v59 = vmul.f32 %v15467_v25, %v13931_v31  ;;  %v3354_v9 = vmul.f32 %v15468_v50, %v13934_v48  ;;  %v2903_v63 = vadd.f32 %v2895_v56, %v2811_v29  ;;  %v3355_v12 = vmul.f32 %v15469_v27, %v13937_v5  ;;  %v15473_v36 = vld [vmem:[#allocation147_spill] sm:$0xff]  ;;  %v15474_v31 = vld [vmem:[#allocation150_spill] sm:$0xff] }
 0x3ae   :  { %15465 = vst [vmem:[#allocation129_spill] sm:$0xff] %v13959_v2  ;;  %v3550_v26 = vmul.f32 %v15470_v24, %v13940_v3  ;;  %v3551_v45 = vmul.f32 %v15471_v15, %v13943_v34  ;;  %v2994_v35 = vadd.f32 %v2986_v1, %v2902_v6  ;;  %v3642_v19 = vmul.f32 %v15472_v61, %v13946_v14  ;;  %v13979_v29 = vld [vmem:[#allocation3 + $0xb0] sm:$0xff]  ;;  %v15475_v27 = vld [vmem:[#allocation151_spill] sm:$0xff] }
 0x3af   :  { %v3643_v25 = vmul.f32 %v15473_v36, %v13949_v13  ;;  %v3734_v50 = vmul.f32 %v15474_v31, %v13952_v28  ;;  %v2995_v56 = vadd.f32 %v2987_v16, %v2903_v63  ;;  %v3735_v5 = vmul.f32 %v15475_v27, %v13959_v2  ;;  %v13989_v6 = vld [vmem:[#allocation3 + $0xb8] sm:$0xff] }
 0x3b0   :  { %v13984_v24 = vrot.slane %v3368_v7, %v15343_v33  ;;  %v13987_v1 = vrot.slane %v3369_v49, %v15343_v33  ;;  %v3086_v15 = vadd.f32 %v3078_v46, %v2994_v35  ;;  %v13992_v36 = vrot.slane %v3368_v7, %v15346_v54  ;;  %v15480_v34 = vld [vmem:[#allocation155_spill] sm:$0xff] }
 0x3b1   :  { %v13995_v31 = vrot.slane %v3369_v49, %v15346_v54  ;;  %v13998_v16 = vrot.slane %v3368_v7, %v15351_v42  ;;  %v3087_v63 = vadd.f32 %v3079_v20, %v2995_v56  ;;  %v14001_v61 = vrot.slane %v3369_v49, %v15351_v42  ;;  %v15479_v56 = vld [vmem:[#allocation152_spill] sm:$0xff]  ;;  %v15482_v48 = vld [vmem:[#allocation159_spill] sm:$0xff] }
 0x3b2   :  { %15476 = vst [vmem:[#allocation132_spill] sm:$0xff] %v13984_v24  ;;  %15477 = vst [vmem:[#allocation135_spill] sm:$0xff] %v13987_v1  ;;  %v14004_v27 = vrot.slane %v3368_v7, %v15356_v44  ;;  %v14007_v46 = vrot.slane %v3369_v49, %v15356_v44  ;;  %v3178_v35 = vadd.f32 %v3170_v0, %v3086_v15  ;;  %v15481_v15 = vld [vmem:[#allocation158_spill] sm:$0xff]  ;;  %v15483_v44 = vld [vmem:[#allocation160_spill] sm:$0xff] }
 0x3b3   :  { %15478 = vst [vmem:[#allocation136_spill] sm:$0xff] %v13995_v31  ;;  %v14010_v2 = vrot.slane %v3368_v7, %v15361_v41  ;;  %v14013_v28 = vrot.slane %v3369_v49, %v15361_v41  ;;  %v14017_v13 = vrot.slane %v13979_v29, %v15333_v22  ;;  %v3179_v20 = vadd.f32 %v3171_v40, %v3087_v63 }
 0x3b4   :  { %v3826_v14 = vmul.f32 %v15479_v56, %v13984_v24  ;;  %v3827_v3 = vmul.f32 %v15480_v34, %v13987_v1  ;;  %v14025_v0 = vrot.slane %v13989_v6, %v15333_v22  ;;  %v3270_v7 = vadd.f32 %v3262_v10, %v3178_v35  ;;  %v15484_v56 = vld [vmem:[#allocation163_spill] sm:$0xff]  ;;  %v15485_v34 = vld [vmem:[#allocation166_spill] sm:$0xff]  ;;  %v15487_v35 = vld [vmem:[#allocation168_spill] sm:$0xff] }
 0x3b5   :  { %v3918_v49 = vmul.f32 %v15481_v15, %v13992_v36  ;;  %v3919_v41 = vmul.f32 %v15482_v48, %v13995_v31  ;;  %v4010_v40 = vmul.f32 %v15483_v44, %v13998_v16  ;;  %v3271_v63 = vadd.f32 %v3263_v59, %v3179_v20  ;;  %v15486_v22 = vld [vmem:[#allocation167_spill] sm:$0xff]  ;;  %v15488_v48 = vld [vmem:[#allocation169_spill] sm:$0xff]  ;;  %v15489_v59 = vld [vmem:[#allocation170_spill] sm:$0xff] }
 0x3b6   :  { %v4011_v24 = vmul.f32 %v15484_v56, %v14001_v61  ;;  %v4102_v1 = vmul.f32 %v15485_v34, %v14004_v27  ;;  %v4103_v42 = vmul.f32 %v15486_v22, %v14007_v46  ;;  %v3362_v10 = vadd.f32 %v3354_v9, %v3270_v7  ;;  %v15490_v56 = vld [vmem:[#allocation171_spill] sm:$0xff] }
 0x3b7   :  { %v14041_v15 = vmul.f32 %v15487_v35, %v14010_v2  ;;  %v14045_v31 = vmul.f32 %v15488_v48, %v14013_v28  ;;  %v14049_v44 = vmul.f32 %v15489_v59, %v14017_v13  ;;  %v3363_v20 = vadd.f32 %v3355_v12, %v3271_v63 }
 0x3b8   :  { %v14053_v34 = vmul.f32 %v15490_v56, %v14025_v0  ;;  %v14057_v9 = vrot.slane %v13979_v29, %v15334_v4  ;;  %v268_v7 = vmul.f32 %v11644_v58, %v13593_v57  ;;  %v3558_v22 = vadd.f32 %v3550_v26, %v3362_v10 }
 0x3b9   :  { %v14063_v35 = vrot.slane %v13989_v6, %v15334_v4  ;;  %v269_v48 = vmul.f32 %v11660_v11, %v13597_v53  ;;  %v360_v12 = vmul.f32 %v11680_v18, %v13603_v62  ;;  %v3559_v63 = vadd.f32 %v3551_v45, %v3363_v20  ;;  %v15491_v53 = vld [vmem:[#allocation172_spill] sm:$0xff] }
 0x3ba   :  { %v14071_v59 = vrot.slane %v13979_v29, %v15337_v30  ;;  %v361_v56 = vmul.f32 %v11699_v55, %v13607_v32  ;;  %v452_v58 = vmul.f32 %v11718_v8, %v13615_v60  ;;  %v3650_v57 = vadd.f32 %v3642_v19, %v3558_v22  ;;  %v15496_v22 = vld [vmem:[#allocation26_spill] sm:$0xff] }
 0x3bb   :  { %v368_v4 = vadd.f32 %v360_v12, %v268_v7  ;;  %v453_v26 = vmul.f32 %v11736_v21, %v13633_v38  ;;  %v544_v11 = vmul.f32 %v11755_v51, %v13638_v23  ;;  %v3651_v18 = vadd.f32 %v3643_v25, %v3559_v63 }
 0x3bc   :  { %v4442_v62 = vmul.f32 %v15491_v53, %v14057_v9  ;;  %v369_v45 = vadd.f32 %v361_v56, %v269_v48  ;;  %v545_v10 = vmul.f32 %v11774_v17, %v13647_v52  ;;  %v3742_v55 = vadd.f32 %v3734_v50, %v3650_v57  ;;  %v15492_v17 = vld [vmem:[#allocation174_spill] sm:$0xff]  ;;  %v15494_v50 = vld [vmem:[#allocation193_spill] sm:$0xff]  ;;  %v15499_v56 = vld [vmem:[#allocation195_spill] sm:$0xff] }
 0x3bd   :  { %v14087_v8 = vrot.slane %v13989_v6, %v15337_v30  ;;  %v460_v32 = vadd.f32 %v452_v58, %v368_v4  ;;  %v636_v21 = vmul.f32 %v11793_v43, %v13652_v37  ;;  %v3743_v60 = vadd.f32 %v3735_v5, %v3651_v18  ;;  %v15493_v30 = vld [vmem:[#allocation18_spill] sm:$0xff]  ;;  %v15495_v43 = vld [vmem:[#allocation176_spill] sm:$0xff]  ;;  %v15500_v4 = vld [vmem:[#allocation177_spill] sm:$0xff] }
 0x3be   :  { %v14093_v51 = vrot.slane %v13979_v29, %v15343_v33  ;;  %v461_v38 = vadd.f32 %v453_v26, %v369_v45  ;;  %v637_v23 = vmul.f32 %v11812_v47, %v13659_v39  ;;  %v3834_v19 = vadd.f32 %v3826_v14, %v3742_v55  ;;  %v15497_v48 = vld [vmem:[#allocation194_spill] sm:$0xff]  ;;  %v15498_v14 = vld [vmem:[#allocation27_spill] sm:$0xff]  ;;  %v15502_v18 = vld [vmem:[#allocation196_spill] sm:$0xff] }
 0x3bf   :  { %v4443_v52 = vmul.f32 %v15492_v17, %v14063_v35  ;;  %v552_v25 = vadd.f32 %v544_v11, %v460_v32  ;;  %v728_v20 = vmul.f32 %v15494_v50, %v15493_v30  ;;  %v3835_v7 = vadd.f32 %v3827_v3, %v3743_v60  ;;  %v15501_v11 = vld [vmem:[#allocation28_spill] sm:$0xff]  ;;  %v15504_v32 = vld [vmem:[#allocation29_spill] sm:$0xff] }
 0x3c0   :  { %v4534_v37 = vmul.f32 %v15495_v43, %v14071_v59  ;;  %v553_v5 = vadd.f32 %v545_v10, %v461_v38  ;;  %v729_v12 = vmul.f32 %v15497_v48, %v15496_v22  ;;  %v3926_v63 = vadd.f32 %v3918_v49, %v3834_v19  ;;  %v15503_v10 = vld [vmem:[#allocation178_spill] sm:$0xff]  ;;  %v15507_v17 = vld [vmem:[#allocation37_spill] sm:$0xff]  ;;  %v15508_v30 = vld [vmem:[#allocation180_spill] sm:$0xff] }
 0x3c1   :  { %v14107_v47 = vrot.slane %v13989_v6, %v15343_v33  ;;  %v644_v39 = vadd.f32 %v636_v21, %v552_v25  ;;  %v820_v58 = vmul.f32 %v15499_v56, %v15498_v14  ;;  %v3927_v57 = vadd.f32 %v3919_v41, %v3835_v7  ;;  %v15505_v33 = vld [vmem:[#allocation35_spill] sm:$0xff]  ;;  %v15506_v19 = vld [vmem:[#allocation30_spill] sm:$0xff]  ;;  %v15509_v7 = vld [vmem:[#allocation20_spill] sm:$0xff] }
 0x3c2   :  { %v4535_v3 = vmul.f32 %v15500_v4, %v14087_v8  ;;  %v645_v26 = vadd.f32 %v637_v23, %v553_v5  ;;  %v821_v53 = vmul.f32 %v15502_v18, %v15501_v11  ;;  %v4018_v45 = vadd.f32 %v4010_v40, %v3926_v63  ;;  %v15510_v43 = vld [vmem:[#allocation38_spill] sm:$0xff]  ;;  %v15511_v48 = vld [vmem:[#allocation31_spill] sm:$0xff]  ;;  %v15513_v14 = vld [vmem:[#allocation21_spill] sm:$0xff] }
 0x3c3   :  { %v4626_v49 = vmul.f32 %v15503_v10, %v14093_v51  ;;  %v736_v55 = vadd.f32 %v728_v20, %v644_v39  ;;  %v912_v60 = vmul.f32 %v15505_v33, %v15504_v32  ;;  %v4019_v21 = vadd.f32 %v4011_v24, %v3927_v57  ;;  %v15512_v63 = vld [vmem:[#allocation43_spill] sm:$0xff]  ;;  %v15515_v57 = vld [vmem:[#allocation44_spill] sm:$0xff]  ;;  %v15517_v18 = vld [vmem:[#allocation33_spill] sm:$0xff] }
 0x3c4   :  { %v14121_v38 = vrot.slane %v13979_v29, %v15346_v54  ;;  %v737_v41 = vadd.f32 %v729_v12, %v645_v26  ;;  %v913_v23 = vmul.f32 %v15507_v17, %v15506_v19  ;;  %v4110_v25 = vadd.f32 %v4102_v1, %v4018_v45  ;;  %v15516_v26 = vld [vmem:[#allocation182_spill] sm:$0xff]  ;;  %v15522_v17 = vld [vmem:[#allocation36_spill] sm:$0xff] }
 0x3c5   :  { %v4627_v40 = vmul.f32 %v15508_v30, %v14107_v47  ;;  %v828_v50 = vadd.f32 %v820_v58, %v736_v55  ;;  %v1068_v20 = vmul.f32 %v15510_v43, %v15509_v7  ;;  %v4111_v5 = vadd.f32 %v4103_v42, %v4019_v21  ;;  %v15514_v58 = vld [vmem:[#allocation32_spill] sm:$0xff]  ;;  %v15519_v32 = vld [vmem:[#allocation34_spill] sm:$0xff]  ;;  %v15525_v43 = vld [vmem:[#allocation39_spill] sm:$0xff] }
 0x3c6   :  { %v14131_v24 = vrot.slane %v13989_v6, %v15346_v54  ;;  %v829_v22 = vadd.f32 %v821_v53, %v737_v41  ;;  %v1069_v12 = vmul.f32 %v15512_v63, %v15511_v48  ;;  %v4202_v39 = vadd.f32 %v14041_v15, %v4110_v25  ;;  %v15518_v53 = vld [vmem:[#allocation45_spill] sm:$0xff]  ;;  %v15520_v33 = vld [vmem:[#allocation46_spill] sm:$0xff]  ;;  %v15527_v48 = vld [vmem:[#allocation184_spill] sm:$0xff] }
 0x3c7   :  { %v14138_v1 = vrot.slane %v13979_v29, %v15513_v14  ;;  %v920_v56 = vadd.f32 %v912_v60, %v828_v50  ;;  %v1160_v4 = vmul.f32 %v15515_v57, %v15514_v58  ;;  %v4203_v42 = vadd.f32 %v14045_v31, %v4111_v5  ;;  %v15521_v31 = vld [vmem:[#allocation22_spill] sm:$0xff]  ;;  %v15530_v57 = vld [vmem:[#allocation41_spill] sm:$0xff] }
 0x3c8   :  { %v4718_v54 = vmul.f32 %v15516_v26, %v14121_v38  ;;  %v921_v11 = vadd.f32 %v913_v23, %v829_v22  ;;  %v1161_v45 = vmul.f32 %v15518_v53, %v15517_v18  ;;  %v4358_v10 = vadd.f32 %v14049_v44, %v4202_v39  ;;  %v15523_v23 = vld [vmem:[#allocation50_spill] sm:$0xff]  ;;  %v15524_v44 = vld [vmem:[#allocation183_spill] sm:$0xff]  ;;  %v15528_v39 = vld [vmem:[#allocation40_spill] sm:$0xff] }
 0x3c9   :  { %v14150_v15 = vrot.slane %v13989_v6, %v15513_v14  ;;  %v1076_v55 = vadd.f32 %v1068_v20, %v920_v56  ;;  %v1252_v60 = vmul.f32 %v15520_v33, %v15519_v32  ;;  %v4359_v21 = vadd.f32 %v14053_v34, %v4203_v42  ;;  %v15526_v20 = vld [vmem:[#allocation51_spill] sm:$0xff]  ;;  %v15529_v14 = vld [vmem:[#allocation53_spill] sm:$0xff]  ;;  %v15531_v42 = vld [vmem:[#allocation54_spill] sm:$0xff] }
 0x3ca   :  { %v14157_v41 = vrot.slane %v13979_v29, %v15521_v31  ;;  %v1077_v19 = vadd.f32 %v1069_v12, %v921_v11  ;;  %v1253_v25 = vmul.f32 %v15523_v23, %v15522_v17  ;;  %v4450_v30 = vadd.f32 %v4442_v62, %v4358_v10  ;;  %v15532_v11 = vld [vmem:[#allocation185_spill] sm:$0xff]  ;;  %v15533_v53 = vld [vmem:[#allocation42_spill] sm:$0xff]  ;;  %v15535_v32 = vld [vmem:[#allocation23_spill] sm:$0xff] }
 0x3cb   :  { %v4719_v50 = vmul.f32 %v15524_v44, %v14131_v24  ;;  %v1168_v7 = vadd.f32 %v1160_v4, %v1076_v55  ;;  %v1344_v5 = vmul.f32 %v15526_v20, %v15525_v43  ;;  %v4451_v22 = vadd.f32 %v4443_v52, %v4359_v21  ;;  %v15534_v10 = vld [vmem:[#allocation58_spill] sm:$0xff]  ;;  %v15536_v21 = vld [vmem:[#allocation47_spill] sm:$0xff]  ;;  %v15538_v23 = vld [vmem:[#allocation48_spill] sm:$0xff] }
 0x3cc   :  { %v4810_v34 = vmul.f32 %v15527_v48, %v14138_v1  ;;  %v1169_v63 = vadd.f32 %v1161_v45, %v1077_v19  ;;  %v1345_v56 = vmul.f32 %v15529_v14, %v15528_v39  ;;  %v4542_v12 = vadd.f32 %v4534_v37, %v4450_v30  ;;  %v15542_v20 = vld [vmem:[#allocation62_spill] sm:$0xff]  ;;  %v15543_v48 = vld [vmem:[#allocation187_spill] sm:$0xff]  ;;  %v15544_v39 = vld [vmem:[#allocation52_spill] sm:$0xff] }
 0x3cd   :  { %v14171_v58 = vrot.slane %v13989_v6, %v15521_v31  ;;  %v1260_v62 = vadd.f32 %v1252_v60, %v1168_v7  ;;  %v1436_v4 = vmul.f32 %v15531_v42, %v15530_v57  ;;  %v4543_v26 = vadd.f32 %v4535_v3, %v4451_v22  ;;  %v15537_v31 = vld [vmem:[#allocation59_spill] sm:$0xff] }
 0x3ce   :  { %v4811_v52 = vmul.f32 %v15532_v11, %v14150_v15  ;;  %v1261_v18 = vadd.f32 %v1253_v25, %v1169_v63  ;;  %v1437_v45 = vmul.f32 %v15534_v10, %v15533_v53  ;;  %v4634_v55 = vadd.f32 %v4626_v49, %v4542_v12  ;;  %v15539_v25 = vld [vmem:[#allocation61_spill] sm:$0xff]  ;;  %v15540_v49 = vld [vmem:[#allocation186_spill] sm:$0xff]  ;;  %v15546_v12 = vld [vmem:[#allocation188_spill] sm:$0xff] }
 0x3cf   :  { %v14181_v37 = vrot.slane %v13979_v29, %v15535_v32  ;;  %v1352_v33 = vadd.f32 %v1344_v5, %v1260_v62  ;;  %v1528_v60 = vmul.f32 %v15537_v31, %v15536_v21  ;;  %v4635_v19 = vadd.f32 %v4627_v40, %v4543_v26  ;;  %v15541_v29 = vld [vmem:[#allocation49_spill] sm:$0xff]  ;;  %v15547_v57 = vld [vmem:[#allocation55_spill] sm:$0xff]  ;;  %v15549_v11 = vld [vmem:[#allocation190_spill] sm:$0xff] }
 0x3d0   :  { %v14187_v3 = vrot.slane %v13989_v6, %v15535_v32  ;;  %v1353_v17 = vadd.f32 %v1345_v56, %v1261_v18  ;;  %v1529_v30 = vmul.f32 %v15539_v25, %v15538_v23  ;;  %v4726_v44 = vadd.f32 %v4718_v54, %v4634_v55  ;;  %v15545_v6 = vld [vmem:[#allocation66_spill] sm:$0xff]  ;;  %v15548_v42 = vld [vmem:[#allocation67_spill] sm:$0xff]  ;;  %v15550_v53 = vld [vmem:[#allocation56_spill] sm:$0xff] }
 0x3d1   :  { %v4902_v7 = vmul.f32 %v15540_v49, %v14157_v41  ;;  %v1444_v43 = vadd.f32 %v1436_v4, %v1352_v33  ;;  %v1620_v5 = vmul.f32 %v15542_v20, %v15541_v29  ;;  %v4727_v22 = vadd.f32 %v4719_v50, %v4635_v19  ;;  %v15551_v10 = vld [vmem:[#allocation69_spill] sm:$0xff]  ;;  %v15553_v21 = vld [vmem:[#allocation70_spill] sm:$0xff]  ;;  %v15557_v49 = vld [vmem:[#allocation76_spill] sm:$0xff] }
 0x3d2   :  { %v4903_v40 = vmul.f32 %v15543_v48, %v14171_v58  ;;  %v1445_v63 = vadd.f32 %v1437_v45, %v1353_v17  ;;  %v1621_v14 = vmul.f32 %v15545_v6, %v15544_v39  ;;  %v4818_v56 = vadd.f32 %v4810_v34, %v4726_v44  ;;  %v15552_v33 = vld [vmem:[#allocation57_spill] sm:$0xff]  ;;  %v15554_v17 = vld [vmem:[#allocation60_spill] sm:$0xff]  ;;  %v15562_v6 = vld [vmem:[#allocation78_spill] sm:$0xff] }
 0x3d3   :  { %v4994_v62 = vmul.f32 %v15546_v12, %v14181_v37  ;;  %v1536_v54 = vadd.f32 %v1528_v60, %v1444_v43  ;;  %v1712_v26 = vmul.f32 %v15548_v42, %v15547_v57  ;;  %v4819_v4 = vadd.f32 %v4811_v52, %v4727_v22  ;;  %v15555_v60 = vld [vmem:[#allocation75_spill] sm:$0xff]  ;;  %v15558_v20 = vld [vmem:[#allocation64_spill] sm:$0xff]  ;;  %v15559_v22 = vld [vmem:[#allocation77_spill] sm:$0xff] }
 0x3d4   :  { %v4995_v18 = vmul.f32 %v15549_v11, %v14187_v3  ;;  %v1537_v50 = vadd.f32 %v1529_v30, %v1445_v63  ;;  %v1713_v55 = vmul.f32 %v15551_v10, %v15550_v53  ;;  %v4910_v45 = vadd.f32 %v4902_v7, %v4818_v56  ;;  %v15556_v52 = vld [vmem:[#allocation63_spill] sm:$0xff]  ;;  %v15560_v7 = vld [vmem:[#allocation189_spill] sm:$0xff]  ;;  %v15563_v12 = vld [vmem:[#allocation68_spill] sm:$0xff] }
 0x3d5   :  { %v1628_v32 = vadd.f32 %v1620_v5, %v1536_v54  ;;  %v1908_v34 = vmul.f32 %v15553_v21, %v15552_v33  ;;  %v4911_v31 = vadd.f32 %v4903_v40, %v4819_v4  ;;  %v1909_v23 = vmul.f32 %v15555_v60, %v15554_v17  ;;  %v15561_v39 = vld [vmem:[#allocation65_spill] sm:$0xff]  ;;  %v15565_v4 = vld [vmem:[#allocation71_spill] sm:$0xff]  ;;  %v15571_v60 = vld [vmem:[#allocation74_spill] sm:$0xff] }
 0x3d6   :  { %v1629_v19 = vadd.f32 %v1621_v14, %v1537_v50  ;;  %v5002_v25 = vadd.f32 %v4994_v62, %v4910_v45  ;;  %v2000_v43 = vmul.f32 %v15557_v49, %v15556_v52  ;;  %v2001_v48 = vmul.f32 %v15559_v22, %v15558_v20  ;;  %v15564_v62 = vld [vmem:[#allocation82_spill] sm:$0xff]  ;;  %v15566_v11 = vld [vmem:[#allocation83_spill] sm:$0xff]  ;;  %v15568_v45 = vld [vmem:[#allocation85_spill] sm:$0xff] }
 0x3d7   :  { %v1720_v44 = vadd.f32 %v1712_v26, %v1628_v32  ;;  %v5003_v29 = vadd.f32 %v4995_v18, %v4911_v31  ;;  %v2092_v40 = vmul.f32 %v15562_v6, %v15561_v39  ;;  %v2093_v54 = vmul.f32 %v15564_v62, %v15563_v12  ;;  %v8942_v57 = vld [vmem:[%s14651_s2 + $0x10] sm:$0xff]  ;;  %v8943_v50 = vld [vmem:[%s14651_s2 + $0x18] sm:$0xff] }
 0x3d8   :  { %v1721_v30 = vadd.f32 %v1713_v55, %v1629_v19  ;;  %v5011_v5 = vmul.f32 %v15560_v7, %v5002_v25  ;;  %v2184_v18 = vmul.f32 %v15566_v11, %v15565_v4  ;;  %v15567_v55 = vld [vmem:[#allocation72_spill] sm:$0xff]  ;;  %v15569_v21 = vld [vmem:[#allocation73_spill] sm:$0xff]  ;;  %v15573_v52 = vld [vmem:[#allocation79_spill] sm:$0xff] }
 0x3d9   :  { %v1916_v63 = vadd.f32 %v1908_v34, %v1720_v44  ;;  %v5012_v14 = vmul.f32 %v15560_v7, %v5003_v29  ;;  %v2185_v32 = vmul.f32 %v15568_v45, %v15567_v55  ;;  %v15570_v34 = vld [vmem:[#allocation86_spill] sm:$0xff]  ;;  %v15574_v49 = vld [vmem:[#allocation91_spill] sm:$0xff]  ;;  %v15576_v20 = vld [vmem:[#allocation93_spill] sm:$0xff] }
 0x3da   :  { %v1917_v56 = vadd.f32 %v1909_v23, %v1721_v30  ;;  %v14224_v42 = vadd.f32 %v8942_v57, %v5011_v5  ;;  %v2276_v31 = vmul.f32 %v15570_v34, %v15569_v21  ;;  %v15572_v23 = vld [vmem:[#allocation90_spill] sm:$0xff]  ;;  %v15575_v30 = vld [vmem:[#allocation80_spill] sm:$0xff]  ;;  %v15577_v5 = vld [vmem:[#allocation81_spill] sm:$0xff] }
 0x3db   :  { %v2008_v26 = vadd.f32 %v2000_v43, %v1916_v63  ;;  %v14231_v53 = vadd.f32 %v8943_v50, %v5012_v14  ;;  %v2277_v25 = vmul.f32 %v15572_v23, %v15571_v60  ;;  %v2368_v43 = vmul.f32 %v15574_v49, %v15573_v52  ;;  %v15578_v63 = vld [vmem:[#allocation94_spill] sm:$0xff]  ;;  %v15581_v62 = vld [vmem:[#allocation87_spill] sm:$0xff]  ;;  %v15583_v4 = vld [vmem:[#allocation88_spill] sm:$0xff] }
 0x3dc   :  { %v2009_v10 = vadd.f32 %v2001_v48, %v1917_v56  ;;  %v2369_v22 = vmul.f32 %v15576_v20, %v15575_v30  ;;  %v2460_v39 = vmul.f32 %v15578_v63, %v15577_v5  ;;  %v15580_v14 = vld [vmem:[#allocation98_spill] sm:$0xff]  ;;  %v15584_v11 = vld [vmem:[#allocation101_spill] sm:$0xff]  ;;  %v15588_v21 = vld [vmem:[#allocation107_spill] sm:$0xff] }
 0x3dd   :  { %v2100_v33 = vadd.f32 %v2092_v40, %v2008_v26  ;;  %v5034_v19 = vadd.f32 %v14231_v53, %v14224_v42  ;;  %v15579_v40 = vld [vmem:[#allocation84_spill] sm:$0xff]  ;;  %v15586_v55 = vld [vmem:[#allocation102_spill] sm:$0xff] }
 0x3de   :  { %v2101_v17 = vadd.f32 %v2093_v54, %v2009_v10  ;;  %v2461_v56 = vmul.f32 %v15580_v14, %v15579_v40  ;;  %v15582_v54 = vld [vmem:[#allocation99_spill] sm:$0xff]  ;;  %v15585_v10 = vld [vmem:[#allocation89_spill] sm:$0xff] }
 0x3df   :  { %v2192_v44 = vadd.f32 %v2184_v18, %v2100_v33  ;;  %5035 = vadd.xlane.f32.xlu1 %v5034_v19  ;;  %v2552_v57 = vmul.f32 %v15582_v54, %v15581_v62  ;;  %v2553_v18 = vmul.f32 %v15584_v11, %v15583_v4  ;;  %v2708_v45 = vmul.f32 %v15586_v55, %v15585_v10  ;;  %v15587_v33 = vld [vmem:[#allocation92_spill] sm:$0xff]  ;;  %v15589_v19 = vld [vmem:[#allocation95_spill] sm:$0xff] }
 0x3e0   :  { %v2193_v29 = vadd.f32 %v2185_v32, %v2101_v17  ;;  %v2709_v34 = vmul.f32 %v15588_v21, %v15587_v33  ;;  %v15590_v17 = vld [vmem:[#allocation108_spill] sm:$0xff] }
 0x3e1   :  { %v2284_v48 = vadd.f32 %v2276_v31, %v2192_v44  ;;  %v2800_v60 = vmul.f32 %v15590_v17, %v15589_v19  ;;  %v15592_v44 = vld [vmem:[#allocation109_spill] sm:$0xff] }
 0x3e2   :  { %v2285_v6 = vadd.f32 %v2277_v25, %v2193_v29  ;;  %v15591_v25 = vld [vmem:[#allocation96_spill] sm:$0xff]  ;;  %v15594_v29 = vld [vmem:[#allocation110_spill] sm:$0xff] }
 0x3e3   :  { %v2376_v12 = vadd.f32 %v2368_v43, %v2284_v48  ;;  %v2801_v52 = vmul.f32 %v15592_v44, %v15591_v25  ;;  %v15593_v43 = vld [vmem:[#allocation97_spill] sm:$0xff]  ;;  %v15596_v48 = vld [vmem:[#allocation114_spill] sm:$0xff] }
 0x3e4   :  { %v2377_v26 = vadd.f32 %v2369_v22, %v2285_v6  ;;  %v2892_v30 = vmul.f32 %v15594_v29, %v15593_v43  ;;  %v15595_v22 = vld [vmem:[#allocation100_spill] sm:$0xff]  ;;  %v15598_v6 = vld [vmem:[#allocation115_spill] sm:$0xff] }
 0x3e5   :  { %v2468_v50 = vadd.f32 %v2460_v39, %v2376_v12  ;;  %v2893_v5 = vmul.f32 %v15596_v48, %v15595_v22  ;;  %v15597_v39 = vld [vmem:[#allocation103_spill] sm:$0xff]  ;;  %v15600_v12 = vld [vmem:[#allocation117_spill] sm:$0xff] }
 0x3e6   :  { %v2469_v32 = vadd.f32 %v2461_v56, %v2377_v26  ;;  %v2984_v40 = vmul.f32 %v15598_v6, %v15597_v39  ;;  %v15599_v56 = vld [vmem:[#allocation104_spill] sm:$0xff]  ;;  %v15602_v26 = vld [vmem:[#allocation118_spill] sm:$0xff] }
 0x3e7   :  { %v2560_v31 = vadd.f32 %v2552_v57, %v2468_v50  ;;  %v2985_v62 = vmul.f32 %v15600_v12, %v15599_v56  ;;  %v15601_v57 = vld [vmem:[#allocation105_spill] sm:$0xff]  ;;  %v15604_v50 = vld [vmem:[#allocation122_spill] sm:$0xff] }
 0x3e8   :  { %v2561_v23 = vadd.f32 %v2553_v18, %v2469_v32  ;;  %v3076_v4 = vmul.f32 %v15602_v26, %v15601_v57  ;;  %v15603_v18 = vld [vmem:[#allocation106_spill] sm:$0xff]  ;;  %v15606_v32 = vld [vmem:[#allocation123_spill] sm:$0xff] }
 0x3e9   :  { %v2716_v49 = vadd.f32 %v2708_v45, %v2560_v31  ;;  %v3077_v10 = vmul.f32 %v15604_v50, %v15603_v18  ;;  %v15605_v45 = vld [vmem:[#allocation111_spill] sm:$0xff]  ;;  %v15608_v31 = vld [vmem:[#allocation125_spill] sm:$0xff] }
 0x3ea   :  { %v2717_v20 = vadd.f32 %v2709_v34, %v2561_v23  ;;  %v3168_v33 = vmul.f32 %v15606_v32, %v15605_v45  ;;  %v15607_v34 = vld [vmem:[#allocation112_spill] sm:$0xff]  ;;  %v15610_v23 = vld [vmem:[#allocation126_spill] sm:$0xff] }
 0x3eb   :  { %v2808_v63 = vadd.f32 %v2800_v60, %v2716_v49  ;;  %v3169_v19 = vmul.f32 %v15608_v31, %v15607_v34  ;;  %v15609_v60 = vld [vmem:[#allocation113_spill] sm:$0xff]  ;;  %v15612_v49 = vld [vmem:[#allocation130_spill] sm:$0xff] }
 0x3ec   :  { %v2809_v14 = vadd.f32 %v2801_v52, %v2717_v20  ;;  %v3260_v25 = vmul.f32 %v15610_v23, %v15609_v60  ;;  %v15611_v52 = vld [vmem:[#allocation116_spill] sm:$0xff]  ;;  %v15614_v20 = vld [vmem:[#allocation131_spill] sm:$0xff] }
 0x3ed   :  { %v2900_v54 = vadd.f32 %v2892_v30, %v2808_v63  ;;  %v3261_v43 = vmul.f32 %v15612_v49, %v15611_v52  ;;  %v15613_v30 = vld [vmem:[#allocation119_spill] sm:$0xff]  ;;  %v15616_v63 = vld [vmem:[#allocation133_spill] sm:$0xff] }
 0x3ee   :  { %v2901_v11 = vadd.f32 %v2893_v5, %v2809_v14  ;;  %v3352_v22 = vmul.f32 %v15614_v20, %v15613_v30  ;;  %v15615_v5 = vld [vmem:[#allocation120_spill] sm:$0xff]  ;;  %v15618_v14 = vld [vmem:[#allocation134_spill] sm:$0xff] }
 0x3ef   :  { %v2992_v55 = vadd.f32 %v2984_v40, %v2900_v54  ;;  %v3353_v39 = vmul.f32 %v15616_v63, %v15615_v5  ;;  %v15617_v40 = vld [vmem:[#allocation121_spill] sm:$0xff]  ;;  %v15634_v63 = vld [vmem:[#allocation136_spill] sm:$0xff] }
 0x3f0   :  { %v2993_v21 = vadd.f32 %v2985_v62, %v2901_v11  ;;  %v3548_v56 = vmul.f32 %v15618_v14, %v15617_v40  ;;  %v15619_v62 = vld [vmem:[#allocation124_spill] sm:$0xff]  ;;  %v15620_v54 = vld [vmem:[#allocation197_spill] sm:$0xff]  ;;  %v15622_v11 = vld [vmem:[#allocation139_spill] sm:$0xff] }
 0x3f1   :  { %v3084_v17 = vadd.f32 %v3076_v4, %v2992_v55  ;;  %v3549_v57 = vmul.f32 %v15620_v54, %v15619_v62  ;;  %v15621_v4 = vld [vmem:[#allocation127_spill] sm:$0xff]  ;;  %v15624_v55 = vld [vmem:[#allocation140_spill] sm:$0xff]  ;;  %v15636_v14 = vld [vmem:[#allocation154_spill] sm:$0xff] }
 0x3f2   :  { %v3085_v44 = vadd.f32 %v3077_v10, %v2993_v21  ;;  %v3640_v18 = vmul.f32 %v15622_v11, %v15621_v4  ;;  %v15623_v10 = vld [vmem:[#allocation128_spill] sm:$0xff]  ;;  %v15626_v21 = vld [vmem:[#allocation141_spill] sm:$0xff] }
 0x3f3   :  { %v3176_v29 = vadd.f32 %v3168_v33, %v3084_v17  ;;  %v3641_v45 = vmul.f32 %v15624_v55, %v15623_v10  ;;  %v15625_v33 = vld [vmem:[#allocation208_spill] sm:$0xff]  ;;  %v15628_v17 = vld [vmem:[#allocation145_spill] sm:$0xff]  ;;  %v15640_v10 = vld [vmem:[#allocation162_spill] sm:$0xff] }
 0x3f4   :  { %v3177_v48 = vadd.f32 %v3169_v19, %v3085_v44  ;;  %v3732_v34 = vmul.f32 %v15626_v21, %v15625_v33  ;;  %v15627_v19 = vld [vmem:[#allocation129_spill] sm:$0xff]  ;;  %v15630_v44 = vld [vmem:[#allocation146_spill] sm:$0xff]  ;;  %v15637_v62 = vld [vmem:[#allocation156_spill] sm:$0xff]  ;;  %v4192_v55 = vmul.f32 %v15640_v10, %v14010_v2 }
 0x3f5   :  { %v3268_v6 = vadd.f32 %v3260_v25, %v3176_v29  ;;  %v3733_v60 = vmul.f32 %v15628_v17, %v15627_v19  ;;  %v15629_v25 = vld [vmem:[#allocation132_spill] sm:$0xff]  ;;  %v4009_v54 = vmul.f32 %v15637_v62, %v14001_v61  ;;  %v15642_v21 = vld [vmem:[#allocation165_spill] sm:$0xff]  ;;  %v15644_v17 = vld [vmem:[#allocation199_spill] sm:$0xff] }
 0x3f6   :  { %v3269_v12 = vadd.f32 %v3261_v43, %v3177_v48  ;;  %v3824_v52 = vmul.f32 %v15630_v44, %v15629_v25  ;;  %v15631_v43 = vld [vmem:[#allocation135_spill] sm:$0xff]  ;;  %v15632_v29 = vld [vmem:[#allocation148_spill] sm:$0xff]  ;;  %v4348_v61 = vmul.f32 %v15642_v21, %v14017_v13  ;;  %v15646_v44 = vld [vmem:[#allocation201_spill] sm:$0xff] }
 0x3f7   :  { %v3360_v26 = vadd.f32 %v3352_v22, %v3268_v6  ;;  %v3825_v30 = vmul.f32 %v15632_v29, %v15631_v43  ;;  %v15633_v22 = vld [vmem:[#allocation149_spill] sm:$0xff]  ;;  %v15648_v29 = vld [vmem:[#allocation202_spill] sm:$0xff] }
 0x3f8   :  { %v3361_v50 = vadd.f32 %v3353_v39, %v3269_v12  ;;  %v3916_v48 = vmul.f32 %v15633_v22, %v13992_v36  ;;  %v15635_v39 = vld [vmem:[#allocation153_spill] sm:$0xff] }
 0x3f9   :  { %v3556_v32 = vadd.f32 %v3548_v56, %v3360_v26  ;;  %v3917_v6 = vmul.f32 %v15635_v39, %v15634_v63  ;;  %v4008_v56 = vmul.f32 %v15636_v14, %v13998_v16  ;;  %v15638_v26 = vld [vmem:[#allocation157_spill] sm:$0xff]  ;;  %v15651_v63 = vld [vmem:[#allocation179_spill] sm:$0xff] }
 0x3fa   :  { %v3557_v31 = vadd.f32 %v3549_v57, %v3361_v50  ;;  %v4100_v4 = vmul.f32 %v15638_v26, %v14004_v27  ;;  %v15653_v14 = vld [vmem:[#allocation181_spill] sm:$0xff]  ;;  %v15656_v26 = vld [vmem:[#allocation207_spill] sm:$0xff] }
 0x3fb   :  { %v3648_v23 = vadd.f32 %v3640_v18, %v3556_v32  ;;  %v15639_v18 = vld [vmem:[#allocation161_spill] sm:$0xff]  ;;  %v15641_v32 = vld [vmem:[#allocation164_spill] sm:$0xff] }
 0x3fc   :  { %v3649_v49 = vadd.f32 %v3641_v45, %v3557_v31  ;;  %v4101_v36 = vmul.f32 %v15639_v18, %v14007_v46  ;;  %v4193_v16 = vmul.f32 %v15641_v32, %v14013_v28  ;;  %v15643_v31 = vld [vmem:[#allocation198_spill] sm:$0xff]  ;;  %v4440_v46 = vmul.f32 %v15644_v17, %v14057_v9  ;;  %v15659_v32 = vld [vmem:[#allocation25_spill] sm:$0xff] }
 0x3fd   :  { %v3740_v20 = vadd.f32 %v3732_v34, %v3648_v23  ;;  %v4349_v27 = vmul.f32 %v15643_v31, %v14025_v0  ;;  %v15645_v23 = vld [vmem:[#allocation200_spill] sm:$0xff]  ;;  %v4532_v28 = vmul.f32 %v15646_v44, %v14071_v59  ;;  %v4624_v0 = vmul.f32 %v15648_v29, %v14093_v51 }
 0x3fe   :  { %v3741_v5 = vadd.f32 %v3733_v60, %v3649_v49  ;;  %v4441_v2 = vmul.f32 %v15645_v23, %v14063_v35  ;;  %v15647_v49 = vld [vmem:[#allocation173_spill] sm:$0xff]  ;;  %v4717_v59 = vmul.f32 %v15651_v63, %v14131_v24  ;;  %v4809_v51 = vmul.f32 %v15653_v14, %v14150_v15  ;;  %v15662_v44 = vld [vmem:[#allocation24_spill] sm:$0xff] }
 0x3ff   :  { %v3832_v40 = vadd.f32 %v3824_v52, %v3740_v20  ;;  %v4533_v13 = vmul.f32 %v15647_v49, %v14087_v8  ;;  %v15649_v20 = vld [vmem:[#allocation175_spill] sm:$0xff]  ;;  %v4992_v24 = vmul.f32 %v15656_v26, %v14181_v37  ;;  %v9061_v63 = vmov 0  }
 0x400   :  { %v3833_v12 = vadd.f32 %v3825_v30, %v3741_v5  ;;  %v4625_v9 = vmul.f32 %v15649_v20, %v14107_v47  ;;  %8681 = vset.pattern.permute.xlu1 %v9061_v63  ;;  %8680 = vset.pattern.permute.xlu0 %v9061_v63  ;;  %v8693_v63 = vld [vmem:[#allocation8 + $0xa8] sm:$0xff]  }
 0x401   :  { %v3924_v57 = vadd.f32 %v3916_v48, %v3832_v40  ;;  %v15650_v48 = vld [vmem:[#allocation203_spill] sm:$0xff] }
 0x402   :  { %v3925_v11 = vadd.f32 %v3917_v6, %v3833_v12  ;;  %v4716_v35 = vmul.f32 %v15650_v48, %v14121_v38  ;;  %v15652_v6 = vld [vmem:[#allocation204_spill] sm:$0xff]  ;;  %v15654_v12 = vld [vmem:[#allocation205_spill] sm:$0xff] }
 0x403   :  { %v4016_v50 = vadd.f32 %v4008_v56, %v3924_v57  ;;  %v4808_v8 = vmul.f32 %v15652_v6, %v14138_v1  ;;  %v4900_v47 = vmul.f32 %v15654_v12, %v14157_v41 }
 0x404   :  { %v4017_v45 = vadd.f32 %v4009_v54, %v3925_v11  ;;  %v15655_v54 = vld [vmem:[#allocation206_spill] sm:$0xff]  ;;  %v15657_v11 = vld [vmem:[#allocation16_spill] sm:$0xff] }
 0x405   :  { %v4108_v33 = vadd.f32 %v4100_v4, %v4016_v50  ;;  %v4901_v38 = vmul.f32 %v15655_v54, %v14171_v58  ;;  %v4993_v1 = vmul.f32 %v15657_v11, %v14187_v3 }
 0x406   :  { %v4109_v34 = vadd.f32 %v4101_v36, %v4017_v45 }
 0x407   :  { %v4200_v19 = vadd.f32 %v4192_v55, %v4108_v33  ;;  %v15658_v55 = vld [vmem:[#allocation17_spill] sm:$0xff]  ;;  %v5030_v33 = vpop.xlane.xlu1 %5029 }
 0x408   :  { %v4201_v60 = vadd.f32 %v4193_v16, %v4109_v34 }
 0x409   :  { %v4356_v25 = vadd.f32 %v4348_v61, %v4200_v19 }
 0x40a   :  { %v4357_v52 = vadd.f32 %v4349_v27, %v4201_v60  ;;  %v15661_v60 = vld [vmem:[#allocation192_spill] sm:$0xff] }
 0x40b   :  { %v4448_v43 = vadd.f32 %v4440_v46, %v4356_v25 }
 0x40c   :  { %v4449_v30 = vadd.f32 %v4441_v2, %v4357_v52  ;;  %v15663_v52 = vld [vmem:[#allocation19_spill] sm:$0xff] }
 0x40d   :  { %v4540_v22 = vadd.f32 %v4532_v28, %v4448_v43  ;;  %v5027_v21 = vpop.xlane.xlu0 %5026 }
 0x40e   :  { %v4541_v5 = vadd.f32 %v4533_v13, %v4449_v30 }
 0x40f   :  { %v4632_v39 = vadd.f32 %v4624_v0, %v4540_v22 }
 0x410   :  { %v4633_v40 = vadd.f32 %v4625_v9, %v4541_v5  ;;  %v5099_v5 = vld [vmem:[%s14653_s4] sm:$0xff] }
 0x411   :  { %v4724_v56 = vadd.f32 %v4716_v35, %v4632_v39 }
 0x412   :  { %v4725_v62 = vadd.f32 %v4717_v59, %v4633_v40 }
 0x413   :  { %v4816_v57 = vadd.f32 %v4808_v8, %v4724_v56 }
 0x414   :  { %v4817_v4 = vadd.f32 %v4809_v51, %v4725_v62  ;;  %v5073_v62 = vld [vmem:[%s14652_s3] sm:$0xff] }
 0x415   :  { %v4908_v18 = vadd.f32 %v4900_v47, %v4816_v57  ;;  %v5074_v57 = vld [vmem:[%s14652_s3 + $0x8] sm:$0xff] }
 0x416   :  { %v4909_v36 = vadd.f32 %v4901_v38, %v4817_v4  ;;  %v5100_v4 = vld [vmem:[%s14653_s4 + $0x8] sm:$0xff] }
 0x417   :  { %v5000_v50 = vadd.f32 %v4992_v24, %v4908_v18 }
 0x418   :  { %v5001_v15 = vadd.f32 %v4993_v1, %v4909_v36 }
 0x419   :  { %v5009_v10 = vmul.f32 %v15560_v7, %v5000_v50 }
 0x41a   :  { %v5010_v41 = vmul.f32 %v15560_v7, %v5001_v15  ;;  %v15660_v7 = vld [vmem:[#allocation191_spill] sm:$0xff] }
 0x41b   :  { %v5021_v45 = vadd.f32 %v15658_v55, %v5009_v10 }
 0x41c   :  { %v5022_v58 = vadd.f32 %v15659_v32, %v5010_v41 }
 0x41e   :  { %v5031_v16 = vadd.f32 %v5022_v58, %v5021_v45 }
 0x420   :  { %5032 = vadd.xlane.f32.xlu0 %v5031_v16 }
 0x468   :  { %v5036_v37 = vpop.xlane.xlu1 %5035 }
 0x469   :  { %v5038_v61 = vadd.f32 %v5036_v37, %v5030_v33 }
 0x46b   :  { %v5040_v34 = vmul.f32 0.001953125, %v5038_v61 }
 0x46d   :  { %v14354_v19 = vsub.f32 %v14224_v42, %v5040_v34  ;;  %v14357_v17 = vsub.f32 %v14231_v53, %v5040_v34  ;;  %v5043_v46 = vsub.f32 %v15660_v7, %v5040_v34  ;;  %v5044_v23 = vsub.f32 %v15661_v60, %v5040_v34 }
 0x46f   :  { %v5055_v42 = vmul.f32 %v14354_v19, %v14354_v19  ;;  %v5056_v53 = vmul.f32 %v14357_v17, %v14357_v17  ;;  %v5051_v9 = vmul.f32 %v5043_v46, %v5043_v46  ;;  %v5052_v22 = vmul.f32 %v5044_v23, %v5044_v23 }
 0x471   :  { %v5066_v48 = vadd.f32 %v5056_v53, %v5055_v42  ;;  %v5060_v35 = vadd.f32 %v5052_v22, %v5051_v9  ;;  %v8683_v42 = vld [vmem:[#allocation8 + $0xf8] sm:$0xff]   ;;  %v8688_v9 = vld [vmem:[#allocation8 + $0x30] sm:$0xff]  }
 0x472   :  { %v8684_v53 = vld [vmem:[#allocation8 + $0x38] sm:$0xff]   ;;  %8336 = vmatprep.subr.bf16.mxu1 %v8683_v42  ;;  %v8689_v22 = vld [vmem:[#allocation8 + $0xb0] sm:$0xff]  }
 0x4a9   :  { %v5033_v3 = vpop.xlane.xlu0 %5032 }
 0x4aa   :  { %v5037_v31 = vadd.f32 %v5033_v3, %v5027_v21 }
 0x4ac   :  { %v5039_v27 = vmul.f32 0.001953125, %v5037_v31 }
 0x4ae   :  { %v5045_v2 = vsub.f32 %v5021_v45, %v5039_v27  ;;  %v5046_v25 = vsub.f32 %v5022_v58, %v5039_v27  ;;  %v5041_v28 = vsub.f32 %v15662_v44, %v5039_v27  ;;  %v5042_v49 = vsub.f32 %v15663_v52, %v5039_v27 }
 0x4b0   :  { %v5053_v13 = vmul.f32 %v5045_v2, %v5045_v2  ;;  %v5054_v43 = vmul.f32 %v5046_v25, %v5046_v25  ;;  %v5049_v29 = vmul.f32 %v5041_v28, %v5041_v28  ;;  %v5050_v0 = vmul.f32 %v5042_v49, %v5042_v49 }
 0x4b2   :  { %v5063_v30 = vadd.f32 %v5054_v43, %v5053_v13  ;;  %v5057_v20 = vadd.f32 %v5050_v0, %v5049_v29  ;;  %v8682_v0 = vld [vmem:[#allocation8 + $0x78] sm:$0xff]  }
 0x4b3   :  { %8314 = vmatprep.subr.bf16.mxu0 %v8682_v0 }
 0x4b4   :  { %5064 = vadd.xlane.f32.xlu1 %v5063_v30  ;;  %5058 = vadd.xlane.f32.xlu0 %v5057_v20  ;;  %v8686_v30 = vld [vmem:[#allocation8 + $0x70] sm:$0xff]  }
 0x4b5   :  { %v8687_v20 = vld [vmem:[#allocation8 + $0xf0] sm:$0xff]   ;;  %8315 = vmatpush3.bf16.msra.mxu0 %v8684_v53  ;;  %v8716_v53 = vld [vmem:[#allocation8 + $0x138] sm:$0xff]  }
 0x4b6   :  { %8316 = vmatprep.subr.bf16.mxu0 %v8686_v30 }
 0x4b8   :  { %5067 = vadd.xlane.f32.xlu1 %v5066_v48  ;;  %5061 = vadd.xlane.f32.xlu0 %v5060_v35  ;;  %v8690_v48 = vld [vmem:[#allocation8 + $0x68] sm:$0xff]  }
 0x4b9   :  { %v8691_v35 = vld [vmem:[#allocation8 + $0xe8] sm:$0xff]   ;;  %8317 = vmatpush3.bf16.msra.mxu0 %v8688_v9 }
 0x4ba   :  { %8318 = vmatprep.subr.bf16.mxu0 %v8690_v48 }
 0x4c9   :  { %5103 = vperm.xlu1 %8681, %v5099_v5   ;;  %v8692_v5 = vld [vmem:[#allocation8 + $0x28] sm:$0xff]  }
 0x4ca   :  { %8319 = vmatpush3.bf16.msra.mxu0 %v8692_v5  ;;  %v8718_v5 = vld [vmem:[#allocation8 + $0x170] sm:$0xff]  }
 0x53d   :  { %v5065_v59 = vpop.xlane.xlu1 %5064  ;;  %v5059_v39 = vpop.xlane.xlu0 %5058 }
 0x53e   :  { %v5069_v6 = vadd.f32 %v5065_v59, %v5059_v39  ;;  %v8694_v59 = vld [vmem:[#allocation8 + $0x60] sm:$0xff]  }
 0x53f   :  { %v8695_v39 = vld [vmem:[#allocation8 + $0xe0] sm:$0xff]   ;;  %8320 = vmatprep.subr.bf16.mxu0 %v8694_v59 }
 0x540   :  { %v5071_v8 = vmul.f32 0.001953125, %v5069_v6  ;;  %v8696_v6 = vld [vmem:[#allocation8 + $0x20] sm:$0xff]  }
 0x541   :  { %v5068_v40 = vpop.xlane.xlu1 %5067  ;;  %v5062_v14 = vpop.xlane.xlu0 %5061  ;;  %8321 = vmatpush3.bf16.msra.mxu0 %v8696_v6 }
 0x542   :  { %v5075_v51 = vadd.f32 1e-05, %v5071_v8  ;;  %v5070_v56 = vadd.f32 %v5068_v40, %v5062_v14  ;;  %v8697_v8 = vld [vmem:[#allocation8 + $0xa0] sm:$0xff]   ;;  %v8698_v40 = vld [vmem:[#allocation8 + $0x58] sm:$0xff]  }
 0x543   :  { %v8699_v14 = vld [vmem:[#allocation8 + $0xd8] sm:$0xff]   ;;  %8322 = vmatprep.subr.bf16.mxu0 %v8698_v40 }
 0x544   :  { %8938 = vrsqrt.f32 %v5075_v51  ;;  %v5072_v12 = vmul.f32 0.001953125, %v5070_v56  ;;  %v8700_v51 = vld [vmem:[#allocation8 + $0x18] sm:$0xff]  }
 0x545   :  { %v5104_v11 = vpop.permute.xlu1 %5103  ;;  %v8701_v56 = vld [vmem:[#allocation8 + $0x98] sm:$0xff]   ;;  %8323 = vmatpush3.bf16.msra.mxu0 %v8700_v51  ;;  %v8720_v51 = vld [vmem:[#allocation8 + $0x130] sm:$0xff]  }
 0x546   :  { %v5076_v47 = vadd.f32 1e-05, %v5072_v12  ;;  %v8702_v12 = vld [vmem:[#allocation8 + $0x50] sm:$0xff]  }
 0x547   :  { %8324 = vmatprep.subr.bf16.mxu0 %v8702_v12 }
 0x548   :  { %8940 = vrsqrt.f32 %v5076_v47  ;;  %v8703_v47 = vld [vmem:[#allocation8 + $0xd0] sm:$0xff]  }
 0x551   :  { %v8939_v54 = vpop.eup %8938 }
 0x552   :  { %v5079_v38 = vmul.f32 %v8939_v54, %v5073_v62  ;;  %v8704_v62 = vld [vmem:[#allocation8 + $0x10] sm:$0xff]  }
 0x553   :  { %v8705_v54 = vld [vmem:[#allocation8 + $0x90] sm:$0xff]   ;;  %8325 = vmatpush3.bf16.msra.mxu0 %v8704_v62 }
 0x554   :  { %5083 = vperm.xlu0 %8680, %v5079_v38   ;;  %v8706_v38 = vld [vmem:[#allocation8 + $0x48] sm:$0xff]  }
 0x555   :  { %v8941_v26 = vpop.eup %8940  ;;  %8326 = vmatprep.subr.bf16.mxu0 %v8706_v38  ;;  %v8723_v38 = vld [vmem:[#allocation8 + $0x1e8] sm:$0xff]  }
 0x556   :  { %v5080_v24 = vmul.f32 %v8941_v26, %v5074_v57  ;;  %v8707_v57 = vld [vmem:[#allocation8 + $0xc8] sm:$0xff]  }
 0x557   :  { %v8708_v26 = vld [vmem:[#allocation8 + $0x8] sm:$0xff]  }
 0x558   :  { %5088 = vperm.xlu1 %8681, %v5080_v24   ;;  %v8709_v24 = vld [vmem:[#allocation8 + $0x88] sm:$0xff]   ;;  %8327 = vmatpush3.bf16.msra.mxu0 %v8708_v26 }
 0x55c   :  { %5108 = vperm.xlu1 %8681, %v5100_v4   ;;  %v8710_v4 = vld [vmem:[#allocation8 + $0x40] sm:$0xff]  }
 0x55d   :  { %8328 = vmatprep.subr.bf16.mxu0 %v8710_v4 }
 0x5cf   :  { %v5084_v1 = vpop.permute.xlu0 %5083 }
 0x5d0   :  { %v5091_v18 = vmul.f32 %v5084_v1, %v5041_v28  ;;  %v5092_v36 = vmul.f32 %v5084_v1, %v5042_v49  ;;  %v5095_v41 = vmul.f32 %v5084_v1, %v5045_v2  ;;  %v5096_v33 = vmul.f32 %v5084_v1, %v5046_v25  ;;  %v8712_v1 = vld [vmem:[#allocation8] sm:$0xff]  }
 0x5d1   :  { %8329 = vmatpush3.bf16.msra.mxu0 %v8712_v1 }
 0x5d2   :  { %v14379_v50 = vadd.f32 %v5104_v11, %v5091_v18  ;;  %v14381_v15 = vadd.f32 %v5104_v11, %v5092_v36  ;;  %v14389_v61 = vadd.f32 %v5104_v11, %v5095_v41  ;;  %v14392_v31 = vadd.f32 %v5104_v11, %v5096_v33  ;;  %v8711_v11 = vld [vmem:[#allocation8 + $0xc0] sm:$0xff]   ;;  %v8714_v36 = vld [vmem:[#allocation8 + $0x178] sm:$0xff]  }
 0x5d3   :  { %v5089_v10 = vpop.permute.xlu1 %5088  ;;  %v8713_v18 = vld [vmem:[#allocation8 + $0x80] sm:$0xff]   ;;  %8358 = vmatprep.subr.bf16.mxu0 %v8714_v36 }
 0x5d4   :  { %v5119_v55 = vmax.f32 %v14379_v50, 0.0  ;;  %v5120_v45 = vmax.f32 %v14381_v15, 0.0  ;;  %v5093_v32 = vmul.f32 %v5089_v10, %v5043_v46  ;;  %v5094_v58 = vmul.f32 %v5089_v10, %v5044_v23 }
 0x5d5   :  { %v5097_v27 = vmul.f32 %v5089_v10, %v14354_v19  ;;  %v5123_v46 = vmax.f32 %v14389_v61, 0.0  ;;  %v5098_v23 = vmul.f32 %v5089_v10, %v14357_v17  ;;  %v5124_v28 = vmax.f32 %v14392_v31, 0.0  ;;  %v8685_v17 = vld [vmem:[#allocation8 + $0xb8] sm:$0xff]  }
 0x5d6   :  { %v5127_v34 = vadd.f32 %v5120_v45, %v5119_v55  ;;  %8337 = vmatpush3.bf16.msra.mxu1 %v8685_v17  ;;  %v8715_v10 = vld [vmem:[#allocation8 + $0x1f8] sm:$0xff]   ;;  %vm5144_vm7 = vcmp.gt.f32.partialorder %v14379_v50, 0.0  ;;  %vm5145_vm8 = vcmp.gt.f32.partialorder %v14381_v15, 0.0  ;;  %vm5148_vm9 = vcmp.gt.f32.partialorder %v14389_v61, 0.0 }
 0x5d7   :  { %v5109_v16 = vpop.permute.xlu1 %5108  ;;  %8338 = vmatprep.subr.bf16.mxu1 %v8687_v20  ;;  %vm5149_vm10 = vcmp.gt.f32.partialorder %v14392_v31, 0.0  ;;  %v8717_v17 = vld [vmem:[#allocation8 + $0x1b8] sm:$0xff]  }
 0x5d8   :  { %v14385_v37 = vadd.f32 %v5109_v16, %v5093_v32  ;;  %v14387_v21 = vadd.f32 %v5109_v16, %v5094_v58  ;;  %v14398_v2 = vadd.f32 %v5109_v16, %v5097_v27  ;;  %v14400_v44 = vadd.f32 %v5109_v16, %v5098_v23 }
 0x5da   :  { %v5121_v3 = vmax.f32 %v14385_v37, 0.0  ;;  %v5122_v7 = vmax.f32 %v14387_v21, 0.0  ;;  %v5125_v49 = vmax.f32 %v14398_v2, 0.0  ;;  %v5126_v19 = vmax.f32 %v14400_v44, 0.0  ;;  %8339 = vmatpush3.bf16.msra.mxu1 %v8689_v22 }
 0x5db   :  { %8340 = vmatprep.subr.bf16.mxu1 %v8691_v35  ;;  %vm5146_vm11 = vcmp.gt.f32.partialorder %v14385_v37, 0.0  ;;  %vm5147_vm12 = vcmp.gt.f32.partialorder %v14387_v21, 0.0  ;;  %vm5150_vm13 = vcmp.gt.f32.partialorder %v14398_v2, 0.0  ;;  %vm5151_vm14 = vcmp.gt.f32.partialorder %v14400_v44, 0.0 }
 0x5dc   :  { %v5128_v60 = vadd.f32 %v5127_v34, %v5121_v3 }
 0x5de   :  { %v5129_v25 = vadd.f32 %v5128_v60, %v5122_v7  ;;  %8341 = vmatpush3.bf16.msra.mxu1 %v8693_v63  ;;  %v8719_v63 = vld [vmem:[#allocation8 + $0x1f0] sm:$0xff]  }
 0x5df   :  { %8342 = vmatprep.subr.bf16.mxu1 %v8695_v39 }
 0x5e0   :  { %v5130_v52 = vadd.f32 %v5129_v25, %v5123_v46 }
 0x5e2   :  { %v5131_v13 = vadd.f32 %v5130_v52, %v5124_v28  ;;  %8343 = vmatpush3.bf16.msra.mxu1 %v8697_v8 }
 0x5e3   :  { %8344 = vmatprep.subr.bf16.mxu1 %v8699_v14 }
 0x5e4   :  { %v5132_v43 = vadd.f32 %v5131_v13, %v5125_v49 }
 0x5e6   :  { %v5133_v29 = vadd.f32 %v5132_v43, %v5126_v19  ;;  %8345 = vmatpush3.bf16.msra.mxu1 %v8701_v56  ;;  %v8721_v56 = vld [vmem:[#allocation8 + $0x1b0] sm:$0xff]  }
 0x5e7   :  { %8346 = vmatprep.subr.bf16.mxu1 %v8703_v47 }
 0x5e8   :  { %5134 = vadd.xlane.f32.xlu1 %v5133_v29 }
 0x5ea   :  { %8347 = vmatpush3.bf16.msra.mxu1 %v8705_v54  ;;  %v8722_v54 = vld [vmem:[#allocation8 + $0x168] sm:$0xff]  }
 0x5eb   :  { %8348 = vmatprep.subr.bf16.mxu1 %v8707_v57 }
 0x5ee   :  { %8349 = vmatpush3.bf16.msra.mxu1 %v8709_v24 }
 0x5ef   :  { %8350 = vmatprep.subr.bf16.mxu1 %v8711_v11 }
 0x5f2   :  { %8351 = vmatpush3.bf16.msra.mxu1 %v8713_v18 }
 0x5f3   :  { %8380 = vmatprep.subr.bf16.mxu1 %v8715_v10 }
 0x671   :  { %v5135_v41 = vpop.xlane.xlu1 %5134 }
 0x672   :  { %v5136_v55 = vrot.slane %v5135_v41, 4 }
 0x674   :  { %v5137_v45 = vadd.f32 %v5136_v55, %v5135_v41  ;;  %v8724_v41 = vld [vmem:[#allocation8 + $0x128] sm:$0xff]  }
 0x675   :  { %v8725_v55 = vld [vmem:[#allocation8 + $0x1a8] sm:$0xff]  }
 0x676   :  { %v5138_v32 = vrot.slane %v5137_v45, 2 }
 0x678   :  { %v5139_v58 = vadd.f32 %v5138_v32, %v5137_v45 }
 0x67a   :  { %v5140_v16 = vrot.slane %v5139_v58, 1 }
 0x67c   :  { %v5141_v33 = vadd.f32 %v5140_v16, %v5139_v58  ;;  %v8726_v16 = vld [vmem:[#allocation8 + $0x160] sm:$0xff]  }
 0x67e   :  { %8666 = vpush %v5141_v33  ;;  %v8727_v33 = vld [vmem:[#allocation8 + $0x1e0] sm:$0xff]  }
 0x6af   :  { %s8667_s3 = spop %8666 }
 0x6b0   :  { %s5143_s4 = smul.f32 0.00012207031, %s8667_s3 }
 0x6b2   :  { %v5152_v34 = vstv %s5143_s4 }
 0x6b3   :  { %v14413_v3 = vsel %vm5144_vm7, %v5152_v34, 0.0  ;;  %v14415_v27 = vsel %vm5145_vm8, %v5152_v34, 0.0  ;;  %v14417_v50 = vsel %vm5146_vm11, %v5152_v34, 0.0  ;;  %v14419_v15 = vsel %vm5147_vm12, %v5152_v34, 0.0 }
 0x6b4   :  { %v14421_v61 = vsel %vm5148_vm9, %v5152_v34, 0.0  ;;  %v14423_v31 = vsel %vm5149_vm10, %v5152_v34, 0.0  ;;  %v14425_v37 = vsel %vm5150_vm13, %v5152_v34, 0.0  ;;  %v14427_v21 = vsel %vm5151_vm14, %v5152_v34, 0.0  ;;  %5161 = vst [vmem:[#allocation10] sm:$0xff] %v14413_v3  ;;  %5162 = vst [vmem:[#allocation10 + $0x8] sm:$0xff] %v14415_v27 }
 0x6b5   :  { %5163 = vst [vmem:[#allocation10 + $0x10] sm:$0xff] %v14417_v50  ;;  %5164 = vst [vmem:[#allocation10 + $0x18] sm:$0xff] %v14419_v15  ;;  %v5175_v7 = vrot.slane %v14423_v31, 7  ;;  %v5181_v60 = vrot.slane %v14415_v27, 1  ;;  %v5173_v46 = vrot.slane %v14421_v61, 7  ;;  %v5179_v23 = vrot.slane %v14413_v3, 1 }
 0x6b6   :  { %5165 = vst [vmem:[#allocation10 + $0x20] sm:$0xff] %v14421_v61  ;;  %5166 = vst [vmem:[#allocation10 + $0x28] sm:$0xff] %v14423_v31  ;;  %v5188_v2 = vrot.slane %v14415_v27, 2  ;;  %v5189_v25 = vrot.slane %v14423_v31, 1  ;;  %v5196_v44 = vrot.slane %v14415_v27, 3  ;;  %v5197_v28 = vrot.slane %v14423_v31, 2 }
 0x6b7   :  { %5167 = vst [vmem:[#allocation10 + $0x30] sm:$0xff] %v14425_v37  ;;  %5168 = vst [vmem:[#allocation10 + $0x38] sm:$0xff] %v14427_v21  ;;  %v5176_v52 = vsel %vm198_vm0, %v5175_v7, %v14415_v27  ;;  %v5182_v49 = vsel %vm198_vm0, %v14423_v31, %v5181_v60  ;;  %v5174_v13 = vsel %vm198_vm0, %v5173_v46, %v14413_v3  ;;  %v5185_v9 = vrot.slane %v14413_v3, 2 }
 0x6b8   :  { %v5180_v19 = vsel %vm198_vm0, %v14421_v61, %v5179_v23  ;;  %v5298_v43 = vpack.c.bf16 %v5176_v52, %v5176_v52  ;;  %v5300_v29 = vpack.c.bf16 %v5182_v49, %v5182_v49  ;;  %v5297_v0 = vpack.c.bf16 %v5174_v13, %v5174_v13  ;;  %v8730_v49 = vld [vmem:[#allocation8 + $0x158] sm:$0xff]  }
 0x6b9   :  { %v5299_v42 = vpack.c.bf16 %v5180_v19, %v5180_v19  ;;  %v5190_v30 = vsel %vm198_vm0, %v5189_v25, %v5188_v2  ;;  %v5198_v20 = vsel %vm198_vm0, %v5197_v28, %v5196_v44  ;;  %v5186_v22 = vrot.slane %v14421_v61, 1  ;;  %v8728_v44 = vld [vmem:[#allocation8 + $0x120] sm:$0xff]   ;;  %v8731_v13 = vld [vmem:[#allocation8 + $0x1d8] sm:$0xff]  }
 0x6ba   :  { %7416 = vmatprep.mubr.bf16.mxu0 %v5298_v43  ;;  %7456 = vmatprep.mubr.bf16.mxu1 %v5300_v29  ;;  %v5302_v48 = vpack.c.bf16 %v5190_v30, %v5190_v30  ;;  %v5304_v35 = vpack.c.bf16 %v5198_v20, %v5198_v20  ;;  %v5193_v59 = vrot.slane %v14413_v3, 3  ;;  %v5194_v39 = vrot.slane %v14421_v61, 2  ;;  %v8729_v28 = vld [vmem:[#allocation8 + $0x1a0] sm:$0xff]   ;;  %v8732_v30 = vld [vmem:[#allocation8 + $0x118] sm:$0xff]  }
 0x6bb   :  { %7417 = vmatmul.mubr.bf16.vlgmr.msra.gmra.mxu0 %v5297_v0  ;;  %7457 = vmatmul.mubr.bf16.vlgmr.msra.gmra.mxu1 %v5299_v42  ;;  %v14460_v6 = vsel %vm198_vm0, %v5186_v22, %v5185_v9  ;;  %v5204_v8 = vrot.slane %v14415_v27, 4  ;;  %v5205_v40 = vrot.slane %v14423_v31, 3  ;;  %v5212_v14 = vrot.slane %v14415_v27, 5  ;;  %v8733_v20 = vld [vmem:[#allocation8 + $0x198] sm:$0xff]  }
 0x6bc   :  { %8359 = vmatpush3.bf16.msra.mxu0 %v8716_v53  ;;  %8381 = vmatpush3.bf16.msra.mxu1 %v8717_v17  ;;  %v14466_v12 = vsel %vm198_vm0, %v5194_v39, %v5193_v59  ;;  %v5213_v47 = vrot.slane %v14423_v31, 4  ;;  %v5201_v62 = vrot.slane %v14413_v3, 4  ;;  %v5202_v26 = vrot.slane %v14421_v61, 3 }
 0x6bd   :  { %7496 = vmatprep.mubr.bf16.mxu0 %v5302_v48  ;;  %7536 = vmatprep.mubr.bf16.mxu1 %v5304_v35  ;;  %v14471_v57 = vsel %vm198_vm0, %v5205_v40, %v5204_v8  ;;  %v5209_v24 = vrot.slane %v14413_v3, 5  ;;  %v5210_v11 = vrot.slane %v14421_v61, 4  ;;  %v5220_v1 = vrot.slane %v14415_v27, 6 }
 0x6be   :  { %8360 = vmatprep.subr.bf16.mxu0 %v8718_v5  ;;  %8382 = vmatprep.subr.bf16.mxu1 %v8719_v63  ;;  %v14476_v4 = vsel %vm198_vm0, %v5213_v47, %v5212_v14  ;;  %v14481_v18 = vsel %vm198_vm0, %v5202_v26, %v5201_v62  ;;  %v5221_v36 = vrot.slane %v14423_v31, 5  ;;  %v5228_v10 = vrot.slane %v14415_v27, 7  ;;  %v8734_v5 = vld [vmem:[#allocation8 + $0x150] sm:$0xff]  }
 0x6bf   :  { %v14486_v45 = vsel %vm198_vm0, %v5210_v11, %v5209_v24  ;;  %v5229_v32 = vrot.slane %v14423_v31, 6  ;;  %v5217_v58 = vrot.slane %v14413_v3, 6  ;;  %v5218_v27 = vrot.slane %v14421_v61, 5  ;;  %v8735_v63 = vld [vmem:[#allocation8 + $0x1d0] sm:$0xff]  }
 0x6c0   :  { %8361 = vmatpush3.bf16.msra.mxu0 %v8720_v51  ;;  %8383 = vmatpush3.bf16.msra.mxu1 %v8721_v56  ;;  %v14491_v34 = vsel %vm198_vm0, %v5221_v36, %v5220_v1  ;;  %v5225_v7 = vrot.slane %v14413_v3, 7  ;;  %v5226_v46 = vrot.slane %v14421_v61, 6  ;;  %v5239_v31 = vrot.slane %v14427_v21, 7  ;;  %v8738_v1 = vld [vmem:[#allocation8 + $0x148] sm:$0xff]  }
 0x6c1   :  { %8362 = vmatprep.subr.bf16.mxu0 %v8722_v54  ;;  %8384 = vmatprep.subr.bf16.mxu1 %v8723_v38  ;;  %v14496_v60 = vsel %vm198_vm0, %v5229_v32, %v5228_v10  ;;  %v14501_v23 = vsel %vm198_vm0, %v5218_v27, %v5217_v58  ;;  %v5245_v2 = vrot.slane %v14419_v15, 1  ;;  %v5237_v25 = vrot.slane %v14425_v37, 7  ;;  %v8736_v54 = vld [vmem:[#allocation8 + $0x110] sm:$0xff]   ;;  %v8739_v36 = vld [vmem:[#allocation8 + $0x1c8] sm:$0xff]  }
 0x6c2   :  { %v14506_v3 = vsel %vm198_vm0, %v5226_v46, %v5225_v7  ;;  %v14510_v52 = vsel %vm198_vm0, %v5239_v31, %v14419_v15  ;;  %v5243_v61 = vrot.slane %v14417_v50, 1  ;;  %v5252_v43 = vrot.slane %v14419_v15, 2  ;;  %v8737_v38 = vld [vmem:[#allocation8 + $0x190] sm:$0xff]   ;;  %v8740_v46 = vld [vmem:[#allocation8 + $0x108] sm:$0xff]  }
 0x6c3   :  { %v14515_v19 = vsel %vm198_vm0, %v14427_v21, %v5245_v2  ;;  %v14520_v29 = vsel %vm198_vm0, %v5237_v25, %v14417_v50  ;;  %v5253_v42 = vrot.slane %v14427_v21, 1  ;;  %v5260_v53 = vrot.slane %v14419_v15, 3  ;;  %v8741_v31 = vld [vmem:[#allocation8 + $0x188] sm:$0xff]  }
 0x6c4   :  { %8363 = vmatpush3.bf16.msra.mxu0 %v8724_v41  ;;  %8385 = vmatpush3.bf16.msra.mxu1 %v8725_v55  ;;  %v14524_v0 = vsel %vm198_vm0, %v14425_v37, %v5243_v61  ;;  %v5261_v17 = vrot.slane %v14427_v21, 2  ;;  %v5249_v22 = vrot.slane %v14417_v50, 2  ;;  %v5250_v48 = vrot.slane %v14425_v37, 1 }
 0x6c5   :  { %8364 = vmatprep.subr.bf16.mxu0 %v8726_v16  ;;  %8386 = vmatprep.subr.bf16.mxu1 %v8727_v33  ;;  %v14530_v9 = vsel %vm198_vm0, %v5253_v42, %v5252_v43  ;;  %v5257_v35 = vrot.slane %v14417_v50, 3  ;;  %v5258_v39 = vrot.slane %v14425_v37, 2  ;;  %v5268_v8 = vrot.slane %v14419_v15, 4  ;;  %v8744_v43 = vld [vmem:[#allocation8 + $0x100] sm:$0xff]  }
 0x6c6   :  { %v14536_v59 = vsel %vm198_vm0, %v5261_v17, %v5260_v53  ;;  %v14541_v40 = vsel %vm198_vm0, %v5250_v48, %v5249_v22  ;;  %v5269_v14 = vrot.slane %v14427_v21, 3  ;;  %v5276_v51 = vrot.slane %v14419_v15, 5  ;;  %v8745_v42 = vld [vmem:[#allocation8 + $0x180] sm:$0xff]   ;;  %v8747_v53 = vld [vmem:[#allocation8 + $0x2f8] sm:$0xff]   ;;  %v8750_v48 = vld [vmem:[#allocation8 + $0x270] sm:$0xff]  }
 0x6c7   :  { %v14546_v56 = vsel %vm198_vm0, %v5258_v39, %v5257_v35  ;;  %v5277_v47 = vrot.slane %v14427_v21, 4  ;;  %v5265_v62 = vrot.slane %v14417_v50, 4  ;;  %v5266_v24 = vrot.slane %v14425_v37, 3  ;;  %v8748_v17 = vld [vmem:[#allocation8 + $0x238] sm:$0xff]   ;;  %v8751_v35 = vld [vmem:[#allocation8 + $0x2f0] sm:$0xff]   ;;  %v8755_v39 = vld [vmem:[#allocation8 + $0x2e8] sm:$0xff]  }
 0x6c8   :  { %8365 = vmatpush3.bf16.msra.mxu0 %v8728_v44  ;;  %8387 = vmatpush3.bf16.msra.mxu1 %v8729_v28  ;;  %v14551_v26 = vsel %vm198_vm0, %v5269_v14, %v5268_v8  ;;  %v5273_v11 = vrot.slane %v14417_v50, 5  ;;  %v5274_v41 = vrot.slane %v14425_v37, 4  ;;  %v5284_v55 = vrot.slane %v14419_v15, 6  ;;  %v8743_v28 = vld [vmem:[#allocation8 + $0x1c0] sm:$0xff]   ;;  %v8756_v8 = vld [vmem:[#allocation8 + $0x228] sm:$0xff]  }
 0x6c9   :  { %8366 = vmatprep.subr.bf16.mxu0 %v8730_v49  ;;  %8388 = vmatprep.subr.bf16.mxu1 %v8731_v13  ;;  %v14556_v10 = vsel %vm198_vm0, %v5277_v47, %v5276_v51  ;;  %v14561_v32 = vsel %vm198_vm0, %v5266_v24, %v5265_v62  ;;  %v5285_v58 = vrot.slane %v14427_v21, 5  ;;  %v5292_v16 = vrot.slane %v14419_v15, 7  ;;  %v8742_v15 = vld [vmem:[#allocation8 + $0x140] sm:$0xff]   ;;  %v8762_v62 = vld [vmem:[#allocation8 + $0x258] sm:$0xff]  }
 0x6ca   :  { %v14566_v33 = vsel %vm198_vm0, %v5274_v41, %v5273_v11  ;;  %v5293_v27 = vrot.slane %v14427_v21, 6  ;;  %v5281_v7 = vrot.slane %v14417_v50, 6  ;;  %v5282_v25 = vrot.slane %v14425_v37, 5  ;;  %v8758_v14 = vld [vmem:[#allocation8 + $0x260] sm:$0xff]   ;;  %v8765_v24 = vld [vmem:[#allocation8 + $0x298] sm:$0xff]   ;;  %v8766_v11 = vld [vmem:[#allocation8 + $0x250] sm:$0xff]  }
 0x6cb   :  { %v14571_v2 = vsel %vm198_vm0, %v5285_v58, %v5284_v55  ;;  %v5289_v44 = vrot.slane %v14417_v50, 7  ;;  %v5290_v21 = vrot.slane %v14425_v37, 6  ;;  %v8746_v50 = vld [vmem:[#allocation8 + $0x278] sm:$0xff]   ;;  %v5301_v37 = vpack.c.bf16 %v14460_v6, %v14460_v6  ;;  %v8753_v6 = vld [vmem:[#allocation8 + $0x2b0] sm:$0xff]   ;;  %v8759_v51 = vld [vmem:[#allocation8 + $0x2e0] sm:$0xff]  }
 0x6cc   :  { %8367 = vmatpush3.bf16.msra.mxu0 %v8732_v30  ;;  %8389 = vmatpush3.bf16.msra.mxu1 %v8733_v20  ;;  %v14576_v61 = vsel %vm198_vm0, %v5293_v27, %v5292_v16  ;;  %v14580_v49 = vsel %vm198_vm0, %v5282_v25, %v5281_v7  ;;  %v5303_v30 = vpack.c.bf16 %v14466_v12, %v14466_v12  ;;  %v8749_v20 = vld [vmem:[#allocation8 + $0x2b8] sm:$0xff]   ;;  %v8754_v12 = vld [vmem:[#allocation8 + $0x268] sm:$0xff]   ;;  %v8761_v47 = vld [vmem:[#allocation8 + $0x2a0] sm:$0xff]  }
 0x6cd   :  { %8368 = vmatprep.subr.bf16.mxu0 %v8734_v5  ;;  %8390 = vmatprep.subr.bf16.mxu1 %v8735_v63  ;;  %v14583_v13 = vsel %vm198_vm0, %v5290_v21, %v5289_v44  ;;  %v5306_v22 = vpack.c.bf16 %v14471_v57, %v14471_v57  ;;  %v5308_v5 = vpack.c.bf16 %v14476_v4, %v14476_v4  ;;  %v8752_v63 = vld [vmem:[#allocation8 + $0x230] sm:$0xff]   ;;  %v8757_v57 = vld [vmem:[#allocation8 + $0x2a8] sm:$0xff]   ;;  %v8760_v4 = vld [vmem:[#allocation8 + $0x220] sm:$0xff]  }
 0x6ce   :  { %v8769_v41 = vld [vmem:[#allocation8 + $0x290] sm:$0xff]   ;;  %v8770_v55 = vld [vmem:[#allocation8 + $0x248] sm:$0xff]   ;;  %v8774_v7 = vld [vmem:[#allocation8 + $0x240] sm:$0xff]   ;;  %v5305_v21 = vpack.c.bf16 %v14481_v18, %v14481_v18 }
 0x6cf   :  { %v8771_v58 = vld [vmem:[#allocation8 + $0x2c8] sm:$0xff]   ;;  %v8777_v25 = vld [vmem:[#allocation8 + $0x280] sm:$0xff]   ;;  %v8778_v44 = vld [vmem:[#allocation8 + $0x378] sm:$0xff]  }
 0x6d0   :  { %8369 = vmatpush3.bf16.msra.mxu0 %v8736_v54  ;;  %8391 = vmatpush3.bf16.msra.mxu1 %v8737_v38  ;;  %v8763_v54 = vld [vmem:[#allocation8 + $0x2d8] sm:$0xff]   ;;  %v8772_v16 = vld [vmem:[#allocation8 + $0x208] sm:$0xff]   ;;  %v8785_v18 = vld [vmem:[#allocation8 + $0x3b0] sm:$0xff]  }
 0x6d1   :  { %8370 = vmatprep.subr.bf16.mxu0 %v8738_v1  ;;  %8392 = vmatprep.subr.bf16.mxu1 %v8739_v36  ;;  %v8764_v38 = vld [vmem:[#allocation8 + $0x218] sm:$0xff]   ;;  %v8767_v1 = vld [vmem:[#allocation8 + $0x2d0] sm:$0xff]   ;;  %v8773_v27 = vld [vmem:[#allocation8 + $0x288] sm:$0xff]  }
 0x6d2   :  { %v8768_v36 = vld [vmem:[#allocation8 + $0x210] sm:$0xff]  }
 0x6d4   :  { %8371 = vmatpush3.bf16.msra.mxu0 %v8740_v46  ;;  %8393 = vmatpush3.bf16.msra.mxu1 %v8741_v31  ;;  %v8775_v46 = vld [vmem:[#allocation8 + $0x2c0] sm:$0xff]  }
 0x6d5   :  { %8372 = vmatprep.subr.bf16.mxu0 %v8742_v15  ;;  %8394 = vmatprep.subr.bf16.mxu1 %v8743_v28  ;;  %v8776_v31 = vld [vmem:[#allocation8 + $0x200] sm:$0xff]   ;;  %v8779_v15 = vld [vmem:[#allocation8 + $0x3f8] sm:$0xff]  }
 0x6d6   :  { %v8780_v28 = vld [vmem:[#allocation8 + $0x338] sm:$0xff]  }
 0x6d8   :  { %8373 = vmatpush3.bf16.msra.mxu0 %v8744_v43  ;;  %8395 = vmatpush3.bf16.msra.mxu1 %v8745_v42  ;;  %v8781_v43 = vld [vmem:[#allocation8 + $0x3b8] sm:$0xff]   ;;  %v5307_v42 = vpack.c.bf16 %v14486_v45, %v14486_v45  ;;  %v8787_v45 = vld [vmem:[#allocation8 + $0x3e8] sm:$0xff]  }
 0x6d9   :  { %8402 = vmatprep.subr.bf16.mxu0 %v8746_v50  ;;  %8424 = vmatprep.subr.bf16.mxu1 %v8747_v53  ;;  %v8782_v50 = vld [vmem:[#allocation8 + $0x370] sm:$0xff]   ;;  %v5310_v53 = vpack.c.bf16 %v14491_v34, %v14491_v34  ;;  %v8789_v34 = vld [vmem:[#allocation8 + $0x3a8] sm:$0xff]  }
 0x6db   :  { %7497 = vmatmul.mubr.bf16.vlgmr.msra.gmra.mxu0 %v5301_v37  ;;  %7537 = vmatmul.mubr.bf16.vlgmr.msra.gmra.mxu1 %v5303_v30  ;;  %v5312_v37 = vpack.c.bf16 %v14496_v60, %v14496_v60  ;;  %v8784_v30 = vld [vmem:[#allocation8 + $0x330] sm:$0xff]   ;;  %v8793_v60 = vld [vmem:[#allocation8 + $0x3a0] sm:$0xff]  }
 0x6dc   :  { %8403 = vmatpush3.bf16.msra.mxu0 %v8748_v17  ;;  %7576 = vmatprep.mubr.bf16.mxu0 %v5306_v22  ;;  %v8783_v17 = vld [vmem:[#allocation8 + $0x3f0] sm:$0xff]   ;;  %v8788_v22 = vld [vmem:[#allocation8 + $0x328] sm:$0xff]  }
 0x6dd   :  { %8425 = vmatpush3.bf16.msra.mxu1 %v8749_v20  ;;  %7616 = vmatprep.mubr.bf16.mxu1 %v5308_v5  ;;  %v8786_v20 = vld [vmem:[#allocation8 + $0x368] sm:$0xff]   ;;  %v8792_v5 = vld [vmem:[#allocation8 + $0x320] sm:$0xff]  }
 0x6de   :  { %8404 = vmatprep.subr.bf16.mxu0 %v8750_v48  ;;  %8426 = vmatprep.subr.bf16.mxu1 %v8751_v35  ;;  %v8790_v48 = vld [vmem:[#allocation8 + $0x360] sm:$0xff]  }
 0x6df   :  { %v8791_v35 = vld [vmem:[#allocation8 + $0x3e0] sm:$0xff]  }
 0x6e0   :  { %8405 = vmatpush3.bf16.msra.mxu0 %v8752_v63  ;;  %v8794_v63 = vld [vmem:[#allocation8 + $0x358] sm:$0xff]  }
 0x6e1   :  { %8427 = vmatpush3.bf16.msra.mxu1 %v8753_v6  ;;  %8406 = vmatprep.subr.bf16.mxu0 %v8754_v12  ;;  %v8795_v6 = vld [vmem:[#allocation8 + $0x3d8] sm:$0xff]  }
 0x6e2   :  { %8428 = vmatprep.subr.bf16.mxu1 %v8755_v39  ;;  %v8796_v12 = vld [vmem:[#allocation8 + $0x318] sm:$0xff]  }
 0x6e3   :  { %v8797_v39 = vld [vmem:[#allocation8 + $0x398] sm:$0xff]  }
 0x6e4   :  { %8407 = vmatpush3.bf16.msra.mxu0 %v8756_v8  ;;  %v8798_v8 = vld [vmem:[#allocation8 + $0x350] sm:$0xff]  }
 0x6e5   :  { %8429 = vmatpush3.bf16.msra.mxu1 %v8757_v57  ;;  %8408 = vmatprep.subr.bf16.mxu0 %v8758_v14  ;;  %v8799_v57 = vld [vmem:[#allocation8 + $0x3d0] sm:$0xff]  }
 0x6e6   :  { %8430 = vmatprep.subr.bf16.mxu1 %v8759_v51  ;;  %v8800_v14 = vld [vmem:[#allocation8 + $0x310] sm:$0xff]  }
 0x6e7   :  { %v8801_v51 = vld [vmem:[#allocation8 + $0x390] sm:$0xff]  }
 0x6e8   :  { %8409 = vmatpush3.bf16.msra.mxu0 %v8760_v4  ;;  %v8802_v4 = vld [vmem:[#allocation8 + $0x348] sm:$0xff]  }
 0x6e9   :  { %8431 = vmatpush3.bf16.msra.mxu1 %v8761_v47  ;;  %8410 = vmatprep.subr.bf16.mxu0 %v8762_v62  ;;  %v8803_v47 = vld [vmem:[#allocation8 + $0x3c8] sm:$0xff]  }
 0x6ea   :  { %8432 = vmatprep.subr.bf16.mxu1 %v8763_v54  ;;  %v8804_v62 = vld [vmem:[#allocation8 + $0x308] sm:$0xff]  }
 0x6eb   :  { %v8805_v54 = vld [vmem:[#allocation8 + $0x388] sm:$0xff]  }
 0x6ec   :  { %8411 = vmatpush3.bf16.msra.mxu0 %v8764_v38  ;;  %v8806_v38 = vld [vmem:[#allocation8 + $0x340] sm:$0xff]  }
 0x6ed   :  { %8433 = vmatpush3.bf16.msra.mxu1 %v8765_v24  ;;  %8412 = vmatprep.subr.bf16.mxu0 %v8766_v11  ;;  %v8807_v24 = vld [vmem:[#allocation8 + $0x3c0] sm:$0xff]  }
 0x6ee   :  { %8434 = vmatprep.subr.bf16.mxu1 %v8767_v1  ;;  %v8808_v11 = vld [vmem:[#allocation8 + $0x300] sm:$0xff]  }
 0x6ef   :  { %v8809_v1 = vld [vmem:[#allocation8 + $0x380] sm:$0xff]  }
 0x6f0   :  { %8413 = vmatpush3.bf16.msra.mxu0 %v8768_v36  ;;  %v8810_v36 = vld [vmem:[#allocation8 + $0x478] sm:$0xff]  }
 0x6f1   :  { %8435 = vmatpush3.bf16.msra.mxu1 %v8769_v41  ;;  %8414 = vmatprep.subr.bf16.mxu0 %v8770_v55  ;;  %v8811_v41 = vld [vmem:[#allocation8 + $0x4f8] sm:$0xff]  }
 0x6f2   :  { %8436 = vmatprep.subr.bf16.mxu1 %v8771_v58  ;;  %v8812_v55 = vld [vmem:[#allocation8 + $0x438] sm:$0xff]   ;;  %v5309_v58 = vpack.c.bf16 %v14501_v23, %v14501_v23  ;;  %v8817_v23 = vld [vmem:[#allocation8 + $0x4b0] sm:$0xff]  }
 0x6f4   :  { %8415 = vmatpush3.bf16.msra.mxu0 %v8772_v16  ;;  %v8813_v16 = vld [vmem:[#allocation8 + $0x4b8] sm:$0xff]  }
 0x6f5   :  { %8437 = vmatpush3.bf16.msra.mxu1 %v8773_v27  ;;  %8416 = vmatprep.subr.bf16.mxu0 %v8774_v7  ;;  %v5311_v27 = vpack.c.bf16 %v14506_v3, %v14506_v3  ;;  %v8814_v7 = vld [vmem:[#allocation8 + $0x470] sm:$0xff]   ;;  %v8819_v3 = vld [vmem:[#allocation8 + $0x4e8] sm:$0xff]  }
 0x6f6   :  { %8438 = vmatprep.subr.bf16.mxu1 %v8775_v46  ;;  %v5314_v46 = vpack.c.bf16 %v14510_v52, %v14510_v52  ;;  %v8821_v52 = vld [vmem:[#allocation8 + $0x4a8] sm:$0xff]  }
 0x6f8   :  { %8417 = vmatpush3.bf16.msra.mxu0 %v8776_v31  ;;  %v8815_v31 = vld [vmem:[#allocation8 + $0x4f0] sm:$0xff]  }
 0x6f9   :  { %8439 = vmatpush3.bf16.msra.mxu1 %v8777_v25  ;;  %8446 = vmatprep.subr.bf16.mxu0 %v8778_v44  ;;  %v5316_v25 = vpack.c.bf16 %v14515_v19, %v14515_v19  ;;  %v8816_v44 = vld [vmem:[#allocation8 + $0x430] sm:$0xff]   ;;  %v8825_v19 = vld [vmem:[#allocation8 + $0x4a0] sm:$0xff]  }
 0x6fa   :  { %8468 = vmatprep.subr.bf16.mxu1 %v8779_v15  ;;  %v8818_v15 = vld [vmem:[#allocation8 + $0x468] sm:$0xff]  }
 0x6fb   :  { %7577 = vmatmul.mubr.bf16.vlgmr.msra.gmra.mxu0 %v5305_v21  ;;  %v8822_v21 = vld [vmem:[#allocation8 + $0x460] sm:$0xff]  }
 0x6fc   :  { %7617 = vmatmul.mubr.bf16.vlgmr.msra.gmra.mxu1 %v5307_v42  ;;  %8447 = vmatpush3.bf16.msra.mxu0 %v8780_v28  ;;  %v8820_v28 = vld [vmem:[#allocation8 + $0x428] sm:$0xff]   ;;  %v8824_v42 = vld [vmem:[#allocation8 + $0x420] sm:$0xff]  }
 0x6fd   :  { %7656 = vmatprep.mubr.bf16.mxu0 %v5310_v53  ;;  %8469 = vmatpush3.bf16.msra.mxu1 %v8781_v43  ;;  %v8823_v43 = vld [vmem:[#allocation8 + $0x4e0] sm:$0xff]   ;;  %v8827_v53 = vld [vmem:[#allocation8 + $0x4d8] sm:$0xff]  }
 0x6fe   :  { %7696 = vmatprep.mubr.bf16.mxu1 %v5312_v37  ;;  %8448 = vmatprep.subr.bf16.mxu0 %v8782_v50  ;;  %v8826_v50 = vld [vmem:[#allocation8 + $0x458] sm:$0xff]  }
 0x6ff   :  { %8470 = vmatprep.subr.bf16.mxu1 %v8783_v17  ;;  %v8828_v17 = vld [vmem:[#allocation8 + $0x418] sm:$0xff]  }
 0x700   :  { %8449 = vmatpush3.bf16.msra.mxu0 %v8784_v30  ;;  %v8829_v37 = vld [vmem:[#allocation8 + $0x498] sm:$0xff]   ;;  %v8830_v30 = vld [vmem:[#allocation8 + $0x450] sm:$0xff]  }
 0x701   :  { %8471 = vmatpush3.bf16.msra.mxu1 %v8785_v18  ;;  %8450 = vmatprep.subr.bf16.mxu0 %v8786_v20  ;;  %v8831_v18 = vld [vmem:[#allocation8 + $0x4d0] sm:$0xff]  }
 0x702   :  { %8472 = vmatprep.subr.bf16.mxu1 %v8787_v45  ;;  %v8832_v20 = vld [vmem:[#allocation8 + $0x410] sm:$0xff]  }
 0x703   :  { %v8833_v45 = vld [vmem:[#allocation8 + $0x490] sm:$0xff]  }
 0x704   :  { %8451 = vmatpush3.bf16.msra.mxu0 %v8788_v22  ;;  %v8834_v22 = vld [vmem:[#allocation8 + $0x448] sm:$0xff]  }
 0x705   :  { %8473 = vmatpush3.bf16.msra.mxu1 %v8789_v34  ;;  %8452 = vmatprep.subr.bf16.mxu0 %v8790_v48  ;;  %v8835_v34 = vld [vmem:[#allocation8 + $0x4c8] sm:$0xff]  }
 0x706   :  { %8474 = vmatprep.subr.bf16.mxu1 %v8791_v35  ;;  %v8836_v48 = vld [vmem:[#allocation8 + $0x408] sm:$0xff]  }
 0x707   :  { %v8837_v35 = vld [vmem:[#allocation8 + $0x488] sm:$0xff]  }
 0x708   :  { %8453 = vmatpush3.bf16.msra.mxu0 %v8792_v5  ;;  %v8838_v5 = vld [vmem:[#allocation8 + $0x440] sm:$0xff]  }
 0x709   :  { %8475 = vmatpush3.bf16.msra.mxu1 %v8793_v60  ;;  %8454 = vmatprep.subr.bf16.mxu0 %v8794_v63  ;;  %v8839_v60 = vld [vmem:[#allocation8 + $0x4c0] sm:$0xff]  }
 0x70a   :  { %8476 = vmatprep.subr.bf16.mxu1 %v8795_v6  ;;  %v8840_v63 = vld [vmem:[#allocation8 + $0x400] sm:$0xff]  }
 0x70b   :  { %v8841_v6 = vld [vmem:[#allocation8 + $0x480] sm:$0xff]  }
 0x70c   :  { %8455 = vmatpush3.bf16.msra.mxu0 %v8796_v12  ;;  %v8842_v12 = vld [vmem:[#allocation8 + $0x578] sm:$0xff]  }
 0x70d   :  { %8477 = vmatpush3.bf16.msra.mxu1 %v8797_v39  ;;  %8456 = vmatprep.subr.bf16.mxu0 %v8798_v8  ;;  %v8843_v39 = vld [vmem:[#allocation8 + $0x5f8] sm:$0xff]  }
 0x70e   :  { %8478 = vmatprep.subr.bf16.mxu1 %v8799_v57  ;;  %v8844_v8 = vld [vmem:[#allocation8 + $0x538] sm:$0xff]   ;;  %v5313_v57 = vpack.c.bf16 %v14520_v29, %v14520_v29  ;;  %v8849_v29 = vld [vmem:[#allocation8 + $0x5b0] sm:$0xff]  }
 0x710   :  { %8457 = vmatpush3.bf16.msra.mxu0 %v8800_v14  ;;  %v8845_v14 = vld [vmem:[#allocation8 + $0x5b8] sm:$0xff]  }
 0x711   :  { %8479 = vmatpush3.bf16.msra.mxu1 %v8801_v51  ;;  %8458 = vmatprep.subr.bf16.mxu0 %v8802_v4  ;;  %v5315_v51 = vpack.c.bf16 %v14524_v0, %v14524_v0  ;;  %v8846_v4 = vld [vmem:[#allocation8 + $0x570] sm:$0xff]   ;;  %v8851_v0 = vld [vmem:[#allocation8 + $0x5e8] sm:$0xff]  }
 0x712   :  { %8480 = vmatprep.subr.bf16.mxu1 %v8803_v47  ;;  %v5318_v47 = vpack.c.bf16 %v14530_v9, %v14530_v9  ;;  %v8853_v9 = vld [vmem:[#allocation8 + $0x5a8] sm:$0xff]  }
 0x714   :  { %8459 = vmatpush3.bf16.msra.mxu0 %v8804_v62  ;;  %v8847_v62 = vld [vmem:[#allocation8 + $0x5f0] sm:$0xff]  }
 0x715   :  { %8481 = vmatpush3.bf16.msra.mxu1 %v8805_v54  ;;  %8460 = vmatprep.subr.bf16.mxu0 %v8806_v38  ;;  %v5320_v54 = vpack.c.bf16 %v14536_v59, %v14536_v59  ;;  %v8848_v38 = vld [vmem:[#allocation8 + $0x530] sm:$0xff]   ;;  %v8857_v59 = vld [vmem:[#allocation8 + $0x5a0] sm:$0xff]  }
 0x716   :  { %8482 = vmatprep.subr.bf16.mxu1 %v8807_v24  ;;  %v8850_v24 = vld [vmem:[#allocation8 + $0x568] sm:$0xff]  }
 0x718   :  { %8461 = vmatpush3.bf16.msra.mxu0 %v8808_v11  ;;  %v8852_v11 = vld [vmem:[#allocation8 + $0x528] sm:$0xff]  }
 0x719   :  { %8483 = vmatpush3.bf16.msra.mxu1 %v8809_v1  ;;  %8490 = vmatprep.subr.bf16.mxu0 %v8810_v36  ;;  %v8854_v1 = vld [vmem:[#allocation8 + $0x560] sm:$0xff]  }
 0x71a   :  { %8512 = vmatprep.subr.bf16.mxu1 %v8811_v41  ;;  %v8855_v36 = vld [vmem:[#allocation8 + $0x5e0] sm:$0xff]  }
 0x71b   :  { %7657 = vmatmul.mubr.bf16.vlgmr.msra.gmra.mxu0 %v5309_v58  ;;  %v8856_v41 = vld [vmem:[#allocation8 + $0x520] sm:$0xff]   ;;  %v8859_v58 = vld [vmem:[#allocation8 + $0x5d8] sm:$0xff]  }
 0x71c   :  { %7697 = vmatmul.mubr.bf16.vlgmr.msra.gmra.mxu1 %v5311_v27  ;;  %8491 = vmatpush3.bf16.msra.mxu0 %v8812_v55  ;;  %v8858_v55 = vld [vmem:[#allocation8 + $0x558] sm:$0xff]  }
 0x71d   :  { %7736 = vmatprep.mubr.bf16.mxu0 %v5314_v46  ;;  %8513 = vmatpush3.bf16.msra.mxu1 %v8813_v16  ;;  %v8860_v16 = vld [vmem:[#allocation8 + $0x518] sm:$0xff]   ;;  %v8863_v46 = vld [vmem:[#allocation8 + $0x5d0] sm:$0xff]  }
 0x71e   :  { %7776 = vmatprep.mubr.bf16.mxu1 %v5316_v25  ;;  %8492 = vmatprep.subr.bf16.mxu0 %v8814_v7  ;;  %v8861_v27 = vld [vmem:[#allocation8 + $0x598] sm:$0xff]   ;;  %v8862_v7 = vld [vmem:[#allocation8 + $0x550] sm:$0xff]  }
 0x71f   :  { %8514 = vmatprep.subr.bf16.mxu1 %v8815_v31  ;;  %v8864_v31 = vld [vmem:[#allocation8 + $0x510] sm:$0xff]  }
 0x720   :  { %8493 = vmatpush3.bf16.msra.mxu0 %v8816_v44  ;;  %v8865_v25 = vld [vmem:[#allocation8 + $0x590] sm:$0xff]   ;;  %v8866_v44 = vld [vmem:[#allocation8 + $0x548] sm:$0xff]  }
 0x721   :  { %8515 = vmatpush3.bf16.msra.mxu1 %v8817_v23  ;;  %8494 = vmatprep.subr.bf16.mxu0 %v8818_v15  ;;  %v8867_v23 = vld [vmem:[#allocation8 + $0x5c8] sm:$0xff]  }
 0x722   :  { %8516 = vmatprep.subr.bf16.mxu1 %v8819_v3  ;;  %v8868_v15 = vld [vmem:[#allocation8 + $0x508] sm:$0xff]  }
 0x723   :  { %v8869_v3 = vld [vmem:[#allocation8 + $0x588] sm:$0xff]  }
 0x724   :  { %8495 = vmatpush3.bf16.msra.mxu0 %v8820_v28  ;;  %v8870_v28 = vld [vmem:[#allocation8 + $0x540] sm:$0xff]  }
 0x725   :  { %8517 = vmatpush3.bf16.msra.mxu1 %v8821_v52  ;;  %8496 = vmatprep.subr.bf16.mxu0 %v8822_v21  ;;  %v8871_v52 = vld [vmem:[#allocation8 + $0x5c0] sm:$0xff]  }
 0x726   :  { %8518 = vmatprep.subr.bf16.mxu1 %v8823_v43  ;;  %v8872_v21 = vld [vmem:[#allocation8 + $0x500] sm:$0xff]  }
 0x727   :  { %v8873_v43 = vld [vmem:[#allocation8 + $0x580] sm:$0xff]  }
 0x728   :  { %8497 = vmatpush3.bf16.msra.mxu0 %v8824_v42  ;;  %v8874_v42 = vld [vmem:[#allocation8 + $0x678] sm:$0xff]  }
 0x729   :  { %8519 = vmatpush3.bf16.msra.mxu1 %v8825_v19  ;;  %8498 = vmatprep.subr.bf16.mxu0 %v8826_v50  ;;  %v8875_v19 = vld [vmem:[#allocation8 + $0x6f8] sm:$0xff]  }
 0x72a   :  { %8520 = vmatprep.subr.bf16.mxu1 %v8827_v53  ;;  %v8876_v50 = vld [vmem:[#allocation8 + $0x638] sm:$0xff]   ;;  %v5317_v53 = vpack.c.bf16 %v14541_v40, %v14541_v40  ;;  %v8881_v40 = vld [vmem:[#allocation8 + $0x6b0] sm:$0xff]  }
 0x72c   :  { %8499 = vmatpush3.bf16.msra.mxu0 %v8828_v17  ;;  %v8877_v17 = vld [vmem:[#allocation8 + $0x6b8] sm:$0xff]  }
 0x72d   :  { %8521 = vmatpush3.bf16.msra.mxu1 %v8829_v37  ;;  %8500 = vmatprep.subr.bf16.mxu0 %v8830_v30  ;;  %v5319_v37 = vpack.c.bf16 %v14546_v56, %v14546_v56  ;;  %v8878_v30 = vld [vmem:[#allocation8 + $0x670] sm:$0xff]   ;;  %v8883_v56 = vld [vmem:[#allocation8 + $0x6e8] sm:$0xff]  }
 0x72e   :  { %8522 = vmatprep.subr.bf16.mxu1 %v8831_v18  ;;  %v5322_v18 = vpack.c.bf16 %v14551_v26, %v14551_v26  ;;  %v8885_v26 = vld [vmem:[#allocation8 + $0x6a8] sm:$0xff]  }
 0x730   :  { %8501 = vmatpush3.bf16.msra.mxu0 %v8832_v20  ;;  %v8879_v20 = vld [vmem:[#allocation8 + $0x6f0] sm:$0xff]  }
 0x731   :  { %8523 = vmatpush3.bf16.msra.mxu1 %v8833_v45  ;;  %8502 = vmatprep.subr.bf16.mxu0 %v8834_v22  ;;  %v5324_v45 = vpack.c.bf16 %v14556_v10, %v14556_v10  ;;  %v8880_v22 = vld [vmem:[#allocation8 + $0x630] sm:$0xff]   ;;  %v8889_v10 = vld [vmem:[#allocation8 + $0x6a0] sm:$0xff]  }
 0x732   :  { %8524 = vmatprep.subr.bf16.mxu1 %v8835_v34  ;;  %v8882_v34 = vld [vmem:[#allocation8 + $0x668] sm:$0xff]  }
 0x734   :  { %8503 = vmatpush3.bf16.msra.mxu0 %v8836_v48  ;;  %v8884_v48 = vld [vmem:[#allocation8 + $0x628] sm:$0xff]  }
 0x735   :  { %8525 = vmatpush3.bf16.msra.mxu1 %v8837_v35  ;;  %8504 = vmatprep.subr.bf16.mxu0 %v8838_v5  ;;  %v8886_v35 = vld [vmem:[#allocation8 + $0x660] sm:$0xff]  }
 0x736   :  { %8526 = vmatprep.subr.bf16.mxu1 %v8839_v60  ;;  %v8887_v5 = vld [vmem:[#allocation8 + $0x6e0] sm:$0xff]  }
 0x737   :  { %v8888_v60 = vld [vmem:[#allocation8 + $0x620] sm:$0xff]  }
 0x738   :  { %8505 = vmatpush3.bf16.msra.mxu0 %v8840_v63  ;;  %v8890_v63 = vld [vmem:[#allocation8 + $0x658] sm:$0xff]  }
 0x739   :  { %8527 = vmatpush3.bf16.msra.mxu1 %v8841_v6  ;;  %8534 = vmatprep.subr.bf16.mxu0 %v8842_v12  ;;  %v8891_v6 = vld [vmem:[#allocation8 + $0x6d8] sm:$0xff]  }
 0x73a   :  { %8556 = vmatprep.subr.bf16.mxu1 %v8843_v39  ;;  %v8892_v12 = vld [vmem:[#allocation8 + $0x618] sm:$0xff]  }
 0x73b   :  { %7737 = vmatmul.mubr.bf16.vlgmr.msra.gmra.mxu0 %v5313_v57  ;;  %v8893_v39 = vld [vmem:[#allocation8 + $0x698] sm:$0xff]   ;;  %v8895_v57 = vld [vmem:[#allocation8 + $0x6d0] sm:$0xff]  }
 0x73c   :  { %7777 = vmatmul.mubr.bf16.vlgmr.msra.gmra.mxu1 %v5315_v51  ;;  %8535 = vmatpush3.bf16.msra.mxu0 %v8844_v8  ;;  %v8894_v8 = vld [vmem:[#allocation8 + $0x650] sm:$0xff]  }
 0x73d   :  { %7816 = vmatprep.mubr.bf16.mxu0 %v5318_v47  ;;  %8557 = vmatpush3.bf16.msra.mxu1 %v8845_v14  ;;  %v8896_v14 = vld [vmem:[#allocation8 + $0x610] sm:$0xff]   ;;  %v8899_v47 = vld [vmem:[#allocation8 + $0x6c8] sm:$0xff]  }
 0x73e   :  { %7856 = vmatprep.mubr.bf16.mxu1 %v5320_v54  ;;  %8536 = vmatprep.subr.bf16.mxu0 %v8846_v4  ;;  %v8897_v51 = vld [vmem:[#allocation8 + $0x690] sm:$0xff]   ;;  %v8898_v4 = vld [vmem:[#allocation8 + $0x648] sm:$0xff]  }
 0x73f   :  { %8558 = vmatprep.subr.bf16.mxu1 %v8847_v62  ;;  %v8900_v62 = vld [vmem:[#allocation8 + $0x608] sm:$0xff]  }
 0x740   :  { %8537 = vmatpush3.bf16.msra.mxu0 %v8848_v38  ;;  %v8901_v54 = vld [vmem:[#allocation8 + $0x688] sm:$0xff]   ;;  %v8902_v38 = vld [vmem:[#allocation8 + $0x640] sm:$0xff]  }
 0x741   :  { %8559 = vmatpush3.bf16.msra.mxu1 %v8849_v29  ;;  %8538 = vmatprep.subr.bf16.mxu0 %v8850_v24  ;;  %v8903_v29 = vld [vmem:[#allocation8 + $0x6c0] sm:$0xff]  }
 0x742   :  { %8560 = vmatprep.subr.bf16.mxu1 %v8851_v0  ;;  %v8904_v24 = vld [vmem:[#allocation8 + $0x600] sm:$0xff]  }
 0x743   :  { %v8905_v0 = vld [vmem:[#allocation8 + $0x680] sm:$0xff]  }
 0x744   :  { %8539 = vmatpush3.bf16.msra.mxu0 %v8852_v11  ;;  %v8906_v11 = vld [vmem:[#allocation8 + $0x778] sm:$0xff]  }
 0x745   :  { %8561 = vmatpush3.bf16.msra.mxu1 %v8853_v9  ;;  %8540 = vmatprep.subr.bf16.mxu0 %v8854_v1  ;;  %v8907_v9 = vld [vmem:[#allocation8 + $0x7f8] sm:$0xff]  }
 0x746   :  { %8562 = vmatprep.subr.bf16.mxu1 %v8855_v36  ;;  %v8908_v1 = vld [vmem:[#allocation8 + $0x738] sm:$0xff]   ;;  %v5321_v36 = vpack.c.bf16 %v14561_v32, %v14561_v32  ;;  %v8912_v32 = vld [vmem:[#allocation8 + $0x730] sm:$0xff]  }
 0x748   :  { %8541 = vmatpush3.bf16.msra.mxu0 %v8856_v41  ;;  %v8909_v41 = vld [vmem:[#allocation8 + $0x7b8] sm:$0xff]  }
 0x749   :  { %8563 = vmatpush3.bf16.msra.mxu1 %v8857_v59  ;;  %8542 = vmatprep.subr.bf16.mxu0 %v8858_v55  ;;  %v5323_v59 = vpack.c.bf16 %v14566_v33, %v14566_v33  ;;  %v8910_v55 = vld [vmem:[#allocation8 + $0x770] sm:$0xff]   ;;  %v8057_v33 = vld [vmem:[%s14655_s6] ss:$0 sm:$0xff]  ;;  %s9062_s6 = smov [#allocation10]  }
 0x74a   :  { %8564 = vmatprep.subr.bf16.mxu1 %v8859_v58  ;;  %s8040_s0 = sshll.u32 %s9062_s6, 4  ;;  %s8041_s0 = int_to_ptr.vmem [resolvable:$true] %s8040_s0 }
 0x74b   :  { %s9004_s5 = scalar_lea.vmem %s8041_s0, 1024  ;;  %p9009_p2 = scmp.lt.s32.totalorder %s8041_s0, %s8041_s0 }
 0x74c   :  { %8543 = vmatpush3.bf16.msra.mxu0 %v8860_v16  ;;  %p9005_p1 = scmp.ne.s32.totalorder %s8041_s0, %s9004_s5  ;;  %p9010_p3 = scmp.lt.s32.totalorder %s9004_s5, %s9004_s5 }
 0x74d   :  { %8565 = vmatpush3.bf16.msra.mxu1 %v8861_v27  ;;  %8544 = vmatprep.subr.bf16.mxu0 %v8862_v7  ;;  %v5326_v27 = vpack.c.bf16 %v14571_v2, %v14571_v2  ;;  %v8911_v7 = vld [vmem:[#allocation8 + $0x7f0] sm:$0xff]  }
 0x74e   :  { %8566 = vmatprep.subr.bf16.mxu1 %v8863_v46  ;;  %v5328_v46 = vpack.c.bf16 %v14576_v61, %v14576_v61  ;;  %p9011_p4 = por %p9010_p3, %p9009_p2 }
 0x750   :  { %8545 = vmatpush3.bf16.msra.mxu0 %v8864_v31  ;;  %p9012_p5 = pnand %p9011_p4, %p9005_p1 }
 0x751   :  { %8567 = vmatpush3.bf16.msra.mxu1 %v8865_v25  ;;  %8546 = vmatprep.subr.bf16.mxu0 %v8866_v44  ;;  %v8913_v44 = vld [vmem:[#allocation8 + $0x7b0] sm:$0xff]  }
 0x752   :  { %8568 = vmatprep.subr.bf16.mxu1 %v8867_v23  ;;  %v8914_v23 = vld [vmem:[#allocation8 + $0x768] sm:$0xff]  }
 0x754   :  { %8547 = vmatpush3.bf16.msra.mxu0 %v8868_v15 }
 0x755   :  { %8569 = vmatpush3.bf16.msra.mxu1 %v8869_v3  ;;  %8548 = vmatprep.subr.bf16.mxu0 %v8870_v28  ;;  %v8915_v3 = vld [vmem:[#allocation8 + $0x7e8] sm:$0xff]  }
 0x756   :  { %8570 = vmatprep.subr.bf16.mxu1 %v8871_v52 }
 0x758   :  { %8549 = vmatpush3.bf16.msra.mxu0 %v8872_v21  ;;  %v8916_v21 = vld [vmem:[#allocation8 + $0x728] sm:$0xff]  }
 0x759   :  { %8571 = vmatpush3.bf16.msra.mxu1 %v8873_v43  ;;  %8578 = vmatprep.subr.bf16.mxu0 %v8874_v42 }
 0x75a   :  { %8600 = vmatprep.subr.bf16.mxu1 %v8875_v19  ;;  %v8917_v19 = vld [vmem:[#allocation8 + $0x7a8] sm:$0xff]  }
 0x75b   :  { %7817 = vmatmul.mubr.bf16.vlgmr.msra.gmra.mxu0 %v5317_v53 }
 0x75c   :  { %7857 = vmatmul.mubr.bf16.vlgmr.msra.gmra.mxu1 %v5319_v37  ;;  %8579 = vmatpush3.bf16.msra.mxu0 %v8876_v50  ;;  %v8918_v50 = vld [vmem:[#allocation8 + $0x760] sm:$0xff]  }
 0x75d   :  { %7896 = vmatprep.mubr.bf16.mxu0 %v5322_v18  ;;  %8601 = vmatpush3.bf16.msra.mxu1 %v8877_v17  ;;  %v8919_v17 = vld [vmem:[#allocation8 + $0x7e0] sm:$0xff]   ;;  %v8922_v18 = vld [vmem:[#allocation8 + $0x758] sm:$0xff]  }
 0x75e   :  { %7936 = vmatprep.mubr.bf16.mxu1 %v5324_v45  ;;  %8580 = vmatprep.subr.bf16.mxu0 %v8878_v30  ;;  %v8920_v37 = vld [vmem:[#allocation8 + $0x720] sm:$0xff]   ;;  %v8924_v45 = vld [vmem:[#allocation8 + $0x718] sm:$0xff]  }
 0x75f   :  { %8602 = vmatprep.subr.bf16.mxu1 %v8879_v20  ;;  %v8921_v30 = vld [vmem:[#allocation8 + $0x7a0] sm:$0xff]   ;;  %v8923_v20 = vld [vmem:[#allocation8 + $0x7d8] sm:$0xff]  }
 0x760   :  { %8581 = vmatpush3.bf16.msra.mxu0 %v8880_v22  ;;  %v8925_v22 = vld [vmem:[#allocation8 + $0x798] sm:$0xff]  }
 0x761   :  { %8603 = vmatpush3.bf16.msra.mxu1 %v8881_v40  ;;  %8582 = vmatprep.subr.bf16.mxu0 %v8882_v34  ;;  %v8926_v40 = vld [vmem:[#allocation8 + $0x750] sm:$0xff]  }
 0x762   :  { %8604 = vmatprep.subr.bf16.mxu1 %v8883_v56  ;;  %v8927_v34 = vld [vmem:[#allocation8 + $0x7d0] sm:$0xff]  }
 0x763   :  { %v8928_v56 = vld [vmem:[#allocation8 + $0x710] sm:$0xff]  }
 0x764   :  { %8583 = vmatpush3.bf16.msra.mxu0 %v8884_v48  ;;  %v8929_v48 = vld [vmem:[#allocation8 + $0x790] sm:$0xff]  }
 0x765   :  { %8605 = vmatpush3.bf16.msra.mxu1 %v8885_v26  ;;  %8584 = vmatprep.subr.bf16.mxu0 %v8886_v35  ;;  %v8930_v26 = vld [vmem:[#allocation8 + $0x748] sm:$0xff]  }
 0x766   :  { %8606 = vmatprep.subr.bf16.mxu1 %v8887_v5  ;;  %v8931_v35 = vld [vmem:[#allocation8 + $0x7c8] sm:$0xff]  }
 0x767   :  { %v8932_v5 = vld [vmem:[#allocation8 + $0x708] sm:$0xff]  }
 0x768   :  { %8585 = vmatpush3.bf16.msra.mxu0 %v8888_v60  ;;  %v8933_v60 = vld [vmem:[#allocation8 + $0x788] sm:$0xff]  }
 0x769   :  { %8607 = vmatpush3.bf16.msra.mxu1 %v8889_v10  ;;  %8586 = vmatprep.subr.bf16.mxu0 %v8890_v63  ;;  %v8934_v10 = vld [vmem:[#allocation8 + $0x740] sm:$0xff]  }
 0x76a   :  { %8608 = vmatprep.subr.bf16.mxu1 %v8891_v6  ;;  %v8935_v63 = vld [vmem:[#allocation8 + $0x7c0] sm:$0xff]  }
 0x76b   :  { %v8936_v6 = vld [vmem:[#allocation8 + $0x700] sm:$0xff]  }
 0x76c   :  { %8587 = vmatpush3.bf16.msra.mxu0 %v8892_v12  ;;  %v8937_v12 = vld [vmem:[#allocation8 + $0x780] sm:$0xff]  }
 0x76d   :  { %8609 = vmatpush3.bf16.msra.mxu1 %v8893_v39  ;;  %8588 = vmatprep.subr.bf16.mxu0 %v8894_v8  ;;  %v5325_v39 = vpack.c.bf16 %v14580_v49, %v14580_v49  ;;  %v5327_v8 = vpack.c.bf16 %v14583_v13, %v14583_v13 }
 0x76e   :  { %8610 = vmatprep.subr.bf16.mxu1 %v8895_v57 }
 0x770   :  { %8589 = vmatpush3.bf16.msra.mxu0 %v8896_v14 }
 0x771   :  { %8611 = vmatpush3.bf16.msra.mxu1 %v8897_v51  ;;  %8590 = vmatprep.subr.bf16.mxu0 %v8898_v4 }
 0x772   :  { %8612 = vmatprep.subr.bf16.mxu1 %v8899_v47 }
 0x774   :  { %8591 = vmatpush3.bf16.msra.mxu0 %v8900_v62 }
 0x775   :  { %8613 = vmatpush3.bf16.msra.mxu1 %v8901_v54  ;;  %8592 = vmatprep.subr.bf16.mxu0 %v8902_v38 }
 0x776   :  { %8614 = vmatprep.subr.bf16.mxu1 %v8903_v29 }
 0x778   :  { %8593 = vmatpush3.bf16.msra.mxu0 %v8904_v24 }
 0x779   :  { %8615 = vmatpush3.bf16.msra.mxu1 %v8905_v0  ;;  %8622 = vmatprep.subr.bf16.mxu0 %v8906_v11 }
 0x77a   :  { %8644 = vmatprep.subr.bf16.mxu1 %v8907_v9 }
 0x77b   :  { %7897 = vmatmul.mubr.bf16.vlgmr.msra.gmra.mxu0 %v5321_v36  ;;  %v8330_v58 = vpop.f32.mrf.mxu0  ;;  %v8352_v16 = vpop.f32.mrf.mxu1 }
 0x77c   :  { %7937 = vmatmul.mubr.bf16.vlgmr.msra.gmra.mxu1 %v5323_v59  ;;  %8623 = vmatpush3.bf16.msra.mxu0 %v8908_v1 }
 0x77d   :  { %7976 = vmatprep.mubr.bf16.mxu0 %v5326_v27  ;;  %8645 = vmatpush3.bf16.msra.mxu1 %v8909_v41  ;;  %v8331_v31 = vpop.f32.mrf.mxu0  ;;  %v8353_v25 = vpop.f32.mrf.mxu1 }
 0x77e   :  { %8016 = vmatprep.mubr.bf16.mxu1 %v5328_v46  ;;  %v8332_v15 = vadd.f32 %v8331_v31, %v8330_v58  ;;  %v8354_v2 = vadd.f32 %v8353_v25, %v8352_v16  ;;  %8624 = vmatprep.subr.bf16.mxu0 %v8910_v55 }
 0x77f   :  { %8646 = vmatprep.subr.bf16.mxu1 %v8911_v7  ;;  %v8333_v28 = vpop.f32.mrf.mxu0  ;;  %v8355_v52 = vpop.f32.mrf.mxu1 }
 0x780   :  { %v7419_v61 = vadd.f32 %v8332_v15, %v8057_v33  ;;  %8625 = vmatpush3.bf16.msra.mxu0 %v8912_v32 }
 0x781   :  { %8647 = vmatpush3.bf16.msra.mxu1 %v8913_v44  ;;  %v8334_v43 = vpop.f32.mrf.mxu0  ;;  %v8356_v42 = vpop.f32.mrf.mxu1  ;;  %8626 = vmatprep.subr.bf16.mxu0 %v8914_v23 }
 0x782   :  { %v7459_v53 = vadd.f32 %v8354_v2, %v7419_v61  ;;  %8648 = vmatprep.subr.bf16.mxu1 %v8915_v3 }
 0x784   :  { %8627 = vmatpush3.bf16.msra.mxu0 %v8916_v21 }
 0x785   :  { %8649 = vmatpush3.bf16.msra.mxu1 %v8917_v19  ;;  %8628 = vmatprep.subr.bf16.mxu0 %v8918_v50 }
 0x786   :  { %8650 = vmatprep.subr.bf16.mxu1 %v8919_v17 }
 0x788   :  { %8629 = vmatpush3.bf16.msra.mxu0 %v8920_v37 }
 0x789   :  { %8651 = vmatpush3.bf16.msra.mxu1 %v8921_v30  ;;  %8630 = vmatprep.subr.bf16.mxu0 %v8922_v18 }
 0x78a   :  { %8652 = vmatprep.subr.bf16.mxu1 %v8923_v20 }
 0x78c   :  { %8631 = vmatpush3.bf16.msra.mxu0 %v8924_v45 }
 0x78d   :  { %8653 = vmatpush3.bf16.msra.mxu1 %v8925_v22  ;;  %8632 = vmatprep.subr.bf16.mxu0 %v8926_v40 }
 0x78e   :  { %8654 = vmatprep.subr.bf16.mxu1 %v8927_v34 }
 0x790   :  { %8633 = vmatpush3.bf16.msra.mxu0 %v8928_v56 }
 0x791   :  { %8655 = vmatpush3.bf16.msra.mxu1 %v8929_v48  ;;  %8634 = vmatprep.subr.bf16.mxu0 %v8930_v26 }
 0x792   :  { %8656 = vmatprep.subr.bf16.mxu1 %v8931_v35 }
 0x794   :  { %8635 = vmatpush3.bf16.msra.mxu0 %v8932_v5 }
 0x795   :  { %8657 = vmatpush3.bf16.msra.mxu1 %v8933_v60  ;;  %8636 = vmatprep.subr.bf16.mxu0 %v8934_v10 }
 0x796   :  { %8658 = vmatprep.subr.bf16.mxu1 %v8935_v63 }
 0x798   :  { %8637 = vmatpush3.bf16.msra.mxu0 %v8936_v6 }
 0x799   :  { %8659 = vmatpush3.bf16.msra.mxu1 %v8937_v12 }
 0x79b   :  { %v8374_v57 = vpop.f32.mrf.mxu0  ;;  %v8396_v14 = vpop.f32.mrf.mxu1  ;;  %7977 = vmatmul.mubr.bf16.vlgmr.msra.gmra.mxu0 %v5325_v39 }
 0x79c   :  { %8017 = vmatmul.mubr.bf16.vlgmr.msra.gmra.mxu1 %v5327_v8 }
 0x79d   :  { %v8375_v51 = vpop.f32.mrf.mxu0  ;;  %v8397_v4 = vpop.f32.mrf.mxu1 }
 0x79e   :  { %v8376_v47 = vadd.f32 %v8375_v51, %v8374_v57  ;;  %v8398_v62 = vadd.f32 %v8397_v4, %v8396_v14 }
 0x79f   :  { %v8377_v54 = vpop.f32.mrf.mxu0  ;;  %v8399_v38 = vpop.f32.mrf.mxu1 }
 0x7a0   :  { %v7499_v29 = vadd.f32 %v8376_v47, %v7459_v53 }
 0x7a1   :  { %v8378_v24 = vpop.f32.mrf.mxu0  ;;  %v8400_v0 = vpop.f32.mrf.mxu1 }
 0x7a2   :  { %v7539_v11 = vadd.f32 %v8398_v62, %v7499_v29 }
 0x7bb   :  { %v8418_v9 = vpop.f32.mrf.mxu0 }
 0x7bc   :  { %v8440_v1 = vpop.f32.mrf.mxu1 }
 0x7bd   :  { %v8419_v49 = vpop.f32.mrf.mxu0 }
 0x7be   :  { %v8420_v36 = vadd.f32 %v8419_v49, %v8418_v9  ;;  %v8441_v41 = vpop.f32.mrf.mxu1 }
 0x7bf   :  { %v8442_v13 = vadd.f32 %v8441_v41, %v8440_v1  ;;  %v8421_v59 = vpop.f32.mrf.mxu0 }
 0x7c0   :  { %v7579_v55 = vadd.f32 %v8420_v36, %v7539_v11  ;;  %v8443_v58 = vpop.f32.mrf.mxu1 }
 0x7c1   :  { %v8422_v16 = vpop.f32.mrf.mxu0 }
 0x7c2   :  { %v7619_v27 = vadd.f32 %v8442_v13, %v7579_v55  ;;  %v8444_v7 = vpop.f32.mrf.mxu1 }
 0x7db   :  { %v8462_v46 = vpop.f32.mrf.mxu0 }
 0x7dc   :  { %v8484_v32 = vpop.f32.mrf.mxu1 }
 0x7dd   :  { %v8463_v33 = vpop.f32.mrf.mxu0 }
 0x7de   :  { %v8464_v31 = vadd.f32 %v8463_v33, %v8462_v46  ;;  %v8485_v25 = vpop.f32.mrf.mxu1 }
 0x7df   :  { %v8486_v44 = vadd.f32 %v8485_v25, %v8484_v32  ;;  %v8465_v23 = vpop.f32.mrf.mxu0 }
 0x7e0   :  { %v7659_v15 = vadd.f32 %v8464_v31, %v7619_v27  ;;  %v8487_v2 = vpop.f32.mrf.mxu1 }
 0x7e1   :  { %v8466_v3 = vpop.f32.mrf.mxu0 }
 0x7e2   :  { %v7699_v28 = vadd.f32 %v8486_v44, %v7659_v15  ;;  %v8488_v52 = vpop.f32.mrf.mxu1 }
 0x7e3   :  { %9015 = shalt.err (!%p9012_p5)
}
 0x7e4   :  { %8046 = dma.vmem_to_hbm [thread:$0]  %s8041_s0, 1024, %s14658_s9, [#allocation11], %s9056_s19, %s9056_s19, %s9057_s20  }
 0x7e5   :  { %s9063_s9 = smov [#allocation9]  }
 0x7e6   :  { %s8031_s19 = sshll.u32 %s9063_s9, 4  ;;  %s8032_s19 = int_to_ptr.vmem [resolvable:$true] %s8031_s19 }
 0x7e7   :  { %s9024_s20 = scalar_lea.vmem %s8032_s19, 32  ;;  %p9029_p7 = scmp.lt.s32.totalorder %s8032_s19, %s8032_s19 }
 0x7e8   :  { %p9025_p6 = scmp.ne.s32.totalorder %s8032_s19, %s9024_s20  ;;  %p9030_p8 = scmp.lt.s32.totalorder %s9024_s20, %s9024_s20 }
 0x7ea   :  { %p9031_p9 = por %p9030_p8, %p9029_p7 }
 0x7ec   :  { %p9032_p10 = pnand %p9031_p9, %p9025_p6 }
 0x7fb   :  { %v8506_v61 = vpop.f32.mrf.mxu0 }
 0x7fc   :  { %v8528_v21 = vpop.f32.mrf.mxu1 }
 0x7fd   :  { %v8507_v43 = vpop.f32.mrf.mxu0 }
 0x7fe   :  { %v8508_v42 = vadd.f32 %v8507_v43, %v8506_v61  ;;  %v8529_v19 = vpop.f32.mrf.mxu1 }
 0x7ff   :  { %v8530_v50 = vadd.f32 %v8529_v19, %v8528_v21  ;;  %v8509_v53 = vpop.f32.mrf.mxu0 }
 0x800   :  { %v7739_v17 = vadd.f32 %v8508_v42, %v7699_v28  ;;  %v8531_v37 = vpop.f32.mrf.mxu1 }
 0x801   :  { %v8510_v30 = vpop.f32.mrf.mxu0 }
 0x802   :  { %v7779_v18 = vadd.f32 %v8530_v50, %v7739_v17  ;;  %v8532_v20 = vpop.f32.mrf.mxu1 }
 0x81b   :  { %v8550_v45 = vpop.f32.mrf.mxu0 }
 0x81c   :  { %v8572_v22 = vpop.f32.mrf.mxu1 }
 0x81d   :  { %v8551_v40 = vpop.f32.mrf.mxu0 }
 0x81e   :  { %v8573_v34 = vpop.f32.mrf.mxu1  ;;  %v8552_v57 = vadd.f32 %v8551_v40, %v8550_v45 }
 0x81f   :  { %v8553_v56 = vpop.f32.mrf.mxu0  ;;  %v8574_v51 = vadd.f32 %v8573_v34, %v8572_v22 }
 0x820   :  { %v8575_v48 = vpop.f32.mrf.mxu1  ;;  %v7819_v14 = vadd.f32 %v8552_v57, %v7779_v18 }
 0x821   :  { %v8554_v26 = vpop.f32.mrf.mxu0 }
 0x822   :  { %v8576_v35 = vpop.f32.mrf.mxu1  ;;  %v7859_v47 = vadd.f32 %v8574_v51, %v7819_v14 }
 0x83b   :  { %v8594_v5 = vpop.f32.mrf.mxu0 }
 0x83c   :  { %v8616_v60 = vpop.f32.mrf.mxu1 }
 0x83d   :  { %v8595_v10 = vpop.f32.mrf.mxu0 }
 0x83e   :  { %v8617_v63 = vpop.f32.mrf.mxu1  ;;  %v8596_v4 = vadd.f32 %v8595_v10, %v8594_v5 }
 0x83f   :  { %v8597_v6 = vpop.f32.mrf.mxu0  ;;  %v8618_v38 = vadd.f32 %v8617_v63, %v8616_v60 }
 0x840   :  { %v8619_v12 = vpop.f32.mrf.mxu1  ;;  %v7899_v62 = vadd.f32 %v8596_v4, %v7859_v47 }
 0x841   :  { %v8598_v39 = vpop.f32.mrf.mxu0 }
 0x842   :  { %v8620_v8 = vpop.f32.mrf.mxu1  ;;  %v7939_v0 = vadd.f32 %v8618_v38, %v7899_v62 }
 0x85b   :  { %v8638_v54 = vpop.f32.mrf.mxu0 }
 0x85c   :  { %v8660_v29 = vpop.f32.mrf.mxu1 }
 0x85d   :  { %v8639_v24 = vpop.f32.mrf.mxu0 }
 0x85e   :  { %v8640_v11 = vadd.f32 %v8639_v24, %v8638_v54  ;;  %v8661_v9 = vpop.f32.mrf.mxu1 }
 0x85f   :  { %v8641_v1 = vpop.f32.mrf.mxu0  ;;  %v8662_v36 = vadd.f32 %v8661_v9, %v8660_v29 }
 0x860   :  { %v7979_v49 = vadd.f32 %v8640_v11, %v7939_v0  ;;  %v8663_v41 = vpop.f32.mrf.mxu1 }
 0x861   :  { %v8642_v13 = vpop.f32.mrf.mxu0 }
 0x862   :  { %v8019_v59 = vadd.f32 %v8662_v36, %v7979_v49  ;;  %v8664_v55 = vpop.f32.mrf.mxu1 }
 0x864   :  { %8024 = vst [vmem:[#allocation9] sm:$0x3] %v8019_v59 }
 0x865   :  { %9035 = shalt.err (!%p9032_p10)
}
 0x866   :  { %8034 = dma.vmem_to_hbm [thread:$0]  %s8032_s19, 32, %s14657_s8, [#allocation5]  }
 0x867   :  { %9048 = dma.done.wait [#allocation5], 32  }
 0x868   :  { %9049 = vsyncadd [#allocation5], 4294967264 }
 0x869   :  { %9050 = dma.done.wait [#allocation11], 1024  }
 0x86a   :  { %9051 = vsyncadd [#allocation11], 4294966272 }
 0x86b   :  { %8053 = vsyncpa [#allocation4], 1 }
 0x86c   :  { %8054 = vsyncpa [#allocation7], 1 }
 0x86d   :  { %8055 = vsyncpa [#allocation5], 1 }
 0x86e   :  { %8056 = vsyncpa [#allocation11], 1 }

</bundles_post_ra>
